<compile_context>
chip_gen: v5e
topology: v5e:2x2
jax: 0.10.0
libtpu: 0.0.40
codegen_flags: <defaults>
</compile_context>

<pallas_src>
import math

import numpy as np

import jax
import jax.numpy as jnp
from jax.experimental import pallas as pl
from jax.experimental.pallas import tpu as pltpu

NHEAD = 4
LN_EPS = 1e-5
NUM_ENC_LAYERS = 2
LANE = 128
BLOCKS_PER_LAYER = 6    # Wq Wk Wv Wout W1 W2 -> one padded (128,128) block each
ROWS_PER_LAYER = 10     # bq bk bv bo ln1w ln1b b1 b2 ln2w ln2b
PARAMS_PER_LAYER = 12   # torch-layout tensors per encoder layer


def _round_up(n, m):
    return (n + m - 1) // m * m


def _make_kernel(S, E, O, block_b):
    hd = E // NHEAD
    scale = 1.0 / math.sqrt(hd)
    M = block_b * S
    Opad = _round_up(O, LANE)
    fc_blk = NUM_ENC_LAYERS * BLOCKS_PER_LAYER
    fc_row = NUM_ENC_LAYERS * ROWS_PER_LAYER

    def layer_norm(x, w, b, cmask):
        # x: (M, 128) with the real features in the first E lanes, zeros after.
        mu = jnp.sum(x, axis=-1, keepdims=True) * (1.0 / E)
        xc = (x - mu) * cmask                                   # re-zero padding
        var = jnp.sum(xc * xc, axis=-1, keepdims=True) * (1.0 / E)
        return xc * jax.lax.rsqrt(var + LN_EPS) * w + b         # w,b zero-padded

    def kernel(x_ref, w_ref, b_ref, out_ref):
        # ---- lane-index constants (hoisted, built once per invocation) ----
        col2 = jax.lax.broadcasted_iota(jnp.int32, (1, LANE), 1)
        cmask = (col2 < E).astype(jnp.float32)                          # (1,128)
        col3 = jax.lax.broadcasted_iota(jnp.int32, (1, 1, LANE), 2)
        hmask = [((col3 >= h * hd) & (col3 < (h + 1) * hd)).astype(jnp.float32)
                 for h in range(NHEAD)]                                 # (1,1,128)
        # identity "embedding" that zero-pads E -> 128 lanes via one matmul
        r_e = jax.lax.broadcasted_iota(jnp.int32, (E, LANE), 0)
        c_e = jax.lax.broadcasted_iota(jnp.int32, (E, LANE), 1)
        embed = (r_e == c_e).astype(jnp.float32)                        # (E,128)

        def wdot(act, blk, width=LANE):
            w = w_ref[:, blk * LANE:blk * LANE + width]   # 128-aligned free view
            return jnp.dot(act.astype(w.dtype), w,
                           preferred_element_type=jnp.float32)

        x2 = x_ref[...].astype(jnp.float32).reshape(M, E)
        x = jnp.dot(x2, embed, preferred_element_type=jnp.float32)      # (M,128)

        for layer in range(NUM_ENC_LAYERS):          # unrolled (LLO visibility)
            blk = layer * BLOCKS_PER_LAYER
            rb = layer * ROWS_PER_LAYER
            bq = b_ref[rb + 0:rb + 1, :LANE]
            bk = b_ref[rb + 1:rb + 2, :LANE]
            bv = b_ref[rb + 2:rb + 3, :LANE]
            bo = b_ref[rb + 3:rb + 4, :LANE]
            ln1w = b_ref[rb + 4:rb + 5, :LANE]
            ln1b = b_ref[rb + 5:rb + 6, :LANE]
            b1 = b_ref[rb + 6:rb + 7, :LANE]
            b2 = b_ref[rb + 7:rb + 8, :LANE]
            ln2w = b_ref[rb + 8:rb + 9, :LANE]
            ln2b = b_ref[rb + 9:rb + 10, :LANE]

            # --- multi-head self-attention (heads via lane masks, no slicing) ---
            q = wdot(x, blk + 0) + bq                                   # (M,128)
            k = wdot(x, blk + 1) + bk
            v = wdot(x, blk + 2) + bv
            q3 = q.reshape(block_b, S, LANE)
            k3 = k.reshape(block_b, S, LANE).astype(jnp.bfloat16)
            v3 = v.reshape(block_b, S, LANE)

            ctx = jnp.zeros((block_b, S, LANE), jnp.float32)
            for h in range(NHEAD):                   # unrolled, mask = VPU only
                qm = (q3 * hmask[h]).astype(jnp.bfloat16)
                s = jnp.einsum('bqe,bke->bqk', qm, k3,
                               preferred_element_type=jnp.float32) * scale
                m = jnp.max(s, axis=-1, keepdims=True)
                e = jnp.exp(s - m)
                p = e * pl.reciprocal(jnp.sum(e, axis=-1, keepdims=True),
                                      approx=True)
                vm = (v3 * hmask[h]).astype(jnp.bfloat16)
                # head-h context lands in head-h lanes because vm is masked
                ctx = ctx + jnp.einsum('bqk,bke->bqe', p.astype(jnp.bfloat16),
                                       vm, preferred_element_type=jnp.float32)

            attn = wdot(ctx.reshape(M, LANE), blk + 3) + bo
            x = layer_norm(x + attn, ln1w, ln1b, cmask)

            # --- feed-forward ---
            ff = jnp.maximum(wdot(x, blk + 4) + b1, 0.0)
            ff = wdot(ff, blk + 5) + b2
            x = layer_norm(x + ff, ln2w, ln2b, cmask)

        # --- mean over sequence + final Linear ---
        pooled = jnp.sum(x.reshape(block_b, S, LANE), axis=1) * (1.0 / S)
        out = wdot(pooled, fc_blk, width=Opad) + b_ref[fc_row:fc_row + 1, :Opad]
        out_ref[...] = out[:, :O]                    # (block_b, O) dense store

    return kernel


def structure_aggregator(x, packed, output_dim, *, block_b=16):
    """x: (B, S, E) batch of structures.  packed = (w, bias) from pack_params().
    Returns (B, output_dim) float32 (one aggregated embedding per structure)."""
    w, bias = packed
    B, S, E = x.shape
    O = output_dim
    assert E % NHEAD == 0 and E <= LANE

    Bp = _round_up(B, block_b)
    if Bp != B:
        x = jnp.pad(x, ((0, Bp - B), (0, 0), (0, 0)))
    n_steps = Bp // block_b
    M = block_b * S
    Opad = _round_up(O, LANE)

    flops_step = (2 * M * E * LANE                                       # pad embed
                  + NUM_ENC_LAYERS * (6 * 2 * M * LANE * LANE            # dense
                                      + NHEAD * 2 * (2 * block_b * S * S * LANE))
                  + 2 * block_b * LANE * Opad)                           # final fc
    transc_step = NUM_ENC_LAYERS * (NHEAD * block_b * S * S              # exp
                                    + NHEAD * block_b * S                # recip
                                    + 2 * M)                             # rsqrt
    nbytes = (x.size * x.dtype.itemsize + w.size * w.dtype.itemsize
              + bias.size * bias.dtype.itemsize + Bp * O * 4)
    cost = pl.CostEstimate(flops=n_steps * flops_step,
                           transcendentals=n_steps * transc_step,
                           bytes_accessed=nbytes)

    out = pl.pallas_call(
        _make_kernel(S, E, O, block_b),
        out_shape=jax.ShapeDtypeStruct((Bp, O), jnp.float32),
        grid=(n_steps,),
        in_specs=[
            pl.BlockSpec((block_b, S, E), lambda i: (i, 0, 0)),   # x stream
            pl.BlockSpec(w.shape, lambda i: (0, 0)),              # resident weights
            pl.BlockSpec(bias.shape, lambda i: (0, 0)),           # resident biases
        ],
        out_specs=pl.BlockSpec((block_b, O), lambda i: (i, 0)),
        compiler_params=pltpu.CompilerParams(
            dimension_semantics=("parallel",)),                   # 2 TCs on v7x
        cost_estimate=cost,
    )(x, w, bias)
    return out[:B]


def init_params(key, E, H, O):
    """Per-layer params in PyTorch layout (weights are (out_features, in_features))."""
    params = []
    for layer in range(NUM_ENC_LAYERS):
        ks = jax.random.split(jax.random.fold_in(key, layer), 8)
        params += [
            0.02 * jax.random.normal(ks[0], (3 * E, E), jnp.float32),  # in_proj_weight
            0.02 * jax.random.normal(ks[1], (3 * E,), jnp.float32),    # in_proj_bias
            0.02 * jax.random.normal(ks[2], (E, E), jnp.float32),      # out_proj.weight
            jnp.zeros((E,), jnp.float32),                              # out_proj.bias
            jnp.ones((E,), jnp.float32),                               # norm1.weight
            jnp.zeros((E,), jnp.float32),                              # norm1.bias
            0.02 * jax.random.normal(ks[3], (H, E), jnp.float32),      # linear1.weight
            0.02 * jax.random.normal(ks[4], (H,), jnp.float32),        # linear1.bias
            0.02 * jax.random.normal(ks[5], (E, H), jnp.float32),      # linear2.weight
            0.02 * jax.random.normal(ks[6], (E,), jnp.float32),        # linear2.bias
            jnp.ones((E,), jnp.float32),                               # norm2.weight
            jnp.zeros((E,), jnp.float32),                              # norm2.bias
        ]
    kf = jax.random.fold_in(key, 1000)
    k1, k2 = jax.random.split(kf)
    params += [0.02 * jax.random.normal(k1, (O, E), jnp.float32),      # fc.weight
               0.02 * jax.random.normal(k2, (O,), jnp.float32)]        # fc.bias
    return params


def pack_params(params, E, H, O):
    """Host-side, once.  Pack the 26 torch-layout tensors into 2 slabs:
       w    : (128, NUM_ENC_LAYERS*6*128 + round_up(O,128))  bfloat16
              every weight transposed to (in, out) and zero-padded to full
              128x128 lane blocks (Wq, Wk, Wv, Wout, W1, W2 per layer, then fc)
       bias : (rows_padded, round_up(O,128))  float32
              bias / LayerNorm vectors as zero-padded rows."""
    assert E <= LANE and H <= LANE and 3 * E <= 3 * LANE
    Opad = _round_up(O, LANE)
    BW = Opad

    def block(wT, cols=LANE):                      # wT: (in, out) -> (128, cols)
        wT = np.asarray(wT, np.float32)
        out = np.zeros((LANE, cols), np.float32)
        out[:wT.shape[0], :wT.shape[1]] = wT
        return out

    def row(v):
        v = np.asarray(v, np.float32)
        out = np.zeros((BW,), np.float32)
        out[:v.shape[0]] = v
        return out

    blocks, rows = [], []
    idx = 0
    for _ in range(NUM_ENC_LAYERS):
        (in_w, in_b, op_w, op_b, ln1_w, ln1_b,
         l1_w, l1_b, l2_w, l2_b, ln2_w, ln2_b) = params[idx:idx + PARAMS_PER_LAYER]
        idx += PARAMS_PER_LAYER
        in_w = np.asarray(in_w, np.float32)
        in_b = np.asarray(in_b, np.float32)
        wq, wk, wv = in_w[:E], in_w[E:2 * E], in_w[2 * E:]     # torch (out, in)
        blocks += [block(wq.T), block(wk.T), block(wv.T),
                   block(np.asarray(op_w).T),
                   block(np.asarray(l1_w).T),
                   block(np.asarray(l2_w).T)]
        rows += [row(in_b[:E]), row(in_b[E:2 * E]), row(in_b[2 * E:]),
                 row(op_b), row(ln1_w), row(ln1_b),
                 row(l1_b), row(l2_b), row(ln2_w), row(ln2_b)]
    fc_w, fc_b = params[idx], params[idx + 1]
    blocks += [block(np.asarray(fc_w).T, cols=Opad)]
    rows += [row(fc_b)]

    w = jnp.asarray(np.concatenate(blocks, axis=1), jnp.bfloat16)
    n_rows = _round_up(len(rows), 8)
    rows += [np.zeros((BW,), np.float32)] * (n_rows - len(rows))
    bias = jnp.asarray(np.stack(rows, axis=0), jnp.float32)
    return w, bias


if __name__ == "__main__":
    # small shapes: batch of 64 structures, each a sequence of S=8 layer
    # embeddings of dim E=32; dim_feedforward=64, output_dim=128, nhead=4.
    B, S, E, H, O = 64, 8, 32, 64, 128
    key = jax.random.PRNGKey(0)
    kx, kp = jax.random.split(key)
    x = jax.random.normal(kx, (B, S, E), jnp.float32)
    params = init_params(kp, E, H, O)
    packed = pack_params(params, E, H, O)

    y = structure_aggregator(x, packed, O, block_b=16)
    y = jax.block_until_ready(y)
    assert y.shape == (B, O) and bool(jnp.all(jnp.isfinite(y)))
    print("KERNEL_OK")
</pallas_src>

<mosaic_0001>
module attributes {stable_mosaic.version = 11 : i64} {
  func.func @kernel(%arg0: i32, %arg1: memref<16x8x32xf32, #tpu.memory_space<vmem>>, %arg2: memref<128x1664xbf16, #tpu.memory_space<vmem>>, %arg3: memref<24x128xf32, #tpu.memory_space<vmem>>, %arg4: memref<16x128xf32, #tpu.memory_space<vmem>>) attributes {dimension_semantics = [#tpu.dimension_semantics<parallel>], iteration_bounds = array<i64: 4>, scalar_prefetch = 0 : i64, scratch_operands = 0 : i64, tpu.core_type = #tpu.core_type<tc>, window_params = [{transform_indices = @transform_0, window_bounds = array<i64: 16, 8, 32>}, {pipeline_mode = #tpu.pipeline_mode<synchronous>, transform_indices = @transform_1, window_bounds = array<i64: 128, 1664>}, {pipeline_mode = #tpu.pipeline_mode<synchronous>, transform_indices = @transform_2, window_bounds = array<i64: 24, 128>}, {transform_indices = @transform_3, window_bounds = array<i64: 16, 128>}]} {
    %0 = tpu.iota {dimensions = array<i32: 1>} : vector<1x128xi32>
    %c32_i32 = arith.constant 32 : i32
    %1 = vector.broadcast %c32_i32 : i32 to vector<1x128xi32>
    %2 = arith.cmpi slt, %0, %1 : vector<1x128xi32>
    %3 = arith.extui %2 : vector<1x128xi1> to vector<1x128xi32>
    %4 = arith.sitofp %3 : vector<1x128xi32> to vector<1x128xf32>
    %5 = tpu.iota {dimensions = array<i32: 2>} : vector<1x1x128xi32>
    %c0_i32 = arith.constant 0 : i32
    %6 = vector.broadcast %c0_i32 : i32 to vector<1x1x128xi32>
    %7 = arith.cmpi sge, %5, %6 : vector<1x1x128xi32>
    %c8_i32 = arith.constant 8 : i32
    %8 = vector.broadcast %c8_i32 : i32 to vector<1x1x128xi32>
    %9 = arith.cmpi slt, %5, %8 : vector<1x1x128xi32>
    %10 = arith.andi %7, %9 : vector<1x1x128xi1>
    %11 = arith.extui %10 : vector<1x1x128xi1> to vector<1x1x128xi32>
    %12 = arith.sitofp %11 : vector<1x1x128xi32> to vector<1x1x128xf32>
    %c8_i32_0 = arith.constant 8 : i32
    %13 = vector.broadcast %c8_i32_0 : i32 to vector<1x1x128xi32>
    %14 = arith.cmpi sge, %5, %13 : vector<1x1x128xi32>
    %c16_i32 = arith.constant 16 : i32
    %15 = vector.broadcast %c16_i32 : i32 to vector<1x1x128xi32>
    %16 = arith.cmpi slt, %5, %15 : vector<1x1x128xi32>
    %17 = arith.andi %14, %16 : vector<1x1x128xi1>
    %18 = arith.extui %17 : vector<1x1x128xi1> to vector<1x1x128xi32>
    %19 = arith.sitofp %18 : vector<1x1x128xi32> to vector<1x1x128xf32>
    %c16_i32_1 = arith.constant 16 : i32
    %20 = vector.broadcast %c16_i32_1 : i32 to vector<1x1x128xi32>
    %21 = arith.cmpi sge, %5, %20 : vector<1x1x128xi32>
    %c24_i32 = arith.constant 24 : i32
    %22 = vector.broadcast %c24_i32 : i32 to vector<1x1x128xi32>
    %23 = arith.cmpi slt, %5, %22 : vector<1x1x128xi32>
    %24 = arith.andi %21, %23 : vector<1x1x128xi1>
    %25 = arith.extui %24 : vector<1x1x128xi1> to vector<1x1x128xi32>
    %26 = arith.sitofp %25 : vector<1x1x128xi32> to vector<1x1x128xf32>
    %c24_i32_2 = arith.constant 24 : i32
    %27 = vector.broadcast %c24_i32_2 : i32 to vector<1x1x128xi32>
    %28 = arith.cmpi sge, %5, %27 : vector<1x1x128xi32>
    %c32_i32_3 = arith.constant 32 : i32
    %29 = vector.broadcast %c32_i32_3 : i32 to vector<1x1x128xi32>
    %30 = arith.cmpi slt, %5, %29 : vector<1x1x128xi32>
    %31 = arith.andi %28, %30 : vector<1x1x128xi1>
    %32 = arith.extui %31 : vector<1x1x128xi1> to vector<1x1x128xi32>
    %33 = arith.sitofp %32 : vector<1x1x128xi32> to vector<1x1x128xf32>
    %34 = tpu.iota {dimensions = array<i32: 0>} : vector<32x128xi32>
    %35 = tpu.iota {dimensions = array<i32: 1>} : vector<32x128xi32>
    %36 = arith.cmpi eq, %34, %35 : vector<32x128xi32>
    %37 = arith.extui %36 : vector<32x128xi1> to vector<32x128xi32>
    %38 = arith.sitofp %37 : vector<32x128xi32> to vector<32x128xf32>
    %c0 = arith.constant 0 : index
    %c0_4 = arith.constant 0 : index
    %c0_5 = arith.constant 0 : index
    %39 = vector.load %arg1[%c0, %c0_4, %c0_5] : memref<16x8x32xf32, #tpu.memory_space<vmem>>, vector<16x8x32xf32>
    %40 = vector.shape_cast %39 : vector<16x8x32xf32> to vector<128x32xf32>
    %cst = arith.constant dense<0.000000e+00> : vector<128x128xf32>
    %41 = tpu.matmul %40, %38, %cst {dimension_numbers = #tpu.dot_dimension_numbers<[1], [0], [0], [1], [0, 0, 1, 1], [], []>} : vector<128x32xf32>, vector<32x128xf32>, vector<128x128xf32> -> vector<128x128xf32>
    %c0_6 = arith.constant 0 : index
    %c0_7 = arith.constant 0 : index
    %42 = vector.load %arg3[%c0_6, %c0_7] : memref<24x128xf32, #tpu.memory_space<vmem>>, vector<1x128xf32>
    %c1 = arith.constant 1 : index
    %c0_8 = arith.constant 0 : index
    %43 = vector.load %arg3[%c1, %c0_8] : memref<24x128xf32, #tpu.memory_space<vmem>>, vector<1x128xf32>
    %c2 = arith.constant 2 : index
    %c0_9 = arith.constant 0 : index
    %44 = vector.load %arg3[%c2, %c0_9] : memref<24x128xf32, #tpu.memory_space<vmem>>, vector<1x128xf32>
    %c3 = arith.constant 3 : index
    %c0_10 = arith.constant 0 : index
    %45 = vector.load %arg3[%c3, %c0_10] : memref<24x128xf32, #tpu.memory_space<vmem>>, vector<1x128xf32>
    %c4 = arith.constant 4 : index
    %c0_11 = arith.constant 0 : index
    %46 = vector.load %arg3[%c4, %c0_11] : memref<24x128xf32, #tpu.memory_space<vmem>>, vector<1x128xf32>
    %c5 = arith.constant 5 : index
    %c0_12 = arith.constant 0 : index
    %47 = vector.load %arg3[%c5, %c0_12] : memref<24x128xf32, #tpu.memory_space<vmem>>, vector<1x128xf32>
    %c6 = arith.constant 6 : index
    %c0_13 = arith.constant 0 : index
    %48 = vector.load %arg3[%c6, %c0_13] : memref<24x128xf32, #tpu.memory_space<vmem>>, vector<1x128xf32>
    %c7 = arith.constant 7 : index
    %c0_14 = arith.constant 0 : index
    %49 = vector.load %arg3[%c7, %c0_14] : memref<24x128xf32, #tpu.memory_space<vmem>>, vector<1x128xf32>
    %c8 = arith.constant 8 : index
    %c0_15 = arith.constant 0 : index
    %50 = vector.load %arg3[%c8, %c0_15] : memref<24x128xf32, #tpu.memory_space<vmem>>, vector<1x128xf32>
    %c9 = arith.constant 9 : index
    %c0_16 = arith.constant 0 : index
    %51 = vector.load %arg3[%c9, %c0_16] : memref<24x128xf32, #tpu.memory_space<vmem>>, vector<1x128xf32>
    %c0_17 = arith.constant 0 : index
    %c0_18 = arith.constant 0 : index
    %52 = vector.load %arg2[%c0_17, %c0_18] : memref<128x1664xbf16, #tpu.memory_space<vmem>>, vector<128x128xbf16>
    %53 = arith.truncf %41 : vector<128x128xf32> to vector<128x128xbf16>
    %cst_19 = arith.constant dense<0.000000e+00> : vector<128x128xf32>
    %54 = tpu.matmul %53, %52, %cst_19 {dimension_numbers = #tpu.dot_dimension_numbers<[1], [0], [0], [1], [0, 0, 1, 1], [], []>} : vector<128x128xbf16>, vector<128x128xbf16>, vector<128x128xf32> -> vector<128x128xf32>
    %55 = vector.broadcast %42 : vector<1x128xf32> to vector<128x128xf32>
    %56 = arith.addf %54, %55 : vector<128x128xf32>
    %c0_20 = arith.constant 0 : index
    %c128 = arith.constant 128 : index
    %57 = vector.load %arg2[%c0_20, %c128] : memref<128x1664xbf16, #tpu.memory_space<vmem>>, vector<128x128xbf16>
    %58 = arith.truncf %41 : vector<128x128xf32> to vector<128x128xbf16>
    %cst_21 = arith.constant dense<0.000000e+00> : vector<128x128xf32>
    %59 = tpu.matmul %58, %57, %cst_21 {dimension_numbers = #tpu.dot_dimension_numbers<[1], [0], [0], [1], [0, 0, 1, 1], [], []>} : vector<128x128xbf16>, vector<128x128xbf16>, vector<128x128xf32> -> vector<128x128xf32>
    %60 = vector.broadcast %43 : vector<1x128xf32> to vector<128x128xf32>
    %61 = arith.addf %59, %60 : vector<128x128xf32>
    %c0_22 = arith.constant 0 : index
    %c256 = arith.constant 256 : index
    %62 = vector.load %arg2[%c0_22, %c256] : memref<128x1664xbf16, #tpu.memory_space<vmem>>, vector<128x128xbf16>
    %63 = arith.truncf %41 : vector<128x128xf32> to vector<128x128xbf16>
    %cst_23 = arith.constant dense<0.000000e+00> : vector<128x128xf32>
    %64 = tpu.matmul %63, %62, %cst_23 {dimension_numbers = #tpu.dot_dimension_numbers<[1], [0], [0], [1], [0, 0, 1, 1], [], []>} : vector<128x128xbf16>, vector<128x128xbf16>, vector<128x128xf32> -> vector<128x128xf32>
    %65 = vector.broadcast %44 : vector<1x128xf32> to vector<128x128xf32>
    %66 = arith.addf %64, %65 : vector<128x128xf32>
    %67 = vector.shape_cast %56 : vector<128x128xf32> to vector<16x8x128xf32>
    %68 = vector.shape_cast %61 : vector<128x128xf32> to vector<16x8x128xf32>
    %69 = arith.truncf %68 : vector<16x8x128xf32> to vector<16x8x128xbf16>
    %70 = vector.shape_cast %66 : vector<128x128xf32> to vector<16x8x128xf32>
    %cst_24 = arith.constant 0.000000e+00 : f32
    %71 = vector.broadcast %cst_24 : f32 to vector<16x8x128xf32>
    %72 = vector.broadcast %12 : vector<1x1x128xf32> to vector<16x8x128xf32>
    %73 = arith.mulf %67, %72 : vector<16x8x128xf32>
    %74 = arith.truncf %73 : vector<16x8x128xf32> to vector<16x8x128xbf16>
    "tpu.trace_start"() <{level = 10 : i32, message = "bqe,bke->bqk"}> : () -> ()
    %cst_25 = arith.constant dense<0.000000e+00> : vector<16x8x8xf32>
    %75 = tpu.matmul %74, %69, %cst_25 {dimension_numbers = #tpu.dot_dimension_numbers<[2], [2], [1], [1], [0, 0, 0, 1, 1, 1], [0], [0]>} : vector<16x8x128xbf16>, vector<16x8x128xbf16>, vector<16x8x8xf32> -> vector<16x8x8xf32>
    "tpu.trace_stop"() : () -> ()
    %cst_26 = arith.constant 0.353553385 : f32
    %76 = vector.broadcast %cst_26 : f32 to vector<16x8x8xf32>
    %77 = arith.mulf %75, %76 : vector<16x8x8xf32>
    %cst_27 = arith.constant dense<0xFF800000> : vector<16x8xf32>
    %78 = vector.multi_reduction <maximumf>, %77, %cst_27 [2] : vector<16x8x8xf32> to vector<16x8xf32>
    %79 = vector.shape_cast %78 : vector<16x8xf32> to vector<16x8x1xf32>
    %80 = vector.broadcast %79 : vector<16x8x1xf32> to vector<16x8x8xf32>
    %81 = arith.subf %77, %80 : vector<16x8x8xf32>
    %82 = math.exp %81 : vector<16x8x8xf32>
    %cst_28 = arith.constant dense<0.000000e+00> : vector<16x8xf32>
    %83 = vector.multi_reduction <add>, %82, %cst_28 [2] : vector<16x8x8xf32> to vector<16x8xf32>
    %84 = vector.shape_cast %83 : vector<16x8xf32> to vector<16x8x1xf32>
    %85 = tpu.reciprocal %84 {approx = true} : vector<16x8x1xf32> -> vector<16x8x1xf32>
    %86 = vector.broadcast %85 : vector<16x8x1xf32> to vector<16x8x8xf32>
    %87 = arith.mulf %82, %86 : vector<16x8x8xf32>
    %88 = vector.broadcast %12 : vector<1x1x128xf32> to vector<16x8x128xf32>
    %89 = arith.mulf %70, %88 : vector<16x8x128xf32>
    %90 = arith.truncf %89 : vector<16x8x128xf32> to vector<16x8x128xbf16>
    %91 = arith.truncf %87 : vector<16x8x8xf32> to vector<16x8x8xbf16>
    "tpu.trace_start"() <{level = 10 : i32, message = "bqk,bke->bqe"}> : () -> ()
    %cst_29 = arith.constant dense<0.000000e+00> : vector<16x8x128xf32>
    %92 = tpu.matmul %91, %90, %cst_29 {dimension_numbers = #tpu.dot_dimension_numbers<[2], [1], [1], [2], [0, 0, 0, 1, 1, 2], [0], [0]>} : vector<16x8x8xbf16>, vector<16x8x128xbf16>, vector<16x8x128xf32> -> vector<16x8x128xf32>
    "tpu.trace_stop"() : () -> ()
    %93 = arith.addf %71, %92 : vector<16x8x128xf32>
    %94 = vector.broadcast %19 : vector<1x1x128xf32> to vector<16x8x128xf32>
    %95 = arith.mulf %67, %94 : vector<16x8x128xf32>
    %96 = arith.truncf %95 : vector<16x8x128xf32> to vector<16x8x128xbf16>
    "tpu.trace_start"() <{level = 10 : i32, message = "bqe,bke->bqk"}> : () -> ()
    %cst_30 = arith.constant dense<0.000000e+00> : vector<16x8x8xf32>
    %97 = tpu.matmul %96, %69, %cst_30 {dimension_numbers = #tpu.dot_dimension_numbers<[2], [2], [1], [1], [0, 0, 0, 1, 1, 1], [0], [0]>} : vector<16x8x128xbf16>, vector<16x8x128xbf16>, vector<16x8x8xf32> -> vector<16x8x8xf32>
    "tpu.trace_stop"() : () -> ()
    %cst_31 = arith.constant 0.353553385 : f32
    %98 = vector.broadcast %cst_31 : f32 to vector<16x8x8xf32>
    %99 = arith.mulf %97, %98 : vector<16x8x8xf32>
    %cst_32 = arith.constant dense<0xFF800000> : vector<16x8xf32>
    %100 = vector.multi_reduction <maximumf>, %99, %cst_32 [2] : vector<16x8x8xf32> to vector<16x8xf32>
    %101 = vector.shape_cast %100 : vector<16x8xf32> to vector<16x8x1xf32>
    %102 = vector.broadcast %101 : vector<16x8x1xf32> to vector<16x8x8xf32>
    %103 = arith.subf %99, %102 : vector<16x8x8xf32>
    %104 = math.exp %103 : vector<16x8x8xf32>
    %cst_33 = arith.constant dense<0.000000e+00> : vector<16x8xf32>
    %105 = vector.multi_reduction <add>, %104, %cst_33 [2] : vector<16x8x8xf32> to vector<16x8xf32>
    %106 = vector.shape_cast %105 : vector<16x8xf32> to vector<16x8x1xf32>
    %107 = tpu.reciprocal %106 {approx = true} : vector<16x8x1xf32> -> vector<16x8x1xf32>
    %108 = vector.broadcast %107 : vector<16x8x1xf32> to vector<16x8x8xf32>
    %109 = arith.mulf %104, %108 : vector<16x8x8xf32>
    %110 = vector.broadcast %19 : vector<1x1x128xf32> to vector<16x8x128xf32>
    %111 = arith.mulf %70, %110 : vector<16x8x128xf32>
    %112 = arith.truncf %111 : vector<16x8x128xf32> to vector<16x8x128xbf16>
    %113 = arith.truncf %109 : vector<16x8x8xf32> to vector<16x8x8xbf16>
    "tpu.trace_start"() <{level = 10 : i32, message = "bqk,bke->bqe"}> : () -> ()
    %cst_34 = arith.constant dense<0.000000e+00> : vector<16x8x128xf32>
    %114 = tpu.matmul %113, %112, %cst_34 {dimension_numbers = #tpu.dot_dimension_numbers<[2], [1], [1], [2], [0, 0, 0, 1, 1, 2], [0], [0]>} : vector<16x8x8xbf16>, vector<16x8x128xbf16>, vector<16x8x128xf32> -> vector<16x8x128xf32>
    "tpu.trace_stop"() : () -> ()
    %115 = arith.addf %93, %114 : vector<16x8x128xf32>
    %116 = vector.broadcast %26 : vector<1x1x128xf32> to vector<16x8x128xf32>
    %117 = arith.mulf %67, %116 : vector<16x8x128xf32>
    %118 = arith.truncf %117 : vector<16x8x128xf32> to vector<16x8x128xbf16>
    "tpu.trace_start"() <{level = 10 : i32, message = "bqe,bke->bqk"}> : () -> ()
    %cst_35 = arith.constant dense<0.000000e+00> : vector<16x8x8xf32>
    %119 = tpu.matmul %118, %69, %cst_35 {dimension_numbers = #tpu.dot_dimension_numbers<[2], [2], [1], [1], [0, 0, 0, 1, 1, 1], [0], [0]>} : vector<16x8x128xbf16>, vector<16x8x128xbf16>, vector<16x8x8xf32> -> vector<16x8x8xf32>
    "tpu.trace_stop"() : () -> ()
    %cst_36 = arith.constant 0.353553385 : f32
    %120 = vector.broadcast %cst_36 : f32 to vector<16x8x8xf32>
    %121 = arith.mulf %119, %120 : vector<16x8x8xf32>
    %cst_37 = arith.constant dense<0xFF800000> : vector<16x8xf32>
    %122 = vector.multi_reduction <maximumf>, %121, %cst_37 [2] : vector<16x8x8xf32> to vector<16x8xf32>
    %123 = vector.shape_cast %122 : vector<16x8xf32> to vector<16x8x1xf32>
    %124 = vector.broadcast %123 : vector<16x8x1xf32> to vector<16x8x8xf32>
    %125 = arith.subf %121, %124 : vector<16x8x8xf32>
    %126 = math.exp %125 : vector<16x8x8xf32>
    %cst_38 = arith.constant dense<0.000000e+00> : vector<16x8xf32>
    %127 = vector.multi_reduction <add>, %126, %cst_38 [2] : vector<16x8x8xf32> to vector<16x8xf32>
    %128 = vector.shape_cast %127 : vector<16x8xf32> to vector<16x8x1xf32>
    %129 = tpu.reciprocal %128 {approx = true} : vector<16x8x1xf32> -> vector<16x8x1xf32>
    %130 = vector.broadcast %129 : vector<16x8x1xf32> to vector<16x8x8xf32>
    %131 = arith.mulf %126, %130 : vector<16x8x8xf32>
    %132 = vector.broadcast %26 : vector<1x1x128xf32> to vector<16x8x128xf32>
    %133 = arith.mulf %70, %132 : vector<16x8x128xf32>
    %134 = arith.truncf %133 : vector<16x8x128xf32> to vector<16x8x128xbf16>
    %135 = arith.truncf %131 : vector<16x8x8xf32> to vector<16x8x8xbf16>
    "tpu.trace_start"() <{level = 10 : i32, message = "bqk,bke->bqe"}> : () -> ()
    %cst_39 = arith.constant dense<0.000000e+00> : vector<16x8x128xf32>
    %136 = tpu.matmul %135, %134, %cst_39 {dimension_numbers = #tpu.dot_dimension_numbers<[2], [1], [1], [2], [0, 0, 0, 1, 1, 2], [0], [0]>} : vector<16x8x8xbf16>, vector<16x8x128xbf16>, vector<16x8x128xf32> -> vector<16x8x128xf32>
    "tpu.trace_stop"() : () -> ()
    %137 = arith.addf %115, %136 : vector<16x8x128xf32>
    %138 = vector.broadcast %33 : vector<1x1x128xf32> to vector<16x8x128xf32>
    %139 = arith.mulf %67, %138 : vector<16x8x128xf32>
    %140 = arith.truncf %139 : vector<16x8x128xf32> to vector<16x8x128xbf16>
    "tpu.trace_start"() <{level = 10 : i32, message = "bqe,bke->bqk"}> : () -> ()
    %cst_40 = arith.constant dense<0.000000e+00> : vector<16x8x8xf32>
    %141 = tpu.matmul %140, %69, %cst_40 {dimension_numbers = #tpu.dot_dimension_numbers<[2], [2], [1], [1], [0, 0, 0, 1, 1, 1], [0], [0]>} : vector<16x8x128xbf16>, vector<16x8x128xbf16>, vector<16x8x8xf32> -> vector<16x8x8xf32>
    "tpu.trace_stop"() : () -> ()
    %cst_41 = arith.constant 0.353553385 : f32
    %142 = vector.broadcast %cst_41 : f32 to vector<16x8x8xf32>
    %143 = arith.mulf %141, %142 : vector<16x8x8xf32>
    %cst_42 = arith.constant dense<0xFF800000> : vector<16x8xf32>
    %144 = vector.multi_reduction <maximumf>, %143, %cst_42 [2] : vector<16x8x8xf32> to vector<16x8xf32>
    %145 = vector.shape_cast %144 : vector<16x8xf32> to vector<16x8x1xf32>
    %146 = vector.broadcast %145 : vector<16x8x1xf32> to vector<16x8x8xf32>
    %147 = arith.subf %143, %146 : vector<16x8x8xf32>
    %148 = math.exp %147 : vector<16x8x8xf32>
    %cst_43 = arith.constant dense<0.000000e+00> : vector<16x8xf32>
    %149 = vector.multi_reduction <add>, %148, %cst_43 [2] : vector<16x8x8xf32> to vector<16x8xf32>
    %150 = vector.shape_cast %149 : vector<16x8xf32> to vector<16x8x1xf32>
    %151 = tpu.reciprocal %150 {approx = true} : vector<16x8x1xf32> -> vector<16x8x1xf32>
    %152 = vector.broadcast %151 : vector<16x8x1xf32> to vector<16x8x8xf32>
    %153 = arith.mulf %148, %152 : vector<16x8x8xf32>
    %154 = vector.broadcast %33 : vector<1x1x128xf32> to vector<16x8x128xf32>
    %155 = arith.mulf %70, %154 : vector<16x8x128xf32>
    %156 = arith.truncf %155 : vector<16x8x128xf32> to vector<16x8x128xbf16>
    %157 = arith.truncf %153 : vector<16x8x8xf32> to vector<16x8x8xbf16>
    "tpu.trace_start"() <{level = 10 : i32, message = "bqk,bke->bqe"}> : () -> ()
    %cst_44 = arith.constant dense<0.000000e+00> : vector<16x8x128xf32>
    %158 = tpu.matmul %157, %156, %cst_44 {dimension_numbers = #tpu.dot_dimension_numbers<[2], [1], [1], [2], [0, 0, 0, 1, 1, 2], [0], [0]>} : vector<16x8x8xbf16>, vector<16x8x128xbf16>, vector<16x8x128xf32> -> vector<16x8x128xf32>
    "tpu.trace_stop"() : () -> ()
    %159 = arith.addf %137, %158 : vector<16x8x128xf32>
    %160 = vector.shape_cast %159 : vector<16x8x128xf32> to vector<128x128xf32>
    %c0_45 = arith.constant 0 : index
    %c384 = arith.constant 384 : index
    %161 = vector.load %arg2[%c0_45, %c384] : memref<128x1664xbf16, #tpu.memory_space<vmem>>, vector<128x128xbf16>
    %162 = arith.truncf %160 : vector<128x128xf32> to vector<128x128xbf16>
    %cst_46 = arith.constant dense<0.000000e+00> : vector<128x128xf32>
    %163 = tpu.matmul %162, %161, %cst_46 {dimension_numbers = #tpu.dot_dimension_numbers<[1], [0], [0], [1], [0, 0, 1, 1], [], []>} : vector<128x128xbf16>, vector<128x128xbf16>, vector<128x128xf32> -> vector<128x128xf32>
    %164 = vector.broadcast %45 : vector<1x128xf32> to vector<128x128xf32>
    %165 = arith.addf %163, %164 : vector<128x128xf32>
    %166 = arith.addf %41, %165 : vector<128x128xf32>
    %cst_47 = arith.constant dense<0.000000e+00> : vector<128xf32>
    %167 = vector.multi_reduction <add>, %166, %cst_47 [1] : vector<128x128xf32> to vector<128xf32>
    %168 = vector.shape_cast %167 : vector<128xf32> to vector<128x1xf32>
    %cst_48 = arith.constant 3.125000e-02 : f32
    %169 = vector.broadcast %cst_48 : f32 to vector<128x1xf32>
    %170 = arith.mulf %168, %169 : vector<128x1xf32>
    %171 = vector.broadcast %170 : vector<128x1xf32> to vector<128x128xf32>
    %172 = arith.subf %166, %171 : vector<128x128xf32>
    %173 = vector.broadcast %4 : vector<1x128xf32> to vector<128x128xf32>
    %174 = arith.mulf %172, %173 : vector<128x128xf32>
    %175 = arith.mulf %174, %174 : vector<128x128xf32>
    %cst_49 = arith.constant dense<0.000000e+00> : vector<128xf32>
    %176 = vector.multi_reduction <add>, %175, %cst_49 [1] : vector<128x128xf32> to vector<128xf32>
    %177 = vector.shape_cast %176 : vector<128xf32> to vector<128x1xf32>
    %cst_50 = arith.constant 3.125000e-02 : f32
    %178 = vector.broadcast %cst_50 : f32 to vector<128x1xf32>
    %179 = arith.mulf %177, %178 : vector<128x1xf32>
    %cst_51 = arith.constant 9.99999974E-6 : f32
    %180 = vector.broadcast %cst_51 : f32 to vector<128x1xf32>
    %181 = arith.addf %179, %180 : vector<128x1xf32>
    %182 = math.rsqrt %181 : vector<128x1xf32>
    %183 = vector.broadcast %182 : vector<128x1xf32> to vector<128x128xf32>
    %184 = arith.mulf %174, %183 : vector<128x128xf32>
    %185 = vector.broadcast %46 : vector<1x128xf32> to vector<128x128xf32>
    %186 = arith.mulf %184, %185 : vector<128x128xf32>
    %187 = vector.broadcast %47 : vector<1x128xf32> to vector<128x128xf32>
    %188 = arith.addf %186, %187 : vector<128x128xf32>
    %c0_52 = arith.constant 0 : index
    %c512 = arith.constant 512 : index
    %189 = vector.load %arg2[%c0_52, %c512] : memref<128x1664xbf16, #tpu.memory_space<vmem>>, vector<128x128xbf16>
    %190 = arith.truncf %188 : vector<128x128xf32> to vector<128x128xbf16>
    %cst_53 = arith.constant dense<0.000000e+00> : vector<128x128xf32>
    %191 = tpu.matmul %190, %189, %cst_53 {dimension_numbers = #tpu.dot_dimension_numbers<[1], [0], [0], [1], [0, 0, 1, 1], [], []>} : vector<128x128xbf16>, vector<128x128xbf16>, vector<128x128xf32> -> vector<128x128xf32>
    %192 = vector.broadcast %48 : vector<1x128xf32> to vector<128x128xf32>
    %193 = arith.addf %191, %192 : vector<128x128xf32>
    %cst_54 = arith.constant 0.000000e+00 : f32
    %194 = vector.broadcast %cst_54 : f32 to vector<128x128xf32>
    %195 = arith.maximumf %193, %194 : vector<128x128xf32>
    %c0_55 = arith.constant 0 : index
    %c640 = arith.constant 640 : index
    %196 = vector.load %arg2[%c0_55, %c640] : memref<128x1664xbf16, #tpu.memory_space<vmem>>, vector<128x128xbf16>
    %197 = arith.truncf %195 : vector<128x128xf32> to vector<128x128xbf16>
    %cst_56 = arith.constant dense<0.000000e+00> : vector<128x128xf32>
    %198 = tpu.matmul %197, %196, %cst_56 {dimension_numbers = #tpu.dot_dimension_numbers<[1], [0], [0], [1], [0, 0, 1, 1], [], []>} : vector<128x128xbf16>, vector<128x128xbf16>, vector<128x128xf32> -> vector<128x128xf32>
    %199 = vector.broadcast %49 : vector<1x128xf32> to vector<128x128xf32>
    %200 = arith.addf %198, %199 : vector<128x128xf32>
    %201 = arith.addf %188, %200 : vector<128x128xf32>
    %cst_57 = arith.constant dense<0.000000e+00> : vector<128xf32>
    %202 = vector.multi_reduction <add>, %201, %cst_57 [1] : vector<128x128xf32> to vector<128xf32>
    %203 = vector.shape_cast %202 : vector<128xf32> to vector<128x1xf32>
    %cst_58 = arith.constant 3.125000e-02 : f32
    %204 = vector.broadcast %cst_58 : f32 to vector<128x1xf32>
    %205 = arith.mulf %203, %204 : vector<128x1xf32>
    %206 = vector.broadcast %205 : vector<128x1xf32> to vector<128x128xf32>
    %207 = arith.subf %201, %206 : vector<128x128xf32>
    %208 = vector.broadcast %4 : vector<1x128xf32> to vector<128x128xf32>
    %209 = arith.mulf %207, %208 : vector<128x128xf32>
    %210 = arith.mulf %209, %209 : vector<128x128xf32>
    %cst_59 = arith.constant dense<0.000000e+00> : vector<128xf32>
    %211 = vector.multi_reduction <add>, %210, %cst_59 [1] : vector<128x128xf32> to vector<128xf32>
    %212 = vector.shape_cast %211 : vector<128xf32> to vector<128x1xf32>
    %cst_60 = arith.constant 3.125000e-02 : f32
    %213 = vector.broadcast %cst_60 : f32 to vector<128x1xf32>
    %214 = arith.mulf %212, %213 : vector<128x1xf32>
    %cst_61 = arith.constant 9.99999974E-6 : f32
    %215 = vector.broadcast %cst_61 : f32 to vector<128x1xf32>
    %216 = arith.addf %214, %215 : vector<128x1xf32>
    %217 = math.rsqrt %216 : vector<128x1xf32>
    %218 = vector.broadcast %217 : vector<128x1xf32> to vector<128x128xf32>
    %219 = arith.mulf %209, %218 : vector<128x128xf32>
    %220 = vector.broadcast %50 : vector<1x128xf32> to vector<128x128xf32>
    %221 = arith.mulf %219, %220 : vector<128x128xf32>
    %222 = vector.broadcast %51 : vector<1x128xf32> to vector<128x128xf32>
    %223 = arith.addf %221, %222 : vector<128x128xf32>
    %c10 = arith.constant 10 : index
    %c0_62 = arith.constant 0 : index
    %224 = vector.load %arg3[%c10, %c0_62] : memref<24x128xf32, #tpu.memory_space<vmem>>, vector<1x128xf32>
    %c11 = arith.constant 11 : index
    %c0_63 = arith.constant 0 : index
    %225 = vector.load %arg3[%c11, %c0_63] : memref<24x128xf32, #tpu.memory_space<vmem>>, vector<1x128xf32>
    %c12 = arith.constant 12 : index
    %c0_64 = arith.constant 0 : index
    %226 = vector.load %arg3[%c12, %c0_64] : memref<24x128xf32, #tpu.memory_space<vmem>>, vector<1x128xf32>
    %c13 = arith.constant 13 : index
    %c0_65 = arith.constant 0 : index
    %227 = vector.load %arg3[%c13, %c0_65] : memref<24x128xf32, #tpu.memory_space<vmem>>, vector<1x128xf32>
    %c14 = arith.constant 14 : index
    %c0_66 = arith.constant 0 : index
    %228 = vector.load %arg3[%c14, %c0_66] : memref<24x128xf32, #tpu.memory_space<vmem>>, vector<1x128xf32>
    %c15 = arith.constant 15 : index
    %c0_67 = arith.constant 0 : index
    %229 = vector.load %arg3[%c15, %c0_67] : memref<24x128xf32, #tpu.memory_space<vmem>>, vector<1x128xf32>
    %c16 = arith.constant 16 : index
    %c0_68 = arith.constant 0 : index
    %230 = vector.load %arg3[%c16, %c0_68] : memref<24x128xf32, #tpu.memory_space<vmem>>, vector<1x128xf32>
    %c17 = arith.constant 17 : index
    %c0_69 = arith.constant 0 : index
    %231 = vector.load %arg3[%c17, %c0_69] : memref<24x128xf32, #tpu.memory_space<vmem>>, vector<1x128xf32>
    %c18 = arith.constant 18 : index
    %c0_70 = arith.constant 0 : index
    %232 = vector.load %arg3[%c18, %c0_70] : memref<24x128xf32, #tpu.memory_space<vmem>>, vector<1x128xf32>
    %c19 = arith.constant 19 : index
    %c0_71 = arith.constant 0 : index
    %233 = vector.load %arg3[%c19, %c0_71] : memref<24x128xf32, #tpu.memory_space<vmem>>, vector<1x128xf32>
    %c0_72 = arith.constant 0 : index
    %c768 = arith.constant 768 : index
    %234 = vector.load %arg2[%c0_72, %c768] : memref<128x1664xbf16, #tpu.memory_space<vmem>>, vector<128x128xbf16>
    %235 = arith.truncf %223 : vector<128x128xf32> to vector<128x128xbf16>
    %cst_73 = arith.constant dense<0.000000e+00> : vector<128x128xf32>
    %236 = tpu.matmul %235, %234, %cst_73 {dimension_numbers = #tpu.dot_dimension_numbers<[1], [0], [0], [1], [0, 0, 1, 1], [], []>} : vector<128x128xbf16>, vector<128x128xbf16>, vector<128x128xf32> -> vector<128x128xf32>
    %237 = vector.broadcast %224 : vector<1x128xf32> to vector<128x128xf32>
    %238 = arith.addf %236, %237 : vector<128x128xf32>
    %c0_74 = arith.constant 0 : index
    %c896 = arith.constant 896 : index
    %239 = vector.load %arg2[%c0_74, %c896] : memref<128x1664xbf16, #tpu.memory_space<vmem>>, vector<128x128xbf16>
    %240 = arith.truncf %223 : vector<128x128xf32> to vector<128x128xbf16>
    %cst_75 = arith.constant dense<0.000000e+00> : vector<128x128xf32>
    %241 = tpu.matmul %240, %239, %cst_75 {dimension_numbers = #tpu.dot_dimension_numbers<[1], [0], [0], [1], [0, 0, 1, 1], [], []>} : vector<128x128xbf16>, vector<128x128xbf16>, vector<128x128xf32> -> vector<128x128xf32>
    %242 = vector.broadcast %225 : vector<1x128xf32> to vector<128x128xf32>
    %243 = arith.addf %241, %242 : vector<128x128xf32>
    %c0_76 = arith.constant 0 : index
    %c1024 = arith.constant 1024 : index
    %244 = vector.load %arg2[%c0_76, %c1024] : memref<128x1664xbf16, #tpu.memory_space<vmem>>, vector<128x128xbf16>
    %245 = arith.truncf %223 : vector<128x128xf32> to vector<128x128xbf16>
    %cst_77 = arith.constant dense<0.000000e+00> : vector<128x128xf32>
    %246 = tpu.matmul %245, %244, %cst_77 {dimension_numbers = #tpu.dot_dimension_numbers<[1], [0], [0], [1], [0, 0, 1, 1], [], []>} : vector<128x128xbf16>, vector<128x128xbf16>, vector<128x128xf32> -> vector<128x128xf32>
    %247 = vector.broadcast %226 : vector<1x128xf32> to vector<128x128xf32>
    %248 = arith.addf %246, %247 : vector<128x128xf32>
    %249 = vector.shape_cast %238 : vector<128x128xf32> to vector<16x8x128xf32>
    %250 = vector.shape_cast %243 : vector<128x128xf32> to vector<16x8x128xf32>
    %251 = arith.truncf %250 : vector<16x8x128xf32> to vector<16x8x128xbf16>
    %252 = vector.shape_cast %248 : vector<128x128xf32> to vector<16x8x128xf32>
    %cst_78 = arith.constant 0.000000e+00 : f32
    %253 = vector.broadcast %cst_78 : f32 to vector<16x8x128xf32>
    %254 = vector.broadcast %12 : vector<1x1x128xf32> to vector<16x8x128xf32>
    %255 = arith.mulf %249, %254 : vector<16x8x128xf32>
    %256 = arith.truncf %255 : vector<16x8x128xf32> to vector<16x8x128xbf16>
    "tpu.trace_start"() <{level = 10 : i32, message = "bqe,bke->bqk"}> : () -> ()
    %cst_79 = arith.constant dense<0.000000e+00> : vector<16x8x8xf32>
    %257 = tpu.matmul %256, %251, %cst_79 {dimension_numbers = #tpu.dot_dimension_numbers<[2], [2], [1], [1], [0, 0, 0, 1, 1, 1], [0], [0]>} : vector<16x8x128xbf16>, vector<16x8x128xbf16>, vector<16x8x8xf32> -> vector<16x8x8xf32>
    "tpu.trace_stop"() : () -> ()
    %cst_80 = arith.constant 0.353553385 : f32
    %258 = vector.broadcast %cst_80 : f32 to vector<16x8x8xf32>
    %259 = arith.mulf %257, %258 : vector<16x8x8xf32>
    %cst_81 = arith.constant dense<0xFF800000> : vector<16x8xf32>
    %260 = vector.multi_reduction <maximumf>, %259, %cst_81 [2] : vector<16x8x8xf32> to vector<16x8xf32>
    %261 = vector.shape_cast %260 : vector<16x8xf32> to vector<16x8x1xf32>
    %262 = vector.broadcast %261 : vector<16x8x1xf32> to vector<16x8x8xf32>
    %263 = arith.subf %259, %262 : vector<16x8x8xf32>
    %264 = math.exp %263 : vector<16x8x8xf32>
    %cst_82 = arith.constant dense<0.000000e+00> : vector<16x8xf32>
    %265 = vector.multi_reduction <add>, %264, %cst_82 [2] : vector<16x8x8xf32> to vector<16x8xf32>
    %266 = vector.shape_cast %265 : vector<16x8xf32> to vector<16x8x1xf32>
    %267 = tpu.reciprocal %266 {approx = true} : vector<16x8x1xf32> -> vector<16x8x1xf32>
    %268 = vector.broadcast %267 : vector<16x8x1xf32> to vector<16x8x8xf32>
    %269 = arith.mulf %264, %268 : vector<16x8x8xf32>
    %270 = vector.broadcast %12 : vector<1x1x128xf32> to vector<16x8x128xf32>
    %271 = arith.mulf %252, %270 : vector<16x8x128xf32>
    %272 = arith.truncf %271 : vector<16x8x128xf32> to vector<16x8x128xbf16>
    %273 = arith.truncf %269 : vector<16x8x8xf32> to vector<16x8x8xbf16>
    "tpu.trace_start"() <{level = 10 : i32, message = "bqk,bke->bqe"}> : () -> ()
    %cst_83 = arith.constant dense<0.000000e+00> : vector<16x8x128xf32>
    %274 = tpu.matmul %273, %272, %cst_83 {dimension_numbers = #tpu.dot_dimension_numbers<[2], [1], [1], [2], [0, 0, 0, 1, 1, 2], [0], [0]>} : vector<16x8x8xbf16>, vector<16x8x128xbf16>, vector<16x8x128xf32> -> vector<16x8x128xf32>
    "tpu.trace_stop"() : () -> ()
    %275 = arith.addf %253, %274 : vector<16x8x128xf32>
    %276 = vector.broadcast %19 : vector<1x1x128xf32> to vector<16x8x128xf32>
    %277 = arith.mulf %249, %276 : vector<16x8x128xf32>
    %278 = arith.truncf %277 : vector<16x8x128xf32> to vector<16x8x128xbf16>
    "tpu.trace_start"() <{level = 10 : i32, message = "bqe,bke->bqk"}> : () -> ()
    %cst_84 = arith.constant dense<0.000000e+00> : vector<16x8x8xf32>
    %279 = tpu.matmul %278, %251, %cst_84 {dimension_numbers = #tpu.dot_dimension_numbers<[2], [2], [1], [1], [0, 0, 0, 1, 1, 1], [0], [0]>} : vector<16x8x128xbf16>, vector<16x8x128xbf16>, vector<16x8x8xf32> -> vector<16x8x8xf32>
    "tpu.trace_stop"() : () -> ()
    %cst_85 = arith.constant 0.353553385 : f32
    %280 = vector.broadcast %cst_85 : f32 to vector<16x8x8xf32>
    %281 = arith.mulf %279, %280 : vector<16x8x8xf32>
    %cst_86 = arith.constant dense<0xFF800000> : vector<16x8xf32>
    %282 = vector.multi_reduction <maximumf>, %281, %cst_86 [2] : vector<16x8x8xf32> to vector<16x8xf32>
    %283 = vector.shape_cast %282 : vector<16x8xf32> to vector<16x8x1xf32>
    %284 = vector.broadcast %283 : vector<16x8x1xf32> to vector<16x8x8xf32>
    %285 = arith.subf %281, %284 : vector<16x8x8xf32>
    %286 = math.exp %285 : vector<16x8x8xf32>
    %cst_87 = arith.constant dense<0.000000e+00> : vector<16x8xf32>
    %287 = vector.multi_reduction <add>, %286, %cst_87 [2] : vector<16x8x8xf32> to vector<16x8xf32>
    %288 = vector.shape_cast %287 : vector<16x8xf32> to vector<16x8x1xf32>
    %289 = tpu.reciprocal %288 {approx = true} : vector<16x8x1xf32> -> vector<16x8x1xf32>
    %290 = vector.broadcast %289 : vector<16x8x1xf32> to vector<16x8x8xf32>
    %291 = arith.mulf %286, %290 : vector<16x8x8xf32>
    %292 = vector.broadcast %19 : vector<1x1x128xf32> to vector<16x8x128xf32>
    %293 = arith.mulf %252, %292 : vector<16x8x128xf32>
    %294 = arith.truncf %293 : vector<16x8x128xf32> to vector<16x8x128xbf16>
    %295 = arith.truncf %291 : vector<16x8x8xf32> to vector<16x8x8xbf16>
    "tpu.trace_start"() <{level = 10 : i32, message = "bqk,bke->bqe"}> : () -> ()
    %cst_88 = arith.constant dense<0.000000e+00> : vector<16x8x128xf32>
    %296 = tpu.matmul %295, %294, %cst_88 {dimension_numbers = #tpu.dot_dimension_numbers<[2], [1], [1], [2], [0, 0, 0, 1, 1, 2], [0], [0]>} : vector<16x8x8xbf16>, vector<16x8x128xbf16>, vector<16x8x128xf32> -> vector<16x8x128xf32>
    "tpu.trace_stop"() : () -> ()
    %297 = arith.addf %275, %296 : vector<16x8x128xf32>
    %298 = vector.broadcast %26 : vector<1x1x128xf32> to vector<16x8x128xf32>
    %299 = arith.mulf %249, %298 : vector<16x8x128xf32>
    %300 = arith.truncf %299 : vector<16x8x128xf32> to vector<16x8x128xbf16>
    "tpu.trace_start"() <{level = 10 : i32, message = "bqe,bke->bqk"}> : () -> ()
    %cst_89 = arith.constant dense<0.000000e+00> : vector<16x8x8xf32>
    %301 = tpu.matmul %300, %251, %cst_89 {dimension_numbers = #tpu.dot_dimension_numbers<[2], [2], [1], [1], [0, 0, 0, 1, 1, 1], [0], [0]>} : vector<16x8x128xbf16>, vector<16x8x128xbf16>, vector<16x8x8xf32> -> vector<16x8x8xf32>
    "tpu.trace_stop"() : () -> ()
    %cst_90 = arith.constant 0.353553385 : f32
    %302 = vector.broadcast %cst_90 : f32 to vector<16x8x8xf32>
    %303 = arith.mulf %301, %302 : vector<16x8x8xf32>
    %cst_91 = arith.constant dense<0xFF800000> : vector<16x8xf32>
    %304 = vector.multi_reduction <maximumf>, %303, %cst_91 [2] : vector<16x8x8xf32> to vector<16x8xf32>
    %305 = vector.shape_cast %304 : vector<16x8xf32> to vector<16x8x1xf32>
    %306 = vector.broadcast %305 : vector<16x8x1xf32> to vector<16x8x8xf32>
    %307 = arith.subf %303, %306 : vector<16x8x8xf32>
    %308 = math.exp %307 : vector<16x8x8xf32>
    %cst_92 = arith.constant dense<0.000000e+00> : vector<16x8xf32>
    %309 = vector.multi_reduction <add>, %308, %cst_92 [2] : vector<16x8x8xf32> to vector<16x8xf32>
    %310 = vector.shape_cast %309 : vector<16x8xf32> to vector<16x8x1xf32>
    %311 = tpu.reciprocal %310 {approx = true} : vector<16x8x1xf32> -> vector<16x8x1xf32>
    %312 = vector.broadcast %311 : vector<16x8x1xf32> to vector<16x8x8xf32>
    %313 = arith.mulf %308, %312 : vector<16x8x8xf32>
    %314 = vector.broadcast %26 : vector<1x1x128xf32> to vector<16x8x128xf32>
    %315 = arith.mulf %252, %314 : vector<16x8x128xf32>
    %316 = arith.truncf %315 : vector<16x8x128xf32> to vector<16x8x128xbf16>
    %317 = arith.truncf %313 : vector<16x8x8xf32> to vector<16x8x8xbf16>
    "tpu.trace_start"() <{level = 10 : i32, message = "bqk,bke->bqe"}> : () -> ()
    %cst_93 = arith.constant dense<0.000000e+00> : vector<16x8x128xf32>
    %318 = tpu.matmul %317, %316, %cst_93 {dimension_numbers = #tpu.dot_dimension_numbers<[2], [1], [1], [2], [0, 0, 0, 1, 1, 2], [0], [0]>} : vector<16x8x8xbf16>, vector<16x8x128xbf16>, vector<16x8x128xf32> -> vector<16x8x128xf32>
    "tpu.trace_stop"() : () -> ()
    %319 = arith.addf %297, %318 : vector<16x8x128xf32>
    %320 = vector.broadcast %33 : vector<1x1x128xf32> to vector<16x8x128xf32>
    %321 = arith.mulf %249, %320 : vector<16x8x128xf32>
    %322 = arith.truncf %321 : vector<16x8x128xf32> to vector<16x8x128xbf16>
    "tpu.trace_start"() <{level = 10 : i32, message = "bqe,bke->bqk"}> : () -> ()
    %cst_94 = arith.constant dense<0.000000e+00> : vector<16x8x8xf32>
    %323 = tpu.matmul %322, %251, %cst_94 {dimension_numbers = #tpu.dot_dimension_numbers<[2], [2], [1], [1], [0, 0, 0, 1, 1, 1], [0], [0]>} : vector<16x8x128xbf16>, vector<16x8x128xbf16>, vector<16x8x8xf32> -> vector<16x8x8xf32>
    "tpu.trace_stop"() : () -> ()
    %cst_95 = arith.constant 0.353553385 : f32
    %324 = vector.broadcast %cst_95 : f32 to vector<16x8x8xf32>
    %325 = arith.mulf %323, %324 : vector<16x8x8xf32>
    %cst_96 = arith.constant dense<0xFF800000> : vector<16x8xf32>
    %326 = vector.multi_reduction <maximumf>, %325, %cst_96 [2] : vector<16x8x8xf32> to vector<16x8xf32>
    %327 = vector.shape_cast %326 : vector<16x8xf32> to vector<16x8x1xf32>
    %328 = vector.broadcast %327 : vector<16x8x1xf32> to vector<16x8x8xf32>
    %329 = arith.subf %325, %328 : vector<16x8x8xf32>
    %330 = math.exp %329 : vector<16x8x8xf32>
    %cst_97 = arith.constant dense<0.000000e+00> : vector<16x8xf32>
    %331 = vector.multi_reduction <add>, %330, %cst_97 [2] : vector<16x8x8xf32> to vector<16x8xf32>
    %332 = vector.shape_cast %331 : vector<16x8xf32> to vector<16x8x1xf32>
    %333 = tpu.reciprocal %332 {approx = true} : vector<16x8x1xf32> -> vector<16x8x1xf32>
    %334 = vector.broadcast %333 : vector<16x8x1xf32> to vector<16x8x8xf32>
    %335 = arith.mulf %330, %334 : vector<16x8x8xf32>
    %336 = vector.broadcast %33 : vector<1x1x128xf32> to vector<16x8x128xf32>
    %337 = arith.mulf %252, %336 : vector<16x8x128xf32>
    %338 = arith.truncf %337 : vector<16x8x128xf32> to vector<16x8x128xbf16>
    %339 = arith.truncf %335 : vector<16x8x8xf32> to vector<16x8x8xbf16>
    "tpu.trace_start"() <{level = 10 : i32, message = "bqk,bke->bqe"}> : () -> ()
    %cst_98 = arith.constant dense<0.000000e+00> : vector<16x8x128xf32>
    %340 = tpu.matmul %339, %338, %cst_98 {dimension_numbers = #tpu.dot_dimension_numbers<[2], [1], [1], [2], [0, 0, 0, 1, 1, 2], [0], [0]>} : vector<16x8x8xbf16>, vector<16x8x128xbf16>, vector<16x8x128xf32> -> vector<16x8x128xf32>
    "tpu.trace_stop"() : () -> ()
    %341 = arith.addf %319, %340 : vector<16x8x128xf32>
    %342 = vector.shape_cast %341 : vector<16x8x128xf32> to vector<128x128xf32>
    %c0_99 = arith.constant 0 : index
    %c1152 = arith.constant 1152 : index
    %343 = vector.load %arg2[%c0_99, %c1152] : memref<128x1664xbf16, #tpu.memory_space<vmem>>, vector<128x128xbf16>
    %344 = arith.truncf %342 : vector<128x128xf32> to vector<128x128xbf16>
    %cst_100 = arith.constant dense<0.000000e+00> : vector<128x128xf32>
    %345 = tpu.matmul %344, %343, %cst_100 {dimension_numbers = #tpu.dot_dimension_numbers<[1], [0], [0], [1], [0, 0, 1, 1], [], []>} : vector<128x128xbf16>, vector<128x128xbf16>, vector<128x128xf32> -> vector<128x128xf32>
    %346 = vector.broadcast %227 : vector<1x128xf32> to vector<128x128xf32>
    %347 = arith.addf %345, %346 : vector<128x128xf32>
    %348 = arith.addf %223, %347 : vector<128x128xf32>
    %cst_101 = arith.constant dense<0.000000e+00> : vector<128xf32>
    %349 = vector.multi_reduction <add>, %348, %cst_101 [1] : vector<128x128xf32> to vector<128xf32>
    %350 = vector.shape_cast %349 : vector<128xf32> to vector<128x1xf32>
    %cst_102 = arith.constant 3.125000e-02 : f32
    %351 = vector.broadcast %cst_102 : f32 to vector<128x1xf32>
    %352 = arith.mulf %350, %351 : vector<128x1xf32>
    %353 = vector.broadcast %352 : vector<128x1xf32> to vector<128x128xf32>
    %354 = arith.subf %348, %353 : vector<128x128xf32>
    %355 = vector.broadcast %4 : vector<1x128xf32> to vector<128x128xf32>
    %356 = arith.mulf %354, %355 : vector<128x128xf32>
    %357 = arith.mulf %356, %356 : vector<128x128xf32>
    %cst_103 = arith.constant dense<0.000000e+00> : vector<128xf32>
    %358 = vector.multi_reduction <add>, %357, %cst_103 [1] : vector<128x128xf32> to vector<128xf32>
    %359 = vector.shape_cast %358 : vector<128xf32> to vector<128x1xf32>
    %cst_104 = arith.constant 3.125000e-02 : f32
    %360 = vector.broadcast %cst_104 : f32 to vector<128x1xf32>
    %361 = arith.mulf %359, %360 : vector<128x1xf32>
    %cst_105 = arith.constant 9.99999974E-6 : f32
    %362 = vector.broadcast %cst_105 : f32 to vector<128x1xf32>
    %363 = arith.addf %361, %362 : vector<128x1xf32>
    %364 = math.rsqrt %363 : vector<128x1xf32>
    %365 = vector.broadcast %364 : vector<128x1xf32> to vector<128x128xf32>
    %366 = arith.mulf %356, %365 : vector<128x128xf32>
    %367 = vector.broadcast %228 : vector<1x128xf32> to vector<128x128xf32>
    %368 = arith.mulf %366, %367 : vector<128x128xf32>
    %369 = vector.broadcast %229 : vector<1x128xf32> to vector<128x128xf32>
    %370 = arith.addf %368, %369 : vector<128x128xf32>
    %c0_106 = arith.constant 0 : index
    %c1280 = arith.constant 1280 : index
    %371 = vector.load %arg2[%c0_106, %c1280] : memref<128x1664xbf16, #tpu.memory_space<vmem>>, vector<128x128xbf16>
    %372 = arith.truncf %370 : vector<128x128xf32> to vector<128x128xbf16>
    %cst_107 = arith.constant dense<0.000000e+00> : vector<128x128xf32>
    %373 = tpu.matmul %372, %371, %cst_107 {dimension_numbers = #tpu.dot_dimension_numbers<[1], [0], [0], [1], [0, 0, 1, 1], [], []>} : vector<128x128xbf16>, vector<128x128xbf16>, vector<128x128xf32> -> vector<128x128xf32>
    %374 = vector.broadcast %230 : vector<1x128xf32> to vector<128x128xf32>
    %375 = arith.addf %373, %374 : vector<128x128xf32>
    %cst_108 = arith.constant 0.000000e+00 : f32
    %376 = vector.broadcast %cst_108 : f32 to vector<128x128xf32>
    %377 = arith.maximumf %375, %376 : vector<128x128xf32>
    %c0_109 = arith.constant 0 : index
    %c1408 = arith.constant 1408 : index
    %378 = vector.load %arg2[%c0_109, %c1408] : memref<128x1664xbf16, #tpu.memory_space<vmem>>, vector<128x128xbf16>
    %379 = arith.truncf %377 : vector<128x128xf32> to vector<128x128xbf16>
    %cst_110 = arith.constant dense<0.000000e+00> : vector<128x128xf32>
    %380 = tpu.matmul %379, %378, %cst_110 {dimension_numbers = #tpu.dot_dimension_numbers<[1], [0], [0], [1], [0, 0, 1, 1], [], []>} : vector<128x128xbf16>, vector<128x128xbf16>, vector<128x128xf32> -> vector<128x128xf32>
    %381 = vector.broadcast %231 : vector<1x128xf32> to vector<128x128xf32>
    %382 = arith.addf %380, %381 : vector<128x128xf32>
    %383 = arith.addf %370, %382 : vector<128x128xf32>
    %cst_111 = arith.constant dense<0.000000e+00> : vector<128xf32>
    %384 = vector.multi_reduction <add>, %383, %cst_111 [1] : vector<128x128xf32> to vector<128xf32>
    %385 = vector.shape_cast %384 : vector<128xf32> to vector<128x1xf32>
    %cst_112 = arith.constant 3.125000e-02 : f32
    %386 = vector.broadcast %cst_112 : f32 to vector<128x1xf32>
    %387 = arith.mulf %385, %386 : vector<128x1xf32>
    %388 = vector.broadcast %387 : vector<128x1xf32> to vector<128x128xf32>
    %389 = arith.subf %383, %388 : vector<128x128xf32>
    %390 = vector.broadcast %4 : vector<1x128xf32> to vector<128x128xf32>
    %391 = arith.mulf %389, %390 : vector<128x128xf32>
    %392 = arith.mulf %391, %391 : vector<128x128xf32>
    %cst_113 = arith.constant dense<0.000000e+00> : vector<128xf32>
    %393 = vector.multi_reduction <add>, %392, %cst_113 [1] : vector<128x128xf32> to vector<128xf32>
    %394 = vector.shape_cast %393 : vector<128xf32> to vector<128x1xf32>
    %cst_114 = arith.constant 3.125000e-02 : f32
    %395 = vector.broadcast %cst_114 : f32 to vector<128x1xf32>
    %396 = arith.mulf %394, %395 : vector<128x1xf32>
    %cst_115 = arith.constant 9.99999974E-6 : f32
    %397 = vector.broadcast %cst_115 : f32 to vector<128x1xf32>
    %398 = arith.addf %396, %397 : vector<128x1xf32>
    %399 = math.rsqrt %398 : vector<128x1xf32>
    %400 = vector.broadcast %399 : vector<128x1xf32> to vector<128x128xf32>
    %401 = arith.mulf %391, %400 : vector<128x128xf32>
    %402 = vector.broadcast %232 : vector<1x128xf32> to vector<128x128xf32>
    %403 = arith.mulf %401, %402 : vector<128x128xf32>
    %404 = vector.broadcast %233 : vector<1x128xf32> to vector<128x128xf32>
    %405 = arith.addf %403, %404 : vector<128x128xf32>
    %406 = vector.shape_cast %405 : vector<128x128xf32> to vector<16x8x128xf32>
    %cst_116 = arith.constant dense<0.000000e+00> : vector<16x128xf32>
    %407 = vector.multi_reduction <add>, %406, %cst_116 [1] : vector<16x8x128xf32> to vector<16x128xf32>
    %cst_117 = arith.constant 1.250000e-01 : f32
    %408 = vector.broadcast %cst_117 : f32 to vector<16x128xf32>
    %409 = arith.mulf %407, %408 : vector<16x128xf32>
    %c0_118 = arith.constant 0 : index
    %c1536 = arith.constant 1536 : index
    %410 = vector.load %arg2[%c0_118, %c1536] : memref<128x1664xbf16, #tpu.memory_space<vmem>>, vector<128x128xbf16>
    %411 = arith.truncf %409 : vector<16x128xf32> to vector<16x128xbf16>
    %cst_119 = arith.constant dense<0.000000e+00> : vector<16x128xf32>
    %412 = tpu.matmul %411, %410, %cst_119 {dimension_numbers = #tpu.dot_dimension_numbers<[1], [0], [0], [1], [0, 0, 1, 1], [], []>} : vector<16x128xbf16>, vector<128x128xbf16>, vector<16x128xf32> -> vector<16x128xf32>
    %c20 = arith.constant 20 : index
    %c0_120 = arith.constant 0 : index
    %413 = vector.load %arg3[%c20, %c0_120] : memref<24x128xf32, #tpu.memory_space<vmem>>, vector<1x128xf32>
    %414 = vector.broadcast %413 : vector<1x128xf32> to vector<16x128xf32>
    %415 = arith.addf %412, %414 : vector<16x128xf32>
    %c0_121 = arith.constant 0 : index
    %c0_122 = arith.constant 0 : index
    %416 = vector.load %arg4[%c0_121, %c0_122] : memref<16x128xf32, #tpu.memory_space<vmem>>, vector<16x128xf32>
    tpu.vector_store %arg4[%c0_121, %c0_122], %415 {strides = array<i32>} : memref<16x128xf32, #tpu.memory_space<vmem>>, vector<16x128xf32>,
    return
  }
  func.func @transform_0(%arg0: i32) -> (i32, i32, i32) {
    %c0_i32 = arith.constant 0 : i32
    %c0_i32_0 = arith.constant 0 : i32
    %c0_i32_1 = arith.constant 0 : i32
    return %arg0, %c0_i32, %c0_i32_0 : i32, i32, i32
  }
  func.func @transform_1(%arg0: i32) -> (i32, i32) {
    %c0_i32 = arith.constant 0 : i32
    %c0_i32_0 = arith.constant 0 : i32
    %c0_i32_1 = arith.constant 0 : i32
    return %c0_i32, %c0_i32_0 : i32, i32
  }
  func.func @transform_2(%arg0: i32) -> (i32, i32) {
    %c0_i32 = arith.constant 0 : i32
    %c0_i32_0 = arith.constant 0 : i32
    %c0_i32_1 = arith.constant 0 : i32
    return %c0_i32, %c0_i32_0 : i32, i32
  }
  func.func @transform_3(%arg0: i32) -> (i32, i32) {
    %c0_i32 = arith.constant 0 : i32
    %c0_i32_0 = arith.constant 0 : i32
    return %arg0, %c0_i32 : i32, i32
  }
}

</mosaic_0001>

<bundles_post_ra>
// kernel: tpu_custom_call.1
= control target key start
LH: loop header
LB: loop body
LE: loop exit
PB: predicated region body
PF: predicated region fallthrough
CT: control target
= control target key end

     0   :  { %8 = vsyncpa [#allocation3], 0  ;;  %s16283_s0 = inlined_call_operand.vmem [shape: f32[64,8,32], index: 0, kind: input, shape index: {}]   ;;  %s16284_s1 = inlined_call_operand.hbm [shape: bf16[128,1664], index: 1, kind: input, shape index: {}]   ;;  %s16285_s2 = inlined_call_operand.vmem [shape: f32[24,128], index: 2, kind: input, shape index: {}]   ;;  %s16286_s3 = inlined_call_operand.hbm [shape: f32[64,128], index: 3, kind: output, shape index: {}]  }
   0x1   :  { %9 = vsyncpa [#allocation4], 0 }
   0x2   :  { %11 = vsyncpa [#allocation4 + $0x1], 0  ;;  %s11669_s12 = smov 0   ;;  %s11671_s13 = smov 0  }
   0x3   :  { %s11673_s14 = smov 0   ;;  %s11675_s15 = smov 0  }
   0x4 LB: > { %s11690_s16 = sadd.s32 4294967295, %s11640_s15   ;;  %s10114_s17 = sadd.s32 4294967294, %s11640_s15   ;;  %s11640_s15 = sphi %s11675_s15, %s16862_s15   ;;  %s11636_s14 = sphi %s11673_s14, %s16861_s14   ;;  %s11632_s13 = sphi %s11671_s13, %s16860_s13   ;;  %s11628_s12 = sphi %s11669_s12, %s16859_s12  }
   0x5   : > { %s11694_s18 = sadd.s32 1, %s11640_s15   ;;  %s92_s19 = sadd.s32 1, %s11636_s14 }
   0x6   : > { %s89_s20 = ssub.s32 %s11640_s15, %s11694_s18  ;;  %p102_p0 = scmp.ne.s32.totalorder %s11636_s14, %s11632_s13 }
   0x7   : > { %p90_p1 = scmp.eq.s32.totalorder %s89_s20, 0  ;;  %p103_p2 = scmp.eq.s32.totalorder %s11690_s16, 3 }
   0x8   : > { %p108_p3 = scmp.ne.s32.totalorder %s11632_s13, %s11628_s12  ;;  %p109_p4 = scmp.eq.s32.totalorder %s10114_s17, 3 }
   0x9   : > { %s11705_s21 = scalar_select %p90_p1, %s11636_s14, %s92_s19  }
   0xa   : > { %p11707_p5 = por %p103_p2, %p102_p0  ;;  %p11711_p6 = por %p109_p4, %p108_p3 }
   0xb   : > { %p10115_p7 = scmp.ge.s32.totalorder %s11640_s15, 1  ;;  %p116_p8 = scmp.lt.s32.totalorder %s11640_s15, 5 }
   0xc   : > { %p10840_p9 = scmp.eq.s32.totalorder %s11690_s16, 0  ;;  %s127_s26 = sshll.u32 %s16284_s1, 4  ;;  %s128_s26 = int_to_ptr.hbm [resolvable:$true] %s127_s26 }
   0xd   : > { %p117_p10 = pnand %p10115_p7, %p116_p8  ;;  %s11642_s27 = smov [#allocation2]  }
   0xe   : > { %s129_s28 = sshll.u32 %s11642_s27, 4  ;;  %s11643_s29 = smov 832   ;;  %s130_s28 = int_to_ptr.vmem [resolvable:$true] %s129_s28 }
   0xf   : > { %p10832_p11 = pneg %p117_p10  ;;  %s11644_s30 = smov 52  }
  0x10   : > { %157 = sbr.rel (%p117_p10) target bundleno = 6372 (0x18e4), region = 32 }
  0x11   : > { %p10833_p12 = pnand %p10840_p9, %p10832_p11 }
  0x13   : > { %10835 = dma.hbm_to_vmem [thread:$0]  (!%p10833_p12), %s128_s26, 13312, %s130_s28, [#allocation3], %s11643_s29, %s11643_s29, %s11644_s30  }
  0x15   : > { %11619 = dma.done.wait (%p10840_p9), [#allocation3], 13312  }
  0x16   : > { %11621 = vsyncadd (%p10840_p9), [#allocation3], 4294953984  ;;  %v190_v0 = vlaneseq  ;;  %s11728_s4 = sshll.u32 %s11690_s16, 4  ;;  %v11645_v3 = vmov 0.0   ;;  %v11646_v11 = vmov 1.0   ;;  %vm247_vm12 = vcmask 261120  }
  0x17   : > { %p183_p13 = scmp.lt.s32.totalorder %s11728_s4, 63  ;;  %v10182_v24 = vld [vmem:[#allocation2 + $0x2d8] sm:$0xf]  ;;  %v10708_v25 = vld [vmem:[#allocation2 + $0x308] sm:$0xf0]  ;;  %vm1701_vm15 = vcmask 1043456  }
  0x18   : > { %v11731_v1 = vand.u32 127, %v190_v0  ;;  %v215_v2 = vshrl.u32 %v190_v0, 7  ;;  %v10178_v26 = vld [vmem:[#allocation2 + $0x270] sm:$0xf]  ;;  %v10183_v27 = vor.u32 %v10708_v25, %v10182_v24  ;;  %v10707_v28 = vld [vmem:[#allocation2 + $0x2a0] sm:$0xf0] }
  0x19   : > { %s184_s5 = scalar_select %p183_p13, %s11728_s4, 63  ;;  %v10246_v29 = vld [vmem:[#allocation2 + $0x2e0] sm:$0xf]  ;;  %v10724_v30 = vld [vmem:[#allocation2 + $0x310] sm:$0xf0]  ;;  %v10179_v31 = vor.u32 %v10707_v28, %v10178_v26 }
  0x1a   : > { %vm192_vm0 = vcmp.lt.s32.totalorder %v11731_v1, 32  ;;  %vm200_vm1 = vcmp.ge.s32.totalorder %v11731_v1, 8  ;;  %vm201_vm2 = vcmp.lt.s32.totalorder %v11731_v1, 16  ;;  %vm205_vm4 = vcmp.ge.s32.totalorder %v11731_v1, 16  ;;  %444 = vmatpush.bf16.msra.mxu1 %v10183_v27  ;;  %v10174_v33 = vld [vmem:[#allocation2 + $0x208] sm:$0xf] }
  0x1b   : > { %v11740_v4 = vsel %vm192_vm0, 1.0, %v11645_v3  ;;  %vm202_vm3 = vmand %vm200_vm1, %vm201_vm2  ;;  %vm206_vm5 = vcmp.lt.s32.totalorder %v11731_v1, 24  ;;  %s10122_s6 = sshll.u32 %s184_s5, 3  ;;  %vm210_vm7 = vcmp.ge.s32.totalorder %v11731_v1, 24  ;;  %v218_v6 = vadd.s32 24, %v215_v2  ;;  %s179_s24 = sand.u32 1, %s11632_s13  }
  0x1c   : > { %16480 = vst [vmem:[#allocation8_spill] sm:$0xff] %v11740_v4  ;;  %v11745_v5 = vsel %vm202_vm3, 1.0, %v11645_v3  ;;  %vm207_vm6 = vmand %vm205_vm4, %vm206_vm5  ;;  %v217_v7 = vadd.s32 16, %v215_v2  ;;  %v216_v9 = vadd.s32 8, %v215_v2  ;;  %s11761_s9 = scalar_lea.vmem %s16283_s0, %s10122_s6  ;;  %vm219_vm13 = vcmp.eq.s32.totalorder %v215_v2, %v11731_v1  ;;  %v10706_v34 = vld [vmem:[#allocation2 + $0x238] sm:$0xf0]  ;;  %s10036_s5 = scalar_lea.hbm %s16286_s3, %s11728_s4 }
  0x1d   : > { %16481 = vst [vmem:[#allocation9_spill] sm:$0xff] %v11745_v5  ;;  %v11749_v8 = vsel %vm207_vm6, 1.0, %v11645_v3  ;;  %vm211_vm8 = vmand %vm210_vm7, %vm192_vm0  ;;  %vm222_vm9 = vcmp.eq.s32.totalorder %v218_v6, %v11731_v1  ;;  %v231_v12 = vld [vmem:[%s11761_s9] sm:$0xff]  ;;  %v232_v14 = vld [vmem:[%s11761_s9 + $0x8] sm:$0xff]  ;;  %v11789_v32 = vor.u32 %v10724_v30, %v10246_v29  ;;  %v10175_v36 = vor.u32 %v10706_v34, %v10174_v33  ;;  %s10120_s25 = sshll.u32 %s179_s24, 4  ;;  %s10039_s7 = sshll.u32 %s10036_s5, 4  ;;  %s10040_s7 = int_to_ptr.hbm [resolvable:$true] %s10039_s7 }
  0x1e   : > { %16482 = vst [vmem:[#allocation10_spill] sm:$0xff] %v11749_v8  ;;  %v11754_v10 = vsel %vm211_vm8, 1.0, %v11645_v3  ;;  %vm221_vm10 = vcmp.eq.s32.totalorder %v217_v7, %v11731_v1  ;;  %10132 = vmatpush.msk.msra.mxu0 %vm222_vm9, %v11646_v11  ;;  %10806 = vmatpush.msk.msra.mxu2 %vm222_vm9, %v11646_v11  ;;  %vm220_vm11 = vcmp.eq.s32.totalorder %v216_v9, %v11731_v1  ;;  %v243_v13 = vld [vmem:[%s11761_s9 + $0x60] sm:$0xff]  ;;  %v244_v15 = vld [vmem:[%s11761_s9 + $0x68] sm:$0xff]  ;;  %v233_v16 = vld [vmem:[%s11761_s9 + $0x10] sm:$0xff]  ;;  %vm196_vm14 = vcmp.lt.s32.totalorder %v11731_v1, 8 }
  0x1f   : > { %16483 = vst [vmem:[#allocation11_spill] sm:$0xff] %v11754_v10  ;;  %v245_v17 = vld [vmem:[%s11761_s9 + $0x70] sm:$0xff]  ;;  %v234_v18 = vld [vmem:[%s11761_s9 + $0x18] sm:$0xff]  ;;  %v235_v20 = vld [vmem:[%s11761_s9 + $0x20] sm:$0xff]  ;;  %10818 = vmatpush.bf16.msra.mxu3 %v11789_v32  ;;  %445 = vmatpush.bf16.msra.mxu1 %v10179_v31  ;;  %vm993_vm0 = vcmask 64512   ;;  %s181_s28 = scalar_lea.vmem [#allocation5], %s10120_s25 }
  0x20   : > { %10133 = vmatpush.msk.msra.mxu0 %vm221_vm10, %v11646_v11  ;;  %10807 = vmatpush.msk.msra.mxu2 %vm221_vm10, %v11646_v11  ;;  %v246_v19 = vld [vmem:[%s11761_s9 + $0x78] sm:$0xff]  ;;  %v236_v21 = vld [vmem:[%s11761_s9 + $0x28] sm:$0xff]  ;;  %v237_v22 = vld [vmem:[%s11761_s9 + $0x30] sm:$0xff]  ;;  %s10037_s6 = sshll.u32 %s181_s28, 4  ;;  %s10025_s8 = scalar_lea.sflag [#allocation4], %s179_s24  ;;  %s10038_s6 = int_to_ptr.vmem [resolvable:$true] %s10037_s6 }
  0x21   : > { %v238_v23 = vld [vmem:[%s11761_s9 + $0x38] sm:$0xff]  ;;  %v239_v35 = vld [vmem:[%s11761_s9 + $0x40] sm:$0xff]  ;;  %v10705_v38 = vld [vmem:[#allocation2 + $0x1d0] sm:$0xf0]  ;;  %s11594_s17 = scalar_lea.hbm %s16286_s3, 64 }
  0x22   : > { %10134 = vmatpush.msk.msra.mxu0 %vm220_vm11, %v11646_v11  ;;  %10808 = vmatpush.msk.msra.mxu2 %vm220_vm11, %v11646_v11  ;;  %v10170_v37 = vld [vmem:[#allocation2 + $0x1a0] sm:$0xf]  ;;  %v240_v40 = vld [vmem:[%s11761_s9 + $0x48] sm:$0xff]  ;;  %v241_v41 = vld [vmem:[%s11761_s9 + $0x50] sm:$0xff] }
  0x23   : > { %v10171_v39 = vor.u32 %v10705_v38, %v10170_v37  ;;  %446 = vmatpush.bf16.msra.mxu1 %v10175_v36  ;;  %v242_v42 = vld [vmem:[%s11761_s9 + $0x58] sm:$0xff]  ;;  %v10723_v44 = vld [vmem:[#allocation2 + $0x2a8] sm:$0xf0]  ;;  %v10238_v49 = vld [vmem:[#allocation2 + $0x210] sm:$0xf]  ;;  %s11588_s9 = sshra.s32 %s10040_s7, 4  ;;  %s11589_s9 = int_to_ptr.hbm [resolvable:$true] %s11588_s9 }
  0x24   : > { %10135 = vmatpush.msk.msra.mxu0 %vm219_vm13, %v11646_v11  ;;  %10809 = vmatpush.msk.msra.mxu2 %vm219_vm13, %v11646_v11  ;;  %v10242_v43 = vld [vmem:[#allocation2 + $0x278] sm:$0xf]  ;;  %v10704_v47 = vld [vmem:[#allocation2 + $0x168] sm:$0xf0]  ;;  %v10722_v50 = vld [vmem:[#allocation2 + $0x240] sm:$0xf0]  ;;  %p11595_p3 = scmp.lt.s32.totalorder %s11589_s9, %s16286_s3 }
  0x25   : > { %10136 = vmatmul.msk.f32.vlgmr.msra.gmra.mxu0 %vm247_vm12, %v231_v12  ;;  %10148 = vmatmul.msk.f32.vlgmr.msra.gmra.mxu2 %vm247_vm12, %v243_v13  ;;  %v11800_v45 = vor.u32 %v10723_v44, %v10242_v43  ;;  %v10166_v46 = vld [vmem:[#allocation2 + $0x138] sm:$0xf]  ;;  %v11803_v51 = vor.u32 %v10722_v50, %v10238_v49  ;;  %v10162_v52 = vld [vmem:[#allocation2 + $0xd0] sm:$0xf]  ;;  %v10703_v53 = vld [vmem:[#allocation2 + $0x100] sm:$0xf0] }
  0x26   : > { %10810 = vmatpush.bf16.msrb.mxu2 %v10183_v27  ;;  %v10167_v48 = vor.u32 %v10704_v47, %v10166_v46  ;;  %v10163_v54 = vor.u32 %v10703_v53, %v10162_v52  ;;  %v10234_v55 = vld [vmem:[#allocation2 + $0x1a8] sm:$0xf]  ;;  %v10721_v56 = vld [vmem:[#allocation2 + $0x1d8] sm:$0xf0]  ;;  %v10230_v61 = vld [vmem:[#allocation2 + $0x140] sm:$0xf] }
  0x27   : > { %447 = vmatpush.bf16.msra.mxu1 %v10171_v39  ;;  %10819 = vmatpush.bf16.msra.mxu3 %v11800_v45  ;;  %v11806_v57 = vor.u32 %v10721_v56, %v10234_v55  ;;  %v10158_v58 = vld [vmem:[#allocation2 + $0x68] sm:$0xf]  ;;  %v10702_v59 = vld [vmem:[#allocation2 + $0x98] sm:$0xf0]  ;;  %v10720_v62 = vld [vmem:[#allocation2 + $0x170] sm:$0xf0] }
  0x28   : > { %v10159_v60 = vor.u32 %v10702_v59, %v10158_v58  ;;  %v11809_v63 = vor.u32 %v10720_v62, %v10230_v61  ;;  %v10154_v0 = vld [vmem:[#allocation2] sm:$0xf]  ;;  %v10701_v2 = vld [vmem:[#allocation2 + $0x30] sm:$0xf0]  ;;  %v10226_v7 = vld [vmem:[#allocation2 + $0xd8] sm:$0xf] }
  0x29   : > { %v10155_v6 = vor.u32 %v10701_v2, %v10154_v0  ;;  %v10719_v9 = vld [vmem:[#allocation2 + $0x108] sm:$0xf0]  ;;  %v10214_v12 = vld [vmem:[#allocation2 + $0x2dc] sm:$0xf]  ;;  %v10716_v13 = vld [vmem:[#allocation2 + $0x30c] sm:$0xf0] }
  0x2a   : > { %10811 = vmatpush.bf16.msrb.mxu2 %v10179_v31  ;;  %v11812_v11 = vor.u32 %v10719_v9, %v10226_v7  ;;  %v10206_v24 = vld [vmem:[#allocation2 + $0x20c] sm:$0xf]  ;;  %v10714_v25 = vld [vmem:[#allocation2 + $0x23c] sm:$0xf0]  ;;  %v10202_v27 = vld [vmem:[#allocation2 + $0x1a4] sm:$0xf] }
  0x2b   : > { %448 = vmatpush.bf16.msra.mxu1 %v10167_v48  ;;  %10820 = vmatpush.bf16.msra.mxu3 %v11803_v51  ;;  %v10207_v26 = vor.u32 %v10714_v25, %v10206_v24  ;;  %v10713_v28 = vld [vmem:[#allocation2 + $0x1d4] sm:$0xf0]  ;;  %v10198_v30 = vld [vmem:[#allocation2 + $0x13c] sm:$0xf]  ;;  %v10712_v31 = vld [vmem:[#allocation2 + $0x16c] sm:$0xf0] }
  0x2c   : > { %v10203_v29 = vor.u32 %v10713_v28, %v10202_v27  ;;  %v10199_v34 = vor.u32 %v10712_v31, %v10198_v30  ;;  %v10186_v44 = vld [vmem:[#allocation2 + $0x4] sm:$0xf]  ;;  %v10709_v46 = vld [vmem:[#allocation2 + $0x34] sm:$0xf0]  ;;  %s11590_s10 = scalar_lea.hbm %s11589_s9, 16 }
  0x2d   : > { %10137 = vmatmul.msk.f32.gmra.mxu0 %vm247_vm12, %v232_v14  ;;  %10149 = vmatmul.msk.f32.gmra.mxu2 %vm247_vm12, %v244_v15  ;;  %v10215_v14 = vor.u32 %v10716_v13, %v10214_v12  ;;  %v10222_v15 = vld [vmem:[#allocation2 + $0x70] sm:$0xf]  ;;  %v10187_v47 = vor.u32 %v10709_v46, %v10186_v44  ;;  %p11591_p0 = scmp.ne.s32.totalorder %s11589_s9, %s11590_s10  ;;  %p11596_p4 = scmp.lt.s32.totalorder %s11594_s17, %s11590_s10 }
  0x2e   : > { %10812 = vmatpush.bf16.msrb.mxu2 %v10175_v36  ;;  %v10711_v36 = vld [vmem:[#allocation2 + $0x104] sm:$0xf0] }
  0x2f   : > { %449 = vmatpush.bf16.msra.mxu1 %v10163_v54  ;;  %10821 = vmatpush.bf16.msra.mxu3 %v11806_v57  ;;  %p11592_p1 = pnand %p11591_p0, %p11707_p5  ;;  %p11597_p7 = por %p11596_p4, %p11595_p3 }
  0x31   : > { %p11593_p2 = pneg %p11592_p1 }
  0x32   : > { %10813 = vmatpush.bf16.msrb.mxu2 %v10171_v39  ;;  %v10190_v39 = vld [vmem:[#allocation2 + $0x6c] sm:$0xf] }
  0x33   : > { %450 = vmatpush.bf16.msra.mxu1 %v10159_v60  ;;  %10822 = vmatpush.bf16.msra.mxu3 %v11809_v63  ;;  %p11598_p8 = pnand %p11597_p7, %p11593_p2 }
  0x35   : > { %10138 = vmatmul.msk.f32.gmra.mxu0 %vm247_vm12, %v233_v16  ;;  %10150 = vmatmul.msk.f32.gmra.mxu2 %vm247_vm12, %v245_v17  ;;  %v10718_v16 = vld [vmem:[#allocation2 + $0xa0] sm:$0xf0] }
  0x36   : > { %10814 = vmatpush.bf16.msrb.mxu2 %v10167_v48  ;;  %v10223_v17 = vor.u32 %v10718_v16, %v10222_v15  ;;  %v11885_v15 = vld [vmem:[%s16285_s2 + $0x1] ss:$0 sm:$0xff]  ;;  %v11890_v16 = vld [vmem:[%s16285_s2] ss:$0 sm:$0xff] }
  0x37   : > { %451 = vmatpush.bf16.msra.mxu1 %v10155_v6  ;;  %10823 = vmatpush.bf16.msra.mxu3 %v11812_v11 }
  0x3a   : > { %10815 = vmatpush.bf16.msrb.mxu2 %v10163_v54 }
  0x3b   : > { %10824 = vmatpush.bf16.msra.mxu3 %v10223_v17 }
  0x3d   : > { %10139 = vmatmul.msk.f32.gmra.mxu0 %vm247_vm12, %v234_v18  ;;  %10151 = vmatmul.msk.f32.gmra.mxu2 %vm247_vm12, %v246_v19  ;;  %v10210_v18 = vld [vmem:[#allocation2 + $0x274] sm:$0xf]  ;;  %v10715_v19 = vld [vmem:[#allocation2 + $0x2a4] sm:$0xf0] }
  0x3e   : > { %10816 = vmatpush.bf16.msrb.mxu2 %v10159_v60 }
  0x42   : > { %10817 = vmatpush.bf16.msrb.mxu2 %v10155_v6 }
  0x45   : > { %10140 = vmatmul.msk.f32.gmra.mxu0 %vm247_vm12, %v235_v20  ;;  %v10211_v20 = vor.u32 %v10715_v19, %v10210_v18 }
  0x46   : > { %558 = vmatpush.bf16.msra.mxu2 %v10215_v14 }
  0x4a   : > { %559 = vmatpush.bf16.msra.mxu2 %v10211_v20 }
  0x4d   : > { %10141 = vmatmul.msk.f32.gmra.mxu0 %vm247_vm12, %v236_v21  ;;  %v10218_v21 = vld [vmem:[#allocation2 + $0x8] sm:$0xf] }
  0x4e   : > { %560 = vmatpush.bf16.msra.mxu2 %v10207_v26 }
  0x52   : > { %561 = vmatpush.bf16.msra.mxu2 %v10203_v29 }
  0x55   : > { %10142 = vmatmul.msk.f32.gmra.mxu0 %vm247_vm12, %v237_v22  ;;  %v10717_v22 = vld [vmem:[#allocation2 + $0x38] sm:$0xf0] }
  0x56   : > { %562 = vmatpush.bf16.msra.mxu2 %v10199_v34 }
  0x5d   : > { %10143 = vmatmul.msk.f32.gmra.mxu0 %vm247_vm12, %v238_v23  ;;  %v10219_v23 = vor.u32 %v10717_v22, %v10218_v21  ;;  %v11900_v21 = vsel %vm196_vm14, 1.0, %v11645_v3 }
  0x5e   : > { %16502 = vst [vmem:[#allocation30_spill] sm:$0xff] %v11900_v21 }
  0x5f   : > { %10825 = vmatpush.bf16.msra.mxu3 %v10219_v23 }
  0x65   : > { %10144 = vmatmul.msk.f32.gmra.mxu0 %vm247_vm12, %v239_v35  ;;  %v10194_v35 = vld [vmem:[#allocation2 + $0xd4] sm:$0xf] }
  0x66   : > { %v10195_v37 = vor.u32 %v10711_v36, %v10194_v35 }
  0x68   : > { %563 = vmatpush.bf16.msra.mxu2 %v10195_v37 }
  0x6d   : > { %10145 = vmatmul.msk.f32.gmra.mxu0 %vm247_vm12, %v240_v40  ;;  %v10710_v40 = vld [vmem:[#allocation2 + $0x9c] sm:$0xf0] }
  0x75   : > { %10146 = vmatmul.msk.f32.gmra.mxu0 %vm247_vm12, %v241_v41 }
  0x7d   : > { %10147 = vmatmul.msk.f32.gmra.mxu0 %vm247_vm12, %v242_v42  ;;  %v10191_v42 = vor.u32 %v10710_v40, %v10190_v39 }
  0x7f   : > { %564 = vmatpush.bf16.msra.mxu2 %v10191_v42 }
  0x83   : > { %565 = vmatpush.bf16.msra.mxu2 %v10187_v47 }
  0xa2   : > { %v11815_v33 = vpop.f32.mrf.mxu0 }
  0xa3   : > { %16484 = vst [vmem:[#allocation12_spill] sm:$0xff] %v11815_v33 }
  0xa8   : > { %v11817_v38 = vpop.f32.mrf.mxu2 }
  0xa9   : > { %16485 = vst [vmem:[#allocation13_spill] sm:$0xff] %v11817_v38 }
  0xaa   : > { %v11819_v41 = vpop.f32.mrf.mxu0 }
  0xab   : > { %16486 = vst [vmem:[#allocation14_spill] sm:$0xff] %v11819_v41  ;;  %v11823_v43 = vpack.c.bf16 %v11819_v41, %v11815_v33 }
  0xad   : > { %452 = vmatmul.bf16.vlgmr.msra.gmra.mxu1 %v11823_v43 }
  0xb0   : > { %v11826_v48 = vpop.f32.mrf.mxu2 }
  0xb1   : > { %16487 = vst [vmem:[#allocation15_spill] sm:$0xff] %v11826_v48  ;;  %v393_v49 = vpack.c.bf16 %v11826_v48, %v11817_v38 }
  0xb2   : > { %v11830_v50 = vpop.f32.mrf.mxu0 }
  0xb3   : > { %16488 = vst [vmem:[#allocation16_spill] sm:$0xff] %v11830_v50  ;;  %482 = vmatmul.bf16.vlgmr.msrb.gmra.mxu2 %v393_v49 }
  0xb4   : > { %672 = vmatpush.bf16.msrb.mxu2 %v11789_v32 }
  0xb8   : > { %v11833_v52 = vpop.f32.mrf.mxu2  ;;  %673 = vmatpush.bf16.msrb.mxu2 %v11800_v45 }
  0xb9   : > { %16489 = vst [vmem:[#allocation17_spill] sm:$0xff] %v11833_v52 }
  0xba   : > { %v11836_v53 = vpop.f32.mrf.mxu0 }
  0xbb   : > { %16490 = vst [vmem:[#allocation18_spill] sm:$0xff] %v11836_v53  ;;  %v388_v54 = vpack.c.bf16 %v11836_v53, %v11830_v50 }
  0xbc   : > { %674 = vmatpush.bf16.msrb.mxu2 %v11803_v51 }
  0xbd   : > { %685 = vmatmul.bf16.vlgmr.msra.gmra.mxu3 %v388_v54  ;;  %457 = vmatmul.bf16.gmra.mxu1 %v388_v54 }
  0xc0   : > { %v11841_v55 = vpop.f32.mrf.mxu2  ;;  %675 = vmatpush.bf16.msrb.mxu2 %v11806_v57 }
  0xc1   : > { %16491 = vst [vmem:[#allocation19_spill] sm:$0xff] %v11841_v55  ;;  %v394_v32 = vpack.c.bf16 %v11841_v55, %v11833_v52 }
  0xc2   : > { %v11846_v56 = vpop.f32.mrf.mxu0 }
  0xc3   : > { %16492 = vst [vmem:[#allocation20_spill] sm:$0xff] %v11846_v56  ;;  %487 = vmatmul.bf16.gmra.mxu2 %v394_v32 }
  0xc4   : > { %676 = vmatpush.bf16.msrb.mxu2 %v11809_v63 }
  0xc8   : > { %677 = vmatpush.bf16.msrb.mxu2 %v11812_v11 }
  0xca   : > { %v11850_v45 = vpop.f32.mrf.mxu0 }
  0xcb   : > { %16493 = vst [vmem:[#allocation21_spill] sm:$0xff] %v11850_v45  ;;  %v389_v51 = vpack.c.bf16 %v11850_v45, %v11846_v56 }
  0xcc   : > { %678 = vmatpush.bf16.msrb.mxu2 %v10223_v17 }
  0xcd   : > { %690 = vmatmul.bf16.gmra.mxu3 %v389_v51  ;;  %462 = vmatmul.bf16.gmra.mxu1 %v389_v51 }
  0xd0   : > { %679 = vmatpush.bf16.msrb.mxu2 %v10219_v23 }
  0xd2   : > { %v11854_v57 = vpop.f32.mrf.mxu0 }
  0xd3   : > { %16494 = vst [vmem:[#allocation22_spill] sm:$0xff] %v11854_v57  ;;  %566 = vmatmul.bf16.vlgmr.msra.gmra.mxu2 %v11823_v43 }
  0xda   : > { %v11857_v58 = vpop.f32.mrf.mxu0 }
  0xdb   : > { %16495 = vst [vmem:[#allocation23_spill] sm:$0xff] %v11857_v58  ;;  %v390_v59 = vpack.c.bf16 %v11857_v58, %v11854_v57 }
  0xdd   : > { %695 = vmatmul.bf16.gmra.mxu3 %v390_v59  ;;  %467 = vmatmul.bf16.gmra.mxu1 %v390_v59 }
  0xe2   : > { %v11861_v60 = vpop.f32.mrf.mxu0 }
  0xe3   : > { %16496 = vst [vmem:[#allocation24_spill] sm:$0xff] %v11861_v60  ;;  %571 = vmatmul.bf16.gmra.mxu2 %v388_v54 }
  0xea   : > { %v11863_v61 = vpop.f32.mrf.mxu0 }
  0xeb   : > { %16497 = vst [vmem:[#allocation25_spill] sm:$0xff] %v11863_v61  ;;  %v391_v62 = vpack.c.bf16 %v11863_v61, %v11861_v60 }
  0xed   : > { %700 = vmatmul.bf16.gmra.mxu3 %v391_v62  ;;  %472 = vmatmul.bf16.gmra.mxu1 %v391_v62 }
  0xf2   : > { %v11867_v63 = vpop.f32.mrf.mxu0 }
  0xf3   : > { %16498 = vst [vmem:[#allocation26_spill] sm:$0xff] %v11867_v63  ;;  %576 = vmatmul.bf16.gmra.mxu2 %v389_v51 }
  0xfa   : > { %v11869_v0 = vpop.f32.mrf.mxu0 }
  0xfb   : > { %16499 = vst [vmem:[#allocation27_spill] sm:$0xff] %v11869_v0  ;;  %v392_v2 = vpack.c.bf16 %v11869_v0, %v11867_v63 }
  0xfd   : > { %705 = vmatmul.bf16.gmra.mxu3 %v392_v2  ;;  %477 = vmatmul.bf16.gmra.mxu1 %v392_v2 }
 0x103   : > { %581 = vmatmul.bf16.gmra.mxu2 %v390_v59 }
 0x10d   : > { %710 = vmatmul.bf16.gmra.mxu3 %v393_v49 }
 0x113   : > { %586 = vmatmul.bf16.gmra.mxu2 %v391_v62 }
 0x11d   : > { %715 = vmatmul.bf16.gmra.mxu3 %v394_v32 }
 0x123   : > { %591 = vmatmul.bf16.gmra.mxu2 %v392_v2 }
 0x12a   : > { %v453_v9 = vpop.f32.mrf.mxu1 }
 0x12b   : > { %v11895_v19 = vadd.f32 %v11890_v16, %v453_v9 }
 0x12d   : > { %16500 = vst [vmem:[#allocation28_spill] sm:$0xff] %v11895_v19  ;;  %v737_v22 = vmul.f32 %v11900_v21, %v11895_v19 }
 0x12f   : > { %v753_v26 = vpack.c.bf16 %v737_v22, %v737_v22 }
 0x132   : > { %v455_v12 = vpop.f32.mrf.mxu1 }
 0x133   : > { %596 = vmatmul.bf16.gmra.mxu2 %v393_v49  ;;  %v11911_v29 = vadd.f32 %v11890_v16, %v455_v12 }
 0x135   : > { %16504 = vst [vmem:[#allocation32_spill] sm:$0xff] %v11911_v29  ;;  %v738_v35 = vmul.f32 %v11900_v21, %v11911_v29 }
 0x136   : > { %v11873_v6 = vpop.f32.mrf.mxu2 }
 0x137   : > { %v754_v40 = vpack.c.bf16 %v738_v35, %v738_v35 }
 0x13a   : > { %v458_v14 = vpop.f32.mrf.mxu1 }
 0x13b   : > { %v11914_v30 = vadd.f32 %v11890_v16, %v458_v14 }
 0x13d   : > { %16505 = vst [vmem:[#allocation33_spill] sm:$0xff] %v11914_v30  ;;  %v739_v34 = vmul.f32 %v11900_v21, %v11914_v30 }
 0x13e   : > { %v11875_v7 = vpop.f32.mrf.mxu2 }
 0x13f   : > { %v755_v39 = vpack.c.bf16 %v739_v34, %v739_v34 }
 0x142   : > { %v460_v23 = vpop.f32.mrf.mxu1 }
 0x143   : > { %601 = vmatmul.bf16.gmra.mxu2 %v394_v32  ;;  %v11929_v47 = vadd.f32 %v11890_v16, %v460_v23  ;;  %v11936_v32 = vpop.f32.mrf.mxu3 }
 0x145   : > { %16508 = vst [vmem:[#allocation36_spill] sm:$0xff] %v11929_v47  ;;  %v740_v59 = vmul.f32 %v11900_v21, %v11929_v47 }
 0x146   : > { %v11877_v11 = vpop.f32.mrf.mxu2 }
 0x147   : > { %v756_v12 = vpack.c.bf16 %v740_v59, %v740_v59 }
 0x14a   : > { %v463_v28 = vpop.f32.mrf.mxu1 }
 0x14b   : > { %v11932_v49 = vadd.f32 %v11890_v16, %v463_v28  ;;  %v11952_v23 = vpop.f32.mrf.mxu3 }
 0x14d   : > { %16509 = vst [vmem:[#allocation37_spill] sm:$0xff] %v11932_v49  ;;  %v741_v62 = vmul.f32 %v11900_v21, %v11932_v49 }
 0x14e   : > { %v11879_v13 = vpop.f32.mrf.mxu2 }
 0x152   : > { %v465_v42 = vpop.f32.mrf.mxu1 }
 0x153   : > { %680 = vmatmul.bf16.vlgmr.msrb.gmra.mxu2 %v11823_v43  ;;  %v11945_v14 = vadd.f32 %v11890_v16, %v465_v42 }
 0x155   : > { %16511 = vst [vmem:[#allocation39_spill] sm:$0xff] %v11945_v14  ;;  %v742_v22 = vmul.f32 %v11900_v21, %v11945_v14 }
 0x156   : > { %v567_v17 = vpop.f32.mrf.mxu2 }
 0x157   : > { %v568_v18 = vadd.f32 %v11885_v15, %v567_v17  ;;  %v757_v17 = vpack.c.bf16 %v741_v62, %v741_v62 }
 0x159   : > { %v11897_v20 = vpack.c.bf16 %v568_v18, %v568_v18 }
 0x15a   : > { %v468_v51 = vpop.f32.mrf.mxu1 }
 0x15b   : > { %16501 = vst [vmem:[#allocation29_spill] sm:$0xff] %v11897_v20  ;;  %776 = vmatpush.bf16.xpose.msrb.mxu0 %v11897_v20  ;;  %v11956_v28 = vadd.f32 %v11890_v16, %v468_v51 }
 0x15d   : > { %16513 = vst [vmem:[#allocation41_spill] sm:$0xff] %v11956_v28  ;;  %v743_v34 = vmul.f32 %v11900_v21, %v11956_v28 }
 0x15e   : > { %v569_v24 = vpop.f32.mrf.mxu2 }
 0x15f   : > { %v570_v25 = vadd.f32 %v11885_v15, %v569_v24  ;;  %v759_v42 = vpack.c.bf16 %v743_v34, %v743_v34 }
 0x161   : > { %v11906_v27 = vpack.c.bf16 %v570_v25, %v570_v25 }
 0x162   : > { %777 = vmatmul.bf16.vlgmr.msrb.gmra.mxu0 %v753_v26  ;;  %v470_v24 = vpop.f32.mrf.mxu1 }
 0x163   : > { %16503 = vst [vmem:[#allocation31_spill] sm:$0xff] %v11906_v27  ;;  %789 = vmatpush.bf16.xpose.msra.mxu0 %v11906_v27 }
 0x166   : > { %v572_v1 = vpop.f32.mrf.mxu2 }
 0x167   : > { %v573_v3 = vadd.f32 %v11885_v15, %v572_v1  ;;  %v758_v1 = vpack.c.bf16 %v742_v22, %v742_v22 }
 0x169   : > { %v11916_v31 = vpack.c.bf16 %v573_v3, %v573_v3 }
 0x16b   : > { %16506 = vst [vmem:[#allocation34_spill] sm:$0xff] %v11916_v31  ;;  %802 = vmatpush.bf16.xpose.msra.mxu2 %v11916_v31 }
 0x16e   : > { %v574_v36 = vpop.f32.mrf.mxu2 }
 0x16f   : > { %v575_v37 = vadd.f32 %v11885_v15, %v574_v36  ;;  %v11963_v36 = vpop.f32.mrf.mxu3 }
 0x171   : > { %v11924_v43 = vpack.c.bf16 %v575_v37, %v575_v37 }
 0x172   : > { %790 = vmatmul.bf16.vlgmr.msra.gmra.mxu0 %v754_v40  ;;  %803 = vmatmul.bf16.vlgmr.msra.gmra.mxu2 %v755_v39  ;;  %v473_v39 = vpop.f32.mrf.mxu1  ;;  %v11967_v40 = vadd.f32 %v11890_v16, %v470_v24 }
 0x173   : > { %16507 = vst [vmem:[#allocation35_spill] sm:$0xff] %v11924_v43  ;;  %815 = vmatpush.bf16.xpose.msrb.mxu2 %v11924_v43 }
 0x174   : > { %16515 = vst [vmem:[#allocation43_spill] sm:$0xff] %v11967_v40 }
 0x176   : > { %v577_v44 = vpop.f32.mrf.mxu2 }
 0x177   : > { %v578_v46 = vadd.f32 %v11885_v15, %v577_v44 }
 0x179   : > { %v11934_v54 = vpack.c.bf16 %v578_v46, %v578_v46  ;;  %v744_v46 = vmul.f32 %v11900_v21, %v11967_v40 }
 0x17b   : > { %16510 = vst [vmem:[#allocation38_spill] sm:$0xff] %v11934_v54  ;;  %828 = vmatpush.bf16.xpose.msrb.mxu3 %v11934_v54  ;;  %v760_v62 = vpack.c.bf16 %v744_v46, %v744_v46 }
 0x17e   : > { %v579_v2 = vpop.f32.mrf.mxu2 }
 0x17f   : > { %v580_v9 = vadd.f32 %v11885_v15, %v579_v2  ;;  %v11976_v2 = vadd.f32 %v11890_v16, %v473_v39 }
 0x181   : > { %v11947_v18 = vpack.c.bf16 %v580_v9, %v580_v9  ;;  %16517 = vst [vmem:[#allocation45_spill] sm:$0xff] %v11976_v2  ;;  %v11978_v9 = vpop.f32.mrf.mxu3  ;;  %v745_v22 = vmul.f32 %v11900_v21, %v11976_v2  ;;  %v1226_v56 = vmul.f32 %v11745_v5, %v11976_v2 }
 0x182   : > { %816 = vmatmul.bf16.vlgmr.msrb.gmra.mxu2 %v756_v12  ;;  %829 = vmatmul.bf16.vlgmr.msrb.gmra.mxu3 %v757_v17  ;;  %v475_v17 = vpop.f32.mrf.mxu1 }
 0x183   : > { %16512 = vst [vmem:[#allocation40_spill] sm:$0xff] %v11947_v18  ;;  %841 = vmatpush.bf16.xpose.msrb.mxu0 %v11947_v18 }
 0x186   : > { %v582_v25 = vpop.f32.mrf.mxu2 }
 0x187   : > { %v583_v26 = vadd.f32 %v11885_v15, %v582_v25 }
 0x189   : > { %v11958_v3 = vpack.c.bf16 %v583_v26, %v583_v26  ;;  %v761_v26 = vpack.c.bf16 %v745_v22, %v745_v22 }
 0x18a   : > { %842 = vmatmul.bf16.vlgmr.msrb.gmra.mxu0 %v758_v1  ;;  %v11987_v1 = vadd.f32 %v11890_v16, %v475_v17 }
 0x18b   : > { %16514 = vst [vmem:[#allocation42_spill] sm:$0xff] %v11958_v3  ;;  %854 = vmatpush.bf16.xpose.msrb.mxu1 %v11958_v3 }
 0x18c   : > { %16519 = vst [vmem:[#allocation47_spill] sm:$0xff] %v11987_v1  ;;  %v746_v39 = vmul.f32 %v11900_v21, %v11987_v1 }
 0x18e   : > { %v584_v35 = vpop.f32.mrf.mxu2 }
 0x18f   : > { %v585_v37 = vadd.f32 %v11885_v15, %v584_v35  ;;  %v11991_v35 = vpop.f32.mrf.mxu3 }
 0x191   : > { %v11969_v44 = vpack.c.bf16 %v585_v37, %v585_v37  ;;  %v478_v37 = vpop.f32.mrf.mxu1 }
 0x192   : > { %855 = vmatmul.bf16.vlgmr.msrb.gmra.mxu1 %v759_v42 }
 0x193   : > { %16516 = vst [vmem:[#allocation44_spill] sm:$0xff] %v11969_v44  ;;  %867 = vmatpush.bf16.xpose.msra.mxu2 %v11969_v44 }
 0x196   : > { %v587_v51 = vpop.f32.mrf.mxu2 }
 0x197   : > { %v588_v59 = vadd.f32 %v11885_v15, %v587_v51  ;;  %v762_v51 = vpack.c.bf16 %v746_v39, %v746_v39  ;;  %v12005_v22 = vpop.f32.mrf.mxu3 }
 0x199   : > { %v11980_v12 = vpack.c.bf16 %v588_v59, %v588_v59  ;;  %v11998_v59 = vadd.f32 %v11890_v16, %v478_v37 }
 0x19a   : > { %868 = vmatmul.bf16.vlgmr.msra.gmra.mxu2 %v760_v62 }
 0x19b   : > { %16518 = vst [vmem:[#allocation46_spill] sm:$0xff] %v11980_v12  ;;  %880 = vmatpush.bf16.xpose.msra.mxu3 %v11980_v12  ;;  %v747_v17 = vmul.f32 %v11900_v21, %v11998_v59 }
 0x19c   : > { %16521 = vst [vmem:[#allocation49_spill] sm:$0xff] %v11998_v59 }
 0x19d   : > { %v763_v55 = vpack.c.bf16 %v747_v17, %v747_v17 }
 0x19e   : > { %v589_v24 = vpop.f32.mrf.mxu2 }
 0x19f   : > { %v590_v25 = vadd.f32 %v11885_v15, %v589_v24  ;;  %v480_v24 = vpop.f32.mrf.mxu1 }
 0x1a0   : > { %v12009_v39 = vadd.f32 %v11890_v16, %v480_v24 }
 0x1a1   : > { %v11989_v34 = vpack.c.bf16 %v590_v25, %v590_v25 }
 0x1a2   : > { %881 = vmatmul.bf16.vlgmr.msra.gmra.mxu3 %v761_v26  ;;  %16523 = vst [vmem:[#allocation51_spill] sm:$0xff] %v12009_v39 }
 0x1a3   : > { %16520 = vst [vmem:[#allocation48_spill] sm:$0xff] %v11989_v34  ;;  %893 = vmatpush.bf16.xpose.msra.mxu0 %v11989_v34 }
 0x1a6   : > { %v592_v42 = vpop.f32.mrf.mxu2 }
 0x1a7   : > { %v593_v46 = vadd.f32 %v11885_v15, %v592_v42  ;;  %v748_v42 = vmul.f32 %v11900_v21, %v12009_v39 }
 0x1a9   : > { %v12000_v62 = vpack.c.bf16 %v593_v46, %v593_v46  ;;  %v764_v17 = vpack.c.bf16 %v748_v42, %v748_v42 }
 0x1aa   : > { %894 = vmatmul.bf16.vlgmr.msra.gmra.mxu0 %v762_v51  ;;  %v12016_v51 = vpop.f32.mrf.mxu3 }
 0x1ab   : > { %16522 = vst [vmem:[#allocation50_spill] sm:$0xff] %v12000_v62  ;;  %906 = vmatpush.bf16.xpose.msra.mxu1 %v12000_v62 }
 0x1ae   : > { %v594_v25 = vpop.f32.mrf.mxu2 }
 0x1af   : > { %v595_v26 = vadd.f32 %v11885_v15, %v594_v25  ;;  %v12021_v25 = vadd.f32 %v11890_v16, %v11873_v6 }
 0x1b1   : > { %v12011_v37 = vpack.c.bf16 %v595_v26, %v595_v26  ;;  %16525 = vst [vmem:[#allocation53_spill] sm:$0xff] %v12021_v25 }
 0x1b2   : > { %907 = vmatmul.bf16.vlgmr.msra.gmra.mxu1 %v763_v55  ;;  %v749_v55 = vmul.f32 %v11900_v21, %v12021_v25  ;;  %v12034_v38 = vpop.f32.mrf.mxu3 }
 0x1b3   : > { %16524 = vst [vmem:[#allocation52_spill] sm:$0xff] %v12011_v37  ;;  %919 = vmatpush.bf16.xpose.msrb.mxu2 %v12011_v37 }
 0x1b4   : > { %v765_v6 = vpack.c.bf16 %v749_v55, %v749_v55 }
 0x1b6   : > { %v597_v46 = vpop.f32.mrf.mxu2 }
 0x1b7   : > { %v598_v52 = vadd.f32 %v11885_v15, %v597_v46  ;;  %v12032_v46 = vadd.f32 %v11890_v16, %v11875_v7  ;;  %v12046_v7 = vadd.f32 %v11890_v16, %v11877_v11 }
 0x1b9   : > { %v12023_v24 = vpack.c.bf16 %v598_v52, %v598_v52  ;;  %16527 = vst [vmem:[#allocation55_spill] sm:$0xff] %v12032_v46  ;;  %v750_v42 = vmul.f32 %v11900_v21, %v12032_v46  ;;  %v751_v0 = vmul.f32 %v11900_v21, %v12046_v7 }
 0x1ba   : > { %920 = vmatmul.bf16.vlgmr.msrb.gmra.mxu2 %v764_v17  ;;  %16529 = vst [vmem:[#allocation57_spill] sm:$0xff] %v12046_v7 }
 0x1bb   : > { %16526 = vst [vmem:[#allocation54_spill] sm:$0xff] %v12023_v24  ;;  %932 = vmatpush.bf16.xpose.msrb.mxu3 %v12023_v24  ;;  %v766_v55 = vpack.c.bf16 %v750_v42, %v750_v42 }
 0x1be   : > { %v599_v26 = vpop.f32.mrf.mxu2 }
 0x1bf   : > { %v600_v48 = vadd.f32 %v11885_v15, %v599_v26 }
 0x1c1   : > { %v12036_v52 = vpack.c.bf16 %v600_v48, %v600_v48 }
 0x1c2   : > { %933 = vmatmul.bf16.vlgmr.msrb.gmra.mxu3 %v765_v6  ;;  %v12050_v6 = vpop.f32.mrf.mxu3 }
 0x1c3   : > { %1257 = vmatpush.bf16.xpose.msra.mxu3 %v11897_v20  ;;  %16528 = vst [vmem:[#allocation56_spill] sm:$0xff] %v12036_v52  ;;  %945 = vmatpush.bf16.xpose.msrb.mxu0 %v12036_v52 }
 0x1c6   : > { %v602_v17 = vpop.f32.mrf.mxu2 }
 0x1c7   : > { %v603_v26 = vadd.f32 %v11885_v15, %v602_v17  ;;  %v1218_v17 = vmul.f32 %v11745_v5, %v11895_v19 }
 0x1c9   : > { %v12048_v48 = vpack.c.bf16 %v603_v26, %v603_v26  ;;  %v12062_v26 = vadd.f32 %v11890_v16, %v11879_v13  ;;  %v1234_v63 = vpack.c.bf16 %v1218_v17, %v1218_v17  ;;  %v1219_v13 = vmul.f32 %v11745_v5, %v11911_v29 }
 0x1ca   : > { %946 = vmatmul.bf16.vlgmr.msrb.gmra.mxu0 %v766_v55  ;;  %v767_v55 = vpack.c.bf16 %v751_v0, %v751_v0  ;;  %v12074_v0 = vpop.f32.mrf.mxu3  ;;  %v1222_v17 = vmul.f32 %v11745_v5, %v11932_v49 }
 0x1cb   : > { %1309 = vmatpush.bf16.xpose.msrb.mxu3 %v11934_v54  ;;  %1270 = vmatpush.bf16.xpose.msra.mxu0 %v11906_v27  ;;  %16530 = vst [vmem:[#allocation58_spill] sm:$0xff] %v12048_v48  ;;  %v752_v4 = vmul.f32 %v11900_v21, %v12062_v26  ;;  %v1235_v16 = vpack.c.bf16 %v1219_v13, %v1219_v13  ;;  %v12091_v13 = vld [vmem:[%s16285_s2 + $0x2] ss:$0 sm:$0xff] }
 0x1cc   : > { %958 = vmatpush.bf16.xpose.msrb.mxu1 %v12048_v48  ;;  %16531 = vst [vmem:[#allocation59_spill] sm:$0xff] %v12062_v26  ;;  %v1238_v60 = vpack.c.bf16 %v1222_v17, %v1222_v17 }
 0x1ce   : > { %v604_v11 = vpop.f32.mrf.mxu2 }
 0x1cf   : > { %v605_v42 = vadd.f32 %v11885_v15, %v604_v11  ;;  %v768_v15 = vpack.c.bf16 %v752_v4, %v752_v4 }
 0x1d1   : > { %v12064_v61 = vpack.c.bf16 %v605_v42, %v605_v42 }
 0x1d2   : > { %1258 = vmatmul.bf16.vlgmr.msra.gmra.mxu3 %v1234_v63  ;;  %v1220_v63 = vmul.f32 %v11745_v5, %v11914_v30  ;;  %v12082_v11 = vpop.f32.mrf.mxu3 }
 0x1d3   : > { %1322 = vmatpush.bf16.xpose.msrb.mxu0 %v11947_v18  ;;  %16532 = vst [vmem:[#allocation60_spill] sm:$0xff] %v12064_v61  ;;  %959 = vmatmul.bf16.vlgmr.msrb.gmra.mxu1 %v767_v55 }
 0x1d4   : > { %1283 = vmatpush.bf16.xpose.msra.mxu1 %v11916_v31  ;;  %1361 = vmatpush.bf16.xpose.msra.mxu3 %v11980_v12  ;;  %v1236_v55 = vpack.c.bf16 %v1220_v63, %v1220_v63 }
 0x1d5   : > { %971 = vmatpush.bf16.xpose.msra.mxu2 %v12064_v61 }
 0x1d6   : > { %v681_v4 = vpop.f32.mrf.mxu2 }
 0x1d7   : > { %v12098_v63 = vadd.f32 %v12091_v13, %v681_v4  ;;  %v1224_v4 = vmul.f32 %v11745_v5, %v11956_v28 }
 0x1d9   : > { %v1650_v57 = vmul.f32 %v11745_v5, %v12098_v63 }
 0x1da   : > { %1271 = vmatmul.bf16.vlgmr.msra.gmra.mxu0 %v1235_v16  ;;  %v1223_v16 = vmul.f32 %v11745_v5, %v11945_v14  ;;  %v12100_v58 = vpop.f32.mrf.mxu3 }
 0x1db   : > { %1374 = vmatpush.bf16.xpose.msra.mxu0 %v11989_v34 }
 0x1dc   : > { %1335 = vmatpush.bf16.xpose.msrb.mxu1 %v11958_v3  ;;  %972 = vmatmul.bf16.vlgmr.msra.gmra.mxu2 %v768_v15  ;;  %v1221_v15 = vmul.f32 %v11745_v5, %v11929_v47 }
 0x1dd   : > { %1296 = vmatpush.bf16.xpose.msrb.mxu2 %v11924_v43 }
 0x1de   : > { %v683_v45 = vpop.f32.mrf.mxu2 }
 0x1df   : > { %v12084_v42 = vpop.f32.mrf.mxu0 }
 0x1e2   : > { %1310 = vmatmul.bf16.vlgmr.msrb.gmra.mxu3 %v1238_v60  ;;  %v1237_v60 = vpack.c.bf16 %v1221_v15, %v1221_v15  ;;  %v12111_v15 = vadd.f32 %v12091_v13, %v683_v45  ;;  %v12118_v41 = vpop.f32.mrf.mxu3  ;;  %v1225_v45 = vmul.f32 %v11745_v5, %v11967_v40 }
 0x1e3   : > { %1284 = vmatmul.bf16.vlgmr.msra.gmra.mxu1 %v1236_v55  ;;  %1413 = vmatpush.bf16.xpose.msrb.mxu3 %v12023_v24  ;;  %v1239_v55 = vpack.c.bf16 %v1223_v16, %v1223_v16  ;;  %v1666_v16 = vpack.c.bf16 %v1650_v57, %v1650_v57 }
 0x1e4   : > { %1387 = vmatpush.bf16.xpose.msra.mxu1 %v12000_v62  ;;  %v1651_v50 = vmul.f32 %v11745_v5, %v12111_v15  ;;  %v1241_v33 = vpack.c.bf16 %v1225_v45, %v1225_v45  ;;  %v12149_v45 = vadd.f32 %v12091_v13, %v11952_v23 }
 0x1e5   : > { %1348 = vmatpush.bf16.xpose.msra.mxu2 %v11969_v44  ;;  %v1703_v53 = vsel %vm1701_vm15, %v1666_v16, 0  ;;  %v12133_v16 = vadd.f32 %v12091_v13, %v11963_v36 }
 0x1e6   : > { %16534 = vst [vmem:[#allocation62_spill] sm:$0xff] %v12149_v45 }
 0x1e7   : > { %v780_v17 = vpop.f32.mrf.mxu0 }
 0x1ea   : > { %1323 = vmatmul.bf16.vlgmr.msrb.gmra.mxu0 %v1239_v55  ;;  %v1240_v55 = vpack.c.bf16 %v1224_v4, %v1224_v4  ;;  %v12129_v4 = vadd.f32 %v12091_v13, %v11936_v32  ;;  %v1230_v32 = vmul.f32 %v11745_v5, %v12021_v25  ;;  %v12145_v36 = vpop.f32.mrf.mxu3 }
 0x1eb   : > { %1426 = vmatpush.bf16.xpose.msrb.mxu0 %v12036_v52 }
 0x1ec   : > { %1297 = vmatmul.bf16.vlgmr.msrb.gmra.mxu2 %v1237_v60  ;;  %v1242_v60 = vpack.c.bf16 %v1226_v56, %v1226_v56  ;;  %v1227_v56 = vmul.f32 %v11745_v5, %v11987_v1  ;;  %16533 = vst [vmem:[#allocation61_spill] sm:$0xff] %v12129_v4  ;;  %v1654_v1 = vmul.f32 %v11745_v5, %v12133_v16 }
 0x1ed   : > { %1400 = vmatpush.bf16.xpose.msrb.mxu2 %v12011_v37 }
 0x1ef   : > { %v12113_v17 = vpop.f32.mrf.mxu0 }
 0x1f2   : > { %1362 = vmatmul.bf16.vlgmr.msra.gmra.mxu3 %v1242_v60  ;;  %v1667_v60 = vpack.c.bf16 %v1651_v50, %v1651_v50  ;;  %v1228_v50 = vmul.f32 %v11745_v5, %v11998_v59 }
 0x1f3   : > { %1336 = vmatmul.bf16.vlgmr.msrb.gmra.mxu1 %v1240_v55  ;;  %1712 = vmatpush.bf16.msra.mxu3 %v1703_v53  ;;  %v1243_v53 = vpack.c.bf16 %v1227_v56, %v1227_v56  ;;  %v12153_v56 = vadd.f32 %v12091_v13, %v11978_v9  ;;  %v1231_v9 = vmul.f32 %v11745_v5, %v12032_v46 }
 0x1f4   : > { %1439 = vmatpush.bf16.xpose.msrb.mxu1 %v12048_v48  ;;  %v1722_v10 = vsel %vm1701_vm15, %v1667_v60, 0  ;;  %v1652_v48 = vmul.f32 %v11745_v5, %v12129_v4 }
 0x1f5   : > { %v12125_v57 = vpop.f32.mrf.mxu2  ;;  %v1655_v23 = vmul.f32 %v11745_v5, %v12153_v56 }
 0x1f6   : > { %v1668_v60 = vpack.c.bf16 %v1652_v48, %v1652_v48 }
 0x1f7   : > { %v793_v55 = vpop.f32.mrf.mxu0 }
 0x1f8   : > { %v1670_v55 = vpack.c.bf16 %v1654_v1, %v1654_v1  ;;  %v1741_v28 = vsel %vm1701_vm15, %v1668_v60, 0  ;;  %v1229_v1 = vmul.f32 %v11745_v5, %v12009_v39 }
 0x1fa   : > { %1375 = vmatmul.bf16.vlgmr.msra.gmra.mxu0 %v1243_v53  ;;  %v1244_v53 = vpack.c.bf16 %v1228_v50, %v1228_v50  ;;  %v1779_v59 = vsel %vm1701_vm15, %v1670_v55, 0  ;;  %v12169_v50 = vadd.f32 %v12091_v13, %v11991_v35 }
 0x1fb   : > { %1731 = vmatpush.bf16.msra.mxu0 %v1722_v10  ;;  %v1246_v10 = vpack.c.bf16 %v1230_v32, %v1230_v32 }
 0x1fc   : > { %1349 = vmatmul.bf16.vlgmr.msra.gmra.mxu2 %v1241_v33  ;;  %16535 = vst [vmem:[#allocation63_spill] sm:$0xff] %v12169_v50 }
 0x1fd   : > { %1452 = vmatpush.bf16.xpose.msra.mxu2 %v12064_v61  ;;  %v806_v33 = vpop.f32.mrf.mxu2 }
 0x1fe   : > { %v1653_v33 = vmul.f32 %v11745_v5, %v12149_v45 }
 0x200   : > { %v1669_v55 = vpack.c.bf16 %v1653_v33, %v1653_v33  ;;  %v1232_v33 = vmul.f32 %v11745_v5, %v12046_v7 }
 0x202   : > { %1414 = vmatmul.bf16.vlgmr.msrb.gmra.mxu3 %v1246_v10  ;;  %v1671_v10 = vpack.c.bf16 %v1655_v23, %v1655_v23  ;;  %v1760_v39 = vsel %vm1701_vm15, %v1669_v55, 0  ;;  %v1248_v55 = vpack.c.bf16 %v1232_v33, %v1232_v33 }
 0x203   : > { %1388 = vmatmul.bf16.vlgmr.msra.gmra.mxu1 %v1244_v53  ;;  %1788 = vmatpush.bf16.msrb.mxu3 %v1779_v59  ;;  %v1245_v59 = vpack.c.bf16 %v1229_v1, %v1229_v1  ;;  %v12185_v1 = vadd.f32 %v12091_v13, %v12005_v22 }
 0x204   : > { %1750 = vmatpush.bf16.msra.mxu1 %v1741_v28  ;;  %v1247_v28 = vpack.c.bf16 %v1231_v9, %v1231_v9  ;;  %v1798_v35 = vsel %vm1701_vm15, %v1671_v10, 0 }
 0x205   : > { %v817_v48 = vpop.f32.mrf.mxu2  ;;  %v12165_v32 = vpop.f32.mrf.mxu3  ;;  %16536 = vst [vmem:[#allocation64_spill] sm:$0xff] %v12185_v1 }
 0x206   : > { %v12171_v60 = vmul.f32 0.35355338, %v817_v48  ;;  %v1656_v48 = vmul.f32 %v11745_v5, %v12169_v50 }
 0x207   : > { %v12173_v53 = vpop.f32.mrf.mxu0 }
 0x208   : > { %v1003_v46 = vsel %vm993_vm0, %v12171_v60, -inf  ;;  %v12347_v20 = vmul.f32 0.35355338, %v12173_v53 }
 0x209   : > { %1004 = vmax.xlane.f32.xlu2 %v1003_v46  ;;  %v1672_v46 = vpack.c.bf16 %v1656_v48, %v1656_v48 }
 0x20a   : > { %1427 = vmatmul.bf16.vlgmr.msrb.gmra.mxu0 %v1247_v28 }
 0x20b   : > { %1807 = vmatpush.bf16.msrb.mxu0 %v1798_v35  ;;  %v1817_v10 = vsel %vm1701_vm15, %v1672_v46, 0  ;;  %v1233_v35 = vmul.f32 %v11745_v5, %v12062_v26 }
 0x20c   : > { %1401 = vmatmul.bf16.vlgmr.msrb.gmra.mxu2 %v1245_v59 }
 0x20d   : > { %1769 = vmatpush.bf16.msrb.mxu2 %v1760_v39  ;;  %v819_v23 = vpop.f32.mrf.mxu2  ;;  %v832_v9 = vpop.f32.mrf.mxu3  ;;  %v1657_v39 = vmul.f32 %v11745_v5, %v12185_v1  ;;  %v1249_v7 = vpack.c.bf16 %v1233_v35, %v1233_v35 }
 0x20f   : > { %v845_v28 = vpop.f32.mrf.mxu0  ;;  %v12187_v59 = vpop.f32.mrf.mxu1  ;;  %v1673_v23 = vpack.c.bf16 %v1657_v39, %v1657_v39 }
 0x211   : > { %v1836_v22 = vsel %vm1701_vm15, %v1673_v23, 0 }
 0x213   : > { %1440 = vmatmul.bf16.vlgmr.msrb.gmra.mxu1 %v1248_v55 }
 0x214   : > { %1826 = vmatpush.bf16.msrb.mxu1 %v1817_v10 }
 0x217   : > { %v858_v9 = vpop.f32.mrf.mxu1 }
 0x21c   : > { %1453 = vmatmul.bf16.vlgmr.msra.gmra.mxu2 %v1249_v7 }
 0x21d   : > { %1845 = vmatpush.bf16.msra.mxu2 %v1836_v22  ;;  %v12195_v48 = vpop.f32.mrf.mxu2 }
 0x225   : > { %v871_v33 = vpop.f32.mrf.mxu2  ;;  %v12197_v28 = vpop.f32.mrf.mxu3 }
 0x226   : > { %v12352_v1 = vmul.f32 0.35355338, %v12197_v28 }
 0x227   : > { %v12199_v46 = vpop.f32.mrf.mxu0 }
 0x228   : > { %v1018_v53 = vsel %vm993_vm0, %v12352_v1, -inf }
 0x22d   : > { %v884_v55 = vpop.f32.mrf.mxu3 }
 0x22f   : > { %v897_v52 = vpop.f32.mrf.mxu0  ;;  %v12201_v10 = vpop.f32.mrf.mxu1 }
 0x237   : > { %v910_v62 = vpop.f32.mrf.mxu1 }
 0x23d   : > { %v12203_v26 = vpop.f32.mrf.mxu2 }
 0x245   : > { %v12205_v39 = vpop.f32.mrf.mxu3  ;;  %v923_v7 = vpop.f32.mrf.mxu2 }
 0x247   : > { %v12207_v35 = vpop.f32.mrf.mxu0 }
 0x24d   : > { %v936_v23 = vpop.f32.mrf.mxu3 }
 0x24f   : > { %v949_v9 = vpop.f32.mrf.mxu0 }
 0x250   : > { %v12209_v22 = vpop.f32.mrf.mxu1 }
 0x255   : > { %v1259_v33 = vpop.f32.mrf.mxu3 }
 0x256   : > { %v12211_v25 = vmul.f32 0.35355338, %v1259_v33 }
 0x257   : > { %v1272_v55 = vpop.f32.mrf.mxu0 }
 0x258   : > { %v962_v61 = vpop.f32.mrf.mxu1  ;;  %v12213_v52 = vmul.f32 0.35355338, %v1272_v55  ;;  %v1474_v62 = vsel %vm993_vm0, %v12211_v25, -inf }
 0x259   : > { %1475 = vmax.xlane.f32.xlu0 %v1474_v62 }
 0x25a   : > { %v1477_v7 = vsel %vm993_vm0, %v12213_v52, -inf }
 0x25b   : > { %1478 = vmax.xlane.f32.xlu1 %v1477_v7 }
 0x25d   : > { %v1261_v23 = vpop.f32.mrf.mxu3 }
 0x25f   : > { %v12219_v14 = vpop.f32.mrf.mxu2  ;;  %v1274_v9 = vpop.f32.mrf.mxu0 }
 0x260   : > { %v1285_v30 = vpop.f32.mrf.mxu1 }
 0x265   : > { %v1311_v33 = vpop.f32.mrf.mxu3 }
 0x266   : > { %v12221_v34 = vmul.f32 0.35355338, %v1311_v33  ;;  %v12234_v33 = vmul.f32 0.35355338, %v12084_v42 }
 0x267   : > { %v975_v40 = vpop.f32.mrf.mxu2  ;;  %v1324_v55 = vpop.f32.mrf.mxu0 }
 0x268   : > { %v1287_v61 = vpop.f32.mrf.mxu1  ;;  %v1486_v3 = vsel %vm993_vm0, %v12221_v34, -inf  ;;  %v12225_v62 = vmul.f32 0.35355338, %v1324_v55  ;;  %v994_v47 = vsel %vm993_vm0, %v12234_v33, -inf }
 0x269   : > { %1487 = vmax.xlane.f32.xlu1 %v1486_v3  ;;  %v12236_v3 = vmul.f32 0.35355338, %v1285_v30  ;;  %v12247_v30 = vmul.f32 0.35355338, %v12113_v17 }
 0x26a   : > { %v1489_v40 = vsel %vm993_vm0, %v12225_v62, -inf }
 0x26b   : > { %v1480_v42 = vsel %vm993_vm0, %v12236_v3, -inf }
 0x26d   : > { %v1313_v37 = vpop.f32.mrf.mxu3 }
 0x26f   : > { %v1298_v2 = vpop.f32.mrf.mxu2  ;;  %v1326_v29 = vpop.f32.mrf.mxu0 }
 0x270   : > { %v12227_v7 = vmul.f32 0.35355338, %v1298_v2  ;;  %v1337_v23 = vpop.f32.mrf.mxu1 }
 0x271   : > { %1490 = vmax.xlane.f32.xlu1 %v1489_v40 }
 0x272   : > { %v1483_v9 = vsel %vm993_vm0, %v12227_v7, -inf }
 0x273   : > { %1484 = vmax.xlane.f32.xlu0 %v1483_v9  ;;  %v12252_v9 = vmul.f32 0.35355338, %v12165_v32 }
 0x275   : > { %v1363_v55 = vpop.f32.mrf.mxu3  ;;  %v1006_v17 = vsel %vm993_vm0, %v12252_v9, -inf }
 0x276   : > { %v12238_v37 = vmul.f32 0.35355338, %v1363_v55 }
 0x277   : > { %v1300_v61 = vpop.f32.mrf.mxu2  ;;  %v1376_v29 = vpop.f32.mrf.mxu0 }
 0x278   : > { %v1339_v2 = vpop.f32.mrf.mxu1  ;;  %v1498_v24 = vsel %vm993_vm0, %v12238_v37, -inf  ;;  %v12249_v40 = vmul.f32 0.35355338, %v1376_v29  ;;  %v12260_v29 = vmul.f32 0.35355338, %v1337_v23 }
 0x279   : > { %995 = vmax.xlane.f32.xlu1 %v994_v47  ;;  %1499 = vmax.xlane.f32.xlu2 %v1498_v24  ;;  %v997_v47 = vsel %vm993_vm0, %v12247_v30, -inf }
 0x27a   : > { %v1501_v24 = vsel %vm993_vm0, %v12249_v40, -inf }
 0x27b   : > { %1481 = vmax.xlane.f32.xlu0 %v1480_v42 }
 0x27d   : > { %v1365_v55 = vpop.f32.mrf.mxu3 }
 0x27f   : > { %v1350_v61 = vpop.f32.mrf.mxu2  ;;  %v1378_v2 = vpop.f32.mrf.mxu0 }
 0x280   : > { %v1389_v18 = vpop.f32.mrf.mxu1  ;;  %v12262_v32 = vmul.f32 0.35355338, %v1350_v61 }
 0x281   : > { %998 = vmax.xlane.f32.xlu1 %v997_v47  ;;  %1502 = vmax.xlane.f32.xlu2 %v1501_v24  ;;  %v12264_v42 = vmul.f32 0.35355338, %v1389_v18  ;;  %v1492_v47 = vsel %vm993_vm0, %v12260_v29, -inf }
 0x282   : > { %v1495_v44 = vsel %vm993_vm0, %v12262_v32, -inf }
 0x283   : > { %1007 = vmax.xlane.f32.xlu0 %v1006_v17  ;;  %v1504_v23 = vsel %vm993_vm0, %v12264_v42, -inf }
 0x285   : > { %v1415_v2 = vpop.f32.mrf.mxu3 }
 0x286   : > { %v12274_v18 = vmul.f32 0.35355338, %v1415_v2 }
 0x287   : > { %v1352_v55 = vpop.f32.mrf.mxu2  ;;  %v1428_v49 = vpop.f32.mrf.mxu0 }
 0x288   : > { %v1391_v31 = vpop.f32.mrf.mxu1  ;;  %v12272_v61 = vmul.f32 0.35355338, %v1428_v49  ;;  %v1510_v49 = vsel %vm993_vm0, %v12274_v18, -inf }
 0x289   : > { %1496 = vmax.xlane.f32.xlu2 %v1495_v44  ;;  %1493 = vmax.xlane.f32.xlu1 %v1492_v47 }
 0x28a   : > { %v1513_v44 = vsel %vm993_vm0, %v12272_v61, -inf }
 0x28b   : > { %1505 = vmax.xlane.f32.xlu0 %v1504_v23 }
 0x28d   : > { %v1417_v17 = vpop.f32.mrf.mxu3 }
 0x28f   : > { %v1402_v24 = vpop.f32.mrf.mxu2  ;;  %v1430_v55 = vpop.f32.mrf.mxu0 }
 0x290   : > { %v12276_v31 = vmul.f32 0.35355338, %v1402_v24  ;;  %v1441_v12 = vpop.f32.mrf.mxu1 }
 0x291   : > { %1514 = vmax.xlane.f32.xlu1 %v1513_v44  ;;  %v12284_v2 = vmul.f32 0.35355338, %v1441_v12 }
 0x292   : > { %v1507_v27 = vsel %vm993_vm0, %v12276_v31, -inf }
 0x293   : > { %1508 = vmax.xlane.f32.xlu2 %v1507_v27  ;;  %1511 = vmax.xlane.f32.xlu0 %v1510_v49  ;;  %v1516_v24 = vsel %vm993_vm0, %v12284_v2, -inf }
 0x297   : > { %v1404_v47 = vpop.f32.mrf.mxu2 }
 0x298   : > { %v1443_v23 = vpop.f32.mrf.mxu1 }
 0x29b   : > { %1517 = vmax.xlane.f32.xlu2 %v1516_v24 }
 0x29f   : > { %v1454_v17 = vpop.f32.mrf.mxu2 }
 0x2a0   : > { %v12288_v55 = vmul.f32 0.35355338, %v1454_v17 }
 0x2a2   : > { %v1519_v8 = vsel %vm993_vm0, %v12288_v55, -inf }
 0x2a3   : > { %1520 = vmax.xlane.f32.xlu2 %v1519_v8 }
 0x2a7   : > { %v1456_v27 = vpop.f32.mrf.mxu2 }
 0x2cc   : > { %v1476_v44 = vpop.xlane.xlu0 %1475 }
 0x2cd   : > { %v1522_v19 = vsub.f32 %v12211_v25, %v1476_v44 }
 0x2ce   : > { %v1479_v49 = vpop.xlane.xlu1 %1478 }
 0x2cf   : > { %v1538_v12 = vmul.f32 1.442695, %v1522_v19  ;;  %v1523_v47 = vsub.f32 %v12213_v52, %v1479_v49  ;;  %v12304_v52 = vmul.f32 0.35355338, %v12195_v48  ;;  %v12308_v49 = vpop.xlane.xlu2 %1004 }
 0x2d1   : > { %10903 = vpow2.f32 %v1538_v12  ;;  %v1540_v23 = vmul.f32 1.442695, %v1523_v47  ;;  %v1015_v44 = vsel %vm993_vm0, %v12304_v52, -inf }
 0x2d3   : > { %10905 = vpow2.f32 %v1540_v23 }
 0x2d7   : > { %v12294_v54 = vpop.eup %10903 }
 0x2d8   : > { %v1570_v24 = vsel %vm993_vm0, %v12294_v54, 0.0 }
 0x2d9   : > { %v12298_v17 = vpop.eup %10905  ;;  %1571 = vadd.xlane.f32.xlu0 %v1570_v24 }
 0x2da   : > { %v1573_v8 = vsel %vm993_vm0, %v12298_v17, 0.0 }
 0x2db   : > { %1574 = vadd.xlane.f32.xlu1 %v1573_v8 }
 0x2dc   : > { %v1488_v25 = vpop.xlane.xlu1 %1487 }
 0x2dd   : > { %v1526_v19 = vsub.f32 %v12221_v34, %v1488_v25 }
 0x2df   : > { %v1546_v27 = vmul.f32 1.442695, %v1526_v19 }
 0x2e1   : > { %10907 = vpow2.f32 %v1546_v27 }
 0x2e3   : > { %1016 = vmax.xlane.f32.xlu1 %v1015_v44 }
 0x2e4   : > { %v1491_v12 = vpop.xlane.xlu1 %1490 }
 0x2e5   : > { %v1527_v23 = vsub.f32 %v12225_v62, %v1491_v12 }
 0x2e6   : > { %v1485_v47 = vpop.xlane.xlu0 %1484 }
 0x2e7   : > { %v1525_v24 = vsub.f32 %v12227_v7, %v1485_v47  ;;  %v12312_v8 = vpop.eup %10907  ;;  %v1548_v34 = vmul.f32 1.442695, %v1527_v23 }
 0x2e8   : > { %v1582_v48 = vsel %vm993_vm0, %v12312_v8, 0.0 }
 0x2e9   : > { %v1544_v25 = vmul.f32 1.442695, %v1525_v24  ;;  %10909 = vpow2.f32 %v1548_v34  ;;  %1583 = vadd.xlane.f32.xlu0 %v1582_v48 }
 0x2eb   : > { %10911 = vpow2.f32 %v1544_v25 }
 0x2ec   : > { %v12316_v19 = vpop.xlane.xlu1 %995  ;;  %v1500_v27 = vpop.xlane.xlu2 %1499 }
 0x2ed   : > { %v1530_v44 = vsub.f32 %v12238_v37, %v1500_v27  ;;  %v12329_v37 = vmul.f32 0.35355338, %v12125_v57 }
 0x2ee   : > { %v1482_v43 = vpop.xlane.xlu0 %1481 }
 0x2ef   : > { %v1524_v62 = vsub.f32 %v12236_v3, %v1482_v43  ;;  %v12320_v12 = vpop.eup %10909  ;;  %v1554_v7 = vmul.f32 1.442695, %v1530_v44  ;;  %v1000_v44 = vsel %vm993_vm0, %v12329_v37, -inf }
 0x2f0   : > { %v1585_v24 = vsel %vm993_vm0, %v12320_v12, 0.0 }
 0x2f1   : > { %v12322_v47 = vpop.eup %10911  ;;  %v1542_v23 = vmul.f32 1.442695, %v1524_v62  ;;  %1586 = vadd.xlane.f32.xlu0 %v1585_v24  ;;  %10913 = vpow2.f32 %v1554_v7 }
 0x2f2   : > { %v1579_v34 = vsel %vm993_vm0, %v12322_v47, 0.0 }
 0x2f3   : > { %1580 = vadd.xlane.f32.xlu2 %v1579_v34  ;;  %10915 = vpow2.f32 %v1542_v23 }
 0x2f4   : > { %v12331_v43 = vpop.xlane.xlu1 %998  ;;  %v1503_v3 = vpop.xlane.xlu2 %1502 }
 0x2f5   : > { %v1531_v27 = vsub.f32 %v12249_v40, %v1503_v3 }
 0x2f6   : > { %v12333_v25 = vpop.xlane.xlu0 %1007 }
 0x2f7   : > { %v12335_v48 = vpop.eup %10913  ;;  %v1556_v23 = vmul.f32 1.442695, %v1531_v27  ;;  %v1009_v27 = vsel %vm993_vm0, %v12347_v20, -inf }
 0x2f8   : > { %v1594_v7 = vsel %vm993_vm0, %v12335_v48, 0.0 }
 0x2f9   : > { %v12340_v62 = vpop.eup %10915  ;;  %1001 = vmax.xlane.f32.xlu0 %v1000_v44  ;;  %1595 = vadd.xlane.f32.xlu1 %v1594_v7  ;;  %10917 = vpow2.f32 %v1556_v23 }
 0x2fa   : > { %v1576_v57 = vsel %vm993_vm0, %v12340_v62, 0.0 }
 0x2fb   : > { %1577 = vadd.xlane.f32.xlu2 %v1576_v57 }
 0x2fc   : > { %v1497_v24 = vpop.xlane.xlu2 %1496  ;;  %v1494_v34 = vpop.xlane.xlu1 %1493 }
 0x2fd   : > { %v1529_v40 = vsub.f32 %v12262_v32, %v1497_v24  ;;  %v1528_v3 = vsub.f32 %v12260_v29, %v1494_v34 }
 0x2fe   : > { %v1506_v50 = vpop.xlane.xlu0 %1505 }
 0x2ff   : > { %v1552_v44 = vmul.f32 1.442695, %v1529_v40  ;;  %v1550_v7 = vmul.f32 1.442695, %v1528_v3  ;;  %v12359_v24 = vpop.eup %10917  ;;  %v1042_v3 = vsub.f32 %v12234_v33, %v12316_v19  ;;  %v12378_v33 = vmul.f32 0.35355338, %v12205_v39 }
 0x301   : > { %10919 = vpow2.f32 %v1552_v44  ;;  %1010 = vmax.xlane.f32.xlu1 %v1009_v27 }
 0x302   : > { %10921 = vpow2.f32 %v1550_v7  ;;  %v1597_v7 = vsel %vm993_vm0, %v12359_v24, 0.0 }
 0x303   : > { %1019 = vmax.xlane.f32.xlu2 %v1018_v53  ;;  %v1058_v53 = vmul.f32 1.442695, %v1042_v3 }
 0x304   : > { %v1515_v19 = vpop.xlane.xlu1 %1514 }
 0x306   : > { %v1509_v32 = vpop.xlane.xlu2 %1508  ;;  %v1512_v57 = vpop.xlane.xlu0 %1511 }
 0x307   : > { %v1533_v29 = vsub.f32 %v12276_v31, %v1509_v32  ;;  %v12361_v28 = vpop.eup %10919  ;;  %v1534_v23 = vsub.f32 %v12274_v18, %v1512_v57  ;;  %v12375_v18 = vmul.f32 0.35355338, %v12203_v26  ;;  %v1535_v57 = vsub.f32 %v12272_v61, %v1515_v19 }
 0x308   : > { %v12364_v40 = vpop.eup %10921  ;;  %v1591_v44 = vsel %vm993_vm0, %v12361_v28, 0.0  ;;  %v1030_v26 = vsel %vm993_vm0, %v12378_v33, -inf  ;;  %v12395_v61 = vmul.f32 0.35355338, %v12187_v59  ;;  %v12405_v59 = vmul.f32 0.35355338, %v12199_v46 }
 0x309   : > { %v1560_v34 = vmul.f32 1.442695, %v1533_v29  ;;  %v1588_v31 = vsel %vm993_vm0, %v12364_v40, 0.0  ;;  %1592 = vadd.xlane.f32.xlu0 %v1591_v44  ;;  %v1562_v27 = vmul.f32 1.442695, %v1534_v23 }
 0x30a   : > { %1589 = vadd.xlane.f32.xlu1 %v1588_v31  ;;  %v1564_v39 = vmul.f32 1.442695, %v1535_v57 }
 0x30b   : > { %10923 = vpow2.f32 %v1560_v34  ;;  %1598 = vadd.xlane.f32.xlu2 %v1597_v7  ;;  %v1027_v34 = vsel %vm993_vm0, %v12375_v18, -inf }
 0x30c   : > { %10925 = vpow2.f32 %v1562_v27  ;;  %v1532_v27 = vsub.f32 %v12264_v42, %v1506_v50 }
 0x30d   : > { %10927 = vpow2.f32 %v1058_v53 }
 0x30e   : > { %v1518_v32 = vpop.xlane.xlu2 %1517  ;;  %10929 = vpow2.f32 %v1564_v39 }
 0x311   : > { %v12380_v29 = vpop.eup %10923  ;;  %1028 = vmax.xlane.f32.xlu0 %v1027_v34  ;;  %v1558_v34 = vmul.f32 1.442695, %v1532_v27 }
 0x312   : > { %v1603_v23 = vsel %vm993_vm0, %v12380_v29, 0.0  ;;  %1031 = vmax.xlane.f32.xlu1 %v1030_v26  ;;  %v12389_v44 = vpop.eup %10925  ;;  %v1021_v26 = vsel %vm993_vm0, %v12405_v59, -inf }
 0x313   : > { %1604 = vadd.xlane.f32.xlu2 %v1603_v23  ;;  %v12392_v7 = vpop.eup %10927  ;;  %v1606_v19 = vsel %vm993_vm0, %v12389_v44, 0.0  ;;  %v1043_v23 = vsub.f32 %v12247_v30, %v12331_v43  ;;  %v12424_v30 = vmul.f32 0.35355338, %v12207_v35 }
 0x314   : > { %v1090_v57 = vsel %vm993_vm0, %v12392_v7, 0.0  ;;  %v12407_v50 = vpop.eup %10929 }
 0x315   : > { %v1609_v46 = vsel %vm993_vm0, %v12407_v50, 0.0 }
 0x316   : > { %v1521_v3 = vpop.xlane.xlu2 %1520 }
 0x317   : > { %v1537_v31 = vsub.f32 %v12288_v55, %v1521_v3  ;;  %v1012_v55 = vsel %vm993_vm0, %v12395_v61, -inf  ;;  %v1045_v3 = vsub.f32 %v12171_v60, %v12308_v49  ;;  %v1536_v49 = vsub.f32 %v12284_v2, %v1518_v32 }
 0x319   : > { %v1568_v53 = vmul.f32 1.442695, %v1537_v31  ;;  %1607 = vadd.xlane.f32.xlu0 %v1606_v19  ;;  %v1060_v31 = vmul.f32 1.442695, %v1043_v23  ;;  %v1064_v43 = vmul.f32 1.442695, %v1045_v3  ;;  %v1046_v19 = vsub.f32 %v12252_v9, %v12333_v25 }
 0x31a   : > { %1091 = vadd.xlane.f32.xlu1 %v1090_v57  ;;  %v1033_v57 = vsel %vm993_vm0, %v12424_v30, -inf  ;;  %v1566_v9 = vmul.f32 1.442695, %v1536_v49 }
 0x31b   : > { %10931 = vpow2.f32 %v1568_v53  ;;  %1013 = vmax.xlane.f32.xlu2 %v1012_v55  ;;  %v12427_v53 = vmul.f32 0.35355338, %v12219_v14  ;;  %v1066_v14 = vmul.f32 1.442695, %v1046_v19  ;;  %v12439_v55 = vmul.f32 0.35355338, %v12201_v10 }
 0x31c   : > { %10933 = vpow2.f32 %v1558_v34 }
 0x31d   : > { %10935 = vpow2.f32 %v1060_v31  ;;  %v1039_v35 = vsel %vm993_vm0, %v12427_v53, -inf  ;;  %v1024_v2 = vsel %vm993_vm0, %v12439_v55, -inf }
 0x31e   : > { %10937 = vpow2.f32 %v1064_v43  ;;  %v12466_v43 = vadd.f32 %v12091_v13, %v12016_v51 }
 0x31f   : > { %10939 = vpow2.f32 %v1066_v14 }
 0x320   : > { %10941 = vpow2.f32 %v1566_v9 }
 0x321   : > { %v12409_v42 = vpop.eup %10931  ;;  %1022 = vmax.xlane.f32.xlu0 %v1021_v26 }
 0x322   : > { %v1615_v39 = vsel %vm993_vm0, %v12409_v42, 0.0  ;;  %1610 = vadd.xlane.f32.xlu1 %v1609_v46  ;;  %v12421_v27 = vpop.eup %10933  ;;  %v12460_v46 = vmul.f32 0.35355338, %v12209_v22  ;;  %v1658_v22 = vmul.f32 %v11745_v5, %v12466_v43 }
 0x323   : > { %1616 = vadd.xlane.f32.xlu2 %v1615_v39  ;;  %v1600_v60 = vsel %vm993_vm0, %v12421_v27, 0.0  ;;  %v12441_v25 = vpop.eup %10935 }
 0x324   : > { %v12443_v34 = vpop.eup %10937  ;;  %v1093_v32 = vsel %vm993_vm0, %v12441_v25, 0.0  ;;  %v1036_v31 = vsel %vm993_vm0, %v12460_v46, -inf  ;;  %v1674_v9 = vpack.c.bf16 %v1658_v22, %v1658_v22 }
 0x325   : > { %v1099_v23 = vsel %vm993_vm0, %v12443_v34, 0.0  ;;  %v12451_v10 = vpop.eup %10939 }
 0x326   : > { %v12453_v26 = vpop.eup %10941  ;;  %v1102_v39 = vsel %vm993_vm0, %v12451_v10, 0.0 }
 0x327   : > { %v1612_v3 = vsel %vm993_vm0, %v12453_v26, 0.0 }
 0x329   : > { %1601 = vadd.xlane.f32.xlu0 %v1600_v60  ;;  %v12470_v60 = vadd.f32 %v12091_v13, %v12034_v38 }
 0x32a   : > { %1034 = vmax.xlane.f32.xlu1 %v1033_v57 }
 0x32b   : > { %1040 = vmax.xlane.f32.xlu2 %v1039_v35  ;;  %v1659_v57 = vmul.f32 %v11745_v5, %v12470_v60 }
 0x331   : > { %1025 = vmax.xlane.f32.xlu0 %v1024_v2 }
 0x332   : > { %1094 = vadd.xlane.f32.xlu1 %v1093_v32 }
 0x333   : > { %1100 = vadd.xlane.f32.xlu2 %v1099_v23 }
 0x339   : > { %1103 = vadd.xlane.f32.xlu0 %v1102_v39  ;;  %v1675_v39 = vpack.c.bf16 %v1659_v57, %v1659_v57 }
 0x33b   : > { %1613 = vadd.xlane.f32.xlu2 %v1612_v3 }
 0x341   : > { %1037 = vmax.xlane.f32.xlu0 %v1036_v31  ;;  %v1855_v31 = vsel %vm1701_vm15, %v1674_v9, 0 }
 0x34c   : > { %v1572_v19 = vpop.xlane.xlu0 %1571 }
 0x34d   : > { %10943 = vrcp.f32 %v1572_v19 }
 0x34e   : > { %v1575_v49 = vpop.xlane.xlu1 %1574 }
 0x34f   : > { %10945 = vrcp.f32 %v1575_v49 }
 0x353   : > { %v10944_v35 = vpop.eup %10943 }
 0x354   : > { %v1634_v14 = vmul.f32 %v10944_v35, %v12294_v54  ;;  %v1874_v54 = vsel %vm1701_vm15, %v1675_v39, 0 }
 0x355   : > { %v10946_v51 = vpop.eup %10945 }
 0x356   : > { %v1682_v2 = vpack.c.bf16 %v1634_v14, %v1634_v14  ;;  %v1635_v32 = vmul.f32 %v10946_v51, %v12298_v17  ;;  %v1017_v23 = vpop.xlane.xlu1 %1016  ;;  %v12485_v17 = vadd.f32 %v12091_v13, %v12082_v11  ;;  %v12495_v14 = vadd.f32 %v12091_v13, %v12100_v58 }
 0x357   : > { %v1049_v38 = vsub.f32 %v12304_v52, %v1017_v23 }
 0x358   : > { %v1683_v3 = vpack.c.bf16 %v1635_v32, %v1635_v32  ;;  %10248 = vmatmul.msk.bf16.vlgmr.msra.gmra.mxu3 %vm993_vm0, %v1682_v2  ;;  %v1662_v52 = vmul.f32 %v11745_v5, %v12485_v17  ;;  %v12500_v2 = vadd.f32 %v12091_v13, %v12074_v0  ;;  %v1663_v58 = vmul.f32 %v11745_v5, %v12495_v14 }
 0x359   : > { %v1072_v19 = vmul.f32 1.442695, %v1049_v38  ;;  %1864 = vmatpush.bf16.msra.mxu3 %v1855_v31 }
 0x35a   : > { %10249 = vmatmul.msk.bf16.vlgmr.msra.gmra.mxu0 %vm993_vm0, %v1683_v3  ;;  %v1678_v51 = vpack.c.bf16 %v1662_v52, %v1662_v52  ;;  %16537 = vst [vmem:[#allocation65_spill] sm:$0xff] %v12500_v2 }
 0x35b   : > { %10947 = vpow2.f32 %v1072_v19  ;;  %1883 = vmatpush.bf16.msra.mxu0 %v1874_v54  ;;  %v1679_v19 = vpack.c.bf16 %v1663_v58, %v1663_v58 }
 0x35c   : > { %v1584_v49 = vpop.xlane.xlu0 %1583  ;;  %v1931_v39 = vsel %vm1701_vm15, %v1678_v51, 0 }
 0x35d   : > { %10949 = vrcp.f32 %v1584_v49 }
 0x361   : > { %v12489_v22 = vpop.eup %10947 }
 0x362   : > { %v1111_v57 = vsel %vm993_vm0, %v12489_v22, 0.0 }
 0x363   : > { %v10950_v35 = vpop.eup %10949  ;;  %1112 = vadd.xlane.f32.xlu1 %v1111_v57 }
 0x364   : > { %v1638_v9 = vmul.f32 %v10950_v35, %v12312_v8  ;;  %v1587_v11 = vpop.xlane.xlu0 %1586  ;;  %v1661_v8 = vmul.f32 %v11745_v5, %v12500_v2  ;;  %v12513_v35 = vadd.f32 %v12091_v13, %v12050_v6  ;;  %v1170_v6 = vmul.f32 %v11900_v21, %v12098_v63 }
 0x365   : > { %10951 = vrcp.f32 %v1587_v11 }
 0x366   : > { %v1581_v32 = vpop.xlane.xlu2 %1580  ;;  %v1686_v23 = vpack.c.bf16 %v1638_v9, %v1638_v9  ;;  %v1677_v57 = vpack.c.bf16 %v1661_v8, %v1661_v8 }
 0x367   : > { %10953 = vrcp.f32 %v1581_v32 }
 0x368   : > { %10252 = vmatmul.msk.bf16.vlgmr.msrb.gmra.mxu3 %vm993_vm0, %v1686_v23 }
 0x369   : > { %1940 = vmatpush.bf16.msrb.mxu3 %v1931_v39 }
 0x36b   : > { %v10952_v38 = vpop.eup %10951 }
 0x36c   : > { %v1639_v0 = vmul.f32 %v10952_v38, %v12320_v12  ;;  %v1002_v31 = vpop.xlane.xlu0 %1001  ;;  %v1596_v49 = vpop.xlane.xlu1 %1595  ;;  %v1950_v12 = vsel %vm1701_vm15, %v1679_v19, 0  ;;  %v1186_v38 = vpack.c.bf16 %v1170_v6, %v1170_v6 }
 0x36d   : > { %v10954_v3 = vpop.eup %10953  ;;  %v1044_v52 = vsub.f32 %v12329_v37, %v1002_v31  ;;  %10955 = vrcp.f32 %v1596_v49  ;;  %v1660_v37 = vmul.f32 %v11745_v5, %v12513_v35 }
 0x36e   : > { %v1637_v54 = vmul.f32 %v10954_v3, %v12322_v47  ;;  %v1687_v9 = vpack.c.bf16 %v1639_v0, %v1639_v0  ;;  %v1578_v11 = vpop.xlane.xlu2 %1577  ;;  %v1912_v47 = vsel %vm1701_vm15, %v1677_v57, 0 }
 0x36f   : > { %v1062_v32 = vmul.f32 1.442695, %v1044_v52  ;;  %10957 = vrcp.f32 %v1578_v11  ;;  %v1676_v19 = vpack.c.bf16 %v1660_v37, %v1660_v37 }
 0x370   : > { %v1685_v51 = vpack.c.bf16 %v1637_v54, %v1637_v54  ;;  %10253 = vmatmul.msk.bf16.vlgmr.msrb.gmra.mxu0 %vm993_vm0, %v1687_v9 }
 0x371   : > { %10959 = vpow2.f32 %v1062_v32  ;;  %1959 = vmatpush.bf16.msrb.mxu0 %v1950_v12  ;;  %v12541_v32 = vadd.f32 %v12091_v13, %v12118_v41 }
 0x372   : > { %10251 = vmatmul.msk.bf16.vlgmr.msrb.gmra.mxu2 %vm993_vm0, %v1685_v51 }
 0x373   : > { %1921 = vmatpush.bf16.msrb.mxu2 %v1912_v47  ;;  %v10956_v23 = vpop.eup %10955 }
 0x374   : > { %v1642_v58 = vmul.f32 %v10956_v23, %v12335_v48  ;;  %v1011_v8 = vpop.xlane.xlu1 %1010  ;;  %v2007_v48 = vsel %vm1701_vm15, %v1186_v38, 0 }
 0x375   : > { %v10958_v39 = vpop.eup %10957  ;;  %v1047_v0 = vsub.f32 %v12347_v20, %v1011_v8  ;;  %v1893_v20 = vsel %vm1701_vm15, %v1676_v19, 0 }
 0x376   : > { %v1636_v3 = vmul.f32 %v10958_v39, %v12340_v62  ;;  %v1020_v31 = vpop.xlane.xlu2 %1019  ;;  %v1690_v49 = vpack.c.bf16 %v1642_v58, %v1642_v58  ;;  %v1664_v39 = vmul.f32 %v11745_v5, %v12541_v32 }
 0x377   : > { %v12526_v54 = vpop.eup %10959  ;;  %v1050_v52 = vsub.f32 %v12352_v1, %v1020_v31  ;;  %v1068_v9 = vmul.f32 1.442695, %v1047_v0  ;;  %v12537_v1 = vadd.f32 %v12091_v13, %v12145_v36  ;;  %v1171_v13 = vmul.f32 %v11900_v21, %v12111_v15 }
 0x378   : > { %v1684_v57 = vpack.c.bf16 %v1636_v3, %v1636_v3  ;;  %v1096_v11 = vsel %vm993_vm0, %v12526_v54, 0.0  ;;  %10256 = vmatmul.msk.bf16.vlgmr.msra.gmra.mxu3 %vm993_vm0, %v1690_v49 }
 0x379   : > { %v1074_v51 = vmul.f32 1.442695, %v1050_v52  ;;  %1097 = vadd.xlane.f32.xlu0 %v1096_v11  ;;  %10961 = vpow2.f32 %v1068_v9  ;;  %2016 = vmatpush.bf16.msra.mxu3 %v2007_v48  ;;  %v1665_v37 = vmul.f32 %v11745_v5, %v12537_v1 }
 0x37a   : > { %10250 = vmatmul.msk.bf16.vlgmr.msra.gmra.mxu1 %vm993_vm0, %v1684_v57  ;;  %v1680_v57 = vpack.c.bf16 %v1664_v39, %v1664_v39 }
 0x37b   : > { %10963 = vpow2.f32 %v1074_v51  ;;  %1902 = vmatpush.bf16.msra.mxu1 %v1893_v20  ;;  %v1681_v0 = vpack.c.bf16 %v1665_v37, %v1665_v37  ;;  %v1187_v20 = vpack.c.bf16 %v1171_v13, %v1171_v13 }
 0x37c   : > { %v1593_v62 = vpop.xlane.xlu0 %1592 }
 0x37d   : > { %v1590_v12 = vpop.xlane.xlu1 %1589  ;;  %10965 = vrcp.f32 %v1593_v62 }
 0x37e   : > { %10967 = vrcp.f32 %v1590_v12  ;;  %v1599_v47 = vpop.xlane.xlu2 %1598 }
 0x37f   : > { %10969 = vrcp.f32 %v1599_v47  ;;  %v12543_v6 = vpop.eup %10961 }
 0x380   : > { %v1105_v36 = vsel %vm993_vm0, %v12543_v6, 0.0 }
 0x381   : > { %v12547_v23 = vpop.eup %10963  ;;  %1106 = vadd.xlane.f32.xlu1 %v1105_v36 }
 0x382   : > { %v1114_v41 = vsel %vm993_vm0, %v12547_v23, 0.0 }
 0x383   : > { %v10966_v58 = vpop.eup %10965  ;;  %1115 = vadd.xlane.f32.xlu2 %v1114_v41 }
 0x384   : > { %v10968_v8 = vpop.eup %10967  ;;  %v1641_v38 = vmul.f32 %v10966_v58, %v12361_v28  ;;  %v1029_v3 = vpop.xlane.xlu0 %1028 }
 0x385   : > { %v10970_v31 = vpop.eup %10969  ;;  %v1640_v19 = vmul.f32 %v10968_v8, %v12364_v40  ;;  %v1032_v49 = vpop.xlane.xlu1 %1031  ;;  %v1053_v52 = vsub.f32 %v12375_v18, %v1029_v3  ;;  %v1988_v40 = vsel %vm1701_vm15, %v1681_v0, 0  ;;  %v2026_v18 = vsel %vm1701_vm15, %v1187_v20, 0 }
 0x386   : > { %v1689_v9 = vpack.c.bf16 %v1641_v38, %v1641_v38  ;;  %v1643_v11 = vmul.f32 %v10970_v31, %v12359_v24  ;;  %v1054_v51 = vsub.f32 %v12378_v33, %v1032_v49  ;;  %v1605_v48 = vpop.xlane.xlu2 %1604  ;;  %v1969_v24 = vsel %vm1701_vm15, %v1680_v57, 0 }
 0x387   : > { %v1688_v62 = vpack.c.bf16 %v1640_v19, %v1640_v19  ;;  %v1080_v12 = vmul.f32 1.442695, %v1053_v52  ;;  %10971 = vrcp.f32 %v1605_v48  ;;  %v1173_v38 = vmul.f32 %v11900_v21, %v12149_v45 }
 0x388   : > { %v1691_v47 = vpack.c.bf16 %v1643_v11, %v1643_v11  ;;  %v1082_v28 = vmul.f32 1.442695, %v1054_v51  ;;  %10255 = vmatmul.msk.bf16.vlgmr.msra.gmra.mxu2 %vm993_vm0, %v1689_v9  ;;  %v1174_v3 = vmul.f32 %v11900_v21, %v12133_v16 }
 0x389   : > { %10973 = vpow2.f32 %v1080_v12  ;;  %1997 = vmatpush.bf16.msra.mxu2 %v1988_v40  ;;  %v1189_v57 = vpack.c.bf16 %v1173_v38, %v1173_v38 }
 0x38a   : > { %10975 = vpow2.f32 %v1082_v28  ;;  %10254 = vmatmul.msk.bf16.vlgmr.msrb.gmra.mxu1 %vm993_vm0, %v1688_v62  ;;  %10257 = vmatmul.msk.bf16.vlgmr.msra.gmra.mxu0 %vm993_vm0, %v1691_v47  ;;  %v1190_v9 = vpack.c.bf16 %v1174_v3, %v1174_v3 }
 0x38b   : > { %1978 = vmatpush.bf16.msrb.mxu1 %v1969_v24  ;;  %2035 = vmatpush.bf16.msra.mxu0 %v2026_v18 }
 0x38c   : > { %v1608_v33 = vpop.xlane.xlu0 %1607 }
 0x38d   : > { %v1092_v37 = vpop.xlane.xlu1 %1091  ;;  %10977 = vrcp.f32 %v1608_v33  ;;  %v10972_v36 = vpop.eup %10971 }
 0x38e   : > { %v1014_v39 = vpop.xlane.xlu2 %1013  ;;  %v1645_v19 = vmul.f32 %v10972_v36, %v12380_v29  ;;  %v2064_v29 = vsel %vm1701_vm15, %v1189_v57, 0 }
 0x38f   : > { %v12568_v41 = vpop.eup %10973  ;;  %v1048_v13 = vsub.f32 %v12395_v61, %v1014_v39 }
 0x390   : > { %v12571_v58 = vpop.eup %10975  ;;  %v1123_v8 = vsel %vm993_vm0, %v12568_v41, 0.0  ;;  %v1693_v48 = vpack.c.bf16 %v1645_v19, %v1645_v19 }
 0x391   : > { %v1070_v0 = vmul.f32 1.442695, %v1048_v13  ;;  %v1126_v31 = vsel %vm993_vm0, %v12571_v58, 0.0  ;;  %1124 = vadd.xlane.f32.xlu2 %v1123_v8 }
 0x392   : > { %1127 = vadd.xlane.f32.xlu0 %v1126_v31 }
 0x393   : > { %v10978_v61 = vpop.eup %10977  ;;  %10979 = vpow2.f32 %v1070_v0 }
 0x394   : > { %v1646_v49 = vmul.f32 %v10978_v61, %v12389_v44  ;;  %v1023_v52 = vpop.xlane.xlu0 %1022  ;;  %v2083_v44 = vsel %vm1701_vm15, %v1190_v9, 0  ;;  %v16538_v61 = vld [vmem:[#allocation64_spill] sm:$0xff] }
 0x395   : > { %v1611_v11 = vpop.xlane.xlu1 %1610  ;;  %v1051_v51 = vsub.f32 %v12405_v59, %v1023_v52  ;;  %v1175_v59 = vmul.f32 %v11900_v21, %v12153_v56 }
 0x396   : > { %v1694_v20 = vpack.c.bf16 %v1646_v49, %v1646_v49  ;;  %10981 = vrcp.f32 %v1611_v11  ;;  %v1617_v62 = vpop.xlane.xlu2 %1616  ;;  %v1177_v49 = vmul.f32 %v11900_v21, %v16538_v61 }
 0x397   : > { %v1076_v12 = vmul.f32 1.442695, %v1051_v51  ;;  %10983 = vrcp.f32 %v1617_v62  ;;  %v1191_v36 = vpack.c.bf16 %v1175_v59, %v1175_v59 }
 0x398   : > { %10259 = vmatmul.msk.bf16.vlgmr.msrb.gmra.mxu2 %vm993_vm0, %v1693_v48  ;;  %10260 = vmatmul.msk.bf16.vlgmr.msrb.gmra.mxu3 %vm993_vm0, %v1694_v20  ;;  %v1193_v62 = vpack.c.bf16 %v1177_v49, %v1177_v49 }
 0x399   : > { %v12588_v47 = vpop.eup %10979  ;;  %10985 = vpow2.f32 %v1076_v12  ;;  %2073 = vmatpush.bf16.msrb.mxu2 %v2064_v29  ;;  %2092 = vmatpush.bf16.msrb.mxu3 %v2083_v44 }
 0x39a   : > { %10987 = vrcp.f32 %v1092_v37  ;;  %v1108_v28 = vsel %vm993_vm0, %v12588_v47, 0.0 }
 0x39b   : > { %1109 = vadd.xlane.f32.xlu1 %v1108_v28 }
 0x39c   : > { %v10982_v40 = vpop.eup %10981  ;;  %v1602_v24 = vpop.xlane.xlu0 %1601 }
 0x39d   : > { %v1647_v18 = vmul.f32 %v10982_v40, %v12407_v50  ;;  %v1035_v33 = vpop.xlane.xlu1 %1034  ;;  %10989 = vrcp.f32 %v1602_v24  ;;  %v10984_v39 = vpop.eup %10983  ;;  %v1172_v50 = vmul.f32 %v11900_v21, %v12129_v4 }
 0x39e   : > { %v1055_v13 = vsub.f32 %v12424_v30, %v1035_v33  ;;  %v1041_v8 = vpop.xlane.xlu2 %1040  ;;  %v2102_v30 = vsel %vm1701_vm15, %v1191_v36, 0  ;;  %v1649_v57 = vmul.f32 %v10984_v39, %v12409_v42  ;;  %v1179_v39 = vmul.f32 %v11900_v21, %v12470_v60 }
 0x39f   : > { %v12596_v38 = vpop.eup %10985  ;;  %v1695_v3 = vpack.c.bf16 %v1647_v18, %v1647_v18  ;;  %v1057_v37 = vsub.f32 %v12427_v53, %v1041_v8  ;;  %v1178_v53 = vmul.f32 %v11900_v21, %v12466_v43  ;;  %v1188_v20 = vpack.c.bf16 %v1172_v50, %v1172_v50 }
 0x3a0   : > { %v10988_v0 = vpop.eup %10987  ;;  %v1084_v31 = vmul.f32 1.442695, %v1055_v13  ;;  %v1117_v19 = vsel %vm993_vm0, %v12596_v38, 0.0  ;;  %v1697_v59 = vpack.c.bf16 %v1649_v57, %v1649_v57 }
 0x3a1   : > { %v1088_v52 = vmul.f32 1.442695, %v1057_v37  ;;  %10261 = vmatmul.msk.bf16.vlgmr.msrb.gmra.mxu0 %vm993_vm0, %v1695_v3  ;;  %1118 = vadd.xlane.f32.xlu2 %v1117_v19  ;;  %v1154_v11 = vmul.f32 %v10988_v0, %v12392_v7  ;;  %v1194_v44 = vpack.c.bf16 %v1178_v53, %v1178_v53  ;;  %v2045_v7 = vsel %vm1701_vm15, %v1188_v20, 0 }
 0x3a2   : > { %10991 = vpow2.f32 %v1084_v31  ;;  %2111 = vmatpush.bf16.msrb.mxu0 %v2102_v30  ;;  %v1195_v0 = vpack.c.bf16 %v1179_v39, %v1179_v39  ;;  %v1181_v30 = vmul.f32 %v11900_v21, %v12500_v2  ;;  %v1185_v39 = vmul.f32 %v11900_v21, %v12537_v1 }
 0x3a3   : > { %v10990_v9 = vpop.eup %10989  ;;  %10993 = vpow2.f32 %v1088_v52  ;;  %v1202_v42 = vpack.c.bf16 %v1154_v11, %v1154_v11 }
 0x3a4   : > { %v1644_v51 = vmul.f32 %v10990_v9, %v12421_v27  ;;  %v1026_v48 = vpop.xlane.xlu0 %1025  ;;  %v2140_v27 = vsel %vm1701_vm15, %v1193_v62, 0  ;;  %v2178_v53 = vsel %vm1701_vm15, %v1195_v0, 0  ;;  %v16539_v9 = vld [vmem:[#allocation63_spill] sm:$0xff]  ;;  %v1197_v62 = vpack.c.bf16 %v1181_v30, %v1181_v30 }
 0x3a5   : > { %v1095_v12 = vpop.xlane.xlu1 %1094  ;;  %v1052_v29 = vsub.f32 %v12439_v55, %v1026_v48  ;;  %v2159_v55 = vsel %vm1701_vm15, %v1194_v44, 0  ;;  %v1176_v11 = vmul.f32 %v11900_v21, %v16539_v9 }
 0x3a6   : > { %v1692_v28 = vpack.c.bf16 %v1644_v51, %v1644_v51  ;;  %10995 = vrcp.f32 %v1095_v12  ;;  %v1101_v40 = vpop.xlane.xlu2 %1100 }
 0x3a7   : > { %v1078_v24 = vmul.f32 1.442695, %v1052_v29  ;;  %10997 = vrcp.f32 %v1101_v40 }
 0x3a8   : > { %v12613_v18 = vpop.eup %10991  ;;  %10258 = vmatmul.msk.bf16.vlgmr.msra.gmra.mxu1 %vm993_vm0, %v1692_v28  ;;  %10263 = vmatmul.msk.bf16.vlgmr.msra.gmra.mxu2 %vm993_vm0, %v1697_v59 }
 0x3a9   : > { %v12619_v33 = vpop.eup %10993  ;;  %10999 = vpow2.f32 %v1078_v24  ;;  %10264 = vmatmul.msk.bf16.vlgmr.msra.gmra.mxu3 %vm993_vm0, %v1202_v42  ;;  %2054 = vmatpush.bf16.msra.mxu1 %v2045_v7  ;;  %v1129_v36 = vsel %vm993_vm0, %v12613_v18, 0.0  ;;  %v1192_v42 = vpack.c.bf16 %v1176_v11, %v1176_v11  ;;  %v2216_v7 = vsel %vm1701_vm15, %v1197_v62, 0 }
 0x3aa   : > { %2149 = vmatpush.bf16.msra.mxu2 %v2140_v27  ;;  %2168 = vmatpush.bf16.msra.mxu3 %v2159_v55  ;;  %v1135_v13 = vsel %vm993_vm0, %v12619_v33, 0.0 }
 0x3ab   : > { %1130 = vadd.xlane.f32.xlu2 %v1129_v36  ;;  %1136 = vadd.xlane.f32.xlu0 %v1135_v13 }
 0x3ac   : > { %v10996_v8 = vpop.eup %10995  ;;  %v1104_v3 = vpop.xlane.xlu0 %1103 }
 0x3ad   : > { %v1155_v37 = vmul.f32 %v10996_v8, %v12441_v25  ;;  %11001 = vrcp.f32 %v1104_v3  ;;  %v10998_v31 = vpop.eup %10997  ;;  %v1182_v25 = vmul.f32 %v11900_v21, %v12485_v17 }
 0x3ae   : > { %v1614_v19 = vpop.xlane.xlu2 %1613  ;;  %v1157_v57 = vmul.f32 %v10998_v31, %v12443_v34 }
 0x3af   : > { %v12630_v50 = vpop.eup %10999  ;;  %v1203_v49 = vpack.c.bf16 %v1155_v37, %v1155_v37  ;;  %11003 = vrcp.f32 %v1614_v19  ;;  %v1198_v44 = vpack.c.bf16 %v1182_v25, %v1182_v25  ;;  %v1201_v37 = vpack.c.bf16 %v1185_v39, %v1185_v39 }
 0x3b0   : > { %v1120_v52 = vsel %vm993_vm0, %v12630_v50, 0.0  ;;  %v1205_v59 = vpack.c.bf16 %v1157_v57, %v1157_v57  ;;  %v1180_v25 = vmul.f32 %v11900_v21, %v12513_v35 }
 0x3b1   : > { %10265 = vmatmul.msk.bf16.vlgmr.msra.gmra.mxu0 %vm993_vm0, %v1203_v49  ;;  %1121 = vadd.xlane.f32.xlu1 %v1120_v52  ;;  %v2292_v19 = vsel %vm1701_vm15, %v1201_v37, 0 }
 0x3b2   : > { %2187 = vmatpush.bf16.msra.mxu0 %v2178_v53 }
 0x3b3   : > { %v11002_v51 = vpop.eup %11001 }
 0x3b4   : > { %v1158_v48 = vmul.f32 %v11002_v51, %v12451_v10  ;;  %v1038_v20 = vpop.xlane.xlu0 %1037  ;;  %v2235_v10 = vsel %vm1701_vm15, %v1198_v44, 0 }
 0x3b5   : > { %v11004_v12 = vpop.eup %11003  ;;  %v1056_v29 = vsub.f32 %v12460_v46, %v1038_v20  ;;  %v2121_v46 = vsel %vm1701_vm15, %v1192_v42, 0 }
 0x3b6   : > { %v1206_v28 = vpack.c.bf16 %v1158_v48, %v1158_v48  ;;  %v1648_v40 = vmul.f32 %v11004_v12, %v12453_v26  ;;  %v1196_v48 = vpack.c.bf16 %v1180_v25, %v1180_v25 }
 0x3b7   : > { %v1086_v24 = vmul.f32 1.442695, %v1056_v29 }
 0x3b8   : > { %v1696_v34 = vpack.c.bf16 %v1648_v40, %v1648_v40  ;;  %10267 = vmatmul.msk.bf16.vlgmr.msrb.gmra.mxu2 %vm993_vm0, %v1205_v59  ;;  %v2197_v59 = vsel %vm1701_vm15, %v1196_v48, 0 }
 0x3b9   : > { %11005 = vpow2.f32 %v1086_v24  ;;  %10268 = vmatmul.msk.bf16.vlgmr.msrb.gmra.mxu3 %vm993_vm0, %v1206_v28  ;;  %2225 = vmatpush.bf16.msrb.mxu2 %v2216_v7  ;;  %v1183_v28 = vmul.f32 %v11900_v21, %v12495_v14 }
 0x3ba   : > { %10262 = vmatmul.msk.bf16.vlgmr.msrb.gmra.mxu1 %vm993_vm0, %v1696_v34  ;;  %2244 = vmatpush.bf16.msrb.mxu3 %v2235_v10 }
 0x3bb   : > { %2130 = vmatpush.bf16.msrb.mxu1 %v2121_v46  ;;  %v1199_v7 = vpack.c.bf16 %v1183_v28, %v1183_v28 }
 0x3bd   : > { %v2254_v39 = vsel %vm1701_vm15, %v1199_v7, 0 }
 0x3bf   : > { %v12652_v26 = vpop.eup %11005 }
 0x3c0   : > { %v1132_v27 = vsel %vm993_vm0, %v12652_v26, 0.0 }
 0x3c1   : > { %1133 = vadd.xlane.f32.xlu0 %v1132_v27 }
 0x3d6   : > { %v1113_v55 = vpop.xlane.xlu1 %1112 }
 0x3d7   : > { %11007 = vrcp.f32 %v1113_v55  ;;  %v12656_v36 = vpop.f32.mrf.mxu0 }
 0x3d8   : > { %16540 = vst [vmem:[#allocation66_spill] sm:$0xff] %v12656_v36 }
 0x3db   : > { %v12660_v13 = vpop.f32.mrf.mxu3 }
 0x3dd   : > { %v11008_v8 = vpop.eup %11007 }
 0x3de   : > { %v1161_v3 = vmul.f32 %v11008_v8, %v12489_v22  ;;  %v16544_v8 = vld [vmem:[#allocation29_spill] sm:$0xff] }
 0x3df   : > { %v1735_v0 = vpop.f32.mrf.mxu0 }
 0x3e0   : > { %v1209_v31 = vpack.c.bf16 %v1161_v3, %v1161_v3 }
 0x3e2   : > { %10271 = vmatmul.msk.bf16.vlgmr.msra.gmra.mxu2 %vm993_vm0, %v1209_v31 }
 0x3e3   : > { %2301 = vmatpush.bf16.msra.mxu2 %v2292_v19  ;;  %v1716_v49 = vpop.f32.mrf.mxu3 }
 0x3eb   : > { %v12665_v52 = vpop.f32.mrf.mxu3 }
 0x3ec   : > { %v1098_v30 = vpop.xlane.xlu0 %1097 }
 0x3ed   : > { %11009 = vrcp.f32 %v1098_v30  ;;  %v12667_v53 = vpop.f32.mrf.mxu0 }
 0x3ee   : > { %16541 = vst [vmem:[#allocation67_spill] sm:$0xff] %v12667_v53 }
 0x3f3   : > { %v11010_v57 = vpop.eup %11009  ;;  %v1792_v22 = vpop.f32.mrf.mxu3 }
 0x3f4   : > { %v1156_v11 = vmul.f32 %v11010_v57, %v12526_v54  ;;  %v1107_v20 = vpop.xlane.xlu1 %1106 }
 0x3f5   : > { %v12672_v51 = vpop.f32.mrf.mxu2  ;;  %v1811_v62 = vpop.f32.mrf.mxu0  ;;  %11011 = vrcp.f32 %v1107_v20 }
 0x3f6   : > { %v1204_v12 = vpack.c.bf16 %v1156_v11, %v1156_v11  ;;  %v1116_v29 = vpop.xlane.xlu2 %1115  ;;  %v16548_v62 = vld [vmem:[#allocation35_spill] sm:$0xff] }
 0x3f7   : > { %11013 = vrcp.f32 %v1116_v29  ;;  %v12674_v44 = vpop.f32.mrf.mxu1  ;;  %v16549_v29 = vld [vmem:[#allocation38_spill] sm:$0xff] }
 0x3f8   : > { %16542 = vst [vmem:[#allocation68_spill] sm:$0xff] %v12674_v44  ;;  %10266 = vmatmul.msk.bf16.vlgmr.msra.gmra.mxu1 %vm993_vm0, %v1204_v12  ;;  %v1184_v12 = vmul.f32 %v11900_v21, %v12541_v32 }
 0x3f9   : > { %2206 = vmatpush.bf16.msra.mxu1 %v2197_v59 }
 0x3fb   : > { %v11012_v54 = vpop.eup %11011  ;;  %v12680_v42 = vpop.f32.mrf.mxu3 }
 0x3fc   : > { %16543 = vst [vmem:[#allocation69_spill] sm:$0xff] %v12680_v42  ;;  %v1159_v34 = vmul.f32 %v11012_v54, %v12543_v6  ;;  %v1200_v54 = vpack.c.bf16 %v1184_v12, %v1184_v12 }
 0x3fd   : > { %v1773_v40 = vpop.f32.mrf.mxu2  ;;  %v11014_v24 = vpop.eup %11013 }
 0x3fe   : > { %v1162_v10 = vmul.f32 %v11014_v24, %v12547_v23  ;;  %v1207_v46 = vpack.c.bf16 %v1159_v34, %v1159_v34  ;;  %v2273_v24 = vsel %vm1701_vm15, %v1200_v54, 0 }
 0x3ff   : > { %v1754_v27 = vpop.f32.mrf.mxu1 }
 0x400   : > { %v1210_v55 = vpack.c.bf16 %v1162_v10, %v1162_v10  ;;  %10269 = vmatmul.msk.bf16.vlgmr.msrb.gmra.mxu0 %vm993_vm0, %v1207_v46  ;;  %v16552_v46 = vld [vmem:[#allocation28_spill] sm:$0xff]  ;;  %v16553_v27 = vld [vmem:[#allocation10_spill] sm:$0xff] }
 0x401   : > { %2263 = vmatpush.bf16.msrb.mxu0 %v2254_v39 }
 0x402   : > { %10272 = vmatmul.msk.bf16.vlgmr.msra.gmra.mxu3 %vm993_vm0, %v1210_v55  ;;  %v2307_v55 = vmul.f32 %v16553_v27, %v16552_v46 }
 0x403   : > { %2346 = vmatpush.bf16.xpose.msra.mxu3 %v16544_v8  ;;  %v1868_v3 = vpop.f32.mrf.mxu3 }
 0x404   : > { %v1125_v37 = vpop.xlane.xlu2 %1124 }
 0x405   : > { %v1128_v0 = vpop.xlane.xlu0 %1127  ;;  %11015 = vrcp.f32 %v1125_v37 }
 0x406   : > { %11017 = vrcp.f32 %v1128_v0 }
 0x407   : > { %v12688_v6 = vpop.f32.mrf.mxu1  ;;  %v12690_v23 = vpop.f32.mrf.mxu0 }
 0x408   : > { %16545 = vst [vmem:[#allocation29_spill] sm:$0xff] %v12688_v6  ;;  %v16581_v6 = vld [vmem:[#allocation51_spill] sm:$0xff] }
 0x409   : > { %16546 = vst [vmem:[#allocation70_spill] sm:$0xff] %v12690_v23  ;;  %v2318_v23 = vmul.f32 %v16553_v27, %v16581_v6  ;;  %v16585_v6 = vld [vmem:[#allocation59_spill] sm:$0xff] }
 0x40b   : > { %v11016_v31 = vpop.eup %11015  ;;  %v12692_v19 = vpop.f32.mrf.mxu2 }
 0x40c   : > { %16547 = vst [vmem:[#allocation71_spill] sm:$0xff] %v12692_v19  ;;  %v11018_v49 = vpop.eup %11017  ;;  %v1165_v30 = vmul.f32 %v11016_v31, %v12568_v41  ;;  %v2323_v31 = vpack.c.bf16 %v2307_v55, %v2307_v55 }
 0x40d   : > { %v1166_v25 = vmul.f32 %v11018_v49, %v12571_v58  ;;  %v16555_v49 = vld [vmem:[#allocation31_spill] sm:$0xff] }
 0x40e   : > { %v1213_v57 = vpack.c.bf16 %v1165_v30, %v1165_v30  ;;  %v1110_v22 = vpop.xlane.xlu1 %1109  ;;  %v16556_v30 = vld [vmem:[#allocation46_spill] sm:$0xff] }
 0x40f   : > { %v1214_v11 = vpack.c.bf16 %v1166_v25, %v1166_v25  ;;  %11019 = vrcp.f32 %v1110_v22  ;;  %v1830_v48 = vpop.f32.mrf.mxu1  ;;  %v1887_v20 = vpop.f32.mrf.mxu0 }
 0x410   : > { %10275 = vmatmul.msk.bf16.vlgmr.msrb.gmra.mxu2 %vm993_vm0, %v1213_v57 }
 0x411   : > { %2385 = vmatpush.bf16.xpose.msrb.mxu2 %v16548_v62 }
 0x412   : > { %10276 = vmatmul.msk.bf16.vlgmr.msrb.gmra.mxu3 %vm993_vm0, %v1214_v11 }
 0x413   : > { %2398 = vmatpush.bf16.xpose.msrb.mxu3 %v16549_v29  ;;  %v1849_v41 = vpop.f32.mrf.mxu2 }
 0x414   : > { %v1119_v59 = vpop.xlane.xlu2 %1118 }
 0x415   : > { %v11020_v58 = vpop.eup %11019  ;;  %11021 = vrcp.f32 %v1119_v59 }
 0x416   : > { %v1160_v28 = vmul.f32 %v11020_v58, %v12588_v47 }
 0x418   : > { %v1208_v40 = vpack.c.bf16 %v1160_v28, %v1160_v28  ;;  %v16558_v28 = vld [vmem:[#allocation44_spill] sm:$0xff] }
 0x41a   : > { %10270 = vmatmul.msk.bf16.vlgmr.msrb.gmra.mxu1 %vm993_vm0, %v1208_v40  ;;  %v16560_v40 = vld [vmem:[#allocation37_spill] sm:$0xff] }
 0x41b   : > { %v11022_v34 = vpop.eup %11021  ;;  %2282 = vmatpush.bf16.msrb.mxu1 %v2273_v24  ;;  %v12705_v7 = vpop.f32.mrf.mxu2  ;;  %v2311_v24 = vmul.f32 %v16553_v27, %v16560_v40 }
 0x41c   : > { %16550 = vst [vmem:[#allocation35_spill] sm:$0xff] %v12705_v7  ;;  %v12707_v10 = vpop.f32.mrf.mxu3  ;;  %v1163_v39 = vmul.f32 %v11022_v34, %v12596_v38  ;;  %v2742_v7 = vmul.f32 %v16553_v27, %v12149_v45  ;;  %v2322_v45 = vmul.f32 %v16553_v27, %v16585_v6 }
 0x41d   : > { %16551 = vst [vmem:[#allocation38_spill] sm:$0xff] %v12707_v10  ;;  %v16580_v10 = vld [vmem:[#allocation56_spill] sm:$0xff] }
 0x41e   : > { %v1211_v3 = vpack.c.bf16 %v1163_v39, %v1163_v39  ;;  %v1137_v37 = vpop.xlane.xlu0 %1136  ;;  %v1131_v47 = vpop.xlane.xlu2 %1130 }
 0x41f   : > { %11023 = vrcp.f32 %v1137_v37  ;;  %v12712_v0 = vpop.f32.mrf.mxu0 }
 0x420   : > { %16554 = vst [vmem:[#allocation28_spill] sm:$0xff] %v12712_v0  ;;  %10273 = vmatmul.msk.bf16.vlgmr.msra.gmra.mxu0 %vm993_vm0, %v1211_v3  ;;  %11025 = vrcp.f32 %v1131_v47  ;;  %v16562_v47 = vld [vmem:[#allocation34_spill] sm:$0xff] }
 0x421   : > { %2359 = vmatpush.bf16.xpose.msra.mxu0 %v16555_v49 }
 0x422   : > { %2347 = vmatmul.bf16.vlgmr.msra.gmra.mxu3 %v2323_v31  ;;  %v16563_v31 = vld [vmem:[#allocation40_spill] sm:$0xff] }
 0x423   : > { %2450 = vmatpush.bf16.xpose.msra.mxu3 %v16556_v30  ;;  %v1925_v25 = vpop.f32.mrf.mxu2 }
 0x424   : > { %v1944_v57 = vpop.f32.mrf.mxu3  ;;  %v1122_v22 = vpop.xlane.xlu1 %1121  ;;  %v16564_v25 = vld [vmem:[#allocation54_spill] sm:$0xff] }
 0x425   : > { %v11024_v11 = vpop.eup %11023  ;;  %11027 = vrcp.f32 %v1122_v22  ;;  %v12717_v38 = vpop.f32.mrf.mxu1  ;;  %v16565_v57 = vld [vmem:[#allocation36_spill] sm:$0xff] }
 0x426   : > { %16557 = vst [vmem:[#allocation31_spill] sm:$0xff] %v12717_v38  ;;  %v1169_v48 = vmul.f32 %v11024_v11, %v12619_v33  ;;  %v11026_v20 = vpop.eup %11025  ;;  %v2310_v22 = vmul.f32 %v16553_v27, %v16565_v57 }
 0x427   : > { %v1963_v12 = vpop.f32.mrf.mxu0  ;;  %v1167_v59 = vmul.f32 %v11026_v20, %v12613_v18  ;;  %v2327_v18 = vpack.c.bf16 %v2311_v24, %v2311_v24  ;;  %v2739_v24 = vmul.f32 %v16553_v27, %v12098_v63 }
 0x428   : > { %v1217_v41 = vpack.c.bf16 %v1169_v48, %v1169_v48 }
 0x429   : > { %v1215_v39 = vpack.c.bf16 %v1167_v59, %v1167_v59  ;;  %v16567_v59 = vld [vmem:[#allocation32_spill] sm:$0xff] }
 0x42a   : > { %10279 = vmatmul.msk.bf16.vlgmr.msra.gmra.mxu2 %vm993_vm0, %v1217_v41  ;;  %v2326_v41 = vpack.c.bf16 %v2310_v22, %v2310_v22 }
 0x42b   : > { %v11028_v58 = vpop.eup %11027  ;;  %2437 = vmatpush.bf16.xpose.msra.mxu2 %v16558_v28  ;;  %v12723_v54 = vpop.f32.mrf.mxu2 }
 0x42c   : > { %16559 = vst [vmem:[#allocation46_spill] sm:$0xff] %v12723_v54  ;;  %v1164_v34 = vmul.f32 %v11028_v58, %v12630_v50  ;;  %v12728_v55 = vpop.f32.mrf.mxu3  ;;  %v2308_v58 = vmul.f32 %v16553_v27, %v16567_v59  ;;  %v16573_v54 = vld [vmem:[#allocation48_spill] sm:$0xff] }
 0x42d   : > { %v1906_v33 = vpop.f32.mrf.mxu1 }
 0x42e   : > { %v1212_v3 = vpack.c.bf16 %v1164_v34, %v1164_v34  ;;  %v16568_v33 = vld [vmem:[#allocation52_spill] sm:$0xff] }
 0x42f   : > { %v12730_v37 = vpop.f32.mrf.mxu0 }
 0x430   : > { %16561 = vst [vmem:[#allocation44_spill] sm:$0xff] %v12730_v37  ;;  %10274 = vmatmul.msk.bf16.vlgmr.msra.gmra.mxu1 %vm993_vm0, %v1212_v3  ;;  %10277 = vmatmul.msk.bf16.vlgmr.msrb.gmra.mxu0 %vm993_vm0, %v1215_v39  ;;  %v16569_v3 = vld [vmem:[#allocation45_spill] sm:$0xff] }
 0x431   : > { %2372 = vmatpush.bf16.xpose.msra.mxu1 %v16562_v47  ;;  %2411 = vmatpush.bf16.xpose.msrb.mxu0 %v16563_v31 }
 0x432   : > { %2399 = vmatmul.bf16.vlgmr.msrb.gmra.mxu3 %v2327_v18  ;;  %v2315_v18 = vmul.f32 %v16553_v27, %v16569_v3 }
 0x433   : > { %2502 = vmatpush.bf16.xpose.msrb.mxu3 %v16564_v25  ;;  %v2001_v50 = vpop.f32.mrf.mxu2 }
 0x434   : > { %v2020_v11 = vpop.f32.mrf.mxu3  ;;  %v1134_v48 = vpop.xlane.xlu0 %1133  ;;  %v2331_v21 = vpack.c.bf16 %v2315_v18, %v2315_v18  ;;  %v16576_v18 = vld [vmem:[#allocation39_spill] sm:$0xff] }
 0x435   : > { %11029 = vrcp.f32 %v1134_v48  ;;  %v2324_v48 = vpack.c.bf16 %v2308_v58, %v2308_v58 }
 0x437   : > { %v12739_v20 = vpop.f32.mrf.mxu1  ;;  %v2039_v12 = vpop.f32.mrf.mxu0 }
 0x438   : > { %16566 = vst [vmem:[#allocation37_spill] sm:$0xff] %v12739_v20  ;;  %v16572_v20 = vld [vmem:[#allocation42_spill] sm:$0xff] }
 0x43a   : > { %2386 = vmatmul.bf16.vlgmr.msrb.gmra.mxu2 %v2326_v41  ;;  %v2755_v41 = vpack.c.bf16 %v2739_v24, %v2739_v24  ;;  %v16575_v24 = vld [vmem:[#allocation33_spill] sm:$0xff] }
 0x43b   : > { %v11030_v34 = vpop.eup %11029  ;;  %2489 = vmatpush.bf16.xpose.msrb.mxu2 %v16568_v33  ;;  %v2075_v39 = vpop.f32.mrf.mxu2 }
 0x43c   : > { %v1168_v50 = vmul.f32 %v11030_v34, %v12652_v26  ;;  %v12750_v11 = vadd.f32 %v2075_v39, %v12672_v51  ;;  %v12752_v22 = vpop.f32.mrf.mxu3  ;;  %v2791_v26 = vsel %vm1701_vm15, %v2755_v41, 0  ;;  %v16574_v34 = vld [vmem:[#allocation43_spill] sm:$0xff]  ;;  %v16578_v41 = vld [vmem:[#allocation53_spill] sm:$0xff] }
 0x43d   : > { %16571 = vst [vmem:[#allocation40_spill] sm:$0xff] %v12752_v22  ;;  %v2314_v39 = vmul.f32 %v16553_v27, %v16574_v34 }
 0x43e   : > { %16570 = vst [vmem:[#allocation34_spill] sm:$0xff] %v12750_v11  ;;  %v1216_v12 = vpack.c.bf16 %v1168_v50, %v1168_v50 }
 0x43f   : > { %v1982_v5 = vpop.f32.mrf.mxu1  ;;  %v2330_v50 = vpack.c.bf16 %v2314_v39, %v2314_v39  ;;  %v16579_v39 = vld [vmem:[#allocation50_spill] sm:$0xff] }
 0x440   : > { %10278 = vmatmul.msk.bf16.vlgmr.msrb.gmra.mxu1 %vm993_vm0, %v1216_v12  ;;  %2360 = vmatmul.bf16.vlgmr.msra.gmra.mxu0 %v2324_v48  ;;  %v2309_v5 = vmul.f32 %v16553_v27, %v16575_v24  ;;  %v2312_v48 = vmul.f32 %v16553_v27, %v16576_v18  ;;  %v2743_v12 = vmul.f32 %v16553_v27, %v12133_v16 }
 0x441   : > { %2424 = vmatpush.bf16.xpose.msrb.mxu1 %v16572_v20  ;;  %2463 = vmatpush.bf16.xpose.msra.mxu0 %v16573_v54 }
 0x442   : > { %2451 = vmatmul.bf16.vlgmr.msra.gmra.mxu3 %v2331_v21  ;;  %v16577_v21 = vld [vmem:[#allocation60_spill] sm:$0xff]  ;;  %v2328_v38 = vpack.c.bf16 %v2312_v48, %v2312_v48  ;;  %v2759_v0 = vpack.c.bf16 %v2743_v12, %v2743_v12  ;;  %v2334_v48 = vpack.c.bf16 %v2318_v23, %v2318_v23  ;;  %v2740_v12 = vmul.f32 %v16553_v27, %v12111_v15 }
 0x443   : > { %2800 = vmatpush.bf16.msra.mxu3 %v2791_v26  ;;  %v2077_v51 = vpop.f32.mrf.mxu2  ;;  %v2319_v26 = vmul.f32 %v16553_v27, %v16578_v41 }
 0x444   : > { %v2096_v58 = vpop.f32.mrf.mxu3  ;;  %v2325_v51 = vpack.c.bf16 %v2309_v5, %v2309_v5  ;;  %v2758_v5 = vpack.c.bf16 %v2742_v7, %v2742_v7  ;;  %v2756_v42 = vpack.c.bf16 %v2740_v12, %v2740_v12  ;;  %v16584_v7 = vld [vmem:[#allocation58_spill] sm:$0xff]  ;;  %v2741_v12 = vmul.f32 %v16553_v27, %v12129_v4 }
 0x445   : > { %v2335_v58 = vpack.c.bf16 %v2319_v26, %v2319_v26 }
 0x446   : > { %v2810_v23 = vsel %vm1701_vm15, %v2756_v42, 0  ;;  %v16587_v42 = vld [vmem:[#allocation55_spill] sm:$0xff] }
 0x44a   : > { %2438 = vmatmul.bf16.vlgmr.msra.gmra.mxu2 %v2330_v50  ;;  %v2867_v50 = vsel %vm1701_vm15, %v2759_v0, 0  ;;  %v2848_v0 = vsel %vm1701_vm15, %v2758_v5, 0 }
 0x44b   : > { %2541 = vmatpush.bf16.xpose.msra.mxu2 %v16577_v21 }
 0x450   : > { %2373 = vmatmul.bf16.vlgmr.msra.gmra.mxu1 %v2325_v51  ;;  %2412 = vmatmul.bf16.vlgmr.msrb.gmra.mxu0 %v2328_v38  ;;  %v16582_v38 = vld [vmem:[#allocation41_spill] sm:$0xff]  ;;  %v16583_v51 = vld [vmem:[#allocation47_spill] sm:$0xff] }
 0x451   : > { %2476 = vmatpush.bf16.xpose.msra.mxu1 %v16579_v39  ;;  %2515 = vmatpush.bf16.xpose.msrb.mxu0 %v16580_v10  ;;  %v2313_v26 = vmul.f32 %v16553_v27, %v16582_v38  ;;  %v2746_v38 = vmul.f32 %v16553_v27, %v16538_v61 }
 0x452   : > { %2503 = vmatmul.bf16.vlgmr.msrb.gmra.mxu3 %v2335_v58  ;;  %v2316_v58 = vmul.f32 %v16553_v27, %v16583_v51 }
 0x453   : > { %2876 = vmatpush.bf16.msrb.mxu3 %v2867_v50  ;;  %v2329_v50 = vpack.c.bf16 %v2313_v26, %v2313_v26  ;;  %v2762_v5 = vpack.c.bf16 %v2746_v38, %v2746_v38  ;;  %v2320_v26 = vmul.f32 %v16553_v27, %v16587_v42 }
 0x454   : > { %v2332_v39 = vpack.c.bf16 %v2316_v58, %v2316_v58  ;;  %v16588_v58 = vld [vmem:[#allocation49_spill] sm:$0xff] }
 0x45a   : > { %2490 = vmatmul.bf16.vlgmr.msrb.gmra.mxu2 %v2334_v48 }
 0x45b   : > { %2857 = vmatpush.bf16.msrb.mxu2 %v2848_v0  ;;  %v2338_v0 = vpack.c.bf16 %v2322_v45, %v2322_v45  ;;  %v2336_v45 = vpack.c.bf16 %v2320_v26, %v2320_v26 }
 0x460   : > { %2425 = vmatmul.bf16.vlgmr.msrb.gmra.mxu1 %v2329_v50  ;;  %2464 = vmatmul.bf16.vlgmr.msra.gmra.mxu0 %v2332_v39  ;;  %v2744_v39 = vmul.f32 %v16553_v27, %v12153_v56  ;;  %v2317_v50 = vmul.f32 %v16553_v27, %v16588_v58 }
 0x461   : > { %2528 = vmatpush.bf16.xpose.msrb.mxu1 %v16584_v7  ;;  %2819 = vmatpush.bf16.msra.mxu0 %v2810_v23  ;;  %v2924_v23 = vsel %vm1701_vm15, %v2762_v5, 0  ;;  %v2757_v7 = vpack.c.bf16 %v2741_v12, %v2741_v12  ;;  %v16590_v5 = vld [vmem:[#allocation57_spill] sm:$0xff] }
 0x462   : > { %v2760_v6 = vpack.c.bf16 %v2744_v39, %v2744_v39  ;;  %v2333_v61 = vpack.c.bf16 %v2317_v50, %v2317_v50  ;;  %v2321_v12 = vmul.f32 %v16553_v27, %v16590_v5 }
 0x463   : > { %v2829_v4 = vsel %vm1701_vm15, %v2757_v7, 0 }
 0x464   : > { %v2337_v26 = vpack.c.bf16 %v2321_v12, %v2321_v12 }
 0x465   : > { %v12789_v48 = vpop.f32.mrf.mxu2 }
 0x466   : > { %16586 = vst [vmem:[#allocation54_spill] sm:$0xff] %v12789_v48  ;;  %v2886_v48 = vsel %vm1701_vm15, %v2760_v6, 0 }
 0x46a   : > { %2542 = vmatmul.bf16.vlgmr.msra.gmra.mxu2 %v2338_v0  ;;  %v2745_v0 = vmul.f32 %v16553_v27, %v16539_v9 }
 0x46b   : > { %2933 = vmatpush.bf16.msra.mxu2 %v2924_v23 }
 0x46c   : > { %v2761_v39 = vpack.c.bf16 %v2745_v0, %v2745_v0 }
 0x46d   : > { %v2153_v38 = vpop.f32.mrf.mxu2 }
 0x470   : > { %2477 = vmatmul.bf16.vlgmr.msra.gmra.mxu1 %v2333_v61  ;;  %2516 = vmatmul.bf16.vlgmr.msrb.gmra.mxu0 %v2336_v45  ;;  %v2905_v61 = vsel %vm1701_vm15, %v2761_v39, 0 }
 0x471   : > { %2838 = vmatpush.bf16.msra.mxu1 %v2829_v4  ;;  %2895 = vmatpush.bf16.msrb.mxu0 %v2886_v48 }
 0x475   : > { %v12802_v19 = vpop.f32.mrf.mxu1 }
 0x476   : > { %16589 = vst [vmem:[#allocation36_spill] sm:$0xff] %v12802_v19 }
 0x47d   : > { %v2058_v23 = vpop.f32.mrf.mxu1  ;;  %v12808_v50 = vpop.f32.mrf.mxu0 }
 0x47e   : > { %16591 = vst [vmem:[#allocation32_spill] sm:$0xff] %v12808_v50 }
 0x480   : > { %2529 = vmatmul.bf16.vlgmr.msrb.gmra.mxu1 %v2337_v26 }
 0x481   : > { %2914 = vmatpush.bf16.msrb.mxu1 %v2905_v61 }
 0x485   : > { %v12811_v6 = vpop.f32.mrf.mxu3  ;;  %v2115_v4 = vpop.f32.mrf.mxu0 }
 0x486   : > { %16592 = vst [vmem:[#allocation45_spill] sm:$0xff] %v12811_v6 }
 0x48d   : > { %v2172_v7 = vpop.f32.mrf.mxu3 }
 0x493   : > { %v12813_v48 = vpop.f32.mrf.mxu2 }
 0x494   : > { %16593 = vst [vmem:[#allocation48_spill] sm:$0xff] %v12813_v48 }
 0x495   : > { %v12815_v38 = vpop.f32.mrf.mxu3 }
 0x496   : > { %16594 = vst [vmem:[#allocation39_spill] sm:$0xff] %v12815_v38 }
 0x497   : > { %v12817_v45 = vpop.f32.mrf.mxu1 }
 0x498   : > { %16595 = vst [vmem:[#allocation53_spill] sm:$0xff] %v12817_v45 }
 0x49b   : > { %v2229_v5 = vpop.f32.mrf.mxu2 }
 0x49d   : > { %v2248_v0 = vpop.f32.mrf.mxu3  ;;  %v12819_v23 = vpop.f32.mrf.mxu0 }
 0x49e   : > { %16596 = vst [vmem:[#allocation56_spill] sm:$0xff] %v12819_v23 }
 0x49f   : > { %v2134_v12 = vpop.f32.mrf.mxu1 }
 0x4a5   : > { %v2348_v9 = vpop.f32.mrf.mxu3  ;;  %v2191_v26 = vpop.f32.mrf.mxu0 }
 0x4a6   : > { %v12821_v58 = vmul.f32 0.35355338, %v2348_v9 }
 0x4a8   : > { %v2563_v39 = vsel %vm993_vm0, %v12821_v58, -inf }
 0x4a9   : > { %2564 = vmax.xlane.f32.xlu1 %v2563_v39 }
 0x4ad   : > { %v12825_v61 = vpop.f32.mrf.mxu2  ;;  %v2350_v4 = vpop.f32.mrf.mxu3 }
 0x4ae   : > { %16597 = vst [vmem:[#allocation47_spill] sm:$0xff] %v12825_v61  ;;  %v12827_v7 = vpop.f32.mrf.mxu1  ;;  %v12829_v38 = vpop.f32.mrf.mxu0 }
 0x4af   : > { %16598 = vst [vmem:[#allocation55_spill] sm:$0xff] %v12827_v7 }
 0x4b0   : > { %16599 = vst [vmem:[#allocation72_spill] sm:$0xff] %v12829_v38 }
 0x4b5   : > { %v2305_v5 = vpop.f32.mrf.mxu2  ;;  %v2400_v0 = vpop.f32.mrf.mxu3 }
 0x4b6   : > { %v12831_v48 = vmul.f32 0.35355338, %v2400_v0  ;;  %v2210_v12 = vpop.f32.mrf.mxu1  ;;  %v2267_v45 = vpop.f32.mrf.mxu0 }
 0x4b8   : > { %v2575_v9 = vsel %vm993_vm0, %v12831_v48, -inf }
 0x4b9   : > { %2576 = vmax.xlane.f32.xlu1 %v2575_v9 }
 0x4bd   : > { %v2387_v26 = vpop.f32.mrf.mxu2  ;;  %v2402_v23 = vpop.f32.mrf.mxu3 }
 0x4be   : > { %v12835_v39 = vmul.f32 0.35355338, %v2387_v26  ;;  %v12837_v61 = vpop.f32.mrf.mxu1  ;;  %v2361_v4 = vpop.f32.mrf.mxu0 }
 0x4bf   : > { %16600 = vst [vmem:[#allocation73_spill] sm:$0xff] %v12837_v61  ;;  %v12839_v7 = vmul.f32 0.35355338, %v2361_v4 }
 0x4c0   : > { %v2572_v5 = vsel %vm993_vm0, %v12835_v39, -inf }
 0x4c1   : > { %2573 = vmax.xlane.f32.xlu0 %v2572_v5  ;;  %v2566_v45 = vsel %vm993_vm0, %v12839_v7, -inf }
 0x4c2   : > { %2567 = vmax.xlane.f32.xlu2 %v2566_v45 }
 0x4c5   : > { %v2389_v0 = vpop.f32.mrf.mxu2  ;;  %v2452_v12 = vpop.f32.mrf.mxu3 }
 0x4c6   : > { %v2286_v9 = vpop.f32.mrf.mxu1  ;;  %v2363_v38 = vpop.f32.mrf.mxu0  ;;  %v12857_v0 = vmul.f32 0.35355338, %v2452_v12 }
 0x4cd   : > { %v2439_v23 = vpop.f32.mrf.mxu2  ;;  %v2454_v26 = vpop.f32.mrf.mxu3 }
 0x4ce   : > { %v12845_v6 = vmul.f32 0.35355338, %v2439_v23  ;;  %v2374_v61 = vpop.f32.mrf.mxu1  ;;  %v2413_v24 = vpop.f32.mrf.mxu0 }
 0x4cf   : > { %v12847_v4 = vmul.f32 0.35355338, %v2374_v61  ;;  %v12849_v21 = vmul.f32 0.35355338, %v2413_v24  ;;  %v2587_v24 = vsel %vm993_vm0, %v12857_v0, -inf }
 0x4d0   : > { %v2584_v5 = vsel %vm993_vm0, %v12845_v6, -inf }
 0x4d1   : > { %2585 = vmax.xlane.f32.xlu1 %v2584_v5  ;;  %v2578_v45 = vsel %vm993_vm0, %v12849_v21, -inf  ;;  %v2569_v38 = vsel %vm993_vm0, %v12847_v4, -inf }
 0x4d2   : > { %2579 = vmax.xlane.f32.xlu0 %v2578_v45  ;;  %2570 = vmax.xlane.f32.xlu2 %v2569_v38 }
 0x4d5   : > { %v2441_v9 = vpop.f32.mrf.mxu2  ;;  %v2504_v23 = vpop.f32.mrf.mxu3 }
 0x4d6   : > { %v2376_v61 = vpop.f32.mrf.mxu1  ;;  %v2415_v26 = vpop.f32.mrf.mxu0 }
 0x4d7   : > { %v12873_v61 = vmul.f32 0.35355338, %v2504_v23 }
 0x4da   : > { %2588 = vmax.xlane.f32.xlu2 %v2587_v24 }
 0x4dd   : > { %v2491_v19 = vpop.f32.mrf.mxu2  ;;  %v2506_v5 = vpop.f32.mrf.mxu3 }
 0x4de   : > { %v12861_v44 = vmul.f32 0.35355338, %v2491_v19  ;;  %v2426_v50 = vpop.f32.mrf.mxu1  ;;  %v2465_v53 = vpop.f32.mrf.mxu0 }
 0x4df   : > { %v12863_v20 = vmul.f32 0.35355338, %v2426_v50  ;;  %v12865_v45 = vmul.f32 0.35355338, %v2465_v53  ;;  %v2599_v53 = vsel %vm993_vm0, %v12873_v61, -inf }
 0x4e0   : > { %v2596_v38 = vsel %vm993_vm0, %v12861_v44, -inf }
 0x4e1   : > { %v2590_v12 = vsel %vm993_vm0, %v12865_v45, -inf  ;;  %v2581_v9 = vsel %vm993_vm0, %v12863_v20, -inf }
 0x4e2   : > { %2591 = vmax.xlane.f32.xlu1 %v2590_v12  ;;  %2597 = vmax.xlane.f32.xlu2 %v2596_v38 }
 0x4e3   : > { %2582 = vmax.xlane.f32.xlu0 %v2581_v9 }
 0x4e5   : > { %v2493_v19 = vpop.f32.mrf.mxu2 }
 0x4e6   : > { %v2428_v26 = vpop.f32.mrf.mxu1  ;;  %v2467_v50 = vpop.f32.mrf.mxu0 }
 0x4eb   : > { %2600 = vmax.xlane.f32.xlu0 %v2599_v53 }
 0x4ed   : > { %v2543_v24 = vpop.f32.mrf.mxu2 }
 0x4ee   : > { %v2478_v5 = vpop.f32.mrf.mxu1  ;;  %v2517_v34 = vpop.f32.mrf.mxu0  ;;  %v12890_v22 = vmul.f32 0.35355338, %v2543_v24 }
 0x4ef   : > { %v12877_v11 = vmul.f32 0.35355338, %v2478_v5  ;;  %v12879_v33 = vmul.f32 0.35355338, %v2517_v34 }
 0x4f1   : > { %v2602_v12 = vsel %vm993_vm0, %v12879_v33, -inf  ;;  %v2593_v23 = vsel %vm993_vm0, %v12877_v11, -inf }
 0x4f2   : > { %2594 = vmax.xlane.f32.xlu2 %v2593_v23 }
 0x4f3   : > { %2603 = vmax.xlane.f32.xlu0 %v2602_v12 }
 0x4f5   : > { %v2545_v38 = vpop.f32.mrf.mxu2 }
 0x4f6   : > { %v2480_v9 = vpop.f32.mrf.mxu1  ;;  %v2519_v19 = vpop.f32.mrf.mxu0 }
 0x4f7   : > { %v2608_v9 = vsel %vm993_vm0, %v12890_v22, -inf }
 0x4fe   : > { %v2530_v26 = vpop.f32.mrf.mxu1 }
 0x506   : > { %v2532_v50 = vpop.f32.mrf.mxu1 }
 0x51c   : > { %v2565_v53 = vpop.xlane.xlu1 %2564 }
 0x51d   : > { %v2611_v37 = vsub.f32 %v12821_v58, %v2565_v53 }
 0x51f   : > { %v2627_v5 = vmul.f32 1.442695, %v2611_v37 }
 0x521   : > { %11031 = vpow2.f32 %v2627_v5 }
 0x527   : > { %v12886_v34 = vpop.eup %11031 }
 0x528   : > { %v2659_v36 = vsel %vm993_vm0, %v12886_v34, 0.0 }
 0x529   : > { %2660 = vadd.xlane.f32.xlu1 %v2659_v36 }
 0x52c   : > { %v2577_v23 = vpop.xlane.xlu1 %2576 }
 0x52d   : > { %v2615_v12 = vsub.f32 %v12831_v48, %v2577_v23 }
 0x52f   : > { %v2635_v38 = vmul.f32 1.442695, %v2615_v12 }
 0x531   : > { %11033 = vpow2.f32 %v2635_v38  ;;  %2609 = vmax.xlane.f32.xlu1 %v2608_v9  ;;  %v12909_v38 = vmul.f32 0.35355338, %v2530_v26 }
 0x534   : > { %v2574_v58 = vpop.xlane.xlu0 %2573 }
 0x535   : > { %v2614_v37 = vsub.f32 %v12835_v39, %v2574_v58  ;;  %v2568_v19 = vpop.xlane.xlu2 %2567 }
 0x536   : > { %v2612_v50 = vsub.f32 %v12839_v7, %v2568_v19 }
 0x537   : > { %v12897_v53 = vpop.eup %11033  ;;  %v2633_v36 = vmul.f32 1.442695, %v2614_v37 }
 0x538   : > { %v2629_v24 = vmul.f32 1.442695, %v2612_v50  ;;  %v2671_v5 = vsel %vm993_vm0, %v12897_v53, 0.0 }
 0x539   : > { %11035 = vpow2.f32 %v2633_v36  ;;  %2672 = vadd.xlane.f32.xlu1 %v2671_v5 }
 0x53a   : > { %11037 = vpow2.f32 %v2629_v24 }
 0x53f   : > { %v12901_v48 = vpop.eup %11035 }
 0x540   : > { %v12903_v23 = vpop.eup %11037  ;;  %v2668_v39 = vsel %vm993_vm0, %v12901_v48, 0.0 }
 0x541   : > { %2669 = vadd.xlane.f32.xlu0 %v2668_v39  ;;  %v2662_v7 = vsel %vm993_vm0, %v12903_v23, 0.0  ;;  %v2605_v39 = vsel %vm993_vm0, %v12909_v38, -inf }
 0x542   : > { %2663 = vadd.xlane.f32.xlu2 %v2662_v7 }
 0x544   : > { %v2586_v12 = vpop.xlane.xlu1 %2585 }
 0x545   : > { %v2618_v9 = vsub.f32 %v12845_v6, %v2586_v12  ;;  %v2580_v58 = vpop.xlane.xlu0 %2579  ;;  %v2571_v37 = vpop.xlane.xlu2 %2570 }
 0x546   : > { %v2616_v19 = vsub.f32 %v12849_v21, %v2580_v58  ;;  %v2613_v50 = vsub.f32 %v12847_v4, %v2571_v37 }
 0x547   : > { %v2641_v36 = vmul.f32 1.442695, %v2618_v9 }
 0x548   : > { %v2637_v24 = vmul.f32 1.442695, %v2616_v19  ;;  %v2631_v5 = vmul.f32 1.442695, %v2613_v50 }
 0x549   : > { %11039 = vpow2.f32 %v2641_v36 }
 0x54a   : > { %11041 = vpow2.f32 %v2637_v24  ;;  %2606 = vmax.xlane.f32.xlu2 %v2605_v39 }
 0x54b   : > { %11043 = vpow2.f32 %v2631_v5 }
 0x54d   : > { %v2589_v26 = vpop.xlane.xlu2 %2588 }
 0x54e   : > { %v2619_v7 = vsub.f32 %v12857_v0, %v2589_v26 }
 0x54f   : > { %v12917_v6 = vpop.eup %11039 }
 0x550   : > { %v12919_v12 = vpop.eup %11041  ;;  %v2643_v21 = vmul.f32 1.442695, %v2619_v7  ;;  %v2680_v9 = vsel %vm993_vm0, %v12917_v6, 0.0 }
 0x551   : > { %v12921_v58 = vpop.eup %11043  ;;  %v2674_v4 = vsel %vm993_vm0, %v12919_v12, 0.0 }
 0x552   : > { %11045 = vpow2.f32 %v2643_v21  ;;  %2675 = vadd.xlane.f32.xlu1 %v2674_v4  ;;  %v2665_v37 = vsel %vm993_vm0, %v12921_v58, 0.0  ;;  %2681 = vadd.xlane.f32.xlu2 %v2680_v9 }
 0x553   : > { %2666 = vadd.xlane.f32.xlu0 %v2665_v37 }
 0x555   : > { %v2592_v0 = vpop.xlane.xlu1 %2591  ;;  %v2598_v19 = vpop.xlane.xlu2 %2597 }
 0x556   : > { %v2620_v50 = vsub.f32 %v12865_v45, %v2592_v0  ;;  %v2622_v36 = vsub.f32 %v12861_v44, %v2598_v19  ;;  %v2583_v24 = vpop.xlane.xlu0 %2582 }
 0x557   : > { %v2617_v5 = vsub.f32 %v12863_v20, %v2583_v24 }
 0x558   : > { %v12932_v39 = vpop.eup %11045  ;;  %v2645_v26 = vmul.f32 1.442695, %v2620_v50  ;;  %v2649_v7 = vmul.f32 1.442695, %v2622_v36 }
 0x559   : > { %v2639_v21 = vmul.f32 1.442695, %v2617_v5  ;;  %v2683_v4 = vsel %vm993_vm0, %v12932_v39, 0.0 }
 0x55a   : > { %11047 = vpow2.f32 %v2645_v26 }
 0x55b   : > { %11049 = vpow2.f32 %v2649_v7  ;;  %2684 = vadd.xlane.f32.xlu0 %v2683_v4 }
 0x55c   : > { %11051 = vpow2.f32 %v2639_v21 }
 0x55e   : > { %v2601_v9 = vpop.xlane.xlu0 %2600 }
 0x55f   : > { %v2623_v45 = vsub.f32 %v12873_v61, %v2601_v9 }
 0x560   : > { %v12937_v37 = vpop.eup %11047 }
 0x561   : > { %v12939_v44 = vpop.eup %11049  ;;  %v2651_v20 = vmul.f32 1.442695, %v2623_v45  ;;  %v2686_v0 = vsel %vm993_vm0, %v12937_v37, 0.0 }
 0x562   : > { %v12943_v19 = vpop.eup %11051  ;;  %v2692_v50 = vsel %vm993_vm0, %v12939_v44, 0.0  ;;  %2687 = vadd.xlane.f32.xlu2 %v2686_v0 }
 0x563   : > { %11053 = vpow2.f32 %v2651_v20  ;;  %2693 = vadd.xlane.f32.xlu0 %v2692_v50  ;;  %v2677_v36 = vsel %vm993_vm0, %v12943_v19, 0.0  ;;  %v2747_v50 = vmul.f32 %v16553_v27, %v12466_v43 }
 0x564   : > { %2678 = vadd.xlane.f32.xlu1 %v2677_v36 }
 0x565   : > { %v2595_v61 = vpop.xlane.xlu2 %2594 }
 0x566   : > { %v2604_v24 = vpop.xlane.xlu0 %2603  ;;  %v2621_v5 = vsub.f32 %v12877_v11, %v2595_v61 }
 0x567   : > { %v2624_v26 = vsub.f32 %v12879_v33, %v2604_v24 }
 0x568   : > { %v2647_v7 = vmul.f32 1.442695, %v2621_v5  ;;  %v2763_v5 = vpack.c.bf16 %v2747_v50, %v2747_v50 }
 0x569   : > { %v12951_v21 = vpop.eup %11053  ;;  %v2653_v4 = vmul.f32 1.442695, %v2624_v26 }
 0x56a   : > { %11055 = vpow2.f32 %v2647_v7  ;;  %v2695_v9 = vsel %vm993_vm0, %v12951_v21, 0.0 }
 0x56b   : > { %11057 = vpow2.f32 %v2653_v4 }
 0x56c   : > { %2696 = vadd.xlane.f32.xlu1 %v2695_v9  ;;  %v2943_v9 = vsel %vm1701_vm15, %v2763_v5, 0 }
 0x570   : > { %v12955_v45 = vpop.eup %11055 }
 0x571   : > { %v12957_v20 = vpop.eup %11057  ;;  %v2689_v0 = vsel %vm993_vm0, %v12955_v45, 0.0 }
 0x572   : > { %v2698_v33 = vsel %vm993_vm0, %v12957_v20, 0.0  ;;  %2690 = vadd.xlane.f32.xlu2 %v2689_v0 }
 0x573   : > { %2699 = vadd.xlane.f32.xlu0 %v2698_v33 }
 0x59c   : > { %v2661_v11 = vpop.xlane.xlu1 %2660 }
 0x59d   : > { %11059 = vrcp.f32 %v2661_v11 }
 0x5a3   : > { %v11060_v36 = vpop.eup %11059 }
 0x5a4   : > { %v2723_v61 = vmul.f32 %v11060_v36, %v12886_v34  ;;  %v2610_v24 = vpop.xlane.xlu1 %2609  ;;  %v2751_v34 = vmul.f32 %v16553_v27, %v12485_v17 }
 0x5a5   : > { %v2626_v26 = vsub.f32 %v12890_v22, %v2610_v24 }
 0x5a6   : > { %v2771_v7 = vpack.c.bf16 %v2723_v61, %v2723_v61  ;;  %v2767_v61 = vpack.c.bf16 %v2751_v34, %v2751_v34 }
 0x5a7   : > { %v2657_v4 = vmul.f32 1.442695, %v2626_v26 }
 0x5a8   : > { %10280 = vmatmul.msk.bf16.vlgmr.msra.gmra.mxu3 %vm993_vm0, %v2771_v7  ;;  %v3019_v26 = vsel %vm1701_vm15, %v2767_v61, 0  ;;  %v2750_v7 = vmul.f32 %v16553_v27, %v12500_v2 }
 0x5a9   : > { %11061 = vpow2.f32 %v2657_v4  ;;  %2952 = vmatpush.bf16.msra.mxu3 %v2943_v9  ;;  %v2748_v4 = vmul.f32 %v16553_v27, %v12470_v60 }
 0x5ac   : > { %v2673_v0 = vpop.xlane.xlu1 %2672 }
 0x5ad   : > { %11063 = vrcp.f32 %v2673_v0 }
 0x5af   : > { %v12969_v33 = vpop.eup %11061 }
 0x5b0   : > { %v2704_v11 = vsel %vm993_vm0, %v12969_v33, 0.0 }
 0x5b1   : > { %2705 = vadd.xlane.f32.xlu1 %v2704_v11  ;;  %v2766_v11 = vpack.c.bf16 %v2750_v7, %v2750_v7 }
 0x5b3   : > { %v11064_v22 = vpop.eup %11063 }
 0x5b4   : > { %v2727_v50 = vmul.f32 %v11064_v22, %v12897_v53  ;;  %v2670_v36 = vpop.xlane.xlu0 %2669 }
 0x5b5   : > { %11065 = vrcp.f32 %v2670_v36  ;;  %v2664_v24 = vpop.xlane.xlu2 %2663 }
 0x5b6   : > { %v2775_v5 = vpack.c.bf16 %v2727_v50, %v2727_v50  ;;  %11067 = vrcp.f32 %v2664_v24  ;;  %v2764_v50 = vpack.c.bf16 %v2748_v4, %v2748_v4 }
 0x5b8   : > { %10284 = vmatmul.msk.bf16.vlgmr.msrb.gmra.mxu3 %vm993_vm0, %v2775_v5  ;;  %v2962_v2 = vsel %vm1701_vm15, %v2764_v50, 0 }
 0x5b9   : > { %3028 = vmatpush.bf16.msrb.mxu3 %v3019_v26  ;;  %v3000_v26 = vsel %vm1701_vm15, %v2766_v11, 0 }
 0x5bb   : > { %v11066_v9 = vpop.eup %11065 }
 0x5bc   : > { %v11068_v0 = vpop.eup %11067  ;;  %v2726_v53 = vmul.f32 %v11066_v9, %v12901_v48  ;;  %v2752_v9 = vmul.f32 %v16553_v27, %v12495_v14 }
 0x5bd   : > { %v2724_v34 = vmul.f32 %v11068_v0, %v12903_v23  ;;  %v2607_v22 = vpop.xlane.xlu2 %2606  ;;  %v2749_v0 = vmul.f32 %v16553_v27, %v12513_v35 }
 0x5be   : > { %v2774_v36 = vpack.c.bf16 %v2726_v53, %v2726_v53  ;;  %v2625_v24 = vsub.f32 %v12909_v38, %v2607_v22  ;;  %v2768_v22 = vpack.c.bf16 %v2752_v9, %v2752_v9 }
 0x5bf   : > { %v2772_v61 = vpack.c.bf16 %v2724_v34, %v2724_v34 }
 0x5c0   : > { %v2655_v5 = vmul.f32 1.442695, %v2625_v24  ;;  %10283 = vmatmul.msk.bf16.vlgmr.msrb.gmra.mxu2 %vm993_vm0, %v2774_v36 }
 0x5c1   : > { %3009 = vmatpush.bf16.msrb.mxu2 %v3000_v26  ;;  %10281 = vmatmul.msk.bf16.vlgmr.msra.gmra.mxu0 %vm993_vm0, %v2772_v61  ;;  %v2765_v61 = vpack.c.bf16 %v2749_v0, %v2749_v0 }
 0x5c2   : > { %11069 = vpow2.f32 %v2655_v5  ;;  %2971 = vmatpush.bf16.msra.mxu0 %v2962_v2  ;;  %v2754_v2 = vmul.f32 %v16553_v27, %v12537_v1 }
 0x5c5   : > { %v2676_v48 = vpop.xlane.xlu1 %2675  ;;  %v2682_v23 = vpop.xlane.xlu2 %2681 }
 0x5c6   : > { %11071 = vrcp.f32 %v2676_v48  ;;  %v2667_v7 = vpop.xlane.xlu0 %2666  ;;  %v2770_v48 = vpack.c.bf16 %v2754_v2, %v2754_v2 }
 0x5c7   : > { %11073 = vrcp.f32 %v2667_v7 }
 0x5c8   : > { %v12989_v4 = vpop.eup %11069  ;;  %11075 = vrcp.f32 %v2682_v23 }
 0x5c9   : > { %v2701_v38 = vsel %vm993_vm0, %v12989_v4, 0.0 }
 0x5ca   : > { %2702 = vadd.xlane.f32.xlu2 %v2701_v38  ;;  %v3038_v38 = vsel %vm1701_vm15, %v2768_v22, 0 }
 0x5cc   : > { %v11072_v53 = vpop.eup %11071 }
 0x5cd   : > { %v11074_v11 = vpop.eup %11073  ;;  %v2728_v34 = vmul.f32 %v11072_v53, %v12919_v12  ;;  %v2981_v12 = vsel %vm1701_vm15, %v2765_v61, 0 }
 0x5ce   : > { %v11076_v50 = vpop.eup %11075  ;;  %v2725_v36 = vmul.f32 %v11074_v11, %v12921_v58  ;;  %v2685_v24 = vpop.xlane.xlu0 %2684  ;;  %v3076_v58 = vsel %vm1701_vm15, %v2770_v48, 0 }
 0x5cf   : > { %v2776_v5 = vpack.c.bf16 %v2728_v34, %v2728_v34  ;;  %v2730_v26 = vmul.f32 %v11076_v50, %v12917_v6  ;;  %11077 = vrcp.f32 %v2685_v24  ;;  %v2753_v34 = vmul.f32 %v16553_v27, %v12541_v32 }
 0x5d0   : > { %v2773_v23 = vpack.c.bf16 %v2725_v36, %v2725_v36 }
 0x5d1   : > { %v2778_v7 = vpack.c.bf16 %v2730_v26, %v2730_v26  ;;  %10285 = vmatmul.msk.bf16.vlgmr.msrb.gmra.mxu0 %vm993_vm0, %v2776_v5  ;;  %v2769_v48 = vpack.c.bf16 %v2753_v34, %v2753_v34 }
 0x5d2   : > { %10282 = vmatmul.msk.bf16.vlgmr.msra.gmra.mxu1 %vm993_vm0, %v2773_v23  ;;  %3047 = vmatpush.bf16.msrb.mxu0 %v3038_v38 }
 0x5d3   : > { %10287 = vmatmul.msk.bf16.vlgmr.msra.gmra.mxu2 %vm993_vm0, %v2778_v7  ;;  %2990 = vmatpush.bf16.msra.mxu1 %v2981_v12 }
 0x5d4   : > { %3085 = vmatpush.bf16.msra.mxu2 %v3076_v58 }
 0x5d5   : > { %v11078_v6 = vpop.eup %11077  ;;  %v2688_v9 = vpop.xlane.xlu2 %2687 }
 0x5d6   : > { %v2731_v0 = vmul.f32 %v11078_v6, %v12932_v39  ;;  %v2694_v2 = vpop.xlane.xlu0 %2693  ;;  %11079 = vrcp.f32 %v2688_v9 }
 0x5d7   : > { %v2679_v53 = vpop.xlane.xlu1 %2678  ;;  %11081 = vrcp.f32 %v2694_v2 }
 0x5d8   : > { %v2779_v11 = vpack.c.bf16 %v2731_v0, %v2731_v0  ;;  %11083 = vrcp.f32 %v2679_v53 }
 0x5da   : > { %10288 = vmatmul.msk.bf16.vlgmr.msra.gmra.mxu3 %vm993_vm0, %v2779_v11 }
 0x5db   : > { %3146 = vmatpush.bf16.xpose.msra.mxu3 %v16544_v8  ;;  %v3057_v8 = vsel %vm1701_vm15, %v2769_v48, 0 }
 0x5dc   : > { %v11080_v22 = vpop.eup %11079 }
 0x5dd   : > { %v11082_v50 = vpop.eup %11081  ;;  %v2732_v36 = vmul.f32 %v11080_v22, %v12937_v37 }
 0x5de   : > { %v11084_v24 = vpop.eup %11083  ;;  %v2734_v39 = vmul.f32 %v11082_v50, %v12939_v44 }
 0x5df   : > { %v2729_v61 = vmul.f32 %v11084_v24, %v12943_v19  ;;  %v2780_v5 = vpack.c.bf16 %v2732_v36, %v2732_v36  ;;  %v2697_v26 = vpop.xlane.xlu1 %2696 }
 0x5e0   : > { %v2782_v23 = vpack.c.bf16 %v2734_v39, %v2734_v39  ;;  %11085 = vrcp.f32 %v2697_v26 }
 0x5e1   : > { %v2777_v7 = vpack.c.bf16 %v2729_v61, %v2729_v61  ;;  %10289 = vmatmul.msk.bf16.vlgmr.msra.gmra.mxu0 %vm993_vm0, %v2780_v5 }
 0x5e2   : > { %3159 = vmatpush.bf16.xpose.msra.mxu0 %v16555_v49 }
 0x5e3   : > { %10286 = vmatmul.msk.bf16.vlgmr.msrb.gmra.mxu1 %vm993_vm0, %v2777_v7  ;;  %10291 = vmatmul.msk.bf16.vlgmr.msrb.gmra.mxu2 %vm993_vm0, %v2782_v23 }
 0x5e4   : > { %3066 = vmatpush.bf16.msrb.mxu1 %v3057_v8  ;;  %3185 = vmatpush.bf16.xpose.msrb.mxu2 %v16548_v62 }
 0x5e5   : > { %v2691_v37 = vpop.xlane.xlu2 %2690 }
 0x5e6   : > { %v11086_v44 = vpop.eup %11085  ;;  %v2700_v19 = vpop.xlane.xlu0 %2699  ;;  %11087 = vrcp.f32 %v2691_v37 }
 0x5e7   : > { %v2735_v38 = vmul.f32 %v11086_v44, %v12951_v21  ;;  %11089 = vrcp.f32 %v2700_v19  ;;  %v16601_v21 = vld [vmem:[#allocation11_spill] sm:$0xff]  ;;  %v16603_v44 = vld [vmem:[#allocation66_spill] sm:$0xff]  ;;  %v16604_v19 = vld [vmem:[#allocation44_spill] sm:$0xff] }
 0x5e8   : > { %v3107_v2 = vmul.f32 %v16601_v21, %v16552_v46  ;;  %v3544_v24 = vmul.f32 %v16601_v21, %v12153_v56 }
 0x5e9   : > { %v2783_v12 = vpack.c.bf16 %v2735_v38, %v2735_v38  ;;  %v2038_v38 = vadd.f32 %v16604_v19, %v16603_v44 }
 0x5ea   : > { %v3123_v53 = vpack.c.bf16 %v3107_v2, %v3107_v2  ;;  %v3560_v23 = vpack.c.bf16 %v3544_v24, %v3544_v24 }
 0x5eb   : > { %10292 = vmatmul.msk.bf16.vlgmr.msrb.gmra.mxu3 %vm993_vm0, %v2783_v12 }
 0x5ec   : > { %v11088_v49 = vpop.eup %11087  ;;  %3198 = vmatpush.bf16.xpose.msrb.mxu3 %v16549_v29  ;;  %v3108_v29 = vmul.f32 %v16601_v21, %v16567_v59  ;;  %v3686_v56 = vsel %vm1701_vm15, %v3560_v23, 0 }
 0x5ed   : > { %v11090_v58 = vpop.eup %11089  ;;  %v2733_v6 = vmul.f32 %v11088_v49, %v12955_v45 }
 0x5ee   : > { %v2736_v9 = vmul.f32 %v11090_v58, %v12957_v20  ;;  %v3124_v45 = vpack.c.bf16 %v3108_v29, %v3108_v29  ;;  %v3111_v20 = vmul.f32 %v16601_v21, %v16560_v40  ;;  %v3540_v40 = vmul.f32 %v16601_v21, %v12111_v15 }
 0x5ef   : > { %v2781_v0 = vpack.c.bf16 %v2733_v6, %v2733_v6  ;;  %v3119_v15 = vmul.f32 %v16601_v21, %v16578_v41  ;;  %v16605_v6 = vld [vmem:[#allocation52_spill] sm:$0xff] }
 0x5f0   : > { %v2784_v62 = vpack.c.bf16 %v2736_v9, %v2736_v9  ;;  %v3556_v34 = vpack.c.bf16 %v3540_v40, %v3540_v40  ;;  %v16612_v40 = vld [vmem:[#allocation36_spill] sm:$0xff] }
 0x5f1   : > { %v3135_v36 = vpack.c.bf16 %v3119_v15, %v3119_v15  ;;  %v16615_v15 = vld [vmem:[#allocation71_spill] sm:$0xff] }
 0x5f2   : > { %10293 = vmatmul.msk.bf16.vlgmr.msrb.gmra.mxu0 %vm993_vm0, %v2784_v62  ;;  %v16606_v62 = vld [vmem:[#allocation34_spill] sm:$0xff] }
 0x5f3   : > { %10290 = vmatmul.msk.bf16.vlgmr.msra.gmra.mxu1 %vm993_vm0, %v2781_v0  ;;  %3211 = vmatpush.bf16.xpose.msrb.mxu0 %v16563_v31  ;;  %v3127_v31 = vpack.c.bf16 %v3111_v20, %v3111_v20 }
 0x5f4   : > { %3172 = vmatpush.bf16.xpose.msra.mxu1 %v16562_v47  ;;  %v3112_v47 = vmul.f32 %v16601_v21, %v16576_v18 }
 0x5f6   : > { %v3128_v46 = vpack.c.bf16 %v3112_v47, %v3112_v47 }
 0x5fb   : > { %3147 = vmatmul.bf16.vlgmr.msra.gmra.mxu3 %v3123_v53 }
 0x5fc   : > { %3250 = vmatpush.bf16.xpose.msra.mxu3 %v16556_v30  ;;  %v3539_v30 = vmul.f32 %v16601_v21, %v12098_v63  ;;  %v3610_v63 = vsel %vm1701_vm15, %v3556_v34, 0 }
 0x5fe   : > { %v3555_v59 = vpack.c.bf16 %v3539_v30, %v3539_v30  ;;  %v16610_v30 = vld [vmem:[#allocation32_spill] sm:$0xff] }
 0x600   : > { %v3591_v18 = vsel %vm1701_vm15, %v3555_v59, 0 }
 0x602   : > { %3160 = vmatmul.bf16.vlgmr.msra.gmra.mxu0 %v3124_v45  ;;  %v16607_v45 = vld [vmem:[#allocation43_spill] sm:$0xff] }
 0x603   : > { %3263 = vmatpush.bf16.xpose.msra.mxu0 %v16573_v54  ;;  %v3115_v54 = vmul.f32 %v16601_v21, %v16569_v3  ;;  %v3543_v3 = vmul.f32 %v16601_v21, %v12133_v16  ;;  %v3120_v16 = vmul.f32 %v16601_v21, %v16587_v42  ;;  %v16602_v42 = vld [vmem:[#allocation40_spill] sm:$0xff]  ;;  %v3114_v20 = vmul.f32 %v16601_v21, %v16607_v45 }
 0x605   : > { %v3131_v11 = vpack.c.bf16 %v3115_v54, %v3115_v54  ;;  %v3559_v50 = vpack.c.bf16 %v3543_v3, %v3543_v3  ;;  %v3136_v7 = vpack.c.bf16 %v3120_v16, %v3120_v16  ;;  %v3130_v59 = vpack.c.bf16 %v3114_v20, %v3114_v20  ;;  %v16614_v3 = vld [vmem:[#allocation33_spill] sm:$0xff]  ;;  %v16617_v16 = vld [vmem:[#allocation62_spill] sm:$0xff]  ;;  %v16627_v20 = vld [vmem:[#allocation35_spill] sm:$0xff] }
 0x607   : > { %v3667_v61 = vsel %vm1701_vm15, %v3559_v50, 0  ;;  %v16616_v50 = vld [vmem:[#allocation54_spill] sm:$0xff] }
 0x60b   : > { %3199 = vmatmul.bf16.vlgmr.msrb.gmra.mxu3 %v3127_v31  ;;  %v16608_v31 = vld [vmem:[#allocation42_spill] sm:$0xff] }
 0x60c   : > { %3302 = vmatpush.bf16.xpose.msrb.mxu3 %v16564_v25  ;;  %v3116_v25 = vmul.f32 %v16601_v21, %v16583_v51  ;;  %v2019_v51 = vadd.f32 %v12728_v55, %v12660_v13  ;;  %v3110_v55 = vmul.f32 %v16601_v21, %v16565_v57 }
 0x60e   : > { %v3126_v49 = vpack.c.bf16 %v3110_v55, %v3110_v55 }
 0x612   : > { %3212 = vmatmul.bf16.vlgmr.msrb.gmra.mxu0 %v3128_v46  ;;  %v16609_v46 = vld [vmem:[#allocation67_spill] sm:$0xff] }
 0x613   : > { %3315 = vmatpush.bf16.xpose.msrb.mxu0 %v16580_v10  ;;  %v3132_v10 = vpack.c.bf16 %v3116_v25, %v3116_v25  ;;  %v2114_v54 = vadd.f32 %v16610_v30, %v16609_v46 }
 0x61b   : > { %3251 = vmatmul.bf16.vlgmr.msra.gmra.mxu3 %v3131_v11  ;;  %v16611_v11 = vld [vmem:[#allocation68_spill] sm:$0xff] }
 0x61c   : > { %3600 = vmatpush.bf16.msra.mxu3 %v3591_v18  ;;  %v2057_v18 = vadd.f32 %v16612_v40, %v16611_v11 }
 0x622   : > { %3264 = vmatmul.bf16.vlgmr.msra.gmra.mxu0 %v3132_v10 }
 0x623   : > { %3619 = vmatpush.bf16.msra.mxu0 %v3610_v63  ;;  %v16613_v63 = vld [vmem:[#allocation60_spill] sm:$0xff] }
 0x624   : > { %v2706_v22 = vpop.xlane.xlu1 %2705 }
 0x625   : > { %11091 = vrcp.f32 %v2706_v22  ;;  %v3109_v22 = vmul.f32 %v16601_v21, %v16614_v3  ;;  %v16631_v3 = vld [vmem:[#allocation58_spill] sm:$0xff] }
 0x62b   : > { %v11092_v39 = vpop.eup %11091  ;;  %3303 = vmatmul.bf16.vlgmr.msrb.gmra.mxu3 %v3135_v36  ;;  %v2802_v5 = vpop.f32.mrf.mxu3  ;;  %v2152_v36 = vadd.f32 %v16616_v50, %v16615_v15  ;;  %v16632_v15 = vld [vmem:[#allocation38_spill] sm:$0xff]  ;;  %v16633_v50 = vld [vmem:[#allocation39_spill] sm:$0xff] }
 0x62c   : > { %v2738_v26 = vmul.f32 %v11092_v39, %v12969_v33  ;;  %3676 = vmatpush.bf16.msrb.mxu3 %v3667_v61  ;;  %v13065_v41 = vadd.f32 %v2802_v5, %v2019_v51  ;;  %v2095_v33 = vadd.f32 %v16602_v42, %v12665_v52  ;;  %v3125_v39 = vpack.c.bf16 %v3109_v22, %v3109_v22 }
 0x62e   : > { %v2786_v48 = vpack.c.bf16 %v2738_v26, %v2738_v26  ;;  %v3542_v26 = vmul.f32 %v16601_v21, %v16617_v16 }
 0x630   : > { %10295 = vmatmul.msk.bf16.vlgmr.msra.gmra.mxu2 %vm993_vm0, %v2786_v48  ;;  %v16618_v48 = vld [vmem:[#allocation51_spill] sm:$0xff]  ;;  %v3558_v42 = vpack.c.bf16 %v3542_v26, %v3542_v26 }
 0x631   : > { %3237 = vmatpush.bf16.xpose.msra.mxu2 %v16558_v28  ;;  %v3118_v23 = vmul.f32 %v16601_v21, %v16618_v48  ;;  %v16636_v48 = vld [vmem:[#allocation31_spill] sm:$0xff] }
 0x632   : > { %3316 = vmatmul.bf16.vlgmr.msrb.gmra.mxu0 %v3136_v7  ;;  %v16619_v7 = vld [vmem:[#allocation50_spill] sm:$0xff] }
 0x633   : > { %3695 = vmatpush.bf16.msrb.mxu0 %v3686_v56  ;;  %v2804_v13 = vpop.f32.mrf.mxu3  ;;  %v16620_v56 = vld [vmem:[#allocation69_spill] sm:$0xff] }
 0x634   : > { %v16621_v13 = vld [vmem:[#allocation45_spill] sm:$0xff] }
 0x635   : > { %v2171_v55 = vadd.f32 %v16621_v13, %v16620_v56 }
 0x63b   : > { %v2878_v8 = vpop.f32.mrf.mxu3 }
 0x63c   : > { %v13074_v37 = vadd.f32 %v2878_v8, %v2095_v33  ;;  %v16622_v33 = vld [vmem:[#allocation70_spill] sm:$0xff]  ;;  %v16623_v8 = vld [vmem:[#allocation56_spill] sm:$0xff] }
 0x63d   : > { %v2703_v12 = vpop.xlane.xlu2 %2702  ;;  %v2190_v44 = vadd.f32 %v16623_v8, %v16622_v33 }
 0x63e   : > { %11093 = vrcp.f32 %v2703_v12  ;;  %v2821_v28 = vpop.f32.mrf.mxu0 }
 0x63f   : > { %v13078_v58 = vadd.f32 %v2821_v28, %v2038_v38  ;;  %v3134_v38 = vpack.c.bf16 %v3118_v23, %v3118_v23  ;;  %v16637_v23 = vld [vmem:[#allocation55_spill] sm:$0xff] }
 0x640   : > { %3186 = vmatmul.bf16.vlgmr.msrb.gmra.mxu2 %v3126_v49 }
 0x641   : > { %3289 = vmatpush.bf16.xpose.msrb.mxu2 %v16605_v6  ;;  %v16624_v6 = vld [vmem:[#allocation29_spill] sm:$0xff] }
 0x643   : > { %v2859_v9 = vpop.f32.mrf.mxu2  ;;  %v2880_v57 = vpop.f32.mrf.mxu3 }
 0x644   : > { %v11094_v0 = vpop.eup %11093  ;;  %v13082_v52 = vadd.f32 %v2859_v9, %v16606_v62  ;;  %v16625_v9 = vld [vmem:[#allocation53_spill] sm:$0xff] }
 0x645   : > { %v2737_v2 = vmul.f32 %v11094_v0, %v12989_v4  ;;  %v2133_v57 = vadd.f32 %v16625_v9, %v16624_v6 }
 0x646   : > { %v2823_v53 = vpop.f32.mrf.mxu0 }
 0x647   : > { %v2785_v29 = vpack.c.bf16 %v2737_v2, %v2737_v2  ;;  %v3648_v2 = vsel %vm1701_vm15, %v3558_v42, 0 }
 0x649   : > { %10294 = vmatmul.msk.bf16.vlgmr.msrb.gmra.mxu1 %vm993_vm0, %v2785_v29  ;;  %v16626_v29 = vld [vmem:[#allocation41_spill] sm:$0xff] }
 0x64a   : > { %3224 = vmatpush.bf16.xpose.msrb.mxu1 %v16608_v31  ;;  %v3113_v45 = vmul.f32 %v16601_v21, %v16626_v29  ;;  %v16628_v31 = vld [vmem:[#allocation48_spill] sm:$0xff] }
 0x64b   : > { %v2861_v47 = vpop.f32.mrf.mxu2 }
 0x64c   : > { %v2228_v47 = vadd.f32 %v16628_v31, %v16627_v20 }
 0x64e   : > { %v2897_v25 = vpop.f32.mrf.mxu0 }
 0x64f   : > { %v2840_v34 = vpop.f32.mrf.mxu1  ;;  %v13093_v4 = vadd.f32 %v2897_v25, %v2114_v54 }
 0x650   : > { %v13095_v10 = vadd.f32 %v2840_v34, %v2057_v18  ;;  %3238 = vmatmul.bf16.vlgmr.msra.gmra.mxu2 %v3130_v59  ;;  %v3129_v59 = vpack.c.bf16 %v3113_v45, %v3113_v45  ;;  %v16629_v18 = vld [vmem:[#allocation64_spill] sm:$0xff]  ;;  %v16630_v34 = vld [vmem:[#allocation59_spill] sm:$0xff] }
 0x651   : > { %3341 = vmatpush.bf16.xpose.msra.mxu2 %v16613_v63  ;;  %v3546_v25 = vmul.f32 %v16601_v21, %v16629_v18  ;;  %v3122_v63 = vmul.f32 %v16601_v21, %v16630_v34 }
 0x653   : > { %v3562_v22 = vpack.c.bf16 %v3546_v25, %v3546_v25 }
 0x655   : > { %v3724_v33 = vsel %vm1701_vm15, %v3562_v22, 0 }
 0x656   : > { %v2935_v51 = vpop.f32.mrf.mxu2  ;;  %v2899_v24 = vpop.f32.mrf.mxu0 }
 0x657   : > { %v13102_v61 = vadd.f32 %v2935_v51, %v2152_v36  ;;  %v2842_v5 = vpop.f32.mrf.mxu1  ;;  %v2247_v36 = vadd.f32 %v16633_v50, %v16632_v15  ;;  %v3138_v51 = vpack.c.bf16 %v3122_v63, %v3122_v63  ;;  %v16634_v24 = vld [vmem:[#allocation28_spill] sm:$0xff] }
 0x659   : > { %3173 = vmatmul.bf16.vlgmr.msra.gmra.mxu1 %v3125_v39  ;;  %v16635_v39 = vld [vmem:[#allocation72_spill] sm:$0xff] }
 0x65a   : > { %3276 = vmatpush.bf16.xpose.msra.mxu1 %v16619_v7  ;;  %v2266_v5 = vadd.f32 %v16635_v39, %v16634_v24  ;;  %v2209_v7 = vadd.f32 %v16637_v23, %v16636_v48 }
 0x65d   : > { %v2954_v19 = vpop.f32.mrf.mxu3 }
 0x65e   : > { %v2937_v12 = vpop.f32.mrf.mxu2  ;;  %v13113_v49 = vadd.f32 %v2954_v19, %v2171_v55  ;;  %v2973_v28 = vpop.f32.mrf.mxu0 }
 0x65f   : > { %v13117_v0 = vadd.f32 %v2973_v28, %v2190_v44  ;;  %v16638_v44 = vld [vmem:[#allocation61_spill] sm:$0xff] }
 0x660   : > { %v2916_v62 = vpop.f32.mrf.mxu1  ;;  %3290 = vmatmul.bf16.vlgmr.msrb.gmra.mxu2 %v3134_v38  ;;  %v3541_v19 = vmul.f32 %v16601_v21, %v16638_v44  ;;  %v16639_v38 = vld [vmem:[#allocation49_spill] sm:$0xff] }
 0x661   : > { %v13120_v53 = vadd.f32 %v2916_v62, %v2133_v57  ;;  %3657 = vmatpush.bf16.msrb.mxu2 %v3648_v2  ;;  %v3117_v12 = vmul.f32 %v16601_v21, %v16639_v38 }
 0x662   : > { %v3557_v28 = vpack.c.bf16 %v3541_v19, %v3541_v19 }
 0x663   : > { %v3133_v9 = vpack.c.bf16 %v3117_v12, %v3117_v12 }
 0x664   : > { %v3629_v2 = vsel %vm1701_vm15, %v3557_v28, 0 }
 0x665   : > { %v2956_v46 = vpop.f32.mrf.mxu3 }
 0x666   : > { %v3011_v30 = vpop.f32.mrf.mxu2  ;;  %v2975_v54 = vpop.f32.mrf.mxu0  ;;  %v16640_v46 = vld [vmem:[#allocation63_spill] sm:$0xff] }
 0x667   : > { %v13126_v11 = vadd.f32 %v3011_v30, %v2228_v47  ;;  %v3545_v30 = vmul.f32 %v16601_v21, %v16640_v46 }
 0x668   : > { %v2918_v40 = vpop.f32.mrf.mxu1 }
 0x669   : > { %3225 = vmatmul.bf16.vlgmr.msrb.gmra.mxu1 %v3129_v59  ;;  %v16641_v59 = vld [vmem:[#allocation57_spill] sm:$0xff]  ;;  %v3561_v18 = vpack.c.bf16 %v3545_v30, %v3545_v30 }
 0x66a   : > { %3328 = vmatpush.bf16.xpose.msrb.mxu1 %v16631_v3  ;;  %v3121_v40 = vmul.f32 %v16601_v21, %v16641_v59 }
 0x66b   : > { %v3705_v3 = vsel %vm1701_vm15, %v3561_v18, 0 }
 0x66c   : > { %v3137_v34 = vpack.c.bf16 %v3121_v40, %v3121_v40 }
 0x66e   : > { %v3013_v16 = vpop.f32.mrf.mxu2  ;;  %v3030_v26 = vpop.f32.mrf.mxu3 }
 0x66f   : > { %v13139_v56 = vadd.f32 %v3030_v26, %v2247_v36  ;;  %v3049_v13 = vpop.f32.mrf.mxu0 }
 0x670   : > { %v2992_v55 = vpop.f32.mrf.mxu1  ;;  %v13141_v42 = vadd.f32 %v3049_v13, %v2266_v5  ;;  %3342 = vmatmul.bf16.vlgmr.msra.gmra.mxu2 %v3138_v51  ;;  %v16643_v13 = vld [vmem:[#allocation47_spill] sm:$0xff] }
 0x671   : > { %v13144_v8 = vadd.f32 %v2992_v55, %v2209_v7  ;;  %3733 = vmatpush.bf16.msra.mxu2 %v3724_v33  ;;  %v16642_v7 = vld [vmem:[#allocation46_spill] sm:$0xff] }
 0x672   : > { %v2304_v55 = vadd.f32 %v16643_v13, %v16642_v7 }
 0x676   : > { %v3032_v6 = vpop.f32.mrf.mxu3 }
 0x677   : > { %v3051_v57 = vpop.f32.mrf.mxu0 }
 0x678   : > { %v2994_v62 = vpop.f32.mrf.mxu1  ;;  %v16645_v57 = vld [vmem:[#allocation73_spill] sm:$0xff] }
 0x679   : > { %3277 = vmatmul.bf16.vlgmr.msra.gmra.mxu1 %v3133_v9  ;;  %v16644_v9 = vld [vmem:[#allocation37_spill] sm:$0xff] }
 0x67a   : > { %3638 = vmatpush.bf16.msra.mxu1 %v3629_v2  ;;  %v2285_v62 = vadd.f32 %v16645_v57, %v16644_v9 }
 0x67e   : > { %v3148_v29 = vpop.f32.mrf.mxu3 }
 0x67f   : > { %v13151_v45 = vmul.f32 0.35355338, %v3148_v29  ;;  %v3161_v20 = vpop.f32.mrf.mxu0 }
 0x680   : > { %v13153_v31 = vmul.f32 0.35355338, %v3161_v20 }
 0x681   : > { %v3363_v47 = vsel %vm993_vm0, %v13151_v45, -inf }
 0x682   : > { %3364 = vmax.xlane.f32.xlu0 %v3363_v47  ;;  %v3366_v54 = vsel %vm993_vm0, %v13153_v31, -inf }
 0x683   : > { %3367 = vmax.xlane.f32.xlu1 %v3366_v54 }
 0x686   : > { %v3150_v25 = vpop.f32.mrf.mxu3 }
 0x687   : > { %v3163_v63 = vpop.f32.mrf.mxu0 }
 0x689   : > { %3329 = vmatmul.bf16.vlgmr.msrb.gmra.mxu1 %v3137_v34 }
 0x68a   : > { %3714 = vmatpush.bf16.msrb.mxu1 %v3705_v3 }
 0x68e   : > { %v3200_v22 = vpop.f32.mrf.mxu3 }
 0x68f   : > { %v13164_v15 = vmul.f32 0.35355338, %v3200_v22  ;;  %v3213_v50 = vpop.f32.mrf.mxu0 }
 0x690   : > { %v13184_v47 = vmul.f32 0.35355338, %v3213_v50 }
 0x691   : > { %v3375_v36 = vsel %vm993_vm0, %v13164_v15, -inf }
 0x692   : > { %3376 = vmax.xlane.f32.xlu1 %v3375_v36  ;;  %v3378_v30 = vsel %vm993_vm0, %v13184_v47, -inf }
 0x696   : > { %v3202_v51 = vpop.f32.mrf.mxu3 }
 0x697   : > { %v3215_v24 = vpop.f32.mrf.mxu0 }
 0x69e   : > { %v3252_v39 = vpop.f32.mrf.mxu3 }
 0x69f   : > { %v3265_v5 = vpop.f32.mrf.mxu0 }
 0x6a6   : > { %v3254_v16 = vpop.f32.mrf.mxu3 }
 0x6a7   : > { %v3267_v26 = vpop.f32.mrf.mxu0 }
 0x6ae   : > { %v13168_v48 = vpop.f32.mrf.mxu3 }
 0x6af   : > { %v13170_v23 = vpop.f32.mrf.mxu0 }
 0x6b3   : > { %v3087_v33 = vpop.f32.mrf.mxu2 }
 0x6b4   : > { %v13174_v44 = vadd.f32 %v3087_v33, %v2304_v55 }
 0x6b6   : > { %v3306_v19 = vpop.f32.mrf.mxu3 }
 0x6b7   : > { %v3319_v38 = vpop.f32.mrf.mxu0 }
 0x6bb   : > { %v3089_v12 = vpop.f32.mrf.mxu2 }
 0x6c3   : > { %v3187_v28 = vpop.f32.mrf.mxu2 }
 0x6c4   : > { %v13176_v6 = vmul.f32 0.35355338, %v3187_v28 }
 0x6c6   : > { %v3372_v2 = vsel %vm993_vm0, %v13176_v6, -inf  ;;  %v3068_v29 = vpop.f32.mrf.mxu1 }
 0x6c7   : > { %3373 = vmax.xlane.f32.xlu2 %v3372_v2  ;;  %v13182_v20 = vadd.f32 %v3068_v29, %v2285_v62 }
 0x6cb   : > { %v3189_v46 = vpop.f32.mrf.mxu2 }
 0x6cc   : > { %v13212_v46 = vmul.f32 0.35355338, %v3252_v39 }
 0x6ce   : > { %v3070_v54 = vpop.f32.mrf.mxu1 }
 0x6cf   : > { %3379 = vmax.xlane.f32.xlu2 %v3378_v30  ;;  %v13214_v30 = vmul.f32 0.35355338, %v3265_v5 }
 0x6d3   : > { %v3239_v59 = vpop.f32.mrf.mxu2 }
 0x6d4   : > { %v13192_v63 = vmul.f32 0.35355338, %v3239_v59 }
 0x6d6   : > { %v3174_v40 = vpop.f32.mrf.mxu1  ;;  %v3384_v22 = vsel %vm993_vm0, %v13192_v63, -inf }
 0x6d7   : > { %v13188_v18 = vmul.f32 0.35355338, %v3174_v40 }
 0x6d9   : > { %v3369_v25 = vsel %vm993_vm0, %v13188_v18, -inf }
 0x6da   : > { %3370 = vmax.xlane.f32.xlu0 %v3369_v25  ;;  %v3387_v25 = vsel %vm993_vm0, %v13212_v46, -inf }
 0x6db   : > { %v3241_v34 = vpop.f32.mrf.mxu2 }
 0x6dc   : > { %v3390_v34 = vsel %vm993_vm0, %v13214_v30, -inf }
 0x6de   : > { %v3176_v3 = vpop.f32.mrf.mxu1 }
 0x6e2   : > { %3385 = vmax.xlane.f32.xlu0 %v3384_v22 }
 0x6e3   : > { %v3291_v50 = vpop.f32.mrf.mxu2 }
 0x6e6   : > { %v3226_v36 = vpop.f32.mrf.mxu1 }
 0x6e7   : > { %v13196_v51 = vmul.f32 0.35355338, %v3226_v36 }
 0x6e9   : > { %v3381_v24 = vsel %vm993_vm0, %v13196_v51, -inf }
 0x6ea   : > { %3382 = vmax.xlane.f32.xlu2 %v3381_v24 }
 0x6eb   : > { %v3293_v16 = vpop.f32.mrf.mxu2 }
 0x6ee   : > { %v3228_v26 = vpop.f32.mrf.mxu1 }
 0x6f3   : > { %v13200_v7 = vpop.f32.mrf.mxu2 }
 0x6f5   : > { %v3365_v13 = vpop.xlane.xlu0 %3364 }
 0x6f6   : > { %v3411_v55 = vsub.f32 %v13151_v45, %v3365_v13  ;;  %v3368_v33 = vpop.xlane.xlu1 %3367  ;;  %v3278_v19 = vpop.f32.mrf.mxu1 }
 0x6f7   : > { %v3412_v38 = vsub.f32 %v13153_v31, %v3368_v33 }
 0x6f8   : > { %v3427_v12 = vmul.f32 1.442695, %v3411_v55 }
 0x6f9   : > { %v3429_v28 = vmul.f32 1.442695, %v3412_v38  ;;  %v13236_v38 = vmul.f32 0.35355338, %v3291_v50 }
 0x6fa   : > { %11095 = vpow2.f32 %v3427_v12 }
 0x6fb   : > { %11097 = vpow2.f32 %v3429_v28  ;;  %v3345_v9 = vpop.f32.mrf.mxu2 }
 0x6fe   : > { %v3280_v57 = vpop.f32.mrf.mxu1 }
 0x700   : > { %v13204_v62 = vpop.eup %11095 }
 0x701   : > { %v13206_v2 = vpop.eup %11097  ;;  %v3459_v29 = vsel %vm993_vm0, %v13204_v62, 0.0 }
 0x702   : > { %3460 = vadd.xlane.f32.xlu1 %v3459_v29  ;;  %v3462_v45 = vsel %vm993_vm0, %v13206_v2, 0.0 }
 0x703   : > { %3463 = vadd.xlane.f32.xlu0 %v3462_v45 }
 0x705   : > { %v3377_v31 = vpop.xlane.xlu1 %3376 }
 0x706   : > { %v3415_v54 = vsub.f32 %v13164_v15, %v3377_v31  ;;  %v3330_v59 = vpop.f32.mrf.mxu1  ;;  %v13226_v15 = vmul.f32 0.35355338, %v13168_v48  ;;  %v13251_v31 = vmul.f32 0.35355338, %v13170_v23 }
 0x708   : > { %v3435_v40 = vmul.f32 1.442695, %v3415_v54  ;;  %v3399_v5 = vsel %vm993_vm0, %v13226_v15, -inf }
 0x70a   : > { %11099 = vpow2.f32 %v3435_v40  ;;  %3388 = vmax.xlane.f32.xlu1 %v3387_v25  ;;  %v13253_v40 = vmul.f32 0.35355338, %v3278_v19 }
 0x70b   : > { %3391 = vmax.xlane.f32.xlu0 %v3390_v34 }
 0x70e   : > { %v3332_v3 = vpop.f32.mrf.mxu1 }
 0x70f   : > { %v3402_v3 = vsel %vm993_vm0, %v13251_v31, -inf }
 0x710   : > { %v13221_v22 = vpop.eup %11099 }
 0x711   : > { %v3471_v39 = vsel %vm993_vm0, %v13221_v22, 0.0 }
 0x713   : > { %3472 = vadd.xlane.f32.xlu0 %v3471_v39 }
 0x71b   : > { %3400 = vmax.xlane.f32.xlu0 %v3399_v5 }
 0x73a   : > { %v3374_v36 = vpop.xlane.xlu2 %3373 }
 0x73b   : > { %v3414_v24 = vsub.f32 %v13176_v6, %v3374_v36  ;;  %v3396_v6 = vsel %vm993_vm0, %v13236_v38, -inf  ;;  %v13269_v36 = vmul.f32 0.35355338, %v13200_v7  ;;  %v3548_v7 = vmul.f32 %v16601_v21, %v12470_v60 }
 0x73d   : > { %v3433_v16 = vmul.f32 1.442695, %v3414_v24  ;;  %v13271_v24 = vmul.f32 0.35355338, %v3330_v59 }
 0x73f   : > { %11101 = vpow2.f32 %v3433_v16  ;;  %v3408_v16 = vsel %vm993_vm0, %v13269_v36, -inf }
 0x742   : > { %v3380_v26 = vpop.xlane.xlu2 %3379 }
 0x743   : > { %v3416_v55 = vsub.f32 %v13184_v47, %v3380_v26  ;;  %v3405_v26 = vsel %vm993_vm0, %v13271_v24, -inf }
 0x745   : > { %v13231_v13 = vpop.eup %11101  ;;  %v3437_v48 = vmul.f32 1.442695, %v3416_v55 }
 0x746   : > { %v3468_v33 = vsel %vm993_vm0, %v13231_v13, 0.0 }
 0x747   : > { %3469 = vadd.xlane.f32.xlu2 %v3468_v33  ;;  %11103 = vpow2.f32 %v3437_v48  ;;  %v3547_v48 = vmul.f32 %v16601_v21, %v12466_v43 }
 0x74d   : > { %v3371_v12 = vpop.xlane.xlu0 %3370  ;;  %v13241_v57 = vpop.eup %11103 }
 0x74e   : > { %v3413_v28 = vsub.f32 %v13188_v18, %v3371_v12  ;;  %v3474_v29 = vsel %vm993_vm0, %v13241_v57, 0.0 }
 0x74f   : > { %3397 = vmax.xlane.f32.xlu2 %v3396_v6 }
 0x750   : > { %v3431_v9 = vmul.f32 1.442695, %v3413_v28 }
 0x752   : > { %11105 = vpow2.f32 %v3431_v9  ;;  %v3563_v9 = vpack.c.bf16 %v3547_v48, %v3547_v48 }
 0x754   : > { %v3743_v60 = vsel %vm1701_vm15, %v3563_v9, 0 }
 0x755   : > { %v3386_v47 = vpop.xlane.xlu0 %3385 }
 0x756   : > { %v3418_v50 = vsub.f32 %v13192_v63, %v3386_v47  ;;  %v3393_v63 = vsel %vm993_vm0, %v13253_v40, -inf }
 0x757   : > { %3475 = vadd.xlane.f32.xlu2 %v3474_v29 }
 0x758   : > { %v13245_v45 = vpop.eup %11105  ;;  %v3441_v54 = vmul.f32 1.442695, %v3418_v50 }
 0x759   : > { %v3465_v18 = vsel %vm993_vm0, %v13245_v45, 0.0 }
 0x75a   : > { %3466 = vadd.xlane.f32.xlu1 %v3465_v18  ;;  %11107 = vpow2.f32 %v3441_v54  ;;  %v3564_v18 = vpack.c.bf16 %v3548_v7, %v3548_v7 }
 0x75d   : > { %v3383_v25 = vpop.xlane.xlu2 %3382 }
 0x75e   : > { %v3417_v34 = vsub.f32 %v13196_v51, %v3383_v25 }
 0x75f   : > { %3403 = vmax.xlane.f32.xlu2 %v3402_v3 }
 0x760   : > { %v3439_v39 = vmul.f32 1.442695, %v3417_v34  ;;  %v13260_v23 = vpop.eup %11107 }
 0x761   : > { %v3480_v51 = vsel %vm993_vm0, %v13260_v23, 0.0 }
 0x762   : > { %11109 = vpow2.f32 %v3439_v39  ;;  %3394 = vmax.xlane.f32.xlu1 %v3393_v63 }
 0x768   : > { %v13262_v5 = vpop.eup %11109 }
 0x769   : > { %v3477_v19 = vsel %vm993_vm0, %v13262_v5, 0.0 }
 0x76a   : > { %3478 = vadd.xlane.f32.xlu0 %v3477_v19  ;;  %3481 = vadd.xlane.f32.xlu1 %v3480_v51  ;;  %v3551_v19 = vmul.f32 %v16601_v21, %v12485_v17 }
 0x772   : > { %3409 = vmax.xlane.f32.xlu1 %v3408_v16  ;;  %3406 = vmax.xlane.f32.xlu0 %v3405_v26 }
 0x775   : > { %v3461_v55 = vpop.xlane.xlu1 %3460 }
 0x776   : > { %11111 = vrcp.f32 %v3461_v55  ;;  %v3464_v33 = vpop.xlane.xlu0 %3463  ;;  %v3567_v55 = vpack.c.bf16 %v3551_v19, %v3551_v19 }
 0x777   : > { %11113 = vrcp.f32 %v3464_v33 }
 0x77c   : > { %v11112_v59 = vpop.eup %11111 }
 0x77d   : > { %v11114_v12 = vpop.eup %11113  ;;  %v3523_v28 = vmul.f32 %v11112_v59, %v13204_v62  ;;  %v3389_v6 = vpop.xlane.xlu1 %3388  ;;  %v3762_v62 = vsel %vm1701_vm15, %v3564_v18, 0  ;;  %v3819_v59 = vsel %vm1701_vm15, %v3567_v55, 0 }
 0x77e   : > { %v3524_v47 = vmul.f32 %v11114_v12, %v13206_v2  ;;  %v3419_v29 = vsub.f32 %v13212_v46, %v3389_v6  ;;  %v3392_v50 = vpop.xlane.xlu0 %3391 }
 0x77f   : > { %v3571_v54 = vpack.c.bf16 %v3523_v28, %v3523_v28  ;;  %v3420_v25 = vsub.f32 %v13214_v30, %v3392_v50 }
 0x780   : > { %v3572_v34 = vpack.c.bf16 %v3524_v47, %v3524_v47  ;;  %v3443_v43 = vmul.f32 1.442695, %v3419_v29 }
 0x781   : > { %v3445_v3 = vmul.f32 1.442695, %v3420_v25  ;;  %10296 = vmatmul.msk.bf16.vlgmr.msra.gmra.mxu3 %vm993_vm0, %v3571_v54 }
 0x782   : > { %11115 = vpow2.f32 %v3443_v43  ;;  %3752 = vmatpush.bf16.msra.mxu3 %v3743_v60  ;;  %10297 = vmatmul.msk.bf16.vlgmr.msra.gmra.mxu0 %vm993_vm0, %v3572_v34 }
 0x783   : > { %11117 = vpow2.f32 %v3445_v3  ;;  %3771 = vmatpush.bf16.msra.mxu0 %v3762_v62  ;;  %v3549_v62 = vmul.f32 %v16601_v21, %v12513_v35 }
 0x786   : > { %v3473_v2 = vpop.xlane.xlu0 %3472 }
 0x787   : > { %11119 = vrcp.f32 %v3473_v2 }
 0x788   : > { %v13289_v46 = vpop.eup %11115 }
 0x789   : > { %v13291_v30 = vpop.eup %11117  ;;  %v3483_v39 = vsel %vm993_vm0, %v13289_v46, 0.0 }
 0x78a   : > { %3484 = vadd.xlane.f32.xlu2 %v3483_v39  ;;  %v3486_v63 = vsel %vm993_vm0, %v13291_v30, 0.0 }
 0x78b   : > { %3487 = vadd.xlane.f32.xlu1 %v3486_v63 }
 0x78d   : > { %v11120_v51 = vpop.eup %11119 }
 0x78e   : > { %v3527_v16 = vmul.f32 %v11120_v51, %v13221_v22  ;;  %v3401_v26 = vpop.xlane.xlu0 %3400  ;;  %v16646_v22 = vld [vmem:[#allocation65_spill] sm:$0xff] }
 0x78f   : > { %v3423_v33 = vsub.f32 %v13226_v15, %v3401_v26  ;;  %v3550_v6 = vmul.f32 %v16601_v21, %v16646_v22 }
 0x790   : > { %v3575_v48 = vpack.c.bf16 %v3527_v16, %v3527_v16 }
 0x791   : > { %v3451_v7 = vmul.f32 1.442695, %v3423_v33  ;;  %v3566_v29 = vpack.c.bf16 %v3550_v6, %v3550_v6  ;;  %v3553_v6 = vmul.f32 %v16601_v21, %v12541_v32 }
 0x792   : > { %10300 = vmatmul.msk.bf16.vlgmr.msrb.gmra.mxu3 %vm993_vm0, %v3575_v48  ;;  %v3565_v48 = vpack.c.bf16 %v3549_v62, %v3549_v62 }
 0x793   : > { %11121 = vpow2.f32 %v3451_v7  ;;  %3828 = vmatpush.bf16.msrb.mxu3 %v3819_v59  ;;  %v3800_v25 = vsel %vm1701_vm15, %v3566_v29, 0 }
 0x799   : > { %v13303_v12 = vpop.eup %11121 }
 0x79a   : > { %v3495_v17 = vsel %vm993_vm0, %v13303_v12, 0.0 }
 0x79b   : > { %3496 = vadd.xlane.f32.xlu1 %v3495_v17 }
 0x7ba   : > { %v3470_v28 = vpop.xlane.xlu2 %3469 }
 0x7bb   : > { %11123 = vrcp.f32 %v3470_v28 }
 0x7c1   : > { %v11124_v15 = vpop.eup %11123 }
 0x7c2   : > { %v3526_v9 = vmul.f32 %v11124_v15, %v13231_v13  ;;  %v3398_v47 = vpop.xlane.xlu2 %3397  ;;  %v3554_v15 = vmul.f32 %v16601_v21, %v12537_v1 }
 0x7c3   : > { %v3422_v50 = vsub.f32 %v13236_v38, %v3398_v47  ;;  %v3552_v38 = vmul.f32 %v16601_v21, %v12495_v14 }
 0x7c4   : > { %v3574_v18 = vpack.c.bf16 %v3526_v9, %v3526_v9 }
 0x7c5   : > { %v3449_v54 = vmul.f32 1.442695, %v3422_v50  ;;  %v3568_v63 = vpack.c.bf16 %v3552_v38, %v3552_v38 }
 0x7c6   : > { %10299 = vmatmul.msk.bf16.vlgmr.msrb.gmra.mxu2 %vm993_vm0, %v3574_v18 }
 0x7c7   : > { %11125 = vpow2.f32 %v3449_v54  ;;  %3809 = vmatpush.bf16.msrb.mxu2 %v3800_v25  ;;  %v3838_v14 = vsel %vm1701_vm15, %v3568_v63, 0  ;;  %v3569_v54 = vpack.c.bf16 %v3553_v6, %v3553_v6 }
 0x7c9   : > { %v3857_v1 = vsel %vm1701_vm15, %v3569_v54, 0  ;;  %v10728_v54 = vld [vmem:[#allocation2 + $0x174] sm:$0xf0] }
 0x7ca   : > { %v3476_v34 = vpop.xlane.xlu2 %3475 }
 0x7cb   : > { %11127 = vrcp.f32 %v3476_v34 }
 0x7cd   : > { %v13313_v43 = vpop.eup %11125  ;;  %v3467_v3 = vpop.xlane.xlu1 %3466 }
 0x7ce   : > { %11129 = vrcp.f32 %v3467_v3  ;;  %v3492_v13 = vsel %vm993_vm0, %v13313_v43, 0.0 }
 0x7cf   : > { %3493 = vadd.xlane.f32.xlu2 %v3492_v13  ;;  %v3570_v13 = vpack.c.bf16 %v3554_v15, %v3554_v15 }
 0x7d1   : > { %v11128_v60 = vpop.eup %11127 }
 0x7d2   : > { %v3528_v2 = vmul.f32 %v11128_v60, %v13241_v57  ;;  %v3404_v39 = vpop.xlane.xlu2 %3403 }
 0x7d3   : > { %v3424_v19 = vsub.f32 %v13251_v31, %v3404_v39  ;;  %v3781_v31 = vsel %vm1701_vm15, %v3565_v48, 0 }
 0x7d4   : > { %v11130_v51 = vpop.eup %11129  ;;  %v3576_v16 = vpack.c.bf16 %v3528_v2, %v3528_v2 }
 0x7d5   : > { %v3525_v26 = vmul.f32 %v11130_v51, %v13245_v45  ;;  %v3453_v55 = vmul.f32 1.442695, %v3424_v19  ;;  %v3395_v33 = vpop.xlane.xlu1 %3394  ;;  %v10342_v51 = vld [vmem:[#allocation2 + $0x2e4] sm:$0xf] }
 0x7d6   : > { %10301 = vmatmul.msk.bf16.vlgmr.msrb.gmra.mxu0 %vm993_vm0, %v3576_v16  ;;  %v3421_v7 = vsub.f32 %v13253_v40, %v3395_v33  ;;  %v10732_v16 = vld [vmem:[#allocation2 + $0x314] sm:$0xf0] }
 0x7d7   : > { %v3573_v35 = vpack.c.bf16 %v3525_v26, %v3525_v26  ;;  %11131 = vpow2.f32 %v3453_v55  ;;  %3847 = vmatpush.bf16.msrb.mxu0 %v3838_v14 }
 0x7d8   : > { %v3447_v57 = vmul.f32 1.442695, %v3421_v7 }
 0x7d9   : > { %10298 = vmatmul.msk.bf16.vlgmr.msra.gmra.mxu1 %vm993_vm0, %v3573_v35 }
 0x7da   : > { %11133 = vpow2.f32 %v3447_v57  ;;  %3790 = vmatpush.bf16.msra.mxu1 %v3781_v31  ;;  %v10343_v57 = vor.u32 %v10732_v16, %v10342_v51 }
 0x7dd   : > { %v13329_v45 = vpop.eup %11131  ;;  %v3479_v59 = vpop.xlane.xlu0 %3478 }
 0x7de   : > { %v3482_v17 = vpop.xlane.xlu1 %3481  ;;  %11135 = vrcp.f32 %v3479_v59  ;;  %v3498_v28 = vsel %vm993_vm0, %v13329_v45, 0.0 }
 0x7df   : > { %11137 = vrcp.f32 %v3482_v17  ;;  %3499 = vadd.xlane.f32.xlu2 %v3498_v28  ;;  %v10338_v28 = vld [vmem:[#allocation2 + $0x27c] sm:$0xf] }
 0x7e0   : > { %v13333_v40 = vpop.eup %11133 }
 0x7e1   : > { %v3489_v22 = vsel %vm993_vm0, %v13333_v40, 0.0 }
 0x7e2   : > { %3490 = vadd.xlane.f32.xlu0 %v3489_v22  ;;  %v10731_v22 = vld [vmem:[#allocation2 + $0x2ac] sm:$0xf0] }
 0x7e3   : > { %v10339_v15 = vor.u32 %v10731_v22, %v10338_v28 }
 0x7e4   : > { %v11136_v9 = vpop.eup %11135 }
 0x7e5   : > { %v11138_v47 = vpop.eup %11137  ;;  %v3529_v29 = vmul.f32 %v11136_v9, %v13262_v5  ;;  %v3407_v18 = vpop.xlane.xlu0 %3406  ;;  %v3876_v5 = vsel %vm1701_vm15, %v3570_v13, 0  ;;  %v10730_v9 = vld [vmem:[#allocation2 + $0x244] sm:$0xf0] }
 0x7e6   : > { %v3410_v50 = vpop.xlane.xlu1 %3409  ;;  %v3530_v25 = vmul.f32 %v11138_v47, %v13260_v23  ;;  %v3425_v3 = vsub.f32 %v13271_v24, %v3407_v18  ;;  %v10326_v18 = vld [vmem:[#allocation2 + $0x144] sm:$0xf] }
 0x7e7   : > { %v3426_v34 = vsub.f32 %v13269_v36, %v3410_v50  ;;  %v3577_v38 = vpack.c.bf16 %v3529_v29, %v3529_v29  ;;  %v10729_v29 = vld [vmem:[#allocation2 + $0x1dc] sm:$0xf0] }
 0x7e8   : > { %v3578_v32 = vpack.c.bf16 %v3530_v25, %v3530_v25  ;;  %v3455_v62 = vmul.f32 1.442695, %v3425_v3 }
 0x7e9   : > { %v3457_v60 = vmul.f32 1.442695, %v3426_v34  ;;  %10302 = vmatmul.msk.bf16.vlgmr.msrb.gmra.mxu1 %vm993_vm0, %v3577_v38  ;;  %v10327_v38 = vor.u32 %v10728_v54, %v10326_v18 }
 0x7ea   : > { %10303 = vmatmul.msk.bf16.vlgmr.msra.gmra.mxu2 %vm993_vm0, %v3578_v32  ;;  %3866 = vmatpush.bf16.msrb.mxu1 %v3857_v1 }
 0x7eb   : > { %11139 = vpow2.f32 %v3457_v60  ;;  %3885 = vmatpush.bf16.msra.mxu2 %v3876_v5  ;;  %v10322_v60 = vld [vmem:[#allocation2 + $0xdc] sm:$0xf]  ;;  %v10318_v5 = vld [vmem:[#allocation2 + $0x74] sm:$0xf] }
 0x7ec   : > { %11141 = vpow2.f32 %v3455_v62  ;;  %v10727_v62 = vld [vmem:[#allocation2 + $0x10c] sm:$0xf0] }
 0x7ed   : > { %v10323_v1 = vor.u32 %v10727_v62, %v10322_v60 }
 0x7f1   : > { %v13349_v23 = vpop.eup %11139 }
 0x7f2   : > { %v13351_v36 = vpop.eup %11141  ;;  %v3504_v24 = vsel %vm993_vm0, %v13349_v23, 0.0 }
 0x7f3   : > { %3505 = vadd.xlane.f32.xlu0 %v3504_v24  ;;  %v3501_v2 = vsel %vm993_vm0, %v13351_v36, 0.0  ;;  %v10726_v24 = vld [vmem:[#allocation2 + $0xa4] sm:$0xf0] }
 0x7f4   : > { %3502 = vadd.xlane.f32.xlu1 %v3501_v2 }
 0x7fd   : > { %v3485_v39 = vpop.xlane.xlu2 %3484 }
 0x7fe   : > { %11143 = vrcp.f32 %v3485_v39  ;;  %v3488_v63 = vpop.xlane.xlu1 %3487  ;;  %v10319_v39 = vor.u32 %v10726_v24, %v10318_v5  ;;  %v13387_v24 = vld [vmem:[%s16285_s2 + $0x3] ss:$0 sm:$0xff] }
 0x7ff   : > { %11145 = vrcp.f32 %v3488_v63  ;;  %v3621_v19 = vpop.f32.mrf.mxu0  ;;  %v10314_v63 = vld [vmem:[#allocation2 + $0xc] sm:$0xf] }
 0x800   : > { %v3892_v14 = vadd.f32 %v3621_v19, %v13078_v58  ;;  %v10725_v19 = vld [vmem:[#allocation2 + $0x3c] sm:$0xf0] }
 0x804   : > { %v11144_v26 = vpop.eup %11143  ;;  %v3602_v55 = vpop.f32.mrf.mxu3 }
 0x805   : > { %v11146_v33 = vpop.eup %11145  ;;  %v3531_v48 = vmul.f32 %v11144_v26, %v13289_v46  ;;  %v3891_v7 = vadd.f32 %v3602_v55, %v13065_v41  ;;  %v10334_v46 = vld [vmem:[#allocation2 + $0x214] sm:$0xf] }
 0x806   : > { %v3532_v35 = vmul.f32 %v11146_v33, %v13291_v30  ;;  %v10335_v41 = vor.u32 %v10730_v9, %v10334_v46  ;;  %v10330_v30 = vld [vmem:[#allocation2 + $0x1ac] sm:$0xf] }
 0x807   : > { %v3579_v31 = vpack.c.bf16 %v3531_v48, %v3531_v48  ;;  %v3923_v59 = vpack.c.bf16 %v3892_v14, %v3891_v7  ;;  %v3623_v17 = vpop.f32.mrf.mxu0  ;;  %v10331_v50 = vor.u32 %v10729_v29, %v10330_v30 }
 0x808   : > { %v3580_v6 = vpack.c.bf16 %v3532_v35, %v3532_v35 }
 0x809   : > { %10304 = vmatmul.msk.bf16.vlgmr.msra.gmra.mxu3 %vm993_vm0, %v3579_v31 }
 0x80a   : > { %10305 = vmatmul.msk.bf16.vlgmr.msra.gmra.mxu0 %vm993_vm0, %v3580_v6  ;;  %3980 = vmatpush.bf16.msra.mxu3 %v10343_v57 }
 0x80c   : > { %v3604_v58 = vpop.f32.mrf.mxu3 }
 0x80e   : > { %v3497_v47 = vpop.xlane.xlu1 %3496  ;;  %3981 = vmatpush.bf16.msra.mxu3 %v10339_v15 }
 0x80f   : > { %11147 = vrcp.f32 %v3497_v47 }
 0x812   : > { %3982 = vmatpush.bf16.msra.mxu3 %v10335_v41 }
 0x815   : > { %v11148_v25 = vpop.eup %11147  ;;  %v3678_v34 = vpop.f32.mrf.mxu3 }
 0x816   : > { %v3535_v3 = vmul.f32 %v11148_v25, %v13303_v12  ;;  %v3895_v13 = vadd.f32 %v3678_v34, %v13074_v37  ;;  %3983 = vmatpush.bf16.msra.mxu3 %v10331_v50  ;;  %v10315_v12 = vor.u32 %v10725_v19, %v10314_v63  ;;  %v16647_v63 = vld [vmem:[#allocation12_spill] sm:$0xff] }
 0x818   : > { %v3583_v32 = vpack.c.bf16 %v3535_v3, %v3535_v3 }
 0x81a   : > { %10308 = vmatmul.msk.bf16.vlgmr.msrb.gmra.mxu3 %vm993_vm0, %v3583_v32 }
 0x81b   : > { %3984 = vmatpush.bf16.msra.mxu3 %v10327_v38 }
 0x81d   : > { %v3680_v2 = vpop.f32.mrf.mxu3 }
 0x81f   : > { %3985 = vmatpush.bf16.msra.mxu3 %v10323_v1 }
 0x823   : > { %3986 = vmatpush.bf16.msra.mxu3 %v10319_v39 }
 0x827   : > { %3987 = vmatpush.bf16.msra.mxu3 %v10315_v12  ;;  %v16648_v12 = vld [vmem:[#allocation14_spill] sm:$0xff] }
 0x82a   : > { %3988 = vmatmul.bf16.vlgmr.msra.gmra.mxu3 %v3923_v59 }
 0x842   : > { %v3494_v37 = vpop.xlane.xlu2 %3493 }
 0x843   : > { %11149 = vrcp.f32 %v3494_v37 }
 0x849   : > { %v11150_v51 = vpop.eup %11149  ;;  %v3659_v16 = vpop.f32.mrf.mxu2 }
 0x84a   : > { %v3534_v26 = vmul.f32 %v11150_v51, %v13313_v43  ;;  %v3894_v59 = vadd.f32 %v3659_v16, %v13082_v52 }
 0x84c   : > { %v3582_v55 = vpack.c.bf16 %v3534_v26, %v3534_v26 }
 0x84e   : > { %10307 = vmatmul.msk.bf16.vlgmr.msrb.gmra.mxu2 %vm993_vm0, %v3582_v55 }
 0x851   : > { %v3661_v33 = vpop.f32.mrf.mxu2 }
 0x852   : > { %v3500_v48 = vpop.xlane.xlu2 %3499 }
 0x853   : > { %11151 = vrcp.f32 %v3500_v48  ;;  %v3697_v14 = vpop.f32.mrf.mxu0 }
 0x854   : > { %v3896_v7 = vadd.f32 %v3697_v14, %v13093_v4 }
 0x855   : > { %v3491_v35 = vpop.xlane.xlu0 %3490 }
 0x856   : > { %v3925_v57 = vpack.c.bf16 %v3896_v7, %v3895_v13  ;;  %11153 = vrcp.f32 %v3491_v35  ;;  %v3640_v31 = vpop.f32.mrf.mxu1 }
 0x857   : > { %v3893_v17 = vadd.f32 %v3640_v31, %v13095_v10  ;;  %v16649_v31 = vld [vmem:[#allocation16_spill] sm:$0xff] }
 0x859   : > { %v11152_v28 = vpop.eup %11151  ;;  %v3924_v22 = vpack.c.bf16 %v3894_v59, %v3893_v17 }
 0x85a   : > { %v3536_v43 = vmul.f32 %v11152_v28, %v13329_v45 }
 0x85b   : > { %v3699_v6 = vpop.f32.mrf.mxu0  ;;  %3993 = vmatmul.bf16.gmra.mxu3 %v3924_v22 }
 0x85c   : > { %v11154_v15 = vpop.eup %11153  ;;  %v3584_v46 = vpack.c.bf16 %v3536_v43, %v3536_v43 }
 0x85d   : > { %v3533_v9 = vmul.f32 %v11154_v15, %v13333_v40 }
 0x85e   : > { %10309 = vmatmul.msk.bf16.vlgmr.msrb.gmra.mxu0 %vm993_vm0, %v3584_v46  ;;  %v3642_v4 = vpop.f32.mrf.mxu1 }
 0x85f   : > { %v3581_v58 = vpack.c.bf16 %v3533_v9, %v3533_v9 }
 0x861   : > { %10306 = vmatmul.msk.bf16.vlgmr.msra.gmra.mxu1 %vm993_vm0, %v3581_v58 }
 0x866   : > { %v3506_v47 = vpop.xlane.xlu0 %3505  ;;  %v3716_v10 = vpop.f32.mrf.mxu1 }
 0x867   : > { %v3503_v52 = vpop.xlane.xlu1 %3502  ;;  %11155 = vrcp.f32 %v3506_v47  ;;  %v3897_v40 = vadd.f32 %v3716_v10, %v13120_v53 }
 0x868   : > { %11157 = vrcp.f32 %v3503_v52 }
 0x86b   : > { %3998 = vmatmul.bf16.gmra.mxu3 %v3925_v57 }
 0x86d   : > { %v11156_v41 = vpop.eup %11155  ;;  %v3735_v29 = vpop.f32.mrf.mxu2 }
 0x86e   : > { %v11158_v45 = vpop.eup %11157  ;;  %v3538_v30 = vmul.f32 %v11156_v41, %v13349_v23  ;;  %v3898_v18 = vadd.f32 %v3735_v29, %v13102_v61  ;;  %v3718_v54 = vpop.f32.mrf.mxu1 }
 0x86f   : > { %v3537_v50 = vmul.f32 %v11158_v45, %v13351_v36  ;;  %v16653_v54 = vld [vmem:[#allocation22_spill] sm:$0xff] }
 0x870   : > { %v3586_v25 = vpack.c.bf16 %v3538_v30, %v3538_v30  ;;  %v3926_v3 = vpack.c.bf16 %v3898_v18, %v3897_v40  ;;  %v16652_v30 = vld [vmem:[#allocation21_spill] sm:$0xff] }
 0x871   : > { %v3585_v34 = vpack.c.bf16 %v3537_v50, %v3537_v50 }
 0x872   : > { %10311 = vmatmul.msk.bf16.vlgmr.msra.gmra.mxu2 %vm993_vm0, %v3586_v25 }
 0x873   : > { %10310 = vmatmul.msk.bf16.vlgmr.msrb.gmra.mxu1 %vm993_vm0, %v3585_v34  ;;  %v16654_v34 = vld [vmem:[#allocation23_spill] sm:$0xff] }
 0x875   : > { %v3737_v13 = vpop.f32.mrf.mxu2 }
 0x87b   : > { %4003 = vmatmul.bf16.gmra.mxu3 %v3926_v3 }
 0x887   : > { %v3773_v38 = vpop.f32.mrf.mxu0 }
 0x888   : > { %v3900_v23 = vadd.f32 %v3773_v38, %v13117_v0 }
 0x88c   : > { %v3754_v32 = vpop.f32.mrf.mxu3 }
 0x88d   : > { %v3899_v36 = vadd.f32 %v3754_v32, %v13113_v49  ;;  %v16655_v32 = vld [vmem:[#allocation24_spill] sm:$0xff] }
 0x88f   : > { %v3927_v60 = vpack.c.bf16 %v3900_v23, %v3899_v36  ;;  %v3775_v53 = vpop.f32.mrf.mxu0 }
 0x891   : > { %4008 = vmatmul.bf16.gmra.mxu3 %v3927_v60 }
 0x894   : > { %v3756_v61 = vpop.f32.mrf.mxu3 }
 0x895   : > { %v16656_v61 = vld [vmem:[#allocation8_spill] sm:$0xff] }
 0x89d   : > { %v3830_v62 = vpop.f32.mrf.mxu3 }
 0x89e   : > { %v3903_v1 = vadd.f32 %v3830_v62, %v13139_v56 }
 0x8a5   : > { %v3832_v5 = vpop.f32.mrf.mxu3 }
 0x8ad   : > { %v3989_v2 = vpop.f32.mrf.mxu3 }
 0x8ae   : > { %v3990_v39 = vadd.f32 %v13387_v24, %v3989_v2 }
 0x8b0   : > { %v4029_v0 = vadd.f32 %v3990_v39, %v16647_v63 }
 0x8b2   : > { %4045 = vadd.xlane.f32.xlu2 %v4029_v0 }
 0x8b5   : > { %v3991_v49 = vpop.f32.mrf.mxu3 }
 0x8b6   : > { %v3992_v19 = vadd.f32 %v13387_v24, %v3991_v49 }
 0x8b8   : > { %v13393_v37 = vadd.f32 %v3992_v19, %v16648_v12  ;;  %v16657_v12 = vld [vmem:[#allocation25_spill] sm:$0xff] }
 0x8ba   : > { %4047 = vadd.xlane.f32.xlu0 %v13393_v37 }
 0x8d1   : > { %v3811_v56 = vpop.f32.mrf.mxu2 }
 0x8d2   : > { %v3902_v14 = vadd.f32 %v3811_v56, %v13126_v11 }
 0x8d9   : > { %v3813_v51 = vpop.f32.mrf.mxu2 }
 0x8db   : > { %v3849_v16 = vpop.f32.mrf.mxu0 }
 0x8dc   : > { %v3904_v26 = vadd.f32 %v3849_v16, %v13141_v42  ;;  %v16650_v42 = vld [vmem:[#allocation18_spill] sm:$0xff] }
 0x8de   : > { %v3929_v55 = vpack.c.bf16 %v3904_v26, %v3903_v1  ;;  %v3792_v33 = vpop.f32.mrf.mxu1  ;;  %v3994_v48 = vpop.f32.mrf.mxu3 }
 0x8df   : > { %v3901_v7 = vadd.f32 %v3792_v33, %v13144_v8  ;;  %v3995_v35 = vadd.f32 %v13387_v24, %v3994_v48  ;;  %v16651_v8 = vld [vmem:[#allocation20_spill] sm:$0xff] }
 0x8e1   : > { %v3928_v57 = vpack.c.bf16 %v3902_v14, %v3901_v7  ;;  %v4031_v59 = vadd.f32 %v3995_v35, %v16649_v31 }
 0x8e3   : > { %v3851_v17 = vpop.f32.mrf.mxu0  ;;  %4013 = vmatmul.bf16.gmra.mxu3 %v3928_v57  ;;  %4049 = vadd.xlane.f32.xlu1 %v4031_v59 }
 0x8e6   : > { %v3794_v28 = vpop.f32.mrf.mxu1  ;;  %v3996_v22 = vpop.f32.mrf.mxu3 }
 0x8e7   : > { %v3997_v43 = vadd.f32 %v13387_v24, %v3996_v22  ;;  %v16658_v22 = vld [vmem:[#allocation26_spill] sm:$0xff] }
 0x8e9   : > { %v4032_v6 = vadd.f32 %v3997_v43, %v16650_v42 }
 0x8eb   : > { %4051 = vadd.xlane.f32.xlu2 %v4032_v6 }
 0x8ee   : > { %v3999_v15 = vpop.f32.mrf.mxu3 }
 0x8ef   : > { %v4000_v11 = vadd.f32 %v13387_v24, %v3999_v15 }
 0x8f0   : > { %v3868_v46 = vpop.f32.mrf.mxu1 }
 0x8f1   : > { %v4033_v9 = vadd.f32 %v4000_v11, %v16651_v8  ;;  %v3905_v58 = vadd.f32 %v3868_v46, %v13182_v20 }
 0x8f3   : > { %4018 = vmatmul.bf16.gmra.mxu3 %v3929_v55  ;;  %4053 = vadd.xlane.f32.xlu0 %v4033_v9 }
 0x8f5   : > { %v3887_v4 = vpop.f32.mrf.mxu2 }
 0x8f6   : > { %v3906_v47 = vadd.f32 %v3887_v4, %v13174_v44  ;;  %v4001_v52 = vpop.f32.mrf.mxu3 }
 0x8f7   : > { %v4002_v45 = vadd.f32 %v13387_v24, %v4001_v52 }
 0x8f8   : > { %v3930_v10 = vpack.c.bf16 %v3906_v47, %v3905_v58  ;;  %v3870_v41 = vpop.f32.mrf.mxu1  ;;  %v16659_v58 = vld [vmem:[#allocation27_spill] sm:$0xff] }
 0x8f9   : > { %v4034_v29 = vadd.f32 %v4002_v45, %v16652_v30 }
 0x8fb   : > { %4055 = vadd.xlane.f32.xlu1 %v4034_v29 }
 0x8fd   : > { %v3889_v50 = vpop.f32.mrf.mxu2 }
 0x8fe   : > { %v4004_v40 = vpop.f32.mrf.mxu3 }
 0x8ff   : > { %v4005_v18 = vadd.f32 %v13387_v24, %v4004_v40 }
 0x901   : > { %v13411_v25 = vadd.f32 %v4005_v18, %v16653_v54 }
 0x903   : > { %4023 = vmatmul.bf16.gmra.mxu3 %v3930_v10  ;;  %4057 = vadd.xlane.f32.xlu2 %v13411_v25 }
 0x906   : > { %v4006_v20 = vpop.f32.mrf.mxu3 }
 0x907   : > { %v4007_v44 = vadd.f32 %v13387_v24, %v4006_v20 }
 0x909   : > { %v13416_v3 = vadd.f32 %v4007_v44, %v16654_v34 }
 0x90b   : > { %4059 = vadd.xlane.f32.xlu0 %v13416_v3 }
 0x914   : > { %v4009_v13 = vpop.f32.mrf.mxu3 }
 0x915   : > { %v4010_v38 = vadd.f32 %v13387_v24, %v4009_v13 }
 0x917   : > { %v13421_v23 = vadd.f32 %v4010_v38, %v16655_v32  ;;  %v16661_v38 = vld [vmem:[#allocation15_spill] sm:$0xff] }
 0x919   : > { %4061 = vadd.xlane.f32.xlu0 %v13421_v23 }
 0x91c   : > { %v4011_v5 = vpop.f32.mrf.mxu3 }
 0x91d   : > { %v4012_v63 = vadd.f32 %v13387_v24, %v4011_v5  ;;  %v10374_v5 = vld [vmem:[#allocation2 + $0x2e8] sm:$0xf] }
 0x91f   : > { %v13437_v56 = vadd.f32 %v4012_v63, %v16657_v12  ;;  %v10739_v12 = vld [vmem:[#allocation2 + $0x2b0] sm:$0xf0] }
 0x925   : > { %v4046_v36 = vpop.xlane.xlu2 %4045 }
 0x926   : > { %v4077_v60 = vmul.f32 0.03125, %v4046_v36 }
 0x928   : > { %v4093_v53 = vsub.f32 %v4029_v0, %v4077_v60 }
 0x92a   : > { %v13425_v62 = vmul.f32 %v16656_v61, %v4093_v53 }
 0x92c   : > { %v4125_v1 = vmul.f32 %v13425_v62, %v13425_v62 }
 0x92d   : > { %v4048_v2 = vpop.xlane.xlu0 %4047 }
 0x92e   : > { %v4078_v39 = vmul.f32 0.03125, %v4048_v2  ;;  %4141 = vadd.xlane.f32.xlu1 %v4125_v1  ;;  %v10740_v2 = vld [vmem:[#allocation2 + $0x318] sm:$0xf0] }
 0x930   : > { %v4094_v49 = vsub.f32 %v13393_v37, %v4078_v39  ;;  %v16662_v39 = vld [vmem:[#allocation17_spill] sm:$0xff] }
 0x932   : > { %v13432_v19 = vmul.f32 %v16656_v61, %v4094_v49  ;;  %v10375_v49 = vor.u32 %v10740_v2, %v10374_v5 }
 0x934   : > { %v4126_v0 = vmul.f32 %v13432_v19, %v13432_v19  ;;  %4488 = vmatpush.bf16.msra.mxu0 %v10375_v49 }
 0x936   : > { %4143 = vadd.xlane.f32.xlu2 %v4126_v0  ;;  %4063 = vadd.xlane.f32.xlu1 %v13437_v56  ;;  %v10370_v0 = vld [vmem:[#allocation2 + $0x280] sm:$0xf] }
 0x956   : > { %v4050_v51 = vpop.xlane.xlu1 %4049 }
 0x957   : > { %v4079_v16 = vmul.f32 0.03125, %v4050_v51 }
 0x959   : > { %v4095_v26 = vsub.f32 %v4031_v59, %v4079_v16  ;;  %v10371_v16 = vor.u32 %v10739_v12, %v10370_v0 }
 0x95b   : > { %v13441_v55 = vmul.f32 %v16656_v61, %v4095_v26  ;;  %4489 = vmatpush.bf16.msra.mxu0 %v10371_v16 }
 0x95d   : > { %v4127_v37 = vmul.f32 %v13441_v55, %v13441_v55 }
 0x95e   : > { %v4052_v33 = vpop.xlane.xlu2 %4051 }
 0x95f   : > { %v4080_v48 = vmul.f32 0.03125, %v4052_v33  ;;  %4145 = vadd.xlane.f32.xlu2 %v4127_v37 }
 0x961   : > { %v4096_v14 = vsub.f32 %v4032_v6, %v4080_v48  ;;  %v10366_v48 = vld [vmem:[#allocation2 + $0x218] sm:$0xf] }
 0x963   : > { %v13446_v7 = vmul.f32 %v16656_v61, %v4096_v14  ;;  %v10738_v14 = vld [vmem:[#allocation2 + $0x248] sm:$0xf0] }
 0x965   : > { %v4128_v35 = vmul.f32 %v13446_v7, %v13446_v7 }
 0x966   : > { %v4014_v57 = vpop.f32.mrf.mxu3  ;;  %v4054_v31 = vpop.xlane.xlu0 %4053 }
 0x967   : > { %v4015_v59 = vadd.f32 %v13387_v24, %v4014_v57  ;;  %v4081_v17 = vmul.f32 0.03125, %v4054_v31  ;;  %4147 = vadd.xlane.f32.xlu0 %v4128_v35  ;;  %v16663_v57 = vld [vmem:[#allocation19_spill] sm:$0xff] }
 0x969   : > { %v4097_v28 = vsub.f32 %v4033_v9, %v4081_v17  ;;  %v13452_v43 = vadd.f32 %v4015_v59, %v16658_v22  ;;  %v10367_v59 = vor.u32 %v10738_v14, %v10366_v48  ;;  %v10358_v22 = vld [vmem:[#allocation2 + $0x148] sm:$0xf] }
 0x96b   : > { %4065 = vadd.xlane.f32.xlu1 %v13452_v43  ;;  %v13456_v42 = vmul.f32 %v16656_v61, %v4097_v28  ;;  %4490 = vmatpush.bf16.msra.mxu0 %v10367_v59  ;;  %v10362_v28 = vld [vmem:[#allocation2 + $0x1b0] sm:$0xf]  ;;  %v13525_v59 = vld [vmem:[%s16285_s2 + $0x5] ss:$0 sm:$0xff] }
 0x96d   : > { %v4129_v6 = vmul.f32 %v13456_v42, %v13456_v42 }
 0x96e   : > { %v4016_v15 = vpop.f32.mrf.mxu3  ;;  %v4056_v46 = vpop.xlane.xlu1 %4055 }
 0x96f   : > { %v4017_v11 = vadd.f32 %v13387_v24, %v4016_v15  ;;  %v4082_v8 = vmul.f32 0.03125, %v4056_v46  ;;  %4149 = vadd.xlane.f32.xlu0 %v4129_v6  ;;  %v10736_v6 = vld [vmem:[#allocation2 + $0x178] sm:$0xf0]  ;;  %v10354_v46 = vld [vmem:[#allocation2 + $0xe0] sm:$0xf] }
 0x970   : > { %v10359_v15 = vor.u32 %v10736_v6, %v10358_v22 }
 0x971   : > { %v4098_v4 = vsub.f32 %v4034_v29, %v4082_v8  ;;  %v13462_v9 = vadd.f32 %v4017_v11, %v16659_v58  ;;  %v16660_v29 = vld [vmem:[#allocation13_spill] sm:$0xff]  ;;  %v10735_v11 = vld [vmem:[#allocation2 + $0x110] sm:$0xf0] }
 0x972   : > { %v10355_v8 = vor.u32 %v10735_v11, %v10354_v46  ;;  %v10734_v58 = vld [vmem:[#allocation2 + $0xa8] sm:$0xf0] }
 0x973   : > { %4067 = vadd.xlane.f32.xlu2 %v13462_v9  ;;  %v13466_v47 = vmul.f32 %v16656_v61, %v4098_v4  ;;  %v10350_v4 = vld [vmem:[#allocation2 + $0x78] sm:$0xf] }
 0x975   : > { %v4130_v52 = vmul.f32 %v13466_v47, %v13466_v47 }
 0x976   : > { %v4019_v10 = vpop.f32.mrf.mxu3  ;;  %v4058_v41 = vpop.xlane.xlu2 %4057 }
 0x977   : > { %v4020_v45 = vadd.f32 %v13387_v24, %v4019_v10  ;;  %v4083_v30 = vmul.f32 0.03125, %v4058_v41  ;;  %4151 = vadd.xlane.f32.xlu1 %v4130_v52  ;;  %v10351_v10 = vor.u32 %v10734_v58, %v10350_v4 }
 0x979   : > { %v4099_v50 = vsub.f32 %v13411_v25, %v4083_v30  ;;  %v13473_v40 = vadd.f32 %v4020_v45, %v16660_v29  ;;  %v10346_v45 = vld [vmem:[#allocation2 + $0x10] sm:$0xf]  ;;  %v10733_v30 = vld [vmem:[#allocation2 + $0x40] sm:$0xf0] }
 0x97b   : > { %v13476_v18 = vmul.f32 %v16656_v61, %v4099_v50  ;;  %4069 = vadd.xlane.f32.xlu2 %v13473_v40  ;;  %v10347_v50 = vor.u32 %v10733_v30, %v10346_v45 }
 0x97d   : > { %v4131_v54 = vmul.f32 %v13476_v18, %v13476_v18 }
 0x97e   : > { %v4021_v20 = vpop.f32.mrf.mxu3  ;;  %v4060_v44 = vpop.xlane.xlu0 %4059 }
 0x97f   : > { %v4022_v34 = vadd.f32 %v13387_v24, %v4021_v20  ;;  %v4084_v13 = vmul.f32 0.03125, %v4060_v44  ;;  %4153 = vadd.xlane.f32.xlu1 %v4131_v54 }
 0x981   : > { %v13483_v32 = vadd.f32 %v4022_v34, %v16661_v38  ;;  %v4100_v25 = vsub.f32 %v13416_v3, %v4084_v13 }
 0x983   : > { %v13487_v36 = vmul.f32 %v16656_v61, %v4100_v25  ;;  %4071 = vadd.xlane.f32.xlu0 %v13483_v32 }
 0x985   : > { %v4132_v60 = vmul.f32 %v13487_v36, %v13487_v36 }
 0x986   : > { %v4024_v53 = vpop.f32.mrf.mxu3 }
 0x987   : > { %v4025_v1 = vadd.f32 %v13387_v24, %v4024_v53  ;;  %4155 = vadd.xlane.f32.xlu2 %v4132_v60 }
 0x989   : > { %v13494_v63 = vadd.f32 %v4025_v1, %v16662_v39 }
 0x98b   : > { %4073 = vadd.xlane.f32.xlu0 %v13494_v63 }
 0x98c   : > { %v4062_v3 = vpop.xlane.xlu0 %4061 }
 0x98d   : > { %v4085_v51 = vmul.f32 0.03125, %v4062_v3 }
 0x98e   : > { %v4026_v26 = vpop.f32.mrf.mxu3 }
 0x98f   : > { %v4101_v37 = vsub.f32 %v13421_v23, %v4085_v51  ;;  %v4027_v33 = vadd.f32 %v13387_v24, %v4026_v26  ;;  %v10737_v23 = vld [vmem:[#allocation2 + $0x1e0] sm:$0xf0] }
 0x990   : > { %v10363_v24 = vor.u32 %v10737_v23, %v10362_v28  ;;  %v13517_v26 = vld [vmem:[%s16285_s2 + $0x4] ss:$0 sm:$0xff] }
 0x991   : > { %v13500_v35 = vmul.f32 %v16656_v61, %v4101_v37  ;;  %v13503_v31 = vadd.f32 %v4027_v33, %v16663_v57 }
 0x992   : > { %4491 = vmatpush.bf16.msra.mxu0 %v10363_v24 }
 0x993   : > { %v4133_v17 = vmul.f32 %v13500_v35, %v13500_v35  ;;  %4075 = vadd.xlane.f32.xlu1 %v13503_v31 }
 0x995   : > { %4157 = vadd.xlane.f32.xlu2 %v4133_v17 }
 0x996   : > { %4492 = vmatpush.bf16.msra.mxu0 %v10359_v15 }
 0x99a   : > { %4493 = vmatpush.bf16.msra.mxu0 %v10355_v8 }
 0x99e   : > { %4494 = vmatpush.bf16.msra.mxu0 %v10351_v10 }
 0x9a1   : > { %v4142_v52 = vpop.xlane.xlu1 %4141 }
 0x9a2   : > { %v4173_v41 = vmul.f32 0.03125, %v4142_v52  ;;  %4495 = vmatpush.bf16.msra.mxu0 %v10347_v50 }
 0x9a4   : > { %v4189_v29 = vadd.f32 1e-05, %v4173_v41 }
 0x9a6   : > { %11159 = vrsqrt.f32 %v4189_v29  ;;  %vm4211_vm2 = vweird.f32 %v4189_v29 }
 0x9a9   : > { %v4144_v54 = vpop.xlane.xlu2 %4143  ;;  %v4064_v20 = vpop.xlane.xlu1 %4063 }
 0x9aa   : > { %v4174_v44 = vmul.f32 0.03125, %v4144_v54  ;;  %v4086_v34 = vmul.f32 0.03125, %v4064_v20 }
 0x9ac   : > { %v11160_v13 = vpop.eup %11159  ;;  %v4190_v38 = vadd.f32 1e-05, %v4174_v44  ;;  %v4102_v25 = vsub.f32 %v13437_v56, %v4086_v34 }
 0x9ad   : > { %v4206_v60 = vmul.f32 %v11160_v13, %v4189_v29  ;;  %vm4212_vm1 = vweird.f32 %v11160_v13 }
 0x9ae   : > { %11161 = vrsqrt.f32 %v4190_v38  ;;  %v13510_v53 = vmul.f32 %v16656_v61, %v4102_v25  ;;  %vm4213_vm3 = vmor %vm4211_vm2, %vm4212_vm1  ;;  %vm4221_vm5 = vweird.f32 %v4190_v38 }
 0x9af   : > { %v4207_v1 = vmul.f32 %v11160_v13, %v4206_v60 }
 0x9b0   : > { %v4134_v5 = vmul.f32 %v13510_v53, %v13510_v53 }
 0x9b1   : > { %v4208_v2 = vmul.f32 0.5, %v4207_v1 }
 0x9b2   : > { %4159 = vadd.xlane.f32.xlu0 %v4134_v5 }
 0x9b3   : > { %v4209_v39 = vsub.f32 1.5, %v4208_v2 }
 0x9b4   : > { %v11162_v49 = vpop.eup %11161 }
 0x9b5   : > { %v4210_v3 = vmul.f32 %v11160_v13, %v4209_v39  ;;  %v4216_v0 = vmul.f32 %v11162_v49, %v4190_v38  ;;  %vm4222_vm4 = vweird.f32 %v11162_v49 }
 0x9b6   : > { %vm4223_vm6 = vmor %vm4221_vm5, %vm4222_vm4 }
 0x9b7   : > { %v4217_v12 = vmul.f32 %v11162_v49, %v4216_v0  ;;  %v4214_v56 = vsel %vm4213_vm3, %v11160_v13, %v4210_v3 }
 0x9b8   : > { %v4365_v37 = vmul.f32 %v4214_v56, %v13425_v62 }
 0x9b9   : > { %v4218_v51 = vmul.f32 0.5, %v4217_v12 }
 0x9ba   : > { %v4382_v14 = vmul.f32 %v13517_v26, %v4365_v37 }
 0x9bb   : > { %v4219_v16 = vsub.f32 1.5, %v4218_v51 }
 0x9bc   : > { %v13529_v28 = vadd.f32 %v13525_v59, %v4382_v14 }
 0x9bd   : > { %v4220_v33 = vmul.f32 %v11162_v49, %v4219_v16 }
 0x9bf   : > { %v4224_v48 = vsel %vm4223_vm6, %v11162_v49, %v4220_v33 }
 0x9c0   : > { %v4366_v57 = vmul.f32 %v4224_v48, %v13432_v19 }
 0x9c2   : > { %v4383_v17 = vmul.f32 %v13517_v26, %v4366_v57 }
 0x9c4   : > { %v13532_v62 = vadd.f32 %v13525_v59, %v4383_v17 }
 0x9c6   : > { %v4431_v23 = vpack.c.bf16 %v13532_v62, %v13529_v28 }
 0x9c8   : > { %4496 = vmatmul.bf16.vlgmr.msra.gmra.mxu0 %v4431_v23 }
 0x9d2   : > { %v4146_v24 = vpop.xlane.xlu2 %4145 }
 0x9d3   : > { %v4175_v22 = vmul.f32 0.03125, %v4146_v24 }
 0x9d5   : > { %v4191_v19 = vadd.f32 1e-05, %v4175_v22 }
 0x9d7   : > { %11163 = vrsqrt.f32 %v4191_v19  ;;  %vm4231_vm8 = vweird.f32 %v4191_v19 }
 0x9da   : > { %v4148_v6 = vpop.xlane.xlu0 %4147 }
 0x9db   : > { %v4176_v15 = vmul.f32 0.03125, %v4148_v6 }
 0x9dd   : > { %v11164_v46 = vpop.eup %11163  ;;  %v4192_v11 = vadd.f32 1e-05, %v4176_v15 }
 0x9de   : > { %v4226_v8 = vmul.f32 %v11164_v46, %v4191_v19  ;;  %v4066_v4 = vpop.xlane.xlu1 %4065  ;;  %vm4232_vm7 = vweird.f32 %v11164_v46 }
 0x9df   : > { %11165 = vrsqrt.f32 %v4192_v11  ;;  %v4087_v58 = vmul.f32 0.03125, %v4066_v4  ;;  %vm4233_vm9 = vmor %vm4231_vm8, %vm4232_vm7  ;;  %vm4241_vm11 = vweird.f32 %v4192_v11 }
 0x9e0   : > { %v4227_v52 = vmul.f32 %v11164_v46, %v4226_v8 }
 0x9e1   : > { %v4103_v10 = vsub.f32 %v13452_v43, %v4087_v58 }
 0x9e2   : > { %v4228_v41 = vmul.f32 0.5, %v4227_v52  ;;  %v4150_v45 = vpop.xlane.xlu0 %4149 }
 0x9e3   : > { %v13538_v30 = vmul.f32 %v16656_v61, %v4103_v10  ;;  %v4177_v50 = vmul.f32 0.03125, %v4150_v45 }
 0x9e4   : > { %v4229_v29 = vsub.f32 1.5, %v4228_v41 }
 0x9e5   : > { %v11166_v54 = vpop.eup %11165  ;;  %v4193_v20 = vadd.f32 1e-05, %v4177_v50  ;;  %v4135_v44 = vmul.f32 %v13538_v30, %v13538_v30 }
 0x9e6   : > { %v4230_v34 = vmul.f32 %v11164_v46, %v4229_v29  ;;  %v4236_v13 = vmul.f32 %v11166_v54, %v4192_v11  ;;  %v4068_v38 = vpop.xlane.xlu2 %4067  ;;  %vm4242_vm10 = vweird.f32 %v11166_v54 }
 0x9e7   : > { %11167 = vrsqrt.f32 %v4193_v20  ;;  %v4088_v25 = vmul.f32 0.03125, %v4068_v38  ;;  %4161 = vadd.xlane.f32.xlu1 %v4135_v44  ;;  %vm4243_vm12 = vmor %vm4241_vm11, %vm4242_vm10  ;;  %vm4251_vm14 = vweird.f32 %v4193_v20 }
 0x9e8   : > { %v4237_v43 = vmul.f32 %v11166_v54, %v4236_v13  ;;  %v4234_v1 = vsel %vm4233_vm9, %v11164_v46, %v4230_v34 }
 0x9e9   : > { %v4104_v60 = vsub.f32 %v13462_v9, %v4088_v25  ;;  %v4367_v51 = vmul.f32 %v4234_v1, %v13441_v55 }
 0x9ea   : > { %v4238_v5 = vmul.f32 0.5, %v4237_v43  ;;  %v4152_v2 = vpop.xlane.xlu1 %4151 }
 0x9eb   : > { %v13544_v39 = vmul.f32 %v16656_v61, %v4104_v60  ;;  %v4178_v49 = vmul.f32 0.03125, %v4152_v2  ;;  %v4384_v23 = vmul.f32 %v13517_v26, %v4367_v51 }
 0x9ec   : > { %v4239_v3 = vsub.f32 1.5, %v4238_v5 }
 0x9ed   : > { %v11168_v0 = vpop.eup %11167  ;;  %v4194_v12 = vadd.f32 1e-05, %v4178_v49  ;;  %v4136_v56 = vmul.f32 %v13544_v39, %v13544_v39 }
 0x9ee   : > { %v4240_v16 = vmul.f32 %v11166_v54, %v4239_v3  ;;  %v4246_v37 = vmul.f32 %v11168_v0, %v4193_v20  ;;  %v4070_v9 = vpop.xlane.xlu2 %4069  ;;  %vm4252_vm13 = vweird.f32 %v11168_v0 }
 0x9ef   : > { %11169 = vrsqrt.f32 %v4194_v12  ;;  %v4089_v33 = vmul.f32 0.03125, %v4070_v9  ;;  %4163 = vadd.xlane.f32.xlu2 %v4136_v56  ;;  %vm4253_vm1 = vmor %vm4251_vm14, %vm4252_vm13  ;;  %vm4261_vm3 = vweird.f32 %v4194_v12 }
 0x9f0   : > { %v4244_v48 = vsel %vm4243_vm12, %v11166_v54, %v4240_v16  ;;  %v4247_v14 = vmul.f32 %v11168_v0, %v4246_v37 }
 0x9f1   : > { %v4105_v57 = vsub.f32 %v13473_v40, %v4089_v33  ;;  %v4368_v17 = vmul.f32 %v4244_v48, %v13446_v7  ;;  %v13559_v40 = vadd.f32 %v13525_v59, %v4384_v23 }
 0x9f2   : > { %v4248_v24 = vmul.f32 0.5, %v4247_v14  ;;  %v4154_v22 = vpop.xlane.xlu1 %4153 }
 0x9f3   : > { %v13553_v55 = vmul.f32 %v16656_v61, %v4105_v57  ;;  %v4179_v19 = vmul.f32 0.03125, %v4154_v22  ;;  %v4385_v6 = vmul.f32 %v13517_v26, %v4368_v17 }
 0x9f4   : > { %v4249_v15 = vsub.f32 1.5, %v4248_v24 }
 0x9f5   : > { %v11170_v46 = vpop.eup %11169  ;;  %v4195_v11 = vadd.f32 1e-05, %v4179_v19  ;;  %v4137_v8 = vmul.f32 %v13553_v55, %v13553_v55  ;;  %v13562_v7 = vadd.f32 %v13525_v59, %v4385_v6 }
 0x9f6   : > { %v4250_v4 = vmul.f32 %v11168_v0, %v4249_v15  ;;  %v4256_v58 = vmul.f32 %v11170_v46, %v4194_v12  ;;  %v4072_v52 = vpop.xlane.xlu0 %4071  ;;  %vm4262_vm2 = vweird.f32 %v11170_v46 }
 0x9f7   : > { %11171 = vrsqrt.f32 %v4195_v11  ;;  %v4090_v10 = vmul.f32 0.03125, %v4072_v52  ;;  %4165 = vadd.xlane.f32.xlu0 %v4137_v8  ;;  %v4432_v41 = vpack.c.bf16 %v13562_v7, %v13559_v40  ;;  %vm4263_vm4 = vmor %vm4261_vm3, %vm4262_vm2  ;;  %vm4271_vm6 = vweird.f32 %v4195_v11 }
 0x9f8   : > { %v4257_v45 = vmul.f32 %v11170_v46, %v4256_v58  ;;  %v4254_v29 = vsel %vm4253_vm1, %v11168_v0, %v4250_v4 }
 0x9f9   : > { %v4106_v50 = vsub.f32 %v13483_v32, %v4090_v10  ;;  %4501 = vmatmul.bf16.gmra.mxu0 %v4432_v41  ;;  %v4369_v20 = vmul.f32 %v4254_v29, %v13456_v42  ;;  %v10406_v29 = vld [vmem:[#allocation2 + $0x2ec] sm:$0xf] }
 0x9fa   : > { %v4258_v54 = vmul.f32 0.5, %v4257_v45  ;;  %v4156_v44 = vpop.xlane.xlu2 %4155 }
 0x9fb   : > { %v13568_v34 = vmul.f32 %v16656_v61, %v4106_v50  ;;  %v4180_v13 = vmul.f32 0.03125, %v4156_v44  ;;  %v4386_v51 = vmul.f32 %v13517_v26, %v4369_v20  ;;  %v10746_v20 = vld [vmem:[#allocation2 + $0x24c] sm:$0xf0] }
 0x9fc   : > { %v4259_v38 = vsub.f32 1.5, %v4258_v54  ;;  %v10748_v54 = vld [vmem:[#allocation2 + $0x31c] sm:$0xf0] }
 0x9fd   : > { %v11172_v25 = vpop.eup %11171  ;;  %v4196_v43 = vadd.f32 1e-05, %v4180_v13  ;;  %v4138_v60 = vmul.f32 %v13568_v34, %v13568_v34  ;;  %v13583_v48 = vadd.f32 %v13525_v59, %v4386_v51  ;;  %v10407_v13 = vor.u32 %v10748_v54, %v10406_v29 }
 0x9fe   : > { %v4260_v1 = vmul.f32 %v11170_v46, %v4259_v38  ;;  %v4266_v32 = vmul.f32 %v11172_v25, %v4195_v11  ;;  %v4074_v5 = vpop.xlane.xlu0 %4073  ;;  %vm4272_vm5 = vweird.f32 %v11172_v25 }
 0x9ff   : > { %11173 = vrsqrt.f32 %v4196_v43  ;;  %v4091_v2 = vmul.f32 0.03125, %v4074_v5  ;;  %4167 = vadd.xlane.f32.xlu1 %v4138_v60  ;;  %vm4273_vm7 = vmor %vm4271_vm6, %vm4272_vm5  ;;  %vm4281_vm9 = vweird.f32 %v4196_v43  ;;  %4626 = vmatpush.bf16.msra.mxu1 %v10407_v13  ;;  %v10398_v60 = vld [vmem:[#allocation2 + $0x21c] sm:$0xf]  ;;  %v10745_v5 = vld [vmem:[#allocation2 + $0x1e4] sm:$0xf0] }
 0xa00   : > { %v4264_v49 = vsel %vm4263_vm4, %v11170_v46, %v4260_v1  ;;  %v4267_v3 = vmul.f32 %v11172_v25, %v4266_v32  ;;  %v10399_v1 = vor.u32 %v10746_v20, %v10398_v60  ;;  %v10394_v32 = vld [vmem:[#allocation2 + $0x1b4] sm:$0xf] }
 0xa01   : > { %v4107_v0 = vsub.f32 %v13494_v63, %v4091_v2  ;;  %v4370_v56 = vmul.f32 %v4264_v49, %v13466_v47  ;;  %v10395_v49 = vor.u32 %v10745_v5, %v10394_v32 }
 0xa02   : > { %v4268_v16 = vmul.f32 0.5, %v4267_v3 }
 0xa03   : > { %v13577_v37 = vmul.f32 %v16656_v61, %v4107_v0  ;;  %v4387_v42 = vmul.f32 %v13517_v26, %v4370_v56  ;;  %v10390_v0 = vld [vmem:[#allocation2 + $0x14c] sm:$0xf]  ;;  %v10744_v56 = vld [vmem:[#allocation2 + $0x17c] sm:$0xf0] }
 0xa04   : > { %v4269_v12 = vsub.f32 1.5, %v4268_v16 }
 0xa05   : > { %v11174_v9 = vpop.eup %11173  ;;  %v4139_v33 = vmul.f32 %v13577_v37, %v13577_v37  ;;  %v13586_v63 = vadd.f32 %v13525_v59, %v4387_v42  ;;  %v10391_v42 = vor.u32 %v10744_v56, %v10390_v0 }
 0xa06   : > { %v4270_v47 = vmul.f32 %v11172_v25, %v4269_v12  ;;  %v4276_v14 = vmul.f32 %v11174_v9, %v4196_v43  ;;  %v4076_v57 = vpop.xlane.xlu1 %4075  ;;  %vm4282_vm8 = vweird.f32 %v11174_v9 }
 0xa07   : > { %v4092_v17 = vmul.f32 0.03125, %v4076_v57  ;;  %4169 = vadd.xlane.f32.xlu2 %v4139_v33  ;;  %v4433_v23 = vpack.c.bf16 %v13586_v63, %v13583_v48  ;;  %vm4283_vm10 = vmor %vm4281_vm9, %vm4282_vm8  ;;  %v10386_v33 = vld [vmem:[#allocation2 + $0xe4] sm:$0xf] }
 0xa08   : > { %v4277_v24 = vmul.f32 %v11174_v9, %v4276_v14  ;;  %v4274_v19 = vsel %vm4273_vm7, %v11172_v25, %v4270_v47  ;;  %v4158_v8 = vpop.xlane.xlu2 %4157  ;;  %v10747_v25 = vld [vmem:[#allocation2 + $0x2b4] sm:$0xf0] }
 0xa09   : > { %v4108_v22 = vsub.f32 %v13503_v31, %v4092_v17  ;;  %4506 = vmatmul.bf16.gmra.mxu0 %v4433_v23  ;;  %v4371_v58 = vmul.f32 %v4274_v19, %v13476_v18  ;;  %v4181_v31 = vmul.f32 0.03125, %v4158_v8  ;;  %v10743_v47 = vld [vmem:[#allocation2 + $0x114] sm:$0xf0]  ;;  %v10382_v17 = vld [vmem:[#allocation2 + $0x7c] sm:$0xf] }
 0xa0a   : > { %v4278_v6 = vmul.f32 0.5, %v4277_v24  ;;  %v10387_v57 = vor.u32 %v10743_v47, %v10386_v33  ;;  %v10742_v23 = vld [vmem:[#allocation2 + $0xac] sm:$0xf0] }
 0xa0b   : > { %v13592_v15 = vmul.f32 %v16656_v61, %v4108_v22  ;;  %v4388_v41 = vmul.f32 %v13517_v26, %v4371_v58  ;;  %v4197_v50 = vadd.f32 1e-05, %v4181_v31  ;;  %v10383_v22 = vor.u32 %v10742_v23, %v10382_v17 }
 0xa0c   : > { %v4279_v46 = vsub.f32 1.5, %v4278_v6  ;;  %v10378_v6 = vld [vmem:[#allocation2 + $0x14] sm:$0xf] }
 0xa0d   : > { %v4140_v4 = vmul.f32 %v13592_v15, %v13592_v15  ;;  %v13601_v44 = vadd.f32 %v13525_v59, %v4388_v41  ;;  %11175 = vrsqrt.f32 %v4197_v50  ;;  %vm4291_vm12 = vweird.f32 %v4197_v50 }
 0xa0e   : > { %v4280_v52 = vmul.f32 %v11174_v9, %v4279_v46  ;;  %v10741_v46 = vld [vmem:[#allocation2 + $0x44] sm:$0xf0] }
 0xa0f   : > { %4171 = vadd.xlane.f32.xlu0 %v4140_v4  ;;  %v10379_v58 = vor.u32 %v10741_v46, %v10378_v6 }
 0xa10   : > { %v4284_v11 = vsel %vm4283_vm10, %v11174_v9, %v4280_v52 }
 0xa11   : > { %v4372_v10 = vmul.f32 %v4284_v11, %v13487_v36  ;;  %v10402_v36 = vld [vmem:[#allocation2 + $0x284] sm:$0xf] }
 0xa12   : > { %v10403_v43 = vor.u32 %v10747_v25, %v10402_v36 }
 0xa13   : > { %v4389_v45 = vmul.f32 %v13517_v26, %v4372_v10  ;;  %v11176_v2 = vpop.eup %11175 }
 0xa14   : > { %4627 = vmatpush.bf16.msra.mxu1 %v10403_v43  ;;  %v4286_v3 = vmul.f32 %v11176_v2, %v4197_v50  ;;  %vm4292_vm11 = vweird.f32 %v11176_v2  ;;  %v13623_v43 = vld [vmem:[%s16285_s2 + $0x6] ss:$0 sm:$0xff] }
 0xa15   : > { %v13604_v18 = vadd.f32 %v13525_v59, %v4389_v45  ;;  %vm4293_vm13 = vmor %vm4291_vm12, %vm4292_vm11 }
 0xa16   : > { %v4287_v51 = vmul.f32 %v11176_v2, %v4286_v3 }
 0xa17   : > { %v4434_v38 = vpack.c.bf16 %v13604_v18, %v13601_v44 }
 0xa18   : > { %4628 = vmatpush.bf16.msra.mxu1 %v10399_v1  ;;  %v4288_v14 = vmul.f32 0.5, %v4287_v51 }
 0xa19   : > { %4511 = vmatmul.bf16.gmra.mxu0 %v4434_v38 }
 0xa1a   : > { %v4289_v24 = vsub.f32 1.5, %v4288_v14 }
 0xa1c   : > { %4629 = vmatpush.bf16.msra.mxu1 %v10395_v49  ;;  %v4290_v8 = vmul.f32 %v11176_v2, %v4289_v24 }
 0xa1e   : > { %v4294_v11 = vsel %vm4293_vm13, %v11176_v2, %v4290_v8 }
 0xa1f   : > { %v4373_v41 = vmul.f32 %v4294_v11, %v13500_v35 }
 0xa20   : > { %4630 = vmatpush.bf16.msra.mxu1 %v10391_v42 }
 0xa21   : > { %v4390_v13 = vmul.f32 %v13517_v26, %v4373_v41 }
 0xa23   : > { %v13613_v50 = vadd.f32 %v13525_v59, %v4390_v13 }
 0xa24   : > { %4631 = vmatpush.bf16.msra.mxu1 %v10387_v57 }
 0xa25   : > { %v4160_v16 = vpop.xlane.xlu0 %4159 }
 0xa26   : > { %v4182_v12 = vmul.f32 0.03125, %v4160_v16 }
 0xa28   : > { %v4198_v9 = vadd.f32 1e-05, %v4182_v12  ;;  %4632 = vmatpush.bf16.msra.mxu1 %v10383_v22 }
 0xa2a   : > { %11177 = vrsqrt.f32 %v4198_v9  ;;  %vm4301_vm1 = vweird.f32 %v4198_v9 }
 0xa2c   : > { %4633 = vmatpush.bf16.msra.mxu1 %v10379_v58 }
 0xa30   : > { %v11178_v19 = vpop.eup %11177 }
 0xa31   : > { %v4296_v4 = vmul.f32 %v11178_v19, %v4198_v9  ;;  %vm4302_vm14 = vweird.f32 %v11178_v19 }
 0xa32   : > { %vm4303_vm2 = vmor %vm4301_vm1, %vm4302_vm14 }
 0xa33   : > { %v4297_v52 = vmul.f32 %v11178_v19, %v4296_v4 }
 0xa35   : > { %v4298_v31 = vmul.f32 0.5, %v4297_v52 }
 0xa37   : > { %v4299_v10 = vsub.f32 1.5, %v4298_v31 }
 0xa39   : > { %v4300_v45 = vmul.f32 %v11178_v19, %v4299_v10 }
 0xa3b   : > { %v4304_v29 = vsel %vm4303_vm2, %v11178_v19, %v4300_v45 }
 0xa3c   : > { %v4374_v54 = vmul.f32 %v4304_v29, %v13510_v53 }
 0xa3e   : > { %v4391_v38 = vmul.f32 %v13517_v26, %v4374_v54 }
 0xa40   : > { %v13616_v36 = vadd.f32 %v13525_v59, %v4391_v38 }
 0xa42   : > { %v4435_v25 = vpack.c.bf16 %v13616_v36, %v13613_v50 }
 0xa44   : > { %4516 = vmatmul.bf16.gmra.mxu0 %v4435_v25 }
 0xa45   : > { %v4497_v35 = vpop.f32.mrf.mxu0 }
 0xa46   : > { %v4498_v53 = vadd.f32 %v13623_v43, %v4497_v35 }
 0xa48   : > { %v4537_v1 = vmax.f32 %v4498_v53, 0.0 }
 0xa4d   : > { %v4499_v60 = vpop.f32.mrf.mxu0 }
 0xa4e   : > { %v4500_v20 = vadd.f32 %v13623_v43, %v4499_v60 }
 0xa50   : > { %v4538_v32 = vmax.f32 %v4500_v20, 0.0 }
 0xa52   : > { %v4569_v5 = vpack.c.bf16 %v4538_v32, %v4537_v1 }
 0xa54   : > { %4634 = vmatmul.bf16.vlgmr.msra.gmra.mxu1 %v4569_v5 }
 0xa5a   : > { %v4162_v2 = vpop.xlane.xlu1 %4161 }
 0xa5b   : > { %v4183_v49 = vmul.f32 0.03125, %v4162_v2 }
 0xa5d   : > { %v4199_v3 = vadd.f32 1e-05, %v4183_v49 }
 0xa5f   : > { %11179 = vrsqrt.f32 %v4199_v3  ;;  %vm4311_vm4 = vweird.f32 %v4199_v3 }
 0xa62   : > { %v4164_v0 = vpop.xlane.xlu2 %4163 }
 0xa63   : > { %v4184_v56 = vmul.f32 0.03125, %v4164_v0 }
 0xa65   : > { %v11180_v51 = vpop.eup %11179  ;;  %v4200_v16 = vadd.f32 1e-05, %v4184_v56 }
 0xa66   : > { %v4306_v42 = vmul.f32 %v11180_v51, %v4199_v3  ;;  %vm4312_vm3 = vweird.f32 %v11180_v51 }
 0xa67   : > { %11181 = vrsqrt.f32 %v4200_v16  ;;  %vm4313_vm5 = vmor %vm4311_vm4, %vm4312_vm3  ;;  %vm4321_vm7 = vweird.f32 %v4200_v16 }
 0xa68   : > { %v4307_v12 = vmul.f32 %v11180_v51, %v4306_v42 }
 0xa6a   : > { %v4308_v9 = vmul.f32 0.5, %v4307_v12  ;;  %v4166_v33 = vpop.xlane.xlu0 %4165 }
 0xa6b   : > { %v4185_v47 = vmul.f32 0.03125, %v4166_v33 }
 0xa6c   : > { %v4309_v14 = vsub.f32 1.5, %v4308_v9 }
 0xa6d   : > { %v11182_v57 = vpop.eup %11181  ;;  %v4201_v17 = vadd.f32 1e-05, %v4185_v47 }
 0xa6e   : > { %v4310_v23 = vmul.f32 %v11180_v51, %v4309_v14  ;;  %v4316_v24 = vmul.f32 %v11182_v57, %v4200_v16  ;;  %vm4322_vm6 = vweird.f32 %v11182_v57 }
 0xa6f   : > { %11183 = vrsqrt.f32 %v4201_v17  ;;  %vm4323_vm8 = vmor %vm4321_vm7, %vm4322_vm6  ;;  %vm4331_vm10 = vweird.f32 %v4201_v17 }
 0xa70   : > { %v4317_v22 = vmul.f32 %v11182_v57, %v4316_v24  ;;  %v4314_v19 = vsel %vm4313_vm5, %v11180_v51, %v4310_v23 }
 0xa71   : > { %v4375_v11 = vmul.f32 %v4314_v19, %v13538_v30 }
 0xa72   : > { %v4318_v6 = vmul.f32 0.5, %v4317_v22  ;;  %v4168_v46 = vpop.xlane.xlu1 %4167 }
 0xa73   : > { %v4186_v8 = vmul.f32 0.03125, %v4168_v46  ;;  %v4392_v13 = vmul.f32 %v13517_v26, %v4375_v11 }
 0xa74   : > { %v4319_v4 = vsub.f32 1.5, %v4318_v6 }
 0xa75   : > { %v11184_v58 = vpop.eup %11183  ;;  %v4202_v52 = vadd.f32 1e-05, %v4186_v8  ;;  %v13633_v32 = vadd.f32 %v13525_v59, %v4392_v13 }
 0xa76   : > { %v4320_v31 = vmul.f32 %v11182_v57, %v4319_v4  ;;  %v4326_v10 = vmul.f32 %v11184_v58, %v4201_v17  ;;  %v4502_v41 = vpop.f32.mrf.mxu0  ;;  %vm4332_vm9 = vweird.f32 %v11184_v58 }
 0xa77   : > { %11185 = vrsqrt.f32 %v4202_v52  ;;  %v4503_v30 = vadd.f32 %v13623_v43, %v4502_v41  ;;  %vm4333_vm11 = vmor %vm4331_vm10, %vm4332_vm9  ;;  %vm4341_vm13 = vweird.f32 %v4202_v52 }
 0xa78   : > { %v4324_v45 = vsel %vm4323_vm8, %v11182_v57, %v4320_v31  ;;  %v4327_v29 = vmul.f32 %v11184_v58, %v4326_v10 }
 0xa79   : > { %v4376_v54 = vmul.f32 %v4324_v45, %v13544_v39  ;;  %v4539_v51 = vmax.f32 %v4503_v30, 0.0 }
 0xa7a   : > { %v4328_v38 = vmul.f32 0.5, %v4327_v29  ;;  %v4170_v25 = vpop.xlane.xlu2 %4169 }
 0xa7b   : > { %v4187_v35 = vmul.f32 0.03125, %v4170_v25  ;;  %v4393_v53 = vmul.f32 %v13517_v26, %v4376_v54 }
 0xa7c   : > { %v4329_v60 = vsub.f32 1.5, %v4328_v38 }
 0xa7d   : > { %v11186_v20 = vpop.eup %11185  ;;  %v4203_v1 = vadd.f32 1e-05, %v4187_v35  ;;  %v13636_v5 = vadd.f32 %v13525_v59, %v4393_v53 }
 0xa7e   : > { %v4330_v2 = vmul.f32 %v11184_v58, %v4329_v60  ;;  %v4336_v39 = vmul.f32 %v11186_v20, %v4202_v52  ;;  %v4504_v49 = vpop.f32.mrf.mxu0  ;;  %vm4342_vm12 = vweird.f32 %v11186_v20 }
 0xa7f   : > { %11187 = vrsqrt.f32 %v4203_v1  ;;  %v4505_v3 = vadd.f32 %v13623_v43, %v4504_v49  ;;  %v4436_v0 = vpack.c.bf16 %v13636_v5, %v13633_v32  ;;  %vm4343_vm14 = vmor %vm4341_vm13, %vm4342_vm12  ;;  %vm4351_vm2 = vweird.f32 %v4203_v1 }
 0xa80   : > { %v4337_v56 = vmul.f32 %v11186_v20, %v4336_v39  ;;  %v4334_v42 = vsel %vm4333_vm11, %v11184_v58, %v4330_v2 }
 0xa81   : > { %v4540_v16 = vmax.f32 %v4505_v3, 0.0  ;;  %4521 = vmatmul.bf16.gmra.mxu0 %v4436_v0  ;;  %v4377_v24 = vmul.f32 %v4334_v42, %v13553_v55 }
 0xa82   : > { %v4338_v12 = vmul.f32 0.5, %v4337_v56  ;;  %v4172_v9 = vpop.xlane.xlu0 %4171 }
 0xa83   : > { %v4188_v33 = vmul.f32 0.03125, %v4172_v9  ;;  %v4570_v47 = vpack.c.bf16 %v4540_v16, %v4539_v51  ;;  %v4394_v4 = vmul.f32 %v13517_v26, %v4377_v24 }
 0xa84   : > { %v4339_v14 = vsub.f32 1.5, %v4338_v12 }
 0xa85   : > { %v11188_v57 = vpop.eup %11187  ;;  %v4204_v23 = vadd.f32 1e-05, %v4188_v33  ;;  %4639 = vmatmul.bf16.gmra.mxu1 %v4570_v47  ;;  %v13647_v55 = vadd.f32 %v13525_v59, %v4394_v4 }
 0xa86   : > { %v4340_v22 = vmul.f32 %v11186_v20, %v4339_v14  ;;  %v4346_v17 = vmul.f32 %v11188_v57, %v4203_v1  ;;  %v4507_v19 = vpop.f32.mrf.mxu0  ;;  %vm4352_vm1 = vweird.f32 %v11188_v57 }
 0xa87   : > { %11189 = vrsqrt.f32 %v4204_v23  ;;  %v4508_v41 = vadd.f32 %v13623_v43, %v4507_v19  ;;  %vm4353_vm3 = vmor %vm4351_vm2, %vm4352_vm1  ;;  %vm4361_vm5 = vweird.f32 %v4204_v23 }
 0xa88   : > { %v4344_v6 = vsel %vm4343_vm14, %v11186_v20, %v4340_v22  ;;  %v4347_v46 = vmul.f32 %v11188_v57, %v4346_v17  ;;  %v13674_v17 = vld [vmem:[%s16285_s2 + $0x7] ss:$0 sm:$0xff] }
 0xa89   : > { %v4378_v8 = vmul.f32 %v4344_v6, %v13568_v34  ;;  %v4541_v25 = vmax.f32 %v4508_v41, 0.0 }
 0xa8a   : > { %v4348_v58 = vmul.f32 0.5, %v4347_v46 }
 0xa8b   : > { %v4395_v11 = vmul.f32 %v13517_v26, %v4378_v8 }
 0xa8c   : > { %v4349_v31 = vsub.f32 1.5, %v4348_v58 }
 0xa8d   : > { %v11190_v10 = vpop.eup %11189  ;;  %v13650_v52 = vadd.f32 %v13525_v59, %v4395_v11 }
 0xa8e   : > { %v4350_v45 = vmul.f32 %v11188_v57, %v4349_v31  ;;  %v4356_v29 = vmul.f32 %v11190_v10, %v4204_v23  ;;  %v4509_v54 = vpop.f32.mrf.mxu0  ;;  %vm4362_vm4 = vweird.f32 %v11190_v10 }
 0xa8f   : > { %v4510_v34 = vadd.f32 %v13623_v43, %v4509_v54  ;;  %v4437_v13 = vpack.c.bf16 %v13650_v52, %v13647_v55  ;;  %vm4363_vm6 = vmor %vm4361_vm5, %vm4362_vm4 }
 0xa90   : > { %v4357_v38 = vmul.f32 %v11190_v10, %v4356_v29  ;;  %v4354_v53 = vsel %vm4353_vm3, %v11188_v57, %v4350_v45 }
 0xa91   : > { %v4542_v35 = vmax.f32 %v4510_v34, 0.0  ;;  %4526 = vmatmul.bf16.gmra.mxu0 %v4437_v13  ;;  %v4379_v2 = vmul.f32 %v4354_v53, %v13577_v37 }
 0xa92   : > { %v4358_v60 = vmul.f32 0.5, %v4357_v38 }
 0xa93   : > { %v4571_v20 = vpack.c.bf16 %v4542_v35, %v4541_v25  ;;  %v4396_v0 = vmul.f32 %v13517_v26, %v4379_v2 }
 0xa94   : > { %v4359_v30 = vsub.f32 1.5, %v4358_v60 }
 0xa95   : > { %4644 = vmatmul.bf16.gmra.mxu1 %v4571_v20  ;;  %v13661_v16 = vadd.f32 %v13525_v59, %v4396_v0 }
 0xa96   : > { %v4360_v39 = vmul.f32 %v11190_v10, %v4359_v30  ;;  %v4512_v49 = vpop.f32.mrf.mxu0 }
 0xa97   : > { %v4513_v51 = vadd.f32 %v13623_v43, %v4512_v49 }
 0xa98   : > { %v4364_v3 = vsel %vm4363_vm6, %v11190_v10, %v4360_v39 }
 0xa99   : > { %v4380_v1 = vmul.f32 %v4364_v3, %v13592_v15  ;;  %v4543_v33 = vmax.f32 %v4513_v51, 0.0 }
 0xa9b   : > { %v4397_v56 = vmul.f32 %v13517_v26, %v4380_v1 }
 0xa9d   : > { %v13664_v42 = vadd.f32 %v13525_v59, %v4397_v56 }
 0xa9e   : > { %v4514_v37 = vpop.f32.mrf.mxu0 }
 0xa9f   : > { %v4515_v12 = vadd.f32 %v13623_v43, %v4514_v37  ;;  %v4438_v9 = vpack.c.bf16 %v13664_v42, %v13661_v16 }
 0xaa1   : > { %v4544_v15 = vmax.f32 %v4515_v12, 0.0  ;;  %4531 = vmatmul.bf16.gmra.mxu0 %v4438_v9 }
 0xaa3   : > { %v4572_v47 = vpack.c.bf16 %v4544_v15, %v4543_v33 }
 0xaa5   : > { %4649 = vmatmul.bf16.gmra.mxu1 %v4572_v47 }
 0xac1   : > { %v4517_v26 = vpop.f32.mrf.mxu0 }
 0xac2   : > { %v4518_v14 = vadd.f32 %v13623_v43, %v4517_v26 }
 0xac4   : > { %v4545_v24 = vmax.f32 %v4518_v14, 0.0 }
 0xac9   : > { %v4519_v57 = vpop.f32.mrf.mxu0 }
 0xaca   : > { %v4520_v23 = vadd.f32 %v13623_v43, %v4519_v57 }
 0xacc   : > { %v4546_v59 = vmax.f32 %v4520_v23, 0.0 }
 0xace   : > { %v4573_v22 = vpack.c.bf16 %v4546_v59, %v4545_v24 }
 0xad0   : > { %4654 = vmatmul.bf16.gmra.mxu1 %v4573_v22 }
 0xad1   : > { %v4635_v19 = vpop.f32.mrf.mxu1 }
 0xad2   : > { %v4636_v6 = vadd.f32 %v13674_v17, %v4635_v19 }
 0xad4   : > { %v4675_v46 = vadd.f32 %v4636_v6, %v13529_v28 }
 0xad6   : > { %4691 = vadd.xlane.f32.xlu1 %v4675_v46 }
 0xad9   : > { %v4637_v8 = vpop.f32.mrf.mxu1 }
 0xada   : > { %v4638_v4 = vadd.f32 %v13674_v17, %v4637_v8 }
 0xadc   : > { %v13680_v58 = vadd.f32 %v4638_v4, %v13532_v62 }
 0xade   : > { %4693 = vadd.xlane.f32.xlu2 %v13680_v58 }
 0xafe   : > { %v4522_v11 = vpop.f32.mrf.mxu0 }
 0xaff   : > { %v4523_v41 = vadd.f32 %v13623_v43, %v4522_v11 }
 0xb01   : > { %v4547_v54 = vmax.f32 %v4523_v41, 0.0 }
 0xb02   : > { %v4640_v31 = vpop.f32.mrf.mxu1 }
 0xb03   : > { %v4641_v10 = vadd.f32 %v13674_v17, %v4640_v31 }
 0xb05   : > { %v13686_v45 = vadd.f32 %v4641_v10, %v13559_v40 }
 0xb06   : > { %v4524_v29 = vpop.f32.mrf.mxu0 }
 0xb07   : > { %v4525_v28 = vadd.f32 %v13623_v43, %v4524_v29  ;;  %4695 = vadd.xlane.f32.xlu0 %v13686_v45 }
 0xb09   : > { %v4548_v34 = vmax.f32 %v4525_v28, 0.0 }
 0xb0a   : > { %v4642_v62 = vpop.f32.mrf.mxu1 }
 0xb0b   : > { %v4643_v13 = vadd.f32 %v13674_v17, %v4642_v62  ;;  %v4574_v38 = vpack.c.bf16 %v4548_v34, %v4547_v54 }
 0xb0d   : > { %v13692_v25 = vadd.f32 %v4643_v13, %v13562_v7  ;;  %4659 = vmatmul.bf16.gmra.mxu1 %v4574_v38 }
 0xb0e   : > { %v4527_v35 = vpop.f32.mrf.mxu0 }
 0xb0f   : > { %4697 = vadd.xlane.f32.xlu1 %v13692_v25  ;;  %v4528_v60 = vadd.f32 %v13623_v43, %v4527_v35 }
 0xb11   : > { %v4549_v39 = vmax.f32 %v4528_v60, 0.0 }
 0xb12   : > { %v4645_v40 = vpop.f32.mrf.mxu1 }
 0xb13   : > { %v4646_v53 = vadd.f32 %v13674_v17, %v4645_v40 }
 0xb15   : > { %v13698_v20 = vadd.f32 %v4646_v53, %v13583_v48 }
 0xb16   : > { %v4529_v30 = vpop.f32.mrf.mxu0 }
 0xb17   : > { %v4530_v2 = vadd.f32 %v13623_v43, %v4529_v30  ;;  %4699 = vadd.xlane.f32.xlu2 %v13698_v20 }
 0xb19   : > { %v4550_v7 = vmax.f32 %v4530_v2, 0.0 }
 0xb1a   : > { %v4647_v49 = vpop.f32.mrf.mxu1 }
 0xb1b   : > { %v4648_v3 = vadd.f32 %v13674_v17, %v4647_v49  ;;  %v4575_v1 = vpack.c.bf16 %v4550_v7, %v4549_v39 }
 0xb1d   : > { %v13704_v0 = vadd.f32 %v4648_v3, %v13586_v63  ;;  %4664 = vmatmul.bf16.gmra.mxu1 %v4575_v1 }
 0xb1e   : > { %v4532_v56 = vpop.f32.mrf.mxu0 }
 0xb1f   : > { %4701 = vadd.xlane.f32.xlu0 %v13704_v0  ;;  %v4533_v37 = vadd.f32 %v13623_v43, %v4532_v56 }
 0xb21   : > { %v4551_v15 = vmax.f32 %v4533_v37, 0.0 }
 0xb22   : > { %v4650_v48 = vpop.f32.mrf.mxu1 }
 0xb23   : > { %v4651_v51 = vadd.f32 %v13674_v17, %v4650_v48 }
 0xb25   : > { %v13710_v12 = vadd.f32 %v4651_v51, %v13601_v44 }
 0xb26   : > { %v4534_v9 = vpop.f32.mrf.mxu0 }
 0xb27   : > { %v4535_v33 = vadd.f32 %v13623_v43, %v4534_v9  ;;  %4703 = vadd.xlane.f32.xlu1 %v13710_v12 }
 0xb29   : > { %v4552_v63 = vmax.f32 %v4535_v33, 0.0 }
 0xb2a   : > { %v4652_v47 = vpop.f32.mrf.mxu1 }
 0xb2b   : > { %v4653_v26 = vadd.f32 %v13674_v17, %v4652_v47  ;;  %v4576_v14 = vpack.c.bf16 %v4552_v63, %v4551_v15 }
 0xb2d   : > { %v13716_v57 = vadd.f32 %v4653_v26, %v13604_v18  ;;  %4669 = vmatmul.bf16.gmra.mxu1 %v4576_v14 }
 0xb2f   : > { %4705 = vadd.xlane.f32.xlu2 %v13716_v57 }
 0xb49   : > { %v4692_v23 = vpop.xlane.xlu1 %4691 }
 0xb4a   : > { %v4723_v44 = vmul.f32 0.03125, %v4692_v23 }
 0xb4c   : > { %v4739_v24 = vsub.f32 %v4675_v46, %v4723_v44 }
 0xb4d   : > { %v4655_v59 = vpop.f32.mrf.mxu1 }
 0xb4e   : > { %v13720_v43 = vmul.f32 %v16656_v61, %v4739_v24  ;;  %v4656_v22 = vadd.f32 %v13674_v17, %v4655_v59 }
 0xb50   : > { %v13724_v19 = vadd.f32 %v4656_v22, %v13613_v50  ;;  %v4771_v6 = vmul.f32 %v13720_v43, %v13720_v43  ;;  %v10438_v22 = vld [vmem:[#allocation2 + $0x2f0] sm:$0xf] }
 0xb51   : > { %v4694_v18 = vpop.xlane.xlu2 %4693 }
 0xb52   : > { %v4724_v8 = vmul.f32 0.03125, %v4694_v18  ;;  %4707 = vadd.xlane.f32.xlu2 %v13724_v19  ;;  %4787 = vadd.xlane.f32.xlu0 %v4771_v6  ;;  %v10756_v6 = vld [vmem:[#allocation2 + $0x320] sm:$0xf0]  ;;  %v10470_v18 = vld [vmem:[#allocation2 + $0x2f4] sm:$0xf] }
 0xb54   : > { %v4740_v4 = vsub.f32 %v13680_v58, %v4724_v8  ;;  %v10764_v8 = vld [vmem:[#allocation2 + $0x324] sm:$0xf0] }
 0xb55   : > { %v4657_v46 = vpop.f32.mrf.mxu1 }
 0xb56   : > { %v13731_v11 = vmul.f32 %v16656_v61, %v4740_v4  ;;  %v4658_v31 = vadd.f32 %v13674_v17, %v4657_v46  ;;  %v10502_v4 = vld [vmem:[#allocation2 + $0x2f8] sm:$0xf]  ;;  %v10772_v46 = vld [vmem:[#allocation2 + $0x328] sm:$0xf0] }
 0xb58   : > { %v13735_v10 = vadd.f32 %v4658_v31, %v13616_v36  ;;  %v4772_v50 = vmul.f32 %v13731_v11, %v13731_v11  ;;  %v10471_v31 = vor.u32 %v10764_v8, %v10470_v18  ;;  %v10418_v18 = vld [vmem:[#allocation2 + $0xe8] sm:$0xf]  ;;  %v10450_v8 = vld [vmem:[#allocation2 + $0xec] sm:$0xf] }
 0xb5a   : > { %4789 = vadd.xlane.f32.xlu1 %v4772_v50  ;;  %4709 = vadd.xlane.f32.xlu0 %v13735_v10  ;;  %v10503_v50 = vor.u32 %v10772_v46, %v10502_v4  ;;  %v10759_v46 = vld [vmem:[#allocation2 + $0x11c] sm:$0xf0] }
 0xb5b   : > { %5258 = vmatpush.bf16.msrb.mxu3 %v10471_v31  ;;  %v10482_v31 = vld [vmem:[#allocation2 + $0xf0] sm:$0xf] }
 0xb5c   : > { %5372 = vmatpush.bf16.msrb.mxu0 %v10503_v50  ;;  %v10767_v50 = vld [vmem:[#allocation2 + $0x120] sm:$0xf0] }
 0xb7a   : > { %v4696_v41 = vpop.xlane.xlu0 %4695 }
 0xb7b   : > { %v4725_v29 = vmul.f32 0.03125, %v4696_v41  ;;  %v10434_v41 = vld [vmem:[#allocation2 + $0x288] sm:$0xf] }
 0xb7d   : > { %v4741_v28 = vsub.f32 %v13686_v45, %v4725_v29  ;;  %v10755_v29 = vld [vmem:[#allocation2 + $0x2b8] sm:$0xf0] }
 0xb7f   : > { %v13742_v58 = vmul.f32 %v16656_v61, %v4741_v28  ;;  %v10466_v28 = vld [vmem:[#allocation2 + $0x28c] sm:$0xf] }
 0xb81   : > { %v4773_v54 = vmul.f32 %v13742_v58, %v13742_v58 }
 0xb82   : > { %v4698_v34 = vpop.xlane.xlu1 %4697 }
 0xb83   : > { %v4726_v62 = vmul.f32 0.03125, %v4698_v34  ;;  %4791 = vadd.xlane.f32.xlu1 %v4773_v54  ;;  %v10435_v54 = vor.u32 %v10755_v29, %v10434_v41  ;;  %v10763_v34 = vld [vmem:[#allocation2 + $0x2bc] sm:$0xf0]  ;;  %v10451_v41 = vor.u32 %v10759_v46, %v10450_v8  ;;  %v10483_v29 = vor.u32 %v10767_v50, %v10482_v31 }
 0xb85   : > { %v4742_v36 = vsub.f32 %v13692_v25, %v4726_v62  ;;  %v10498_v62 = vld [vmem:[#allocation2 + $0x290] sm:$0xf] }
 0xb87   : > { %v13748_v13 = vmul.f32 %v16656_v61, %v4742_v36  ;;  %v10771_v36 = vld [vmem:[#allocation2 + $0x2c0] sm:$0xf0] }
 0xb89   : > { %v4774_v38 = vmul.f32 %v13748_v13, %v13748_v13 }
 0xb8a   : > { %v4700_v35 = vpop.xlane.xlu2 %4699  ;;  %v4660_v40 = vpop.f32.mrf.mxu1 }
 0xb8b   : > { %v4727_v45 = vmul.f32 0.03125, %v4700_v35  ;;  %v4661_v53 = vadd.f32 %v13674_v17, %v4660_v40  ;;  %4793 = vadd.xlane.f32.xlu2 %v4774_v38  ;;  %v10467_v38 = vor.u32 %v10763_v34, %v10466_v28  ;;  %v10499_v35 = vor.u32 %v10771_v36, %v10498_v62  ;;  %v10414_v28 = vld [vmem:[#allocation2 + $0x80] sm:$0xf]  ;;  %v10446_v34 = vld [vmem:[#allocation2 + $0x84] sm:$0xf] }
 0xb8d   : > { %v4743_v60 = vsub.f32 %v13698_v20, %v4727_v45  ;;  %v13755_v30 = vadd.f32 %v4661_v53, %v13633_v32  ;;  %5259 = vmatpush.bf16.msrb.mxu3 %v10467_v38  ;;  %5373 = vmatpush.bf16.msrb.mxu0 %v10499_v35  ;;  %v10430_v45 = vld [vmem:[#allocation2 + $0x220] sm:$0xf]  ;;  %v10754_v53 = vld [vmem:[#allocation2 + $0x250] sm:$0xf0]  ;;  %v10758_v38 = vld [vmem:[#allocation2 + $0xb4] sm:$0xf0] }
 0xb8e   : > { %v10478_v35 = vld [vmem:[#allocation2 + $0x88] sm:$0xf] }
 0xb8f   : > { %v13758_v2 = vmul.f32 %v16656_v61, %v4743_v60  ;;  %4711 = vadd.xlane.f32.xlu0 %v13755_v30  ;;  %v10462_v60 = vld [vmem:[#allocation2 + $0x224] sm:$0xf] }
 0xb91   : > { %v4775_v25 = vmul.f32 %v13758_v2, %v13758_v2 }
 0xb92   : > { %v4702_v39 = vpop.xlane.xlu0 %4701  ;;  %v4662_v7 = vpop.f32.mrf.mxu1 }
 0xb93   : > { %v4728_v49 = vmul.f32 0.03125, %v4702_v39  ;;  %v4663_v3 = vadd.f32 %v13674_v17, %v4662_v7  ;;  %4795 = vadd.xlane.f32.xlu2 %v4775_v25  ;;  %v10431_v39 = vor.u32 %v10754_v53, %v10430_v45  ;;  %v10762_v7 = vld [vmem:[#allocation2 + $0x254] sm:$0xf0] }
 0xb95   : > { %v4744_v1 = vsub.f32 %v13704_v0, %v4728_v49  ;;  %v13766_v20 = vadd.f32 %v4663_v3, %v13636_v5  ;;  %v10494_v49 = vld [vmem:[#allocation2 + $0x228] sm:$0xf]  ;;  %v10770_v3 = vld [vmem:[#allocation2 + $0x258] sm:$0xf0] }
 0xb97   : > { %v13769_v32 = vmul.f32 %v16656_v61, %v4744_v1  ;;  %4713 = vadd.xlane.f32.xlu1 %v13766_v20  ;;  %v10463_v1 = vor.u32 %v10762_v7, %v10462_v60  ;;  %v10447_v60 = vor.u32 %v10758_v38, %v10446_v34  ;;  %v10410_v7 = vld [vmem:[#allocation2 + $0x18] sm:$0xf] }
 0xb99   : > { %v4776_v56 = vmul.f32 %v13769_v32, %v13769_v32  ;;  %5260 = vmatpush.bf16.msrb.mxu3 %v10463_v1  ;;  %v10442_v1 = vld [vmem:[#allocation2 + $0x1c] sm:$0xf] }
 0xb9a   : > { %v4665_v48 = vpop.f32.mrf.mxu1  ;;  %v4704_v51 = vpop.xlane.xlu1 %4703 }
 0xb9b   : > { %v4666_v37 = vadd.f32 %v13674_v17, %v4665_v48  ;;  %v4729_v9 = vmul.f32 0.03125, %v4704_v51  ;;  %4797 = vadd.xlane.f32.xlu0 %v4776_v56  ;;  %v10495_v56 = vor.u32 %v10770_v3, %v10494_v49  ;;  %v10753_v48 = vld [vmem:[#allocation2 + $0x1e8] sm:$0xf0]  ;;  %v10458_v51 = vld [vmem:[#allocation2 + $0x1bc] sm:$0xf] }
 0xb9c   : > { %v10749_v49 = vld [vmem:[#allocation2 + $0x48] sm:$0xf0] }
 0xb9d   : > { %v13776_v33 = vadd.f32 %v4666_v37, %v13647_v55  ;;  %v4745_v5 = vsub.f32 %v13710_v12, %v4729_v9  ;;  %5374 = vmatpush.bf16.msrb.mxu0 %v10495_v56  ;;  %v10761_v9 = vld [vmem:[#allocation2 + $0x1ec] sm:$0xf0]  ;;  %v10411_v3 = vor.u32 %v10749_v49, %v10410_v7 }
 0xb9e   : > { %v10757_v56 = vld [vmem:[#allocation2 + $0x4c] sm:$0xf0] }
 0xb9f   : > { %v13780_v0 = vmul.f32 %v16656_v61, %v4745_v5  ;;  %4715 = vadd.xlane.f32.xlu1 %v13776_v33  ;;  %v10490_v5 = vld [vmem:[#allocation2 + $0x1c0] sm:$0xf] }
 0xba1   : > { %v4777_v15 = vmul.f32 %v13780_v0, %v13780_v0 }
 0xba2   : > { %v4706_v63 = vpop.xlane.xlu2 %4705  ;;  %v4667_v47 = vpop.f32.mrf.mxu1 }
 0xba3   : > { %v4730_v26 = vmul.f32 0.03125, %v4706_v63  ;;  %v4668_v14 = vadd.f32 %v13674_v17, %v4667_v47  ;;  %4799 = vadd.xlane.f32.xlu0 %v4777_v15  ;;  %v10769_v15 = vld [vmem:[#allocation2 + $0x1f0] sm:$0xf0]  ;;  %v10422_v47 = vld [vmem:[#allocation2 + $0x150] sm:$0xf] }
 0xba4   : > { %v10491_v63 = vor.u32 %v10769_v15, %v10490_v5 }
 0xba5   : > { %v4746_v23 = vsub.f32 %v13716_v57, %v4730_v26  ;;  %v13788_v55 = vadd.f32 %v4668_v14, %v13650_v52  ;;  %v10439_v52 = vor.u32 %v10756_v6, %v10438_v22  ;;  %v10752_v26 = vld [vmem:[#allocation2 + $0x180] sm:$0xf0]  ;;  %v10454_v14 = vld [vmem:[#allocation2 + $0x154] sm:$0xf] }
 0xba6   : > { %5375 = vmatpush.bf16.msrb.mxu0 %v10491_v63 }
 0xba7   : > { %v13791_v12 = vmul.f32 %v16656_v61, %v4746_v23  ;;  %4717 = vadd.xlane.f32.xlu2 %v13788_v55  ;;  %5144 = vmatpush.bf16.msrb.mxu2 %v10439_v52  ;;  %v10423_v23 = vor.u32 %v10752_v26, %v10422_v47  ;;  %v10751_v52 = vld [vmem:[#allocation2 + $0x118] sm:$0xf0] }
 0xba8   : > { %v10419_v4 = vor.u32 %v10751_v52, %v10418_v18 }
 0xba9   : > { %v4778_v44 = vmul.f32 %v13791_v12, %v13791_v12 }
 0xbaa   : > { %v4670_v24 = vpop.f32.mrf.mxu1 }
 0xbab   : > { %v4671_v59 = vadd.f32 %v13674_v17, %v4670_v24  ;;  %4801 = vadd.xlane.f32.xlu1 %v4778_v44  ;;  %5145 = vmatpush.bf16.msrb.mxu2 %v10435_v54  ;;  %v10760_v44 = vld [vmem:[#allocation2 + $0x184] sm:$0xf0]  ;;  %v10486_v24 = vld [vmem:[#allocation2 + $0x158] sm:$0xf]  ;;  %v10750_v54 = vld [vmem:[#allocation2 + $0xb0] sm:$0xf0] }
 0xbac   : > { %v10455_v22 = vor.u32 %v10760_v44, %v10454_v14 }
 0xbad   : > { %v13798_v57 = vadd.f32 %v4671_v59, %v13661_v16  ;;  %v10768_v59 = vld [vmem:[#allocation2 + $0x188] sm:$0xf0] }
 0xbae   : > { %v10487_v6 = vor.u32 %v10768_v59, %v10486_v24 }
 0xbaf   : > { %4719 = vadd.xlane.f32.xlu2 %v13798_v57  ;;  %5146 = vmatpush.bf16.msrb.mxu2 %v10431_v39 }
 0xbb0   : > { %5376 = vmatpush.bf16.msrb.mxu0 %v10487_v6 }
 0xbb2   : > { %v4672_v16 = vpop.f32.mrf.mxu1 }
 0xbb3   : > { %v4673_v40 = vadd.f32 %v13674_v17, %v4672_v16  ;;  %v10426_v17 = vld [vmem:[#allocation2 + $0x1b8] sm:$0xf]  ;;  %v10415_v16 = vor.u32 %v10750_v54, %v10414_v28 }
 0xbb4   : > { %v10427_v37 = vor.u32 %v10753_v48, %v10426_v17  ;;  %5377 = vmatpush.bf16.msrb.mxu0 %v10483_v29  ;;  %v10474_v17 = vld [vmem:[#allocation2 + $0x20] sm:$0xf]  ;;  %v13821_v29 = vld [vmem:[%s16285_s2 + $0x8] ss:$0 sm:$0xff] }
 0xbb5   : > { %v13803_v25 = vadd.f32 %v4673_v40, %v13664_v42  ;;  %v10459_v42 = vor.u32 %v10761_v9, %v10458_v51  ;;  %v10766_v40 = vld [vmem:[#allocation2 + $0xb8] sm:$0xf0]  ;;  %v10765_v9 = vld [vmem:[#allocation2 + $0x50] sm:$0xf0] }
 0xbb6   : > { %5147 = vmatpush.bf16.msrb.mxu2 %v10427_v37  ;;  %v10479_v39 = vor.u32 %v10766_v40, %v10478_v35  ;;  %v10443_v37 = vor.u32 %v10757_v56, %v10442_v1  ;;  %v10475_v5 = vor.u32 %v10765_v9, %v10474_v17 }
 0xbb7   : > { %4721 = vadd.xlane.f32.xlu0 %v13803_v25  ;;  %5261 = vmatpush.bf16.msrb.mxu3 %v10459_v42 }
 0xbb8   : > { %5378 = vmatpush.bf16.msrb.mxu0 %v10479_v39 }
 0xbba   : > { %5148 = vmatpush.bf16.msrb.mxu2 %v10423_v23 }
 0xbbb   : > { %5262 = vmatpush.bf16.msrb.mxu3 %v10455_v22 }
 0xbbc   : > { %5379 = vmatpush.bf16.msrb.mxu0 %v10475_v5 }
 0xbbe   : > { %5149 = vmatpush.bf16.msrb.mxu2 %v10419_v4 }
 0xbbf   : > { %5263 = vmatpush.bf16.msrb.mxu3 %v10451_v41 }
 0xbc2   : > { %5150 = vmatpush.bf16.msrb.mxu2 %v10415_v16  ;;  %v13829_v16 = vld [vmem:[%s16285_s2 + $0x9] ss:$0 sm:$0xff] }
 0xbc3   : > { %5264 = vmatpush.bf16.msrb.mxu3 %v10447_v60 }
 0xbc5   : > { %v4708_v62 = vpop.xlane.xlu2 %4707  ;;  %v4788_v36 = vpop.xlane.xlu0 %4787 }
 0xbc6   : > { %v4731_v45 = vmul.f32 0.03125, %v4708_v62  ;;  %v4819_v53 = vmul.f32 0.03125, %v4788_v36  ;;  %5151 = vmatpush.bf16.msrb.mxu2 %v10411_v3 }
 0xbc7   : > { %5265 = vmatpush.bf16.msrb.mxu3 %v10443_v37 }
 0xbc8   : > { %v4747_v48 = vsub.f32 %v13724_v19, %v4731_v45  ;;  %v4835_v51 = vadd.f32 1e-05, %v4819_v53 }
 0xbca   : > { %v13808_v15 = vmul.f32 %v16656_v61, %v4747_v48  ;;  %11191 = vrsqrt.f32 %v4835_v51  ;;  %vm4857_vm8 = vweird.f32 %v4835_v51 }
 0xbcc   : > { %v4779_v42 = vmul.f32 %v13808_v15, %v13808_v15 }
 0xbcd   : > { %v4710_v63 = vpop.xlane.xlu0 %4709  ;;  %v4790_v47 = vpop.xlane.xlu1 %4789 }
 0xbce   : > { %v4732_v26 = vmul.f32 0.03125, %v4710_v63  ;;  %v4820_v19 = vmul.f32 0.03125, %v4790_v47  ;;  %4803 = vadd.xlane.f32.xlu1 %v4779_v42 }
 0xbd0   : > { %v11192_v14 = vpop.eup %11191  ;;  %v4748_v23 = vsub.f32 %v13735_v10, %v4732_v26  ;;  %v4836_v44 = vadd.f32 1e-05, %v4820_v19 }
 0xbd1   : > { %v4852_v24 = vmul.f32 %v11192_v14, %v4835_v51  ;;  %vm4858_vm7 = vweird.f32 %v11192_v14 }
 0xbd2   : > { %v13814_v59 = vmul.f32 %v16656_v61, %v4748_v23  ;;  %11193 = vrsqrt.f32 %v4836_v44  ;;  %vm4859_vm9 = vmor %vm4857_vm8, %vm4858_vm7  ;;  %vm4867_vm11 = vweird.f32 %v4836_v44 }
 0xbd3   : > { %v4853_v22 = vmul.f32 %v11192_v14, %v4852_v24 }
 0xbd4   : > { %v4780_v6 = vmul.f32 %v13814_v59, %v13814_v59 }
 0xbd5   : > { %v4854_v18 = vmul.f32 0.5, %v4853_v22 }
 0xbd6   : > { %4805 = vadd.xlane.f32.xlu2 %v4780_v6 }
 0xbd7   : > { %v4855_v52 = vsub.f32 1.5, %v4854_v18 }
 0xbd8   : > { %v11194_v8 = vpop.eup %11193 }
 0xbd9   : > { %v4856_v4 = vmul.f32 %v11192_v14, %v4855_v52  ;;  %v4862_v46 = vmul.f32 %v11194_v8, %v4836_v44  ;;  %vm4868_vm10 = vweird.f32 %v11194_v8 }
 0xbda   : > { %vm4869_vm12 = vmor %vm4867_vm11, %vm4868_vm10 }
 0xbdb   : > { %v4863_v31 = vmul.f32 %v11194_v8, %v4862_v46  ;;  %v4860_v10 = vsel %vm4859_vm9, %v11192_v14, %v4856_v4 }
 0xbdc   : > { %v5011_v28 = vmul.f32 %v4860_v10, %v13720_v43 }
 0xbdd   : > { %v4864_v50 = vmul.f32 0.5, %v4863_v31 }
 0xbde   : > { %v5028_v62 = vmul.f32 %v13821_v29, %v5011_v28 }
 0xbdf   : > { %v4865_v41 = vsub.f32 1.5, %v4864_v50 }
 0xbe0   : > { %v13833_v35 = vadd.f32 %v13829_v16, %v5028_v62 }
 0xbe1   : > { %v4866_v54 = vmul.f32 %v11194_v8, %v4865_v41 }
 0xbe2   : > { %16664 = vst [vmem:[#allocation40_spill] sm:$0xff] %v13833_v35 }
 0xbe3   : > { %v4870_v34 = vsel %vm4869_vm12, %v11194_v8, %v4866_v54 }
 0xbe4   : > { %v5012_v36 = vmul.f32 %v4870_v34, %v13731_v11 }
 0xbe6   : > { %v5029_v38 = vmul.f32 %v13821_v29, %v5012_v36 }
 0xbe8   : > { %v13836_v43 = vadd.f32 %v13829_v16, %v5029_v38 }
 0xbea   : > { %16665 = vst [vmem:[#allocation66_spill] sm:$0xff] %v13836_v43  ;;  %v5087_v40 = vpack.c.bf16 %v13836_v43, %v13833_v35 }
 0xbec   : > { %5152 = vmatmul.bf16.vlgmr.msrb.gmra.mxu2 %v5087_v40  ;;  %5266 = vmatmul.bf16.vlgmr.msrb.gmra.mxu3 %v5087_v40 }
 0xbed   : > { %5380 = vmatmul.bf16.vlgmr.msrb.gmra.mxu0 %v5087_v40 }
 0xbf6   : > { %v4792_v11 = vpop.xlane.xlu1 %4791 }
 0xbf7   : > { %v4821_v45 = vmul.f32 0.03125, %v4792_v11 }
 0xbf9   : > { %v4837_v53 = vadd.f32 1e-05, %v4821_v45 }
 0xbfb   : > { %11195 = vrsqrt.f32 %v4837_v53  ;;  %vm4877_vm14 = vweird.f32 %v4837_v53 }
 0xbfe   : > { %v4794_v60 = vpop.xlane.xlu2 %4793 }
 0xbff   : > { %v4822_v39 = vmul.f32 0.03125, %v4794_v60 }
 0xc01   : > { %v11196_v7 = vpop.eup %11195  ;;  %v4838_v49 = vadd.f32 1e-05, %v4822_v39 }
 0xc02   : > { %v4872_v3 = vmul.f32 %v11196_v7, %v4837_v53  ;;  %v4712_v1 = vpop.xlane.xlu0 %4711  ;;  %vm4878_vm13 = vweird.f32 %v11196_v7 }
 0xc03   : > { %11197 = vrsqrt.f32 %v4838_v49  ;;  %v4733_v56 = vmul.f32 0.03125, %v4712_v1  ;;  %vm4879_vm1 = vmor %vm4877_vm14, %vm4878_vm13  ;;  %vm4887_vm3 = vweird.f32 %v4838_v49 }
 0xc04   : > { %v4873_v17 = vmul.f32 %v11196_v7, %v4872_v3 }
 0xc05   : > { %v4749_v48 = vsub.f32 %v13755_v30, %v4733_v56 }
 0xc06   : > { %v4874_v51 = vmul.f32 0.5, %v4873_v17  ;;  %v4796_v37 = vpop.xlane.xlu2 %4795 }
 0xc07   : > { %v13842_v9 = vmul.f32 %v16656_v61, %v4749_v48  ;;  %v4823_v5 = vmul.f32 0.03125, %v4796_v37 }
 0xc08   : > { %v4875_v42 = vsub.f32 1.5, %v4874_v51 }
 0xc09   : > { %v11198_v63 = vpop.eup %11197  ;;  %v4839_v47 = vadd.f32 1e-05, %v4823_v5  ;;  %v4781_v26 = vmul.f32 %v13842_v9, %v13842_v9 }
 0xc0a   : > { %v4876_v19 = vmul.f32 %v11196_v7, %v4875_v42  ;;  %v4882_v14 = vmul.f32 %v11198_v63, %v4838_v49  ;;  %v4714_v23 = vpop.xlane.xlu1 %4713  ;;  %vm4888_vm2 = vweird.f32 %v11198_v63 }
 0xc0b   : > { %11199 = vrsqrt.f32 %v4839_v47  ;;  %v4734_v44 = vmul.f32 0.03125, %v4714_v23  ;;  %4807 = vadd.xlane.f32.xlu0 %v4781_v26  ;;  %vm4889_vm4 = vmor %vm4887_vm3, %vm4888_vm2  ;;  %vm4897_vm6 = vweird.f32 %v4839_v47 }
 0xc0c   : > { %v4883_v30 = vmul.f32 %v11198_v63, %v4882_v14  ;;  %v4880_v22 = vsel %vm4879_vm1, %v11196_v7, %v4876_v19 }
 0xc0d   : > { %v4750_v24 = vsub.f32 %v13766_v20, %v4734_v44  ;;  %v5013_v50 = vmul.f32 %v4880_v22, %v13742_v58 }
 0xc0e   : > { %v4884_v6 = vmul.f32 0.5, %v4883_v30  ;;  %v4798_v18 = vpop.xlane.xlu0 %4797 }
 0xc0f   : > { %v13848_v52 = vmul.f32 %v16656_v61, %v4750_v24  ;;  %v4824_v8 = vmul.f32 0.03125, %v4798_v18  ;;  %v5030_v40 = vmul.f32 %v13821_v29, %v5013_v50 }
 0xc10   : > { %v4885_v4 = vsub.f32 1.5, %v4884_v6 }
 0xc11   : > { %v11200_v46 = vpop.eup %11199  ;;  %v4840_v31 = vadd.f32 1e-05, %v4824_v8  ;;  %v4782_v10 = vmul.f32 %v13848_v52, %v13848_v52 }
 0xc12   : > { %v4886_v41 = vmul.f32 %v11198_v63, %v4885_v4  ;;  %v4892_v28 = vmul.f32 %v11200_v46, %v4839_v47  ;;  %v4716_v20 = vpop.xlane.xlu1 %4715  ;;  %vm4898_vm5 = vweird.f32 %v11200_v46 }
 0xc13   : > { %11201 = vrsqrt.f32 %v4840_v31  ;;  %v4735_v54 = vmul.f32 0.03125, %v4716_v20  ;;  %4809 = vadd.xlane.f32.xlu1 %v4782_v10  ;;  %vm4899_vm7 = vmor %vm4897_vm6, %vm4898_vm5  ;;  %vm4907_vm9 = vweird.f32 %v4840_v31 }
 0xc14   : > { %v4890_v34 = vsel %vm4889_vm4, %v11198_v63, %v4886_v41  ;;  %v4893_v62 = vmul.f32 %v11200_v46, %v4892_v28 }
 0xc15   : > { %v4751_v36 = vsub.f32 %v13776_v33, %v4735_v54  ;;  %v5014_v38 = vmul.f32 %v4890_v34, %v13748_v13  ;;  %v13863_v33 = vadd.f32 %v13829_v16, %v5030_v40 }
 0xc16   : > { %v4894_v11 = vmul.f32 0.5, %v4893_v62  ;;  %v4800_v45 = vpop.xlane.xlu0 %4799 }
 0xc17   : > { %v13857_v58 = vmul.f32 %v16656_v61, %v4751_v36  ;;  %v4825_v53 = vmul.f32 0.03125, %v4800_v45  ;;  %v5031_v60 = vmul.f32 %v13821_v29, %v5014_v38  ;;  %16666 = vst [vmem:[#allocation44_spill] sm:$0xff] %v13863_v33 }
 0xc18   : > { %v4895_v39 = vsub.f32 1.5, %v4894_v11 }
 0xc19   : > { %v11202_v7 = vpop.eup %11201  ;;  %v4841_v49 = vadd.f32 1e-05, %v4825_v53  ;;  %v4783_v3 = vmul.f32 %v13857_v58, %v13857_v58  ;;  %v13866_v13 = vadd.f32 %v13829_v16, %v5031_v60 }
 0xc1a   : > { %v4896_v1 = vmul.f32 %v11200_v46, %v4895_v39  ;;  %v4902_v56 = vmul.f32 %v11202_v7, %v4840_v31  ;;  %v4718_v17 = vpop.xlane.xlu2 %4717  ;;  %vm4908_vm8 = vweird.f32 %v11202_v7 }
 0xc1b   : > { %16667 = vst [vmem:[#allocation52_spill] sm:$0xff] %v13866_v13  ;;  %11203 = vrsqrt.f32 %v4841_v49  ;;  %v4736_v48 = vmul.f32 0.03125, %v4718_v17  ;;  %4811 = vadd.xlane.f32.xlu2 %v4783_v3  ;;  %v5088_v51 = vpack.c.bf16 %v13866_v13, %v13863_v33  ;;  %vm4909_vm10 = vmor %vm4907_vm9, %vm4908_vm8  ;;  %vm4917_vm12 = vweird.f32 %v4841_v49 }
 0xc1c   : > { %v4903_v37 = vmul.f32 %v11202_v7, %v4902_v56  ;;  %v4900_v42 = vsel %vm4899_vm7, %v11200_v46, %v4896_v1 }
 0xc1d   : > { %v4752_v5 = vsub.f32 %v13788_v55, %v4736_v48  ;;  %5157 = vmatmul.bf16.gmra.mxu2 %v5088_v51  ;;  %5271 = vmatmul.bf16.gmra.mxu3 %v5088_v51  ;;  %v5015_v24 = vmul.f32 %v4900_v42, %v13758_v2 }
 0xc1e   : > { %v4904_v63 = vmul.f32 0.5, %v4903_v37  ;;  %5385 = vmatmul.bf16.gmra.mxu0 %v5088_v51  ;;  %v4802_v26 = vpop.xlane.xlu1 %4801 }
 0xc1f   : > { %v13872_v19 = vmul.f32 %v16656_v61, %v4752_v5  ;;  %v4826_v14 = vmul.f32 0.03125, %v4802_v26  ;;  %v5032_v50 = vmul.f32 %v13821_v29, %v5015_v24 }
 0xc20   : > { %v4905_v23 = vsub.f32 1.5, %v4904_v63 }
 0xc21   : > { %v11204_v44 = vpop.eup %11203  ;;  %v4842_v30 = vadd.f32 1e-05, %v4826_v14  ;;  %v4784_v47 = vmul.f32 %v13872_v19, %v13872_v19  ;;  %v13887_v34 = vadd.f32 %v13829_v16, %v5032_v50 }
 0xc22   : > { %v4906_v55 = vmul.f32 %v11202_v7, %v4905_v23  ;;  %v4912_v22 = vmul.f32 %v11204_v44, %v4841_v49  ;;  %v4720_v6 = vpop.xlane.xlu2 %4719  ;;  %vm4918_vm11 = vweird.f32 %v11204_v44 }
 0xc23   : > { %11205 = vrsqrt.f32 %v4842_v30  ;;  %v4737_v18 = vmul.f32 0.03125, %v4720_v6  ;;  %4813 = vadd.xlane.f32.xlu0 %v4784_v47  ;;  %16668 = vst [vmem:[#allocation34_spill] sm:$0xff] %v13887_v34  ;;  %vm4919_vm13 = vmor %vm4917_vm12, %vm4918_vm11  ;;  %vm4927_vm1 = vweird.f32 %v4842_v30 }
 0xc24   : > { %v4910_v8 = vsel %vm4909_vm10, %v11202_v7, %v4906_v55  ;;  %v4913_v4 = vmul.f32 %v11204_v44, %v4912_v22 }
 0xc25   : > { %v4753_v46 = vsub.f32 %v13798_v57, %v4737_v18  ;;  %v5016_v10 = vmul.f32 %v4910_v8, %v13769_v32 }
 0xc26   : > { %v4914_v41 = vmul.f32 0.5, %v4913_v4 }
 0xc27   : > { %v13881_v28 = vmul.f32 %v16656_v61, %v4753_v46  ;;  %v5033_v2 = vmul.f32 %v13821_v29, %v5016_v10 }
 0xc28   : > { %v4915_v31 = vsub.f32 1.5, %v4914_v41 }
 0xc29   : > { %v11206_v20 = vpop.eup %11205  ;;  %v4785_v54 = vmul.f32 %v13881_v28, %v13881_v28  ;;  %v13890_v57 = vadd.f32 %v13829_v16, %v5033_v2 }
 0xc2a   : > { %v4916_v32 = vmul.f32 %v11204_v44, %v4915_v31  ;;  %v4922_v62 = vmul.f32 %v11206_v20, %v4842_v30  ;;  %v4722_v36 = vpop.xlane.xlu0 %4721  ;;  %vm4928_vm14 = vweird.f32 %v11206_v20 }
 0xc2b   : > { %16669 = vst [vmem:[#allocation43_spill] sm:$0xff] %v13890_v57  ;;  %v4738_v38 = vmul.f32 0.03125, %v4722_v36  ;;  %4815 = vadd.xlane.f32.xlu1 %v4785_v54  ;;  %v5089_v40 = vpack.c.bf16 %v13890_v57, %v13887_v34  ;;  %vm4929_vm2 = vmor %vm4927_vm1, %vm4928_vm14 }
 0xc2c   : > { %v4923_v11 = vmul.f32 %v11206_v20, %v4922_v62  ;;  %v4920_v53 = vsel %vm4919_vm13, %v11204_v44, %v4916_v32 }
 0xc2d   : > { %v4754_v45 = vsub.f32 %v13803_v25, %v4738_v38  ;;  %5162 = vmatmul.bf16.gmra.mxu2 %v5089_v40  ;;  %5276 = vmatmul.bf16.gmra.mxu3 %v5089_v40  ;;  %v5017_v1 = vmul.f32 %v4920_v53, %v13780_v0  ;;  %v16676_v53 = vld [vmem:[#allocation30_spill] sm:$0xff] }
 0xc2e   : > { %v4924_v60 = vmul.f32 0.5, %v4923_v11  ;;  %5390 = vmatmul.bf16.gmra.mxu0 %v5089_v40 }
 0xc2f   : > { %v13896_v39 = vmul.f32 %v16656_v61, %v4754_v45  ;;  %v5034_v17 = vmul.f32 %v13821_v29, %v5017_v1 }
 0xc30   : > { %v4925_v7 = vsub.f32 1.5, %v4924_v60 }
 0xc31   : > { %v4786_v3 = vmul.f32 %v13896_v39, %v13896_v39  ;;  %v13905_v51 = vadd.f32 %v13829_v16, %v5034_v17 }
 0xc32   : > { %v4926_v49 = vmul.f32 %v11206_v20, %v4925_v7 }
 0xc33   : > { %4817 = vadd.xlane.f32.xlu2 %v4786_v3  ;;  %16670 = vst [vmem:[#allocation42_spill] sm:$0xff] %v13905_v51 }
 0xc34   : > { %v4930_v25 = vsel %vm4929_vm2, %v11206_v20, %v4926_v49 }
 0xc35   : > { %v5018_v56 = vmul.f32 %v4930_v25, %v13791_v12 }
 0xc37   : > { %v5035_v48 = vmul.f32 %v13821_v29, %v5018_v56 }
 0xc39   : > { %v13908_v37 = vadd.f32 %v13829_v16, %v5035_v48 }
 0xc3b   : > { %16671 = vst [vmem:[#allocation67_spill] sm:$0xff] %v13908_v37  ;;  %v5090_v0 = vpack.c.bf16 %v13908_v37, %v13905_v51 }
 0xc3d   : > { %5167 = vmatmul.bf16.gmra.mxu2 %v5090_v0  ;;  %5281 = vmatmul.bf16.gmra.mxu3 %v5090_v0 }
 0xc3e   : > { %5395 = vmatmul.bf16.gmra.mxu0 %v5090_v0 }
 0xc41   : > { %v4804_v5 = vpop.xlane.xlu1 %4803 }
 0xc42   : > { %v4827_v42 = vmul.f32 0.03125, %v4804_v5 }
 0xc44   : > { %v4843_v63 = vadd.f32 1e-05, %v4827_v42 }
 0xc46   : > { %11207 = vrsqrt.f32 %v4843_v63  ;;  %vm4937_vm4 = vweird.f32 %v4843_v63 }
 0xc49   : > { %v4806_v12 = vpop.xlane.xlu2 %4805 }
 0xc4a   : > { %v4828_v26 = vmul.f32 0.03125, %v4806_v12 }
 0xc4c   : > { %v11208_v14 = vpop.eup %11207  ;;  %v4844_v23 = vadd.f32 1e-05, %v4828_v26 }
 0xc4d   : > { %v4932_v44 = vmul.f32 %v11208_v14, %v4843_v63  ;;  %vm4938_vm3 = vweird.f32 %v11208_v14 }
 0xc4e   : > { %11209 = vrsqrt.f32 %v4844_v23  ;;  %vm4939_vm5 = vmor %vm4937_vm4, %vm4938_vm3  ;;  %vm4947_vm7 = vweird.f32 %v4844_v23 }
 0xc4f   : > { %v4933_v30 = vmul.f32 %v11208_v14, %v4932_v44 }
 0xc51   : > { %v4934_v47 = vmul.f32 0.5, %v4933_v30 }
 0xc53   : > { %v4935_v24 = vsub.f32 1.5, %v4934_v47 }
 0xc54   : > { %v11210_v55 = vpop.eup %11209 }
 0xc55   : > { %v4936_v22 = vmul.f32 %v11208_v14, %v4935_v24  ;;  %v4942_v6 = vmul.f32 %v11210_v55, %v4844_v23  ;;  %vm4948_vm6 = vweird.f32 %v11210_v55 }
 0xc56   : > { %vm4949_vm8 = vmor %vm4947_vm7, %vm4948_vm6 }
 0xc57   : > { %v4943_v18 = vmul.f32 %v11210_v55, %v4942_v6  ;;  %v4940_v8 = vsel %vm4939_vm5, %v11208_v14, %v4936_v22 }
 0xc58   : > { %v5019_v10 = vmul.f32 %v4940_v8, %v13808_v15  ;;  %v13927_v15 = vld [vmem:[%s16285_s2 + $0xb] ss:$0 sm:$0xff] }
 0xc59   : > { %v4944_v4 = vmul.f32 0.5, %v4943_v18 }
 0xc5a   : > { %v5036_v31 = vmul.f32 %v13821_v29, %v5019_v10 }
 0xc5b   : > { %v4945_v46 = vsub.f32 1.5, %v4944_v4 }
 0xc5c   : > { %v13917_v54 = vadd.f32 %v13829_v16, %v5036_v31 }
 0xc5d   : > { %v4946_v50 = vmul.f32 %v11210_v55, %v4945_v46 }
 0xc5e   : > { %16672 = vst [vmem:[#allocation32_spill] sm:$0xff] %v13917_v54 }
 0xc5f   : > { %v4950_v41 = vsel %vm4949_vm8, %v11210_v55, %v4946_v50 }
 0xc60   : > { %v5020_v2 = vmul.f32 %v4950_v41, %v13814_v59  ;;  %v13932_v59 = vld [vmem:[%s16285_s2 + $0xa] ss:$0 sm:$0xff] }
 0xc62   : > { %v5037_v20 = vmul.f32 %v13821_v29, %v5020_v2 }
 0xc64   : > { %v13920_v32 = vadd.f32 %v13829_v16, %v5037_v20 }
 0xc66   : > { %16673 = vst [vmem:[#allocation68_spill] sm:$0xff] %v13920_v32  ;;  %v5091_v62 = vpack.c.bf16 %v13920_v32, %v13917_v54 }
 0xc68   : > { %5172 = vmatmul.bf16.gmra.mxu2 %v5091_v62  ;;  %5286 = vmatmul.bf16.gmra.mxu3 %v5091_v62 }
 0xc69   : > { %5400 = vmatmul.bf16.gmra.mxu0 %v5091_v62 }
 0xc6f   : > { %v5153_v36 = vpop.f32.mrf.mxu2  ;;  %v5267_v38 = vpop.f32.mrf.mxu3 }
 0xc70   : > { %v5268_v40 = vadd.f32 %v13927_v15, %v5267_v38  ;;  %v13936_v11 = vadd.f32 %v13932_v59, %v5153_v36 }
 0xc72   : > { %16674 = vst [vmem:[#allocation36_spill] sm:$0xff] %v13936_v11  ;;  %v13938_v45 = vpack.c.bf16 %v5268_v40, %v5268_v40  ;;  %v5437_v60 = vmul.f32 %v16676_v53, %v13936_v11 }
 0xc74   : > { %16675 = vst [vmem:[#allocation60_spill] sm:$0xff] %v13938_v45  ;;  %5476 = vmatpush.bf16.xpose.msrb.mxu1 %v13938_v45  ;;  %5956 = vmatpush.bf16.xpose.msra.mxu3 %v13938_v45  ;;  %v5453_v1 = vpack.c.bf16 %v5437_v60, %v5437_v60 }
 0xc77   : > { %v5269_v7 = vpop.f32.mrf.mxu3  ;;  %v13949_v4 = vpop.f32.mrf.mxu2 }
 0xc78   : > { %v5270_v3 = vadd.f32 %v13927_v15, %v5269_v7 }
 0xc7a   : > { %v13945_v49 = vpack.c.bf16 %v5270_v3, %v5270_v3 }
 0xc7b   : > { %5477 = vmatmul.bf16.vlgmr.msrb.gmra.mxu1 %v5453_v1 }
 0xc7c   : > { %16677 = vst [vmem:[#allocation33_spill] sm:$0xff] %v13945_v49  ;;  %5489 = vmatpush.bf16.xpose.msra.mxu2 %v13945_v49  ;;  %5969 = vmatpush.bf16.xpose.msra.mxu0 %v13945_v49 }
 0xc7e   : > { %v4808_v25 = vpop.xlane.xlu0 %4807 }
 0xc7f   : > { %v4829_v56 = vmul.f32 0.03125, %v4808_v25 }
 0xc81   : > { %v4845_v17 = vadd.f32 1e-05, %v4829_v56 }
 0xc83   : > { %11211 = vrsqrt.f32 %v4845_v17  ;;  %vm4957_vm10 = vweird.f32 %v4845_v17 }
 0xc86   : > { %v4810_v48 = vpop.xlane.xlu1 %4809 }
 0xc87   : > { %v4830_v0 = vmul.f32 0.03125, %v4810_v48 }
 0xc89   : > { %v11212_v5 = vpop.eup %11211  ;;  %v4846_v42 = vadd.f32 1e-05, %v4830_v0 }
 0xc8a   : > { %v4952_v63 = vmul.f32 %v11212_v5, %v4845_v17  ;;  %vm4958_vm9 = vweird.f32 %v11212_v5 }
 0xc8b   : > { %11213 = vrsqrt.f32 %v4846_v42  ;;  %vm4959_vm11 = vmor %vm4957_vm10, %vm4958_vm9  ;;  %vm4967_vm13 = vweird.f32 %v4846_v42 }
 0xc8c   : > { %v4953_v12 = vmul.f32 %v11212_v5, %v4952_v63 }
 0xc8e   : > { %v4954_v26 = vmul.f32 0.5, %v4953_v12  ;;  %v4812_v14 = vpop.xlane.xlu2 %4811 }
 0xc8f   : > { %v4831_v23 = vmul.f32 0.03125, %v4812_v14 }
 0xc90   : > { %v4955_v30 = vsub.f32 1.5, %v4954_v26 }
 0xc91   : > { %v11214_v44 = vpop.eup %11213  ;;  %v4847_v47 = vadd.f32 1e-05, %v4831_v23 }
 0xc92   : > { %v4962_v24 = vmul.f32 %v11214_v44, %v4846_v42  ;;  %v4956_v22 = vmul.f32 %v11212_v5, %v4955_v30  ;;  %vm4968_vm12 = vweird.f32 %v11214_v44 }
 0xc93   : > { %11215 = vrsqrt.f32 %v4847_v47  ;;  %vm4969_vm14 = vmor %vm4967_vm13, %vm4968_vm12  ;;  %vm4977_vm2 = vweird.f32 %v4847_v47 }
 0xc94   : > { %v4963_v55 = vmul.f32 %v11214_v44, %v4962_v24  ;;  %v4960_v50 = vsel %vm4959_vm11, %v11212_v5, %v4956_v22 }
 0xc95   : > { %v5021_v36 = vmul.f32 %v4960_v50, %v13842_v9 }
 0xc96   : > { %v4964_v6 = vmul.f32 0.5, %v4963_v55  ;;  %v4814_v18 = vpop.xlane.xlu0 %4813 }
 0xc97   : > { %v4832_v8 = vmul.f32 0.03125, %v4814_v18  ;;  %v5038_v56 = vmul.f32 %v13821_v29, %v5021_v36 }
 0xc98   : > { %v4965_v46 = vsub.f32 1.5, %v4964_v6 }
 0xc99   : > { %v11216_v10 = vpop.eup %11215  ;;  %v4848_v41 = vadd.f32 1e-05, %v4832_v8  ;;  %v13963_v12 = vadd.f32 %v13829_v16, %v5038_v56 }
 0xc9a   : > { %v4966_v2 = vmul.f32 %v11214_v44, %v4965_v46  ;;  %v4972_v31 = vmul.f32 %v11216_v10, %v4847_v47  ;;  %vm4978_vm1 = vweird.f32 %v11216_v10 }
 0xc9b   : > { %11217 = vrsqrt.f32 %v4848_v41  ;;  %16680 = vst [vmem:[#allocation62_spill] sm:$0xff] %v13963_v12  ;;  %vm13970_vm3 = vmor %vm4977_vm2, %vm4978_vm1  ;;  %vm4987_vm5 = vweird.f32 %v4848_v41 }
 0xc9c   : > { %v4970_v20 = vsel %vm4969_vm14, %v11214_v44, %v4966_v2  ;;  %v4973_v62 = vmul.f32 %v11216_v10, %v4972_v31 }
 0xc9d   : > { %v5022_v38 = vmul.f32 %v4970_v20, %v13848_v52 }
 0xc9e   : > { %v4974_v40 = vmul.f32 0.5, %v4973_v62  ;;  %v4816_v60 = vpop.xlane.xlu1 %4815 }
 0xc9f   : > { %v4833_v7 = vmul.f32 0.03125, %v4816_v60  ;;  %v5039_v3 = vmul.f32 %v13821_v29, %v5022_v38 }
 0xca0   : > { %v5158_v1 = vpop.f32.mrf.mxu2  ;;  %v5272_v25 = vpop.f32.mrf.mxu3  ;;  %v4975_v48 = vsub.f32 1.5, %v4974_v40 }
 0xca1   : > { %v11218_v17 = vpop.eup %11217  ;;  %v4849_v0 = vadd.f32 1e-05, %v4833_v7  ;;  %v5273_v5 = vadd.f32 %v13927_v15, %v5272_v25  ;;  %v13957_v63 = vadd.f32 %v13829_v16, %v5039_v3  ;;  %v13960_v52 = vadd.f32 %v13932_v59, %v5158_v1 }
 0xca2   : > { %v4982_v42 = vmul.f32 %v11218_v17, %v4848_v41  ;;  %v4976_v26 = vmul.f32 %v11216_v10, %v4975_v48  ;;  %vm4988_vm4 = vweird.f32 %v11218_v17 }
 0xca3   : > { %16678 = vst [vmem:[#allocation71_spill] sm:$0xff] %v13957_v63  ;;  %11219 = vrsqrt.f32 %v4849_v0  ;;  %v13965_v14 = vpack.c.bf16 %v5273_v5, %v5273_v5  ;;  %v5092_v44 = vpack.c.bf16 %v13957_v63, %v13963_v12  ;;  %v5439_v6 = vmul.f32 %v16676_v53, %v13960_v52  ;;  %vm4989_vm6 = vmor %vm4987_vm5, %vm4988_vm4 }
 0xca4   : > { %v4983_v9 = vmul.f32 %v11218_v17, %v4982_v42  ;;  %16679 = vst [vmem:[#allocation54_spill] sm:$0xff] %v13960_v52  ;;  %v4980_v47 = vsel %vm13970_vm3, %v11216_v10, %v4976_v26  ;;  %vm4997_vm8 = vweird.f32 %v4849_v0 }
 0xca5   : > { %16681 = vst [vmem:[#allocation51_spill] sm:$0xff] %v13965_v14  ;;  %5502 = vmatpush.bf16.xpose.msra.mxu1 %v13965_v14  ;;  %5177 = vmatmul.bf16.gmra.mxu2 %v5092_v44  ;;  %v5455_v38 = vpack.c.bf16 %v5439_v6, %v5439_v6  ;;  %v5023_v40 = vmul.f32 %v4980_v47, %v13857_v58 }
 0xca6   : > { %v4984_v23 = vmul.f32 0.5, %v4983_v9  ;;  %v4818_v30 = vpop.xlane.xlu2 %4817  ;;  %5291 = vmatmul.bf16.gmra.mxu3 %v5092_v44  ;;  %5405 = vmatmul.bf16.gmra.mxu0 %v5092_v44 }
 0xca7   : > { %v4834_v24 = vmul.f32 0.03125, %v4818_v30  ;;  %v5040_v41 = vmul.f32 %v13821_v29, %v5023_v40 }
 0xca8   : > { %v4985_v22 = vsub.f32 1.5, %v4984_v23  ;;  %v13976_v18 = vpop.f32.mrf.mxu2  ;;  %v5274_v8 = vpop.f32.mrf.mxu3 }
 0xca9   : > { %v11220_v46 = vpop.eup %11219  ;;  %v4850_v50 = vadd.f32 1e-05, %v4834_v24  ;;  %v5275_v2 = vadd.f32 %v13927_v15, %v5274_v8  ;;  %v13998_v23 = vadd.f32 %v13829_v16, %v5040_v41 }
 0xcaa   : > { %v4986_v31 = vmul.f32 %v11218_v17, %v4985_v22  ;;  %v4992_v20 = vmul.f32 %v11220_v46, %v4849_v0  ;;  %vm4998_vm7 = vweird.f32 %v11220_v46 }
 0xcab   : > { %11221 = vrsqrt.f32 %v4850_v50  ;;  %v13982_v60 = vpack.c.bf16 %v5275_v2, %v5275_v2  ;;  %16688 = vst [vmem:[#allocation56_spill] sm:$0xff] %v13998_v23  ;;  %vm14000_vm9 = vmor %vm4997_vm8, %vm4998_vm7  ;;  %vm5007_vm11 = vweird.f32 %v4850_v50 }
 0xcac   : > { %v4990_v62 = vsel %vm4989_vm6, %v11218_v17, %v4986_v31  ;;  %v4993_v36 = vmul.f32 %v11220_v46, %v4992_v20  ;;  %5503 = vmatmul.bf16.vlgmr.msra.gmra.mxu1 %v5455_v38 }
 0xcad   : > { %16684 = vst [vmem:[#allocation50_spill] sm:$0xff] %v13982_v60  ;;  %v5024_v10 = vmul.f32 %v4990_v62, %v13872_v19  ;;  %5515 = vmatpush.bf16.xpose.msrb.mxu2 %v13982_v60 }
 0xcae   : > { %v4994_v7 = vmul.f32 0.5, %v4993_v36 }
 0xcaf   : > { %v5041_v56 = vmul.f32 %v13821_v29, %v5024_v10 }
 0xcb0   : > { %v4995_v3 = vsub.f32 1.5, %v4994_v7  ;;  %v5163_v1 = vpop.f32.mrf.mxu2  ;;  %v5277_v25 = vpop.f32.mrf.mxu3 }
 0xcb1   : > { %v11222_v17 = vpop.eup %11221  ;;  %v5278_v48 = vadd.f32 %v13927_v15, %v5277_v25  ;;  %v13990_v58 = vadd.f32 %v13829_v16, %v5041_v56  ;;  %v13993_v19 = vadd.f32 %v13932_v59, %v5163_v1  ;;  %v14041_v56 = vadd.f32 %v13932_v59, %v13949_v4 }
 0xcb2   : > { %v5002_v5 = vmul.f32 %v11222_v17, %v4850_v50  ;;  %v4996_v42 = vmul.f32 %v11220_v46, %v4995_v3  ;;  %vm5008_vm10 = vweird.f32 %v11222_v17 }
 0xcb3   : > { %16685 = vst [vmem:[#allocation69_spill] sm:$0xff] %v13990_v58  ;;  %v13995_v26 = vpack.c.bf16 %v5278_v48, %v5278_v48  ;;  %v5093_v24 = vpack.c.bf16 %v13990_v58, %v13998_v23  ;;  %v5441_v0 = vmul.f32 %v16676_v53, %v13993_v19  ;;  %vm5009_vm12 = vmor %vm5007_vm11, %vm5008_vm10 }
 0xcb4   : > { %v5003_v9 = vmul.f32 %v11222_v17, %v5002_v5  ;;  %16686 = vst [vmem:[#allocation45_spill] sm:$0xff] %v13993_v19  ;;  %v5000_v55 = vsel %vm14000_vm9, %v11220_v46, %v4996_v42  ;;  %v5438_v42 = vmul.f32 %v16676_v53, %v14041_v56 }
 0xcb5   : > { %16687 = vst [vmem:[#allocation70_spill] sm:$0xff] %v13995_v26  ;;  %5528 = vmatpush.bf16.xpose.msrb.mxu1 %v13995_v26  ;;  %6008 = vmatpush.bf16.xpose.msrb.mxu3 %v13995_v26  ;;  %v5025_v31 = vmul.f32 %v5000_v55, %v13881_v28  ;;  %v5457_v62 = vpack.c.bf16 %v5441_v0, %v5441_v0 }
 0xcb6   : > { %v5004_v30 = vmul.f32 0.5, %v5003_v9  ;;  %5182 = vmatmul.bf16.gmra.mxu2 %v5093_v24  ;;  %5296 = vmatmul.bf16.gmra.mxu3 %v5093_v24  ;;  %16696 = vst [vmem:[#allocation64_spill] sm:$0xff] %v14041_v56  ;;  %v14056_v55 = vadd.f32 %v13932_v59, %v13976_v18 }
 0xcb7   : > { %5410 = vmatmul.bf16.gmra.mxu0 %v5093_v24  ;;  %v5042_v38 = vmul.f32 %v13821_v29, %v5025_v31 }
 0xcb8   : > { %v5005_v22 = vsub.f32 1.5, %v5004_v30  ;;  %v5165_v6 = vpop.f32.mrf.mxu2  ;;  %v5279_v8 = vpop.f32.mrf.mxu3  ;;  %v5454_v30 = vpack.c.bf16 %v5438_v42, %v5438_v42  ;;  %16698 = vst [vmem:[#allocation59_spill] sm:$0xff] %v14056_v55 }
 0xcb9   : > { %v5280_v47 = vadd.f32 %v13927_v15, %v5279_v8  ;;  %v14022_v28 = vadd.f32 %v13829_v16, %v5042_v38  ;;  %v5440_v8 = vmul.f32 %v16676_v53, %v14056_v55 }
 0xcba   : > { %v5006_v2 = vmul.f32 %v11222_v17, %v5005_v22  ;;  %v14059_v22 = vadd.f32 %v13932_v59, %v5165_v6 }
 0xcbb   : > { %v14014_v46 = vpack.c.bf16 %v5280_v47, %v5280_v47  ;;  %16692 = vst [vmem:[#allocation53_spill] sm:$0xff] %v14022_v28  ;;  %v5456_v18 = vpack.c.bf16 %v5440_v8, %v5440_v8 }
 0xcbc   : > { %v5010_v20 = vsel %vm5009_vm12, %v11222_v17, %v5006_v2  ;;  %5529 = vmatmul.bf16.vlgmr.msrb.gmra.mxu1 %v5457_v62  ;;  %v16697_v17 = vld [vmem:[#allocation9_spill] sm:$0xff]  ;;  %16699 = vst [vmem:[#allocation58_spill] sm:$0xff] %v14059_v22 }
 0xcbd   : > { %16691 = vst [vmem:[#allocation29_spill] sm:$0xff] %v14014_v46  ;;  %6021 = vmatpush.bf16.xpose.msrb.mxu0 %v14014_v46  ;;  %v5026_v36 = vmul.f32 %v5010_v20, %v13896_v39  ;;  %v5917_v48 = vmul.f32 %v16697_v17, %v13936_v11  ;;  %v5918_v9 = vmul.f32 %v16697_v17, %v14041_v56 }
 0xcbe   : > { %v5921_v47 = vmul.f32 %v16697_v17, %v13993_v19  ;;  %v5922_v2 = vmul.f32 %v16697_v17, %v14059_v22 }
 0xcbf   : > { %v5043_v7 = vmul.f32 %v13821_v29, %v5026_v36  ;;  %v14035_v29 = vpop.f32.mrf.mxu0  ;;  %v5933_v44 = vpack.c.bf16 %v5917_v48, %v5917_v48  ;;  %v5934_v24 = vpack.c.bf16 %v5918_v9, %v5918_v9 }
 0xcc0   : > { %v5282_v40 = vpop.f32.mrf.mxu3  ;;  %v5168_v10 = vpop.f32.mrf.mxu2  ;;  %v5937_v36 = vpack.c.bf16 %v5921_v47, %v5921_v47  ;;  %v5938_v38 = vpack.c.bf16 %v5922_v2, %v5922_v2 }
 0xcc1   : > { %v5283_v50 = vadd.f32 %v13927_v15, %v5282_v40  ;;  %v14025_v3 = vadd.f32 %v13829_v16, %v5043_v7  ;;  %v14028_v1 = vadd.f32 %v13932_v59, %v5168_v10 }
 0xcc3   : > { %16693 = vst [vmem:[#allocation41_spill] sm:$0xff] %v14025_v3  ;;  %v14030_v25 = vpack.c.bf16 %v5283_v50, %v5283_v50  ;;  %v5094_v39 = vpack.c.bf16 %v14025_v3, %v14022_v28  ;;  %v5443_v41 = vmul.f32 %v16676_v53, %v14028_v1 }
 0xcc4   : > { %16694 = vst [vmem:[#allocation35_spill] sm:$0xff] %v14028_v1 }
 0xcc5   : > { %16695 = vst [vmem:[#allocation48_spill] sm:$0xff] %v14030_v25  ;;  %5554 = vmatpush.bf16.xpose.msra.mxu1 %v14030_v25  ;;  %v5459_v16 = vpack.c.bf16 %v5443_v41, %v5443_v41 }
 0xcc6   : > { %5187 = vmatmul.bf16.gmra.mxu2 %v5094_v39  ;;  %5301 = vmatmul.bf16.gmra.mxu3 %v5094_v39 }
 0xcc7   : > { %5415 = vmatmul.bf16.gmra.mxu0 %v5094_v39  ;;  %v14045_v5 = vpop.f32.mrf.mxu0 }
 0xcc8   : > { %v5284_v0 = vpop.f32.mrf.mxu3  ;;  %v5170_v31 = vpop.f32.mrf.mxu2 }
 0xcc9   : > { %v5285_v20 = vadd.f32 %v13927_v15, %v5284_v0 }
 0xccb   : > { %v14070_v6 = vpack.c.bf16 %v5285_v20, %v5285_v20 }
 0xccc   : > { %5555 = vmatmul.bf16.vlgmr.msra.gmra.mxu1 %v5459_v16  ;;  %v5442_v16 = vmul.f32 %v16676_v53, %v14059_v22 }
 0xccd   : > { %16700 = vst [vmem:[#allocation38_spill] sm:$0xff] %v14070_v6 }
 0xccf   : > { %v14052_v4 = vpop.f32.mrf.mxu0 }
 0xcd6   : > { %5490 = vmatmul.bf16.vlgmr.msra.gmra.mxu2 %v5454_v30  ;;  %5957 = vmatmul.bf16.vlgmr.msra.gmra.mxu3 %v5933_v44 }
 0xcd7   : > { %5541 = vmatpush.bf16.xpose.msra.mxu2 %v14014_v46  ;;  %5970 = vmatmul.bf16.vlgmr.msra.gmra.mxu0 %v5934_v24  ;;  %v14068_v62 = vpop.f32.mrf.mxu0  ;;  %v5458_v24 = vpack.c.bf16 %v5442_v16, %v5442_v16 }
 0xcdf   : > { %v14074_v50 = vpop.f32.mrf.mxu0 }
 0xce6   : > { %5516 = vmatmul.bf16.vlgmr.msrb.gmra.mxu2 %v5456_v18  ;;  %6009 = vmatmul.bf16.vlgmr.msrb.gmra.mxu3 %v5937_v36 }
 0xce7   : > { %5567 = vmatpush.bf16.xpose.msrb.mxu2 %v14070_v6  ;;  %6022 = vmatmul.bf16.vlgmr.msrb.gmra.mxu0 %v5938_v38  ;;  %v14095_v20 = vpop.f32.mrf.mxu0  ;;  %v14104_v38 = vadd.f32 %v13932_v59, %v5170_v31 }
 0xce9   : > { %16705 = vst [vmem:[#allocation55_spill] sm:$0xff] %v14104_v38  ;;  %v5444_v16 = vmul.f32 %v16676_v53, %v14104_v38 }
 0xceb   : > { %v5173_v40 = vpop.f32.mrf.mxu2  ;;  %v5287_v7 = vpop.f32.mrf.mxu3 }
 0xcec   : > { %v5288_v10 = vadd.f32 %v13927_v15, %v5287_v7  ;;  %v14077_v39 = vadd.f32 %v13932_v59, %v5173_v40 }
 0xcee   : > { %16701 = vst [vmem:[#allocation39_spill] sm:$0xff] %v14077_v39  ;;  %v14079_v41 = vpack.c.bf16 %v5288_v10, %v5288_v10  ;;  %v5445_v48 = vmul.f32 %v16676_v53, %v14077_v39  ;;  %v5925_v42 = vmul.f32 %v16697_v17, %v14077_v39 }
 0xcef   : > { %v14106_v10 = vpop.f32.mrf.mxu0 }
 0xcf0   : > { %16702 = vst [vmem:[#allocation28_spill] sm:$0xff] %v14079_v41  ;;  %5580 = vmatpush.bf16.xpose.msrb.mxu1 %v14079_v41  ;;  %6060 = vmatpush.bf16.xpose.msra.mxu3 %v14079_v41  ;;  %v5461_v0 = vpack.c.bf16 %v5445_v48, %v5445_v48  ;;  %v5941_v8 = vpack.c.bf16 %v5925_v42, %v5925_v42 }
 0xcf1   : > { %v5460_v48 = vpack.c.bf16 %v5444_v16, %v5444_v16 }
 0xcf3   : > { %v5289_v9 = vpop.f32.mrf.mxu3  ;;  %v5175_v44 = vpop.f32.mrf.mxu2 }
 0xcf4   : > { %v5290_v30 = vadd.f32 %v13927_v15, %v5289_v9  ;;  %v14091_v47 = vadd.f32 %v13932_v59, %v5175_v44 }
 0xcf6   : > { %16703 = vst [vmem:[#allocation72_spill] sm:$0xff] %v14091_v47  ;;  %v14093_v2 = vpack.c.bf16 %v5290_v30, %v5290_v30  ;;  %5542 = vmatmul.bf16.vlgmr.msra.gmra.mxu2 %v5458_v24  ;;  %v5926_v36 = vmul.f32 %v16697_v17, %v14091_v47  ;;  %v5446_v9 = vmul.f32 %v16676_v53, %v14091_v47 }
 0xcf7   : > { %5581 = vmatmul.bf16.vlgmr.msrb.gmra.mxu1 %v5461_v0  ;;  %6061 = vmatmul.bf16.vlgmr.msra.gmra.mxu3 %v5941_v8  ;;  %v14110_v42 = vpop.f32.mrf.mxu0 }
 0xcf8   : > { %16704 = vst [vmem:[#allocation31_spill] sm:$0xff] %v14093_v2  ;;  %v14097_v18 = vpop.f32.mrf.mxu1  ;;  %5593 = vmatpush.bf16.xpose.msra.mxu2 %v14093_v2  ;;  %6073 = vmatpush.bf16.xpose.msra.mxu0 %v14093_v2  ;;  %v5942_v40 = vpack.c.bf16 %v5926_v36, %v5926_v36  ;;  %v5462_v30 = vpack.c.bf16 %v5446_v9, %v5446_v9  ;;  %v14133_v9 = vld [vmem:[%s16285_s2 + $0xc] ss:$0 sm:$0xff] }
 0xcf9   : > { %v14141_v58 = vadd.f32 %v14133_v9, %v14035_v29 }
 0xcfb   : > { %v6349_v32 = vmul.f32 %v16697_v17, %v14141_v58 }
 0xcff   : > { %6074 = vmatmul.bf16.vlgmr.msra.gmra.mxu0 %v5942_v40  ;;  %v14114_v44 = vpop.f32.mrf.mxu0 }
 0xd00   : > { %v5480_v7 = vpop.f32.mrf.mxu1 }
 0xd06   : > { %5568 = vmatmul.bf16.vlgmr.msrb.gmra.mxu2 %v5460_v48 }
 0xd07   : > { %v14116_v31 = vpop.f32.mrf.mxu0 }
 0xd16   : > { %5594 = vmatmul.bf16.vlgmr.msra.gmra.mxu2 %v5462_v30 }
 0xd23   : > { %v14118_v24 = vpop.f32.mrf.mxu0 }
 0xd28   : > { %v5178_v0 = vpop.f32.mrf.mxu2 }
 0xd29   : > { %v5292_v8 = vpop.f32.mrf.mxu3  ;;  %v14121_v40 = vpop.f32.mrf.mxu1  ;;  %v14124_v7 = vadd.f32 %v13932_v59, %v5178_v0 }
 0xd2a   : > { %v5293_v36 = vadd.f32 %v13927_v15, %v5292_v8 }
 0xd2b   : > { %16706 = vst [vmem:[#allocation61_spill] sm:$0xff] %v14124_v7  ;;  %v14126_v16 = vpop.f32.mrf.mxu0  ;;  %v5447_v30 = vmul.f32 %v16676_v53, %v14124_v7 }
 0xd2c   : > { %v14128_v48 = vpack.c.bf16 %v5293_v36, %v5293_v36 }
 0xd2d   : > { %v5463_v36 = vpack.c.bf16 %v5447_v30, %v5447_v30 }
 0xd2e   : > { %16707 = vst [vmem:[#allocation49_spill] sm:$0xff] %v14128_v48  ;;  %5606 = vmatpush.bf16.xpose.msra.mxu1 %v14128_v48 }
 0xd30   : > { %v5180_v8 = vpop.f32.mrf.mxu2 }
 0xd31   : > { %v5294_v3 = vpop.f32.mrf.mxu3  ;;  %v5506_v0 = vpop.f32.mrf.mxu1  ;;  %v14144_v23 = vadd.f32 %v13932_v59, %v5180_v8  ;;  %v14160_v8 = vadd.f32 %v14133_v9, %v14074_v50 }
 0xd32   : > { %v5295_v28 = vadd.f32 %v13927_v15, %v5294_v3 }
 0xd33   : > { %16708 = vst [vmem:[#allocation63_spill] sm:$0xff] %v14144_v23  ;;  %v5448_v3 = vmul.f32 %v16676_v53, %v14144_v23 }
 0xd34   : > { %v14146_v63 = vpop.f32.mrf.mxu0  ;;  %v14148_v12 = vpack.c.bf16 %v5295_v28, %v5295_v28  ;;  %v6365_v28 = vpack.c.bf16 %v6349_v32, %v6349_v32  ;;  %v6353_v32 = vmul.f32 %v16697_v17, %v14160_v8 }
 0xd35   : > { %5607 = vmatmul.bf16.vlgmr.msra.gmra.mxu1 %v5463_v36  ;;  %v14164_v36 = vadd.f32 %v14133_v9, %v14045_v5  ;;  %v5464_v54 = vpack.c.bf16 %v5448_v3, %v5448_v3 }
 0xd36   : > { %16709 = vst [vmem:[#allocation57_spill] sm:$0xff] %v14148_v12  ;;  %5619 = vmatpush.bf16.xpose.msrb.mxu2 %v14148_v12  ;;  %v6401_v50 = vsel %vm1701_vm15, %v6365_v28, 0  ;;  %v14187_v28 = vadd.f32 %v14133_v9, %v14095_v20  ;;  %v6369_v13 = vpack.c.bf16 %v6353_v32, %v6353_v32 }
 0xd37   : > { %v6350_v3 = vmul.f32 %v16697_v17, %v14164_v36 }
 0xd38   : > { %v6354_v20 = vmul.f32 %v16697_v17, %v14187_v28 }
 0xd39   : > { %v5183_v0 = vpop.f32.mrf.mxu2  ;;  %v5297_v29 = vpop.f32.mrf.mxu3  ;;  %v6366_v35 = vpack.c.bf16 %v6350_v3, %v6350_v3 }
 0xd3a   : > { %v5298_v30 = vadd.f32 %v13927_v15, %v5297_v29  ;;  %v14156_v61 = vpop.f32.mrf.mxu1  ;;  %v14167_v37 = vadd.f32 %v13932_v59, %v5183_v0 }
 0xd3c   : > { %16710 = vst [vmem:[#allocation46_spill] sm:$0xff] %v14167_v37  ;;  %v14169_v51 = vpop.f32.mrf.mxu0  ;;  %v14171_v57 = vpack.c.bf16 %v5298_v30, %v5298_v30  ;;  %v5449_v5 = vmul.f32 %v16676_v53, %v14167_v37  ;;  %v5929_v0 = vmul.f32 %v16697_v17, %v14167_v37 }
 0xd3d   : > { %5620 = vmatmul.bf16.vlgmr.msrb.gmra.mxu2 %v5464_v54 }
 0xd3e   : > { %16711 = vst [vmem:[#allocation47_spill] sm:$0xff] %v14171_v57  ;;  %5632 = vmatpush.bf16.xpose.msrb.mxu1 %v14171_v57  ;;  %6112 = vmatpush.bf16.xpose.msrb.mxu3 %v14171_v57  ;;  %v5465_v33 = vpack.c.bf16 %v5449_v5, %v5449_v5  ;;  %v5945_v21 = vpack.c.bf16 %v5929_v0, %v5929_v0  ;;  %v6420_v5 = vsel %vm1701_vm15, %v6366_v35, 0 }
 0xd41   : > { %v5185_v54 = vpop.f32.mrf.mxu2  ;;  %v5299_v29 = vpop.f32.mrf.mxu3 }
 0xd42   : > { %v5300_v30 = vadd.f32 %v13927_v15, %v5299_v29  ;;  %v5532_v34 = vpop.f32.mrf.mxu1  ;;  %v14190_v43 = vadd.f32 %v13932_v59, %v5185_v54  ;;  %v6370_v54 = vpack.c.bf16 %v6354_v20, %v6354_v20 }
 0xd43   : > { %v6477_v34 = vsel %vm1701_vm15, %v6369_v13, 0 }
 0xd44   : > { %16712 = vst [vmem:[#allocation37_spill] sm:$0xff] %v14190_v43  ;;  %v14194_v47 = vpack.c.bf16 %v5300_v30, %v5300_v30  ;;  %v5450_v32 = vmul.f32 %v16676_v53, %v14190_v43  ;;  %v5930_v3 = vmul.f32 %v16697_v17, %v14190_v43  ;;  %v6496_v35 = vsel %vm1701_vm15, %v6370_v54, 0 }
 0xd45   : > { %5633 = vmatmul.bf16.vlgmr.msrb.gmra.mxu1 %v5465_v33  ;;  %6113 = vmatmul.bf16.vlgmr.msrb.gmra.mxu3 %v5945_v21 }
 0xd46   : > { %6410 = vmatpush.bf16.msra.mxu3 %v6401_v50  ;;  %v14192_v50 = vpop.f32.mrf.mxu0  ;;  %16713 = vst [vmem:[#allocation73_spill] sm:$0xff] %v14194_v47  ;;  %5645 = vmatpush.bf16.xpose.msra.mxu2 %v14194_v47  ;;  %v5466_v29 = vpack.c.bf16 %v5450_v32, %v5450_v32 }
 0xd47   : > { %6125 = vmatpush.bf16.xpose.msrb.mxu0 %v14194_v47 }
 0xd49   : > { %v5188_v21 = vpop.f32.mrf.mxu2  ;;  %v5302_v33 = vpop.f32.mrf.mxu3 }
 0xd4a   : > { %6486 = vmatpush.bf16.msrb.mxu3 %v6477_v34  ;;  %v5303_v0 = vadd.f32 %v13927_v15, %v5302_v33  ;;  %v14207_v13 = vpop.f32.mrf.mxu1  ;;  %v14210_v30 = vadd.f32 %v13932_v59, %v5188_v21  ;;  %v5946_v34 = vpack.c.bf16 %v5930_v3, %v5930_v3 }
 0xd4c   : > { %16714 = vst [vmem:[#allocation65_spill] sm:$0xff] %v14210_v30  ;;  %v14214_v47 = vpack.c.bf16 %v5303_v0, %v5303_v0 }
 0xd4d   : > { %5646 = vmatmul.bf16.vlgmr.msra.gmra.mxu2 %v5466_v29 }
 0xd4e   : > { %v14212_v37 = vpop.f32.mrf.mxu0  ;;  %16715 = vst [vmem:[#allocation12_spill] sm:$0xff] %v14214_v47  ;;  %6126 = vmatmul.bf16.vlgmr.msrb.gmra.mxu0 %v5946_v34  ;;  %5658 = vmatpush.bf16.xpose.msra.mxu1 %v14214_v47 }
 0xd4f   : > { %6429 = vmatpush.bf16.msra.mxu0 %v6420_v5  ;;  %v5451_v5 = vmul.f32 %v16676_v53, %v14210_v30 }
 0xd51   : > { %v5190_v20 = vpop.f32.mrf.mxu2  ;;  %v5304_v32 = vpop.f32.mrf.mxu3  ;;  %v5467_v3 = vpack.c.bf16 %v5451_v5, %v5451_v5 }
 0xd52   : > { %v5305_v21 = vadd.f32 %v13927_v15, %v5304_v32  ;;  %v5558_v33 = vpop.f32.mrf.mxu1  ;;  %v14223_v0 = vadd.f32 %v13932_v59, %v5190_v20 }
 0xd53   : > { %6505 = vmatpush.bf16.msrb.mxu0 %v6496_v35 }
 0xd54   : > { %16716 = vst [vmem:[#allocation14_spill] sm:$0xff] %v14223_v0  ;;  %v14225_v34 = vpack.c.bf16 %v5305_v21, %v5305_v21  ;;  %v5452_v54 = vmul.f32 %v16676_v53, %v14223_v0  ;;  %v5919_v21 = vmul.f32 %v16697_v17, %v13960_v52 }
 0xd55   : > { %5659 = vmatmul.bf16.vlgmr.msra.gmra.mxu1 %v5467_v3 }
 0xd56   : > { %5982 = vmatpush.bf16.xpose.msrb.mxu1 %v13965_v14  ;;  %v5971_v29 = vpop.f32.mrf.mxu0  ;;  %16717 = vst [vmem:[#allocation16_spill] sm:$0xff] %v14225_v34  ;;  %5671 = vmatpush.bf16.xpose.msrb.mxu2 %v14225_v34  ;;  %v5468_v59 = vpack.c.bf16 %v5452_v54, %v5452_v54  ;;  %v5935_v22 = vpack.c.bf16 %v5919_v21, %v5919_v21 }
 0xd57   : > { %v14241_v33 = vmul.f32 0.35355338, %v5971_v29  ;;  %v5920_v29 = vmul.f32 %v16697_v17, %v14056_v55 }
 0xd59   : > { %v14232_v35 = vpop.f32.mrf.mxu2  ;;  %v5958_v15 = vpop.f32.mrf.mxu3  ;;  %v6176_v54 = vsel %vm993_vm0, %v14241_v33, -inf  ;;  %v5936_v21 = vpack.c.bf16 %v5920_v29, %v5920_v29  ;;  %v5924_v29 = vmul.f32 %v16697_v17, %v14104_v38 }
 0xd5a   : > { %v14234_v5 = vmul.f32 0.35355338, %v5958_v15 }
 0xd5c   : > { %v6173_v32 = vsel %vm993_vm0, %v14234_v5, -inf }
 0xd5d   : > { %6174 = vmax.xlane.f32.xlu0 %v6173_v32  ;;  %5672 = vmatmul.bf16.vlgmr.msrb.gmra.mxu2 %v5468_v59 }
 0xd5e   : > { %6034 = vmatpush.bf16.xpose.msra.mxu1 %v14030_v25  ;;  %5995 = vmatpush.bf16.xpose.msra.mxu2 %v13982_v60  ;;  %v5973_v20 = vpop.f32.mrf.mxu0 }
 0xd61   : > { %v5493_v3 = vpop.f32.mrf.mxu2  ;;  %v5960_v43 = vpop.f32.mrf.mxu3 }
 0xd65   : > { %6177 = vmax.xlane.f32.xlu0 %v6176_v54  ;;  %5983 = vmatmul.bf16.vlgmr.msrb.gmra.mxu1 %v5935_v22  ;;  %v5923_v22 = vmul.f32 %v16697_v17, %v14028_v1 }
 0xd66   : > { %6047 = vmatpush.bf16.xpose.msrb.mxu2 %v14070_v6  ;;  %v6023_v25 = vpop.f32.mrf.mxu0  ;;  %6086 = vmatpush.bf16.xpose.msrb.mxu1 %v14128_v48 }
 0xd67   : > { %v14245_v15 = vmul.f32 0.35355338, %v6023_v25  ;;  %v5939_v52 = vpack.c.bf16 %v5923_v22, %v5923_v22 }
 0xd69   : > { %v6188_v59 = vsel %vm993_vm0, %v14245_v15, -inf  ;;  %v5517_v20 = vpop.f32.mrf.mxu2  ;;  %v6010_v43 = vpop.f32.mrf.mxu3 }
 0xd6a   : > { %6189 = vmax.xlane.f32.xlu1 %v6188_v59  ;;  %v14252_v32 = vmul.f32 0.35355338, %v6010_v43 }
 0xd6c   : > { %v6185_v25 = vsel %vm993_vm0, %v14252_v32, -inf }
 0xd6d   : > { %6186 = vmax.xlane.f32.xlu2 %v6185_v25  ;;  %5996 = vmatmul.bf16.vlgmr.msra.gmra.mxu2 %v5936_v21  ;;  %v14268_v21 = vadd.f32 %v14133_v9, %v14052_v4  ;;  %v5927_v4 = vmul.f32 %v16697_v17, %v14124_v7 }
 0xd6e   : > { %v6025_v3 = vpop.f32.mrf.mxu0  ;;  %6099 = vmatpush.bf16.xpose.msra.mxu2 %v14148_v12 }
 0xd6f   : > { %16718 = vst [vmem:[#allocation18_spill] sm:$0xff] %v14268_v21  ;;  %v5943_v12 = vpack.c.bf16 %v5927_v4, %v5927_v4 }
 0xd71   : > { %v5519_v54 = vpop.f32.mrf.mxu2  ;;  %v6012_v48 = vpop.f32.mrf.mxu3 }
 0xd72   : > { %v5940_v54 = vpack.c.bf16 %v5924_v29, %v5924_v29  ;;  %v14283_v29 = vadd.f32 %v14133_v9, %v14068_v62  ;;  %v14292_v62 = vmul.f32 0.35355338, %v5517_v20  ;;  %v5931_v20 = vmul.f32 %v16697_v17, %v14210_v30 }
 0xd74   : > { %v14259_v59 = vpop.f32.mrf.mxu1  ;;  %16719 = vst [vmem:[#allocation20_spill] sm:$0xff] %v14283_v29 }
 0xd75   : > { %6035 = vmatmul.bf16.vlgmr.msra.gmra.mxu1 %v5939_v52 }
 0xd76   : > { %6138 = vmatpush.bf16.xpose.msra.mxu1 %v14214_v47  ;;  %v6351_v47 = vmul.f32 %v16697_v17, %v14268_v21 }
 0xd78   : > { %v6367_v38 = vpack.c.bf16 %v6351_v47, %v6351_v47  ;;  %v14298_v47 = vadd.f32 %v14133_v9, %v14106_v10  ;;  %v14309_v10 = vadd.f32 %v14133_v9, %v14110_v42 }
 0xd79   : > { %v14264_v43 = vpop.f32.mrf.mxu2 }
 0xd7a   : > { %v6062_v3 = vpop.f32.mrf.mxu3  ;;  %16720 = vst [vmem:[#allocation21_spill] sm:$0xff] %v14298_v47 }
 0xd7b   : > { %v14270_v25 = vmul.f32 0.35355338, %v6062_v3  ;;  %16721 = vst [vmem:[#allocation22_spill] sm:$0xff] %v14309_v10 }
 0xd7c   : > { %v5584_v48 = vpop.f32.mrf.mxu1  ;;  %v6075_v22 = vpop.f32.mrf.mxu0 }
 0xd7d   : > { %v6197_v52 = vsel %vm993_vm0, %v14270_v25, -inf  ;;  %6048 = vmatmul.bf16.vlgmr.msrb.gmra.mxu2 %v5940_v54  ;;  %v14279_v1 = vmul.f32 0.35355338, %v6075_v22  ;;  %v6352_v22 = vmul.f32 %v16697_v17, %v14283_v29 }
 0xd7e   : > { %6198 = vmax.xlane.f32.xlu2 %v6197_v52  ;;  %6151 = vmatpush.bf16.xpose.msrb.mxu2 %v14225_v34  ;;  %v6439_v34 = vsel %vm1701_vm15, %v6367_v38, 0  ;;  %v5702_v38 = vsel %vm993_vm0, %v14292_v62, -inf }
 0xd7f   : > { %v6200_v52 = vsel %vm993_vm0, %v14279_v1, -inf  ;;  %v6368_v4 = vpack.c.bf16 %v6352_v22, %v6352_v22 }
 0xd81   : > { %v5545_v3 = vpop.f32.mrf.mxu2 }
 0xd82   : > { %v6064_v48 = vpop.f32.mrf.mxu3  ;;  %v5928_v3 = vmul.f32 %v16697_v17, %v14144_v23 }
 0xd84   : > { %v6077_v54 = vpop.f32.mrf.mxu0 }
 0xd85   : > { %6087 = vmatmul.bf16.vlgmr.msrb.gmra.mxu1 %v5943_v12  ;;  %v5944_v12 = vpack.c.bf16 %v5928_v3, %v5928_v3  ;;  %v6458_v54 = vsel %vm1701_vm15, %v6368_v4, 0  ;;  %v5947_v3 = vpack.c.bf16 %v5931_v20, %v5931_v20  ;;  %v6356_v4 = vmul.f32 %v16697_v17, %v14309_v10 }
 0xd86   : > { %6201 = vmax.xlane.f32.xlu2 %v6200_v52  ;;  %6448 = vmatpush.bf16.msrb.mxu1 %v6439_v34  ;;  %v6355_v34 = vmul.f32 %v16697_v17, %v14298_v47 }
 0xd87   : > { %v6372_v30 = vpack.c.bf16 %v6356_v4, %v6356_v4 }
 0xd88   : > { %v6371_v22 = vpack.c.bf16 %v6355_v34, %v6355_v34 }
 0xd89   : > { %v14294_v48 = vpop.f32.mrf.mxu2  ;;  %v6534_v42 = vsel %vm1701_vm15, %v6372_v30, 0 }
 0xd8d   : > { %6100 = vmatmul.bf16.vlgmr.msra.gmra.mxu2 %v5944_v12  ;;  %v6515_v12 = vsel %vm1701_vm15, %v6371_v22, 0 }
 0xd8e   : > { %5703 = vmax.xlane.f32.xlu2 %v5702_v38  ;;  %6467 = vmatpush.bf16.msra.mxu2 %v6458_v54  ;;  %v5932_v38 = vmul.f32 %v16697_v17, %v14223_v0 }
 0xd91   : > { %v5571_v52 = vpop.f32.mrf.mxu2 }
 0xd92   : > { %v5948_v52 = vpack.c.bf16 %v5932_v38, %v5932_v38 }
 0xd95   : > { %6139 = vmatmul.bf16.vlgmr.msra.gmra.mxu1 %v5947_v3 }
 0xd96   : > { %6524 = vmatpush.bf16.msra.mxu1 %v6515_v12 }
 0xd99   : > { %v14316_v54 = vpop.f32.mrf.mxu2 }
 0xd9d   : > { %6152 = vmatmul.bf16.vlgmr.msrb.gmra.mxu2 %v5948_v52 }
 0xd9e   : > { %6543 = vmatpush.bf16.msrb.mxu2 %v6534_v42 }
 0xda1   : > { %v5597_v34 = vpop.f32.mrf.mxu2 }
 0xdb2   : > { %v14319_v20 = vpop.f32.mrf.mxu1 }
 0xdba   : > { %v5610_v3 = vpop.f32.mrf.mxu1 }
 0xdc0   : > { %v14321_v22 = vpop.f32.mrf.mxu2 }
 0xdc2   : > { %v14323_v7 = vpop.f32.mrf.mxu1 }
 0xdc8   : > { %v5623_v12 = vpop.f32.mrf.mxu2  ;;  %v6114_v23 = vpop.f32.mrf.mxu3 }
 0xdc9   : > { %v14325_v39 = vmul.f32 0.35355338, %v6114_v23 }
 0xdca   : > { %v5636_v0 = vpop.f32.mrf.mxu1 }
 0xdcb   : > { %v6127_v2 = vpop.f32.mrf.mxu0  ;;  %v6209_v4 = vsel %vm993_vm0, %v14325_v39, -inf }
 0xdcc   : > { %6210 = vmax.xlane.f32.xlu0 %v6209_v4 }
 0xdd0   : > { %v14329_v30 = vpop.f32.mrf.mxu2  ;;  %v6116_v38 = vpop.f32.mrf.mxu3 }
 0xdd1   : > { %v6175_v3 = vpop.xlane.xlu0 %6174 }
 0xdd2   : > { %v14331_v52 = vpop.f32.mrf.mxu1  ;;  %v6221_v12 = vsub.f32 %v14234_v5, %v6175_v3 }
 0xdd3   : > { %v6129_v42 = vpop.f32.mrf.mxu0 }
 0xdd4   : > { %v6237_v57 = vmul.f32 1.442695, %v6221_v12 }
 0xdd6   : > { %11223 = vpow2.f32 %v6237_v57 }
 0xdd8   : > { %v5649_v34 = vpop.f32.mrf.mxu2 }
 0xdd9   : > { %v14345_v34 = vmul.f32 0.35355338, %v14156_v61 }
 0xdda   : > { %v5662_v55 = vpop.f32.mrf.mxu1 }
 0xddc   : > { %v14340_v6 = vpop.eup %11223 }
 0xddd   : > { %v6269_v55 = vsel %vm993_vm0, %v14340_v6, 0.0  ;;  %v6190_v46 = vpop.xlane.xlu1 %6189 }
 0xde0   : > { %v14334_v23 = vpop.f32.mrf.mxu2 }
 0xde2   : > { %v5984_v0 = vpop.f32.mrf.mxu1 }
 0xde3   : > { %v14336_v56 = vmul.f32 0.35355338, %v5984_v0  ;;  %v5705_v0 = vsel %vm993_vm0, %v14345_v34, -inf }
 0xde5   : > { %v6179_v4 = vsel %vm993_vm0, %v14336_v56, -inf }
 0xde6   : > { %6180 = vmax.xlane.f32.xlu0 %v6179_v4 }
 0xde8   : > { %v5675_v38 = vpop.f32.mrf.mxu2 }
 0xdea   : > { %v5986_v42 = vpop.f32.mrf.mxu1 }
 0xdeb   : > { %v6187_v42 = vpop.xlane.xlu2 %6186 }
 0xdee   : > { %6270 = vadd.xlane.f32.xlu0 %v6269_v55 }
 0xdf0   : > { %v5997_v5 = vpop.f32.mrf.mxu2 }
 0xdf1   : > { %v14347_v3 = vmul.f32 0.35355338, %v5997_v5  ;;  %v6225_v5 = vsub.f32 %v14252_v32, %v6187_v42  ;;  %v14368_v32 = vmul.f32 0.35355338, %v14097_v18  ;;  %v6178_v42 = vpop.xlane.xlu0 %6177  ;;  %v14377_v18 = vmul.f32 0.35355338, %v6127_v2 }
 0xdf2   : > { %v6036_v12 = vpop.f32.mrf.mxu1 }
 0xdf3   : > { %v6182_v57 = vsel %vm993_vm0, %v14347_v3, -inf  ;;  %v14353_v4 = vmul.f32 0.35355338, %v6036_v12  ;;  %v6245_v14 = vmul.f32 1.442695, %v6225_v5  ;;  %v6222_v5 = vsub.f32 %v14241_v33, %v6178_v42  ;;  %v6199_v2 = vpop.xlane.xlu2 %6198 }
 0xdf4   : > { %6183 = vmax.xlane.f32.xlu1 %v6182_v57 }
 0xdf5   : > { %v6191_v61 = vsel %vm993_vm0, %v14353_v4, -inf  ;;  %11225 = vpow2.f32 %v6245_v14 }
 0xdf6   : > { %5706 = vmax.xlane.f32.xlu0 %v5705_v0  ;;  %v6226_v0 = vsub.f32 %v14245_v15, %v6190_v46  ;;  %v5693_v46 = vsel %vm993_vm0, %v14368_v32, -inf  ;;  %v6239_v15 = vmul.f32 1.442695, %v6222_v5 }
 0xdf8   : > { %v5999_v38 = vpop.f32.mrf.mxu2 }
 0xdfa   : > { %v6038_v55 = vpop.f32.mrf.mxu1 }
 0xdfc   : > { %6192 = vmax.xlane.f32.xlu1 %v6191_v61  ;;  %v14370_v61 = vpop.eup %11225 }
 0xdfd   : > { %v6281_v14 = vsel %vm993_vm0, %v14370_v61, 0.0 }
 0xe00   : > { %v6049_v19 = vpop.f32.mrf.mxu2 }
 0xe01   : > { %v14358_v41 = vmul.f32 0.35355338, %v6049_v19  ;;  %v6247_v19 = vmul.f32 1.442695, %v6226_v0 }
 0xe02   : > { %v6088_v57 = vpop.f32.mrf.mxu1 }
 0xe03   : > { %v14360_v27 = vmul.f32 0.35355338, %v6088_v57  ;;  %v6194_v12 = vsel %vm993_vm0, %v14358_v41, -inf  ;;  %11227 = vpow2.f32 %v6247_v19  ;;  %v6212_v19 = vsel %vm993_vm0, %v14377_v18, -inf }
 0xe04   : > { %6195 = vmax.xlane.f32.xlu1 %v6194_v12  ;;  %11229 = vpow2.f32 %v6239_v15  ;;  %v6229_v15 = vsub.f32 %v14270_v25, %v6199_v2 }
 0xe05   : > { %v6203_v38 = vsel %vm993_vm0, %v14360_v27, -inf }
 0xe06   : > { %6204 = vmax.xlane.f32.xlu0 %v6203_v38 }
 0xe08   : > { %v6051_v55 = vpop.f32.mrf.mxu2 }
 0xe09   : > { %v14381_v38 = vpop.eup %11227 }
 0xe0a   : > { %v6090_v57 = vpop.f32.mrf.mxu1  ;;  %v6284_v55 = vsel %vm993_vm0, %v14381_v38, 0.0 }
 0xe0b   : > { %v14391_v57 = vpop.eup %11229 }
 0xe0c   : > { %5694 = vmax.xlane.f32.xlu1 %v5693_v46 }
 0xe0e   : > { %6282 = vadd.xlane.f32.xlu0 %v6281_v14  ;;  %v14394_v14 = vmul.f32 0.35355338, %v14121_v40 }
 0xe10   : > { %v6101_v12 = vpop.f32.mrf.mxu2 }
 0xe11   : > { %v14379_v0 = vmul.f32 0.35355338, %v6101_v12 }
 0xe12   : > { %v6140_v33 = vpop.f32.mrf.mxu1 }
 0xe13   : > { %v6206_v42 = vsel %vm993_vm0, %v14379_v0, -inf  ;;  %v14389_v5 = vmul.f32 0.35355338, %v6140_v33  ;;  %v5699_v33 = vsel %vm993_vm0, %v14394_v14, -inf }
 0xe14   : > { %6207 = vmax.xlane.f32.xlu2 %v6206_v42  ;;  %6213 = vmax.xlane.f32.xlu1 %v6212_v19  ;;  %v6272_v42 = vsel %vm993_vm0, %v14391_v57, 0.0 }
 0xe15   : > { %v6215_v19 = vsel %vm993_vm0, %v14389_v5, -inf }
 0xe16   : > { %6285 = vadd.xlane.f32.xlu0 %v6284_v55  ;;  %v6253_v55 = vmul.f32 1.442695, %v6229_v15 }
 0xe18   : > { %v6103_v46 = vpop.f32.mrf.mxu2  ;;  %11231 = vpow2.f32 %v6253_v55 }
 0xe19   : > { %v14404_v46 = vmul.f32 0.35355338, %v14232_v35  ;;  %v14417_v35 = vmul.f32 0.35355338, %v14294_v48 }
 0xe1a   : > { %v6142_v12 = vpop.f32.mrf.mxu1 }
 0xe1b   : > { %v5696_v25 = vsel %vm993_vm0, %v14404_v46, -inf }
 0xe1c   : > { %6273 = vadd.xlane.f32.xlu1 %v6272_v42  ;;  %6216 = vmax.xlane.f32.xlu2 %v6215_v19  ;;  %v5714_v19 = vsel %vm993_vm0, %v14417_v35, -inf }
 0xe1e   : > { %5700 = vmax.xlane.f32.xlu0 %v5699_v33  ;;  %v14412_v12 = vpop.eup %11231  ;;  %v14422_v33 = vmul.f32 0.35355338, %v14264_v43 }
 0xe1f   : > { %v6293_v15 = vsel %vm993_vm0, %v14412_v12, 0.0 }
 0xe20   : > { %v6153_v40 = vpop.f32.mrf.mxu2  ;;  %v5708_v55 = vsel %vm993_vm0, %v14422_v33, -inf }
 0xe21   : > { %v14406_v11 = vmul.f32 0.35355338, %v6153_v40 }
 0xe23   : > { %v6218_v2 = vsel %vm993_vm0, %v14406_v11, -inf }
 0xe24   : > { %5697 = vmax.xlane.f32.xlu1 %v5696_v25  ;;  %6219 = vmax.xlane.f32.xlu2 %v6218_v2  ;;  %v14428_v2 = vadd.f32 %v14133_v9, %v14114_v44 }
 0xe26   : > { %16722 = vst [vmem:[#allocation23_spill] sm:$0xff] %v14428_v2  ;;  %v6357_v48 = vmul.f32 %v16697_v17, %v14428_v2 }
 0xe28   : > { %v6155_v42 = vpop.f32.mrf.mxu2  ;;  %v6373_v26 = vpack.c.bf16 %v6357_v48, %v6357_v48 }
 0xe2a   : > { %v6553_v44 = vsel %vm1701_vm15, %v6373_v26, 0 }
 0xe2c   : > { %6294 = vadd.xlane.f32.xlu1 %v6293_v15 }
 0xe34   : > { %5715 = vmax.xlane.f32.xlu1 %v5714_v19 }
 0xe3c   : > { %5709 = vmax.xlane.f32.xlu1 %v5708_v55 }
 0xe3f   : > { %v6211_v40 = vpop.xlane.xlu0 %6210 }
 0xe59   : > { %v6181_v25 = vpop.xlane.xlu0 %6180 }
 0xe5a   : > { %v6223_v55 = vsub.f32 %v14336_v56, %v6181_v25  ;;  %v6233_v25 = vsub.f32 %v14325_v39, %v6211_v40 }
 0xe61   : > { %v6271_v42 = vpop.xlane.xlu0 %6270 }
 0xe62   : > { %11233 = vrcp.f32 %v6271_v42  ;;  %v6241_v42 = vmul.f32 1.442695, %v6223_v55 }
 0xe67   : > { %v6184_v15 = vpop.xlane.xlu1 %6183 }
 0xe68   : > { %v11234_v19 = vpop.eup %11233  ;;  %v6224_v43 = vsub.f32 %v14347_v3, %v6184_v15 }
 0xe69   : > { %v6333_v49 = vmul.f32 %v11234_v19, %v14340_v6  ;;  %v14438_v21 = vpop.xlane.xlu0 %5706 }
 0xe6a   : > { %v6243_v60 = vmul.f32 1.442695, %v6224_v43  ;;  %v6261_v43 = vmul.f32 1.442695, %v6233_v25 }
 0xe6b   : > { %v6381_v45 = vpack.c.bf16 %v6333_v49, %v6333_v49  ;;  %v6202_v49 = vpop.xlane.xlu2 %6201 }
 0xe6c   : > { %11235 = vpow2.f32 %v6243_v60 }
 0xe6d   : > { %10504 = vmatmul.msk.bf16.vlgmr.msra.gmra.mxu3 %vm993_vm0, %v6381_v45  ;;  %11237 = vpow2.f32 %v6241_v42  ;;  %v14468_v42 = vadd.f32 %v14133_v9, %v14146_v63 }
 0xe6e   : > { %6562 = vmatpush.bf16.msra.mxu3 %v6553_v44  ;;  %v14463_v44 = vmul.f32 0.35355338, %v14259_v59 }
 0xe6f   : > { %v6193_v47 = vpop.xlane.xlu1 %6192  ;;  %16723 = vst [vmem:[#allocation24_spill] sm:$0xff] %v14468_v42 }
 0xe70   : > { %v6227_v10 = vsub.f32 %v14353_v4, %v6193_v47  ;;  %v5717_v63 = vsel %vm993_vm0, %v14463_v44, -inf }
 0xe72   : > { %v14440_v3 = vpop.eup %11235  ;;  %v6249_v6 = vmul.f32 1.442695, %v6227_v10  ;;  %v6230_v10 = vsub.f32 %v14279_v1, %v6202_v49 }
 0xe73   : > { %v6278_v56 = vsel %vm993_vm0, %v14440_v3, 0.0  ;;  %v14444_v60 = vpop.eup %11237  ;;  %v14460_v40 = vpop.xlane.xlu2 %5703 }
 0xe74   : > { %11239 = vpow2.f32 %v6249_v6  ;;  %6279 = vadd.xlane.f32.xlu2 %v6278_v56  ;;  %v6275_v19 = vsel %vm993_vm0, %v14444_v60, 0.0  ;;  %v6255_v39 = vmul.f32 1.442695, %v6230_v10 }
 0xe77   : > { %v6196_v45 = vpop.xlane.xlu1 %6195 }
 0xe78   : > { %v6228_v26 = vsub.f32 %v14358_v41, %v6196_v45  ;;  %v14458_v41 = vmul.f32 0.35355338, %v14323_v7 }
 0xe79   : > { %v14448_v47 = vpop.xlane.xlu0 %6204 }
 0xe7a   : > { %v14450_v4 = vpop.eup %11239  ;;  %v6251_v48 = vmul.f32 1.442695, %v6228_v26  ;;  %v5729_v7 = vsel %vm993_vm0, %v14458_v41, -inf }
 0xe7b   : > { %v6287_v15 = vsel %vm993_vm0, %v14450_v4, 0.0 }
 0xe7c   : > { %11241 = vpow2.f32 %v6251_v48  ;;  %6288 = vadd.xlane.f32.xlu1 %v6287_v15  ;;  %6276 = vadd.xlane.f32.xlu2 %v6275_v19 }
 0xe7d   : > { %11243 = vpow2.f32 %v6261_v43 }
 0xe7f   : > { %v5695_v55 = vpop.xlane.xlu1 %5694 }
 0xe80   : > { %v5741_v1 = vsub.f32 %v14368_v32, %v5695_v55  ;;  %v6361_v32 = vmul.f32 %v16697_v17, %v14468_v42 }
 0xe81   : > { %v6283_v6 = vpop.xlane.xlu0 %6282 }
 0xe82   : > { %v14470_v56 = vpop.eup %11241  ;;  %v5757_v49 = vmul.f32 1.442695, %v5741_v1  ;;  %11245 = vrcp.f32 %v6283_v6 }
 0xe83   : > { %11247 = vpow2.f32 %v6255_v39  ;;  %v6290_v59 = vsel %vm993_vm0, %v14470_v56, 0.0  ;;  %v14480_v45 = vpop.eup %11243  ;;  %v6377_v39 = vpack.c.bf16 %v6361_v32, %v6361_v32 }
 0xe84   : > { %11249 = vpow2.f32 %v5757_v49  ;;  %5730 = vmax.xlane.f32.xlu1 %v5729_v7  ;;  %6291 = vadd.xlane.f32.xlu0 %v6290_v59  ;;  %v6305_v59 = vsel %vm993_vm0, %v14480_v45, 0.0 }
 0xe85   : > { %5718 = vmax.xlane.f32.xlu2 %v5717_v63  ;;  %v14502_v63 = vmul.f32 0.35355338, %v14321_v22 }
 0xe87   : > { %v6208_v26 = vpop.xlane.xlu2 %6207  ;;  %v6214_v25 = vpop.xlane.xlu1 %6213 }
 0xe88   : > { %v11246_v48 = vpop.eup %11245  ;;  %v6232_v10 = vsub.f32 %v14379_v0, %v6208_v26  ;;  %v6234_v15 = vsub.f32 %v14377_v18, %v6214_v25  ;;  %v14499_v0 = vadd.f32 %v14133_v9, %v14116_v31 }
 0xe89   : > { %v14484_v19 = vpop.eup %11247  ;;  %v6337_v43 = vmul.f32 %v11246_v48, %v14370_v61  ;;  %v6629_v61 = vsel %vm1701_vm15, %v6377_v39, 0  ;;  %v6231_v48 = vsub.f32 %v14360_v27, %v14448_v47  ;;  %v14521_v27 = vmul.f32 0.35355338, %v14316_v54 }
 0xe8a   : > { %v14487_v55 = vpop.eup %11249  ;;  %v6259_v1 = vmul.f32 1.442695, %v6232_v10  ;;  %v6263_v6 = vmul.f32 1.442695, %v6234_v15  ;;  %v6296_v18 = vsel %vm993_vm0, %v14484_v19, 0.0  ;;  %v5726_v15 = vsel %vm993_vm0, %v14502_v63, -inf }
 0xe8b   : > { %v6385_v49 = vpack.c.bf16 %v6337_v43, %v6337_v43  ;;  %v5789_v7 = vsel %vm993_vm0, %v14487_v55, 0.0  ;;  %v6358_v22 = vmul.f32 %v16697_v17, %v14499_v0 }
 0xe8c   : > { %11251 = vpow2.f32 %v6259_v1  ;;  %5790 = vadd.xlane.f32.xlu1 %v5789_v7  ;;  %6306 = vadd.xlane.f32.xlu0 %v6305_v59  ;;  %v6257_v1 = vmul.f32 1.442695, %v6231_v48  ;;  %v14525_v59 = vmul.f32 0.35355338, %v14207_v13  ;;  %v5720_v13 = vsel %vm993_vm0, %v14521_v27, -inf }
 0xe8d   : > { %11253 = vpow2.f32 %v6263_v6  ;;  %6297 = vadd.xlane.f32.xlu2 %v6296_v18  ;;  %10508 = vmatmul.msk.bf16.vlgmr.msrb.gmra.mxu3 %vm993_vm0, %v6385_v49  ;;  %v6374_v7 = vpack.c.bf16 %v6358_v22, %v6358_v22  ;;  %v14528_v18 = vmul.f32 0.35355338, %v14329_v30 }
 0xe8e   : > { %6638 = vmatpush.bf16.msrb.mxu3 %v6629_v61  ;;  %v6286_v61 = vpop.xlane.xlu0 %6285 }
 0xe8f   : > { %v6274_v32 = vpop.xlane.xlu1 %6273  ;;  %v14504_v26 = vpop.xlane.xlu2 %6216  ;;  %v5732_v30 = vsel %vm993_vm0, %v14528_v18, -inf }
 0xe90   : > { %11255 = vrcp.f32 %v6274_v32 }
 0xe91   : > { %11257 = vpow2.f32 %v6257_v1 }
 0xe92   : > { %v14506_v25 = vpop.eup %11251  ;;  %11259 = vrcp.f32 %v6286_v61 }
 0xe93   : > { %v14510_v10 = vpop.eup %11253  ;;  %v6302_v31 = vsel %vm993_vm0, %v14506_v25, 0.0 }
 0xe94   : > { %v6308_v43 = vsel %vm993_vm0, %v14510_v10, 0.0  ;;  %5727 = vmax.xlane.f32.xlu0 %v5726_v15 }
 0xe95   : > { %6309 = vadd.xlane.f32.xlu1 %v6308_v43  ;;  %6303 = vadd.xlane.f32.xlu2 %v6302_v31 }
 0xe96   : > { %v11256_v39 = vpop.eup %11255 }
 0xe97   : > { %v6334_v47 = vmul.f32 %v11256_v39, %v14391_v57  ;;  %v5698_v6 = vpop.xlane.xlu1 %5697  ;;  %v6220_v49 = vpop.xlane.xlu2 %6219  ;;  %v6572_v57 = vsel %vm1701_vm15, %v6374_v7, 0  ;;  %v5745_v7 = vsub.f32 %v14345_v34, %v14438_v21 }
 0xe98   : > { %v5742_v32 = vsub.f32 %v14404_v46, %v5698_v6  ;;  %v6236_v15 = vsub.f32 %v14406_v11, %v6220_v49  ;;  %v5711_v11 = vsel %vm993_vm0, %v14525_v59, -inf  ;;  %v14542_v46 = vadd.f32 %v14133_v9, %v14169_v51  ;;  %v14544_v43 = vpop.eup %11257 }
 0xe99   : > { %v6382_v48 = vpack.c.bf16 %v6334_v47, %v6334_v47  ;;  %v11260_v39 = vpop.eup %11259  ;;  %v5744_v47 = vsub.f32 %v14292_v62, %v14460_v40  ;;  %v5869_v6 = vmul.f32 %v16676_v53, %v14141_v58  ;;  %v6299_v61 = vsel %vm993_vm0, %v14544_v43, 0.0 }
 0xe9a   : > { %v5759_v54 = vmul.f32 1.442695, %v5742_v32  ;;  %v6267_v31 = vmul.f32 1.442695, %v6236_v15  ;;  %v6362_v32 = vmul.f32 %v16697_v17, %v14542_v46  ;;  %v6338_v40 = vmul.f32 %v11260_v39, %v14381_v38 }
 0xe9b   : > { %10505 = vmatmul.msk.bf16.vlgmr.msra.gmra.mxu0 %vm993_vm0, %v6382_v48  ;;  %v5763_v48 = vmul.f32 1.442695, %v5744_v47  ;;  %v5765_v21 = vmul.f32 1.442695, %v5745_v7  ;;  %v6235_v47 = vsub.f32 %v14389_v5, %v14504_v26  ;;  %v5701_v7 = vpop.xlane.xlu0 %5700 }
 0xe9c   : > { %11261 = vpow2.f32 %v5759_v54  ;;  %6581 = vmatpush.bf16.msra.mxu0 %v6572_v57  ;;  %5721 = vmax.xlane.f32.xlu0 %v5720_v13  ;;  %v5885_v57 = vpack.c.bf16 %v5869_v6, %v5869_v6  ;;  %v14567_v13 = vmul.f32 0.35355338, %v14319_v20 }
 0xe9d   : > { %11263 = vpow2.f32 %v6267_v31  ;;  %5733 = vmax.xlane.f32.xlu1 %v5732_v30  ;;  %5712 = vmax.xlane.f32.xlu2 %v5711_v11  ;;  %v6378_v31 = vpack.c.bf16 %v6362_v32, %v6362_v32  ;;  %v14570_v30 = vmul.f32 0.35355338, %v14334_v23  ;;  %v6265_v5 = vmul.f32 1.442695, %v6235_v47 }
 0xe9e   : > { %v5723_v23 = vsel %vm993_vm0, %v14567_v13, -inf }
 0xe9f   : > { %v6295_v22 = vpop.xlane.xlu1 %6294  ;;  %v6648_v20 = vsel %vm1701_vm15, %v6378_v31, 0 }
 0xea0   : > { %11265 = vrcp.f32 %v6295_v22  ;;  %v6386_v22 = vpack.c.bf16 %v6338_v40, %v6338_v40  ;;  %v5743_v40 = vsub.f32 %v14394_v14, %v5701_v7 }
 0xea1   : > { %11267 = vpow2.f32 %v5763_v48 }
 0xea2   : > { %v14546_v1 = vpop.eup %11261  ;;  %11269 = vpow2.f32 %v5765_v21 }
 0xea3   : > { %v14552_v49 = vpop.eup %11263  ;;  %v5792_v51 = vsel %vm993_vm0, %v14546_v1, 0.0 }
 0xea4   : > { %6300 = vadd.xlane.f32.xlu0 %v6299_v61  ;;  %v6314_v62 = vsel %vm993_vm0, %v14552_v49, 0.0 }
 0xea5   : > { %5793 = vadd.xlane.f32.xlu1 %v5792_v51  ;;  %6315 = vadd.xlane.f32.xlu2 %v6314_v62 }
 0xea6   : > { %v11266_v15 = vpop.eup %11265 }
 0xea7   : > { %v6341_v34 = vmul.f32 %v11266_v15, %v14412_v12  ;;  %v5716_v54 = vpop.xlane.xlu1 %5715  ;;  %v6705_v12 = vsel %vm1701_vm15, %v5885_v57, 0  ;;  %v14583_v6 = vpop.eup %11267 }
 0xea8   : > { %v5748_v11 = vsub.f32 %v14417_v35, %v5716_v54  ;;  %v5738_v35 = vsel %vm993_vm0, %v14570_v30, -inf  ;;  %v14586_v61 = vpop.eup %11269  ;;  %v5798_v21 = vsel %vm993_vm0, %v14583_v6, 0.0 }
 0xea9   : > { %v6389_v38 = vpack.c.bf16 %v6341_v34, %v6341_v34  ;;  %v5801_v48 = vsel %vm993_vm0, %v14586_v61, 0.0  ;;  %v14598_v34 = vmul.f32 0.35355338, %v14331_v52 }
 0xeaa   : > { %v5771_v39 = vmul.f32 1.442695, %v5748_v11 }
 0xeab   : > { %10509 = vmatmul.msk.bf16.vlgmr.msrb.gmra.mxu0 %vm993_vm0, %v6386_v22  ;;  %10512 = vmatmul.msk.bf16.vlgmr.msra.gmra.mxu3 %vm993_vm0, %v6389_v38  ;;  %v5735_v57 = vsel %vm993_vm0, %v14598_v34, -inf  ;;  %v14616_v38 = vadd.f32 %v14133_v9, %v14126_v16 }
 0xeac   : > { %11271 = vpow2.f32 %v5771_v39  ;;  %6657 = vmatpush.bf16.msrb.mxu0 %v6648_v20  ;;  %6714 = vmatpush.bf16.msra.mxu3 %v6705_v12 }
 0xead   : > { %5724 = vmax.xlane.f32.xlu0 %v5723_v23  ;;  %5739 = vmax.xlane.f32.xlu2 %v5738_v35  ;;  %11273 = vpow2.f32 %v6265_v5  ;;  %v6360_v47 = vmul.f32 %v16697_v17, %v14616_v38 }
 0xeaf   : > { %v5710_v26 = vpop.xlane.xlu1 %5709  ;;  %v6376_v5 = vpack.c.bf16 %v6360_v47, %v6360_v47 }
 0xeb0   : > { %v5746_v51 = vsub.f32 %v14422_v33, %v5710_v26  ;;  %v5761_v33 = vmul.f32 1.442695, %v5743_v40  ;;  %v11543_v26 = vld [vmem:[%s16285_s2 + $0xc] ss:$0 sm:$0xff] }
 0xeb1   : > { %v14625_v7 = vadd.f32 %v11543_v26, %v14118_v24  ;;  %v14634_v40 = vadd.f32 %v11543_v26, %v14212_v37 }
 0xeb2   : > { %v14588_v32 = vpop.eup %11271  ;;  %v5767_v62 = vmul.f32 1.442695, %v5746_v51  ;;  %v6610_v51 = vsel %vm1701_vm15, %v6376_v5, 0  ;;  %v14645_v5 = vadd.f32 %v11543_v26, %v14192_v50 }
 0xeb3   : > { %v5810_v15 = vsel %vm993_vm0, %v14588_v32, 0.0  ;;  %v14600_v54 = vpop.eup %11273  ;;  %v6364_v37 = vmul.f32 %v16697_v17, %v14634_v40 }
 0xeb4   : > { %11275 = vpow2.f32 %v5767_v62  ;;  %5811 = vadd.xlane.f32.xlu1 %v5810_v15  ;;  %v6311_v11 = vsel %vm993_vm0, %v14600_v54, 0.0  ;;  %v6363_v26 = vmul.f32 %v16697_v17, %v14645_v5 }
 0xeb5   : > { %5802 = vadd.xlane.f32.xlu0 %v5801_v48  ;;  %5799 = vadd.xlane.f32.xlu2 %v5798_v21  ;;  %11277 = vpow2.f32 %v5761_v33 }
 0xeba   : > { %v14602_v14 = vpop.eup %11275 }
 0xebb   : > { %v5804_v31 = vsel %vm993_vm0, %v14602_v14, 0.0  ;;  %v14610_v22 = vpop.eup %11277 }
 0xebc   : > { %5805 = vadd.xlane.f32.xlu1 %v5804_v31  ;;  %v5795_v52 = vsel %vm993_vm0, %v14610_v22, 0.0 }
 0xebd   : > { %5736 = vmax.xlane.f32.xlu0 %v5735_v57  ;;  %6312 = vadd.xlane.f32.xlu2 %v6311_v11 }
 0xec5   : > { %5796 = vadd.xlane.f32.xlu0 %v5795_v52 }
 0xee7   : > { %v6280_v39 = vpop.xlane.xlu2 %6279 }
 0xee8   : > { %11279 = vrcp.f32 %v6280_v39 }
 0xeee   : > { %v11280_v20 = vpop.eup %11279 }
 0xeef   : > { %v6336_v12 = vmul.f32 %v11280_v20, %v14440_v3  ;;  %v6289_v23 = vpop.xlane.xlu1 %6288  ;;  %v6277_v35 = vpop.xlane.xlu2 %6276  ;;  %v6359_v3 = vmul.f32 %v16697_v17, %v14625_v7 }
 0xef0   : > { %v14627_v16 = vpop.f32.mrf.mxu3  ;;  %11281 = vrcp.f32 %v6277_v35 }
 0xef1   : > { %v6384_v9 = vpack.c.bf16 %v6336_v12, %v6336_v12  ;;  %v6375_v57 = vpack.c.bf16 %v6359_v3, %v6359_v3 }
 0xef3   : > { %10507 = vmatmul.msk.bf16.vlgmr.msra.gmra.mxu2 %vm993_vm0, %v6384_v9 }
 0xef4   : > { %6619 = vmatpush.bf16.msra.mxu2 %v6610_v51 }
 0xef6   : > { %v11282_v62 = vpop.eup %11281 }
 0xef7   : > { %v5731_v15 = vpop.xlane.xlu1 %5730  ;;  %v6292_v48 = vpop.xlane.xlu0 %6291  ;;  %v6335_v24 = vmul.f32 %v11282_v62, %v14444_v60  ;;  %v6591_v60 = vsel %vm1701_vm15, %v6375_v57, 0 }
 0xef8   : > { %v5753_v21 = vsub.f32 %v14458_v41, %v5731_v15  ;;  %11283 = vrcp.f32 %v6292_v48  ;;  %v5719_v33 = vpop.xlane.xlu2 %5718  ;;  %v6414_v31 = vpop.f32.mrf.mxu3  ;;  %v5870_v48 = vmul.f32 %v16676_v53, %v14164_v36 }
 0xef9   : > { %v5749_v11 = vsub.f32 %v14463_v44, %v5719_v33  ;;  %v6383_v52 = vpack.c.bf16 %v6335_v24, %v6335_v24  ;;  %11285 = vrcp.f32 %v6289_v23  ;;  %v6380_v44 = vpack.c.bf16 %v6364_v37, %v6364_v37 }
 0xefa   : > { %v5781_v39 = vmul.f32 1.442695, %v5753_v21  ;;  %v5873_v24 = vmul.f32 %v16676_v53, %v14160_v8  ;;  %v6379_v37 = vpack.c.bf16 %v6363_v26, %v6363_v26 }
 0xefb   : > { %v5773_v47 = vmul.f32 1.442695, %v5749_v11  ;;  %10506 = vmatmul.msk.bf16.vlgmr.msrb.gmra.mxu1 %vm993_vm0, %v6383_v52  ;;  %v6686_v15 = vsel %vm1701_vm15, %v6380_v44, 0 }
 0xefc   : > { %11287 = vpow2.f32 %v5781_v39  ;;  %6600 = vmatpush.bf16.msrb.mxu1 %v6591_v60  ;;  %v5886_v60 = vpack.c.bf16 %v5870_v48, %v5870_v48 }
 0xefd   : > { %11289 = vpow2.f32 %v5773_v47 }
 0xefe   : > { %v11284_v41 = vpop.eup %11283 }
 0xeff   : > { %v6340_v20 = vmul.f32 %v11284_v41, %v14470_v56  ;;  %v5791_v12 = vpop.xlane.xlu1 %5790  ;;  %v6307_v35 = vpop.xlane.xlu0 %6306  ;;  %v5889_v41 = vpack.c.bf16 %v5873_v24, %v5873_v24 }
 0xf00   : > { %v6298_v23 = vpop.xlane.xlu2 %6297  ;;  %v11286_v9 = vpop.eup %11285  ;;  %11291 = vrcp.f32 %v6307_v35 }
 0xf01   : > { %v6388_v51 = vpack.c.bf16 %v6340_v20, %v6340_v20  ;;  %11293 = vrcp.f32 %v6298_v23  ;;  %v6339_v21 = vmul.f32 %v11286_v9, %v14450_v4  ;;  %v6667_v4 = vsel %vm1701_vm15, %v6379_v37, 0 }
 0xf02   : > { %v14647_v3 = vpop.eup %11287 }
 0xf03   : > { %v14649_v62 = vpop.eup %11289  ;;  %10511 = vmatmul.msk.bf16.vlgmr.msrb.gmra.mxu2 %vm993_vm0, %v6388_v51  ;;  %v5825_v56 = vsel %vm993_vm0, %v14647_v3, 0.0  ;;  %v6387_v20 = vpack.c.bf16 %v6339_v21, %v6339_v21 }
 0xf04   : > { %6695 = vmatpush.bf16.msrb.mxu2 %v6686_v15  ;;  %5826 = vadd.xlane.f32.xlu0 %v5825_v56  ;;  %v5813_v50 = vsel %vm993_vm0, %v14649_v62, 0.0 }
 0xf05   : > { %5814 = vadd.xlane.f32.xlu2 %v5813_v50 }
 0xf06   : > { %v11292_v33 = vpop.eup %11291 }
 0xf07   : > { %v5728_v31 = vpop.xlane.xlu0 %5727  ;;  %v11294_v57 = vpop.eup %11293  ;;  %v6345_v11 = vmul.f32 %v11292_v33, %v14480_v45  ;;  %v6724_v45 = vsel %vm1701_vm15, %v5886_v60, 0 }
 0xf08   : > { %v6310_v52 = vpop.xlane.xlu1 %6309  ;;  %v5752_v39 = vsub.f32 %v14502_v63, %v5728_v31  ;;  %v6304_v47 = vpop.xlane.xlu2 %6303  ;;  %v6342_v17 = vmul.f32 %v11294_v57, %v14484_v19  ;;  %v6781_v19 = vsel %vm1701_vm15, %v5889_v41, 0  ;;  %v5872_v63 = vmul.f32 %v16676_v53, %v14283_v29 }
 0xf09   : > { %v6393_v35 = vpack.c.bf16 %v6345_v11, %v6345_v11  ;;  %11295 = vrcp.f32 %v6304_v47  ;;  %v5874_v47 = vmul.f32 %v16676_v53, %v14187_v28 }
 0xf0a   : > { %v5779_v44 = vmul.f32 1.442695, %v5752_v39  ;;  %v6390_v23 = vpack.c.bf16 %v6342_v17, %v6342_v17  ;;  %v5888_v21 = vpack.c.bf16 %v5872_v63, %v5872_v63 }
 0xf0b   : > { %10510 = vmatmul.msk.bf16.vlgmr.msra.gmra.mxu1 %vm993_vm0, %v6387_v20  ;;  %10516 = vmatmul.msk.bf16.vlgmr.msrb.gmra.mxu3 %vm993_vm0, %v6393_v35 }
 0xf0c   : > { %11297 = vpow2.f32 %v5779_v44  ;;  %10513 = vmatmul.msk.bf16.vlgmr.msra.gmra.mxu0 %vm993_vm0, %v6390_v23  ;;  %6676 = vmatpush.bf16.msra.mxu1 %v6667_v4  ;;  %v5890_v23 = vpack.c.bf16 %v5874_v47, %v5874_v47 }
 0xf0d   : > { %11299 = vrcp.f32 %v5791_v12  ;;  %6733 = vmatpush.bf16.msra.mxu0 %v6724_v45  ;;  %6790 = vmatpush.bf16.msrb.mxu3 %v6781_v19  ;;  %v16725_v19 = vld [vmem:[#allocation18_spill] sm:$0xff] }
 0xf0e   : > { %11301 = vrcp.f32 %v6310_v52 }
 0xf0f   : > { %v5722_v9 = vpop.xlane.xlu0 %5721  ;;  %v11296_v51 = vpop.eup %11295 }
 0xf10   : > { %v5734_v15 = vpop.xlane.xlu1 %5733  ;;  %v5750_v56 = vsub.f32 %v14521_v27, %v5722_v9  ;;  %v5713_v50 = vpop.xlane.xlu2 %5712  ;;  %v6344_v12 = vmul.f32 %v11296_v51, %v14506_v25  ;;  %v5877_v25 = vmul.f32 %v16676_v53, %v14428_v2 }
 0xf11   : > { %v5754_v26 = vsub.f32 %v14528_v18, %v5734_v15  ;;  %v5747_v48 = vsub.f32 %v14525_v59, %v5713_v50  ;;  %v14679_v24 = vpop.f32.mrf.mxu3  ;;  %v6762_v59 = vsel %vm1701_vm15, %v5888_v21, 0 }
 0xf12   : > { %16724 = vst [vmem:[#allocation25_spill] sm:$0xff] %v14679_v24  ;;  %v14681_v33 = vpop.eup %11297  ;;  %v5775_v31 = vmul.f32 1.442695, %v5750_v56  ;;  %v6392_v11 = vpack.c.bf16 %v6344_v12, %v6344_v12  ;;  %v5893_v20 = vpack.c.bf16 %v5877_v25, %v5877_v25  ;;  %v16726_v56 = vld [vmem:[#allocation22_spill] sm:$0xff]  ;;  %v6800_v12 = vsel %vm1701_vm15, %v5890_v23, 0 }
 0xf13   : > { %v11300_v57 = vpop.eup %11299  ;;  %v5769_v52 = vmul.f32 1.442695, %v5747_v48  ;;  %v5822_v39 = vsel %vm993_vm0, %v14681_v33, 0.0  ;;  %v5783_v18 = vmul.f32 1.442695, %v5754_v26  ;;  %v5876_v50 = vmul.f32 %v16676_v53, %v16726_v56 }
 0xf14   : > { %v11302_v27 = vpop.eup %11301  ;;  %11303 = vpow2.f32 %v5775_v31  ;;  %5823 = vadd.xlane.f32.xlu2 %v5822_v39  ;;  %10515 = vmatmul.msk.bf16.vlgmr.msra.gmra.mxu2 %vm993_vm0, %v6392_v11  ;;  %v5853_v37 = vmul.f32 %v11300_v57, %v14487_v55  ;;  %v5871_v55 = vmul.f32 %v16676_v53, %v16725_v19  ;;  %v6857_v15 = vsel %vm1701_vm15, %v5893_v20, 0 }
 0xf15   : > { %11305 = vpow2.f32 %v5769_v52  ;;  %6771 = vmatpush.bf16.msra.mxu2 %v6762_v59  ;;  %v6346_v17 = vmul.f32 %v11302_v27, %v14510_v10  ;;  %v5892_v27 = vpack.c.bf16 %v5876_v50, %v5876_v50 }
 0xf16   : > { %v5901_v45 = vpack.c.bf16 %v5853_v37, %v5853_v37  ;;  %v5887_v21 = vpack.c.bf16 %v5871_v55, %v5871_v55 }
 0xf17   : > { %v6301_v60 = vpop.xlane.xlu0 %6300  ;;  %v6394_v63 = vpack.c.bf16 %v6346_v17, %v6346_v17 }
 0xf18   : > { %11307 = vrcp.f32 %v6301_v60  ;;  %v6316_v41 = vpop.xlane.xlu2 %6315  ;;  %v14693_v35 = vpop.f32.mrf.mxu0  ;;  %v6743_v17 = vsel %vm1701_vm15, %v5887_v21, 0  ;;  %v5880_v21 = vmul.f32 %v16676_v53, %v14616_v38 }
 0xf19   : > { %11309 = vpow2.f32 %v5783_v18  ;;  %v6490_v44 = vpop.f32.mrf.mxu3  ;;  %v5794_v9 = vpop.xlane.xlu1 %5793 }
 0xf1a   : > { %v14695_v4 = vpop.eup %11303  ;;  %11311 = vrcp.f32 %v6316_v41 }
 0xf1b   : > { %v5816_v10 = vsel %vm993_vm0, %v14695_v4, 0.0  ;;  %v14701_v51 = vpop.eup %11305  ;;  %10520 = vmatmul.msk.bf16.vlgmr.msra.gmra.mxu3 %vm993_vm0, %v5901_v45  ;;  %11313 = vrcp.f32 %v5794_v9 }
 0xf1c   : > { %5817 = vadd.xlane.f32.xlu2 %v5816_v10  ;;  %10517 = vmatmul.msk.bf16.vlgmr.msrb.gmra.mxu0 %vm993_vm0, %v6394_v63  ;;  %v5807_v26 = vsel %vm993_vm0, %v14701_v51, 0.0 }
 0xf1d   : > { %6866 = vmatpush.bf16.msra.mxu3 %v6857_v15  ;;  %6809 = vmatpush.bf16.msrb.mxu0 %v6800_v12 }
 0xf1e   : > { %v11308_v48 = vpop.eup %11307  ;;  %5808 = vadd.xlane.f32.xlu1 %v5807_v26  ;;  %v5881_v26 = vmul.f32 %v16676_v53, %v14468_v42 }
 0xf1f   : > { %v14711_v31 = vpop.eup %11309  ;;  %v6343_v57 = vmul.f32 %v11308_v48, %v14544_v43 }
 0xf20   : > { %v11312_v11 = vpop.eup %11311  ;;  %v5725_v52 = vpop.xlane.xlu0 %5724  ;;  %v5828_v43 = vsel %vm993_vm0, %v14711_v31, 0.0 }
 0xf21   : > { %v5740_v39 = vpop.xlane.xlu2 %5739  ;;  %v6391_v25 = vpack.c.bf16 %v6343_v57, %v6343_v57  ;;  %v6348_v18 = vmul.f32 %v11312_v11, %v14552_v49  ;;  %v5751_v59 = vsub.f32 %v14567_v13, %v5725_v52  ;;  %v6433_v37 = vpop.f32.mrf.mxu0  ;;  %v6838_v49 = vsel %vm1701_vm15, %v5892_v27, 0 }
 0xf22   : > { %v5756_v47 = vsub.f32 %v14570_v30, %v5740_v39  ;;  %v11314_v44 = vpop.eup %11313  ;;  %v5878_v13 = vmul.f32 %v16676_v53, %v14499_v0 }
 0xf23   : > { %v6396_v60 = vpack.c.bf16 %v6348_v18, %v6348_v18  ;;  %v5777_v41 = vmul.f32 1.442695, %v5751_v59  ;;  %10514 = vmatmul.msk.bf16.vlgmr.msrb.gmra.mxu1 %vm993_vm0, %v6391_v25  ;;  %v5854_v30 = vmul.f32 %v11314_v44, %v14546_v1  ;;  %v5897_v59 = vpack.c.bf16 %v5881_v26, %v5881_v26 }
 0xf24   : > { %v5787_v20 = vmul.f32 1.442695, %v5756_v47  ;;  %6752 = vmatpush.bf16.msrb.mxu1 %v6743_v17  ;;  %5829 = vadd.xlane.f32.xlu2 %v5828_v43  ;;  %v5894_v9 = vpack.c.bf16 %v5878_v13, %v5878_v13 }
 0xf25   : > { %11315 = vpow2.f32 %v5777_v41  ;;  %10519 = vmatmul.msk.bf16.vlgmr.msrb.gmra.mxu2 %vm993_vm0, %v6396_v60  ;;  %v5902_v15 = vpack.c.bf16 %v5854_v30, %v5854_v30  ;;  %v5896_v60 = vpack.c.bf16 %v5880_v21, %v5880_v21  ;;  %v6933_v44 = vsel %vm1701_vm15, %v5897_v59, 0 }
 0xf26   : > { %11317 = vpow2.f32 %v5787_v20  ;;  %6847 = vmatpush.bf16.msrb.mxu2 %v6838_v49  ;;  %v6876_v1 = vsel %vm1701_vm15, %v5894_v9, 0  ;;  %v16729_v49 = vld [vmem:[#allocation21_spill] sm:$0xff]  ;;  %v5879_v59 = vmul.f32 %v16676_v53, %v14625_v7 }
 0xf27   : > { %v5812_v23 = vpop.xlane.xlu1 %5811 }
 0xf28   : > { %v5803_v45 = vpop.xlane.xlu0 %5802 }
 0xf29   : > { %v5800_v55 = vpop.xlane.xlu2 %5799  ;;  %11319 = vrcp.f32 %v5803_v45  ;;  %v14726_v63 = vpop.f32.mrf.mxu0 }
 0xf2a   : > { %16727 = vst [vmem:[#allocation26_spill] sm:$0xff] %v14726_v63  ;;  %11321 = vrcp.f32 %v5800_v55 }
 0xf2b   : > { %v14728_v10 = vpop.eup %11315 }
 0xf2c   : > { %v14730_v50 = vpop.eup %11317  ;;  %v5819_v12 = vsel %vm993_vm0, %v14728_v10, 0.0  ;;  %10521 = vmatmul.msk.bf16.vlgmr.msra.gmra.mxu0 %vm993_vm0, %v5902_v15 }
 0xf2d   : > { %5820 = vadd.xlane.f32.xlu1 %v5819_v12  ;;  %v5834_v48 = vsel %vm993_vm0, %v14730_v50, 0.0  ;;  %6885 = vmatpush.bf16.msra.mxu0 %v6876_v1 }
 0xf2e   : > { %5835 = vadd.xlane.f32.xlu0 %v5834_v48  ;;  %v14742_v57 = vpop.f32.mrf.mxu3 }
 0xf2f   : > { %16728 = vst [vmem:[#allocation27_spill] sm:$0xff] %v14742_v57  ;;  %v11320_v11 = vpop.eup %11319  ;;  %v5806_v52 = vpop.xlane.xlu1 %5805  ;;  %v16770_v57 = vld [vmem:[#allocation35_spill] sm:$0xff] }
 0xf30   : > { %v11322_v39 = vpop.eup %11321  ;;  %v5857_v27 = vmul.f32 %v11320_v11, %v14586_v61  ;;  %11323 = vrcp.f32 %v5806_v52  ;;  %v5737_v25 = vpop.xlane.xlu0 %5736  ;;  %v5875_v61 = vmul.f32 %v16676_v53, %v16729_v49 }
 0xf31   : > { %v6313_v18 = vpop.xlane.xlu2 %6312  ;;  %v5856_v47 = vmul.f32 %v11322_v39, %v14583_v6  ;;  %v5755_v37 = vsub.f32 %v14598_v34, %v5737_v25  ;;  %v6509_v17 = vpop.f32.mrf.mxu0  ;;  %v6914_v6 = vsel %vm1701_vm15, %v5896_v60, 0  ;;  %v5882_v34 = vmul.f32 %v16676_v53, %v14542_v46 }
 0xf32   : > { %11325 = vrcp.f32 %v6313_v18  ;;  %v5905_v41 = vpack.c.bf16 %v5857_v27, %v5857_v27  ;;  %v5891_v15 = vpack.c.bf16 %v5875_v61, %v5875_v61  ;;  %v5895_v17 = vpack.c.bf16 %v5879_v59, %v5879_v59 }
 0xf33   : > { %v5904_v20 = vpack.c.bf16 %v5856_v47, %v5856_v47  ;;  %v5785_v43 = vmul.f32 1.442695, %v5755_v37  ;;  %v5898_v26 = vpack.c.bf16 %v5882_v34, %v5882_v34 }
 0xf34   : > { %10524 = vmatmul.msk.bf16.vlgmr.msrb.gmra.mxu3 %vm993_vm0, %v5905_v41  ;;  %v6819_v52 = vsel %vm1701_vm15, %v5891_v15, 0  ;;  %v6895_v41 = vsel %vm1701_vm15, %v5895_v17, 0 }
 0xf35   : > { %11327 = vpow2.f32 %v5785_v43  ;;  %10523 = vmatmul.msk.bf16.vlgmr.msra.gmra.mxu2 %vm993_vm0, %v5904_v20  ;;  %6942 = vmatpush.bf16.msrb.mxu3 %v6933_v44 }
 0xf36   : > { %v11324_v13 = vpop.eup %11323  ;;  %11329 = vrcp.f32 %v5812_v23  ;;  %6923 = vmatpush.bf16.msra.mxu2 %v6914_v6  ;;  %v6566_v30 = vpop.f32.mrf.mxu3 }
 0xf37   : > { %v5858_v55 = vmul.f32 %v11324_v13, %v14602_v14  ;;  %v5884_v14 = vmul.f32 %v16676_v53, %v14634_v40  ;;  %v16731_v30 = vld [vmem:[#allocation60_spill] sm:$0xff] }
 0xf38   : > { %v11326_v45 = vpop.eup %11325  ;;  %v5797_v48 = vpop.xlane.xlu0 %5796 }
 0xf39   : > { %v6347_v9 = vmul.f32 %v11326_v45, %v14600_v54  ;;  %v5906_v12 = vpack.c.bf16 %v5858_v55, %v5858_v55  ;;  %11331 = vrcp.f32 %v5797_v48  ;;  %v6952_v54 = vsel %vm1701_vm15, %v5898_v26, 0 }
 0xf3a   : > { %v5900_v27 = vpack.c.bf16 %v5884_v14, %v5884_v14 }
 0xf3b   : > { %v6395_v1 = vpack.c.bf16 %v6347_v9, %v6347_v9  ;;  %v14757_v21 = vpop.eup %11327 }
 0xf3c   : > { %v11330_v11 = vpop.eup %11329  ;;  %v5831_v23 = vsel %vm993_vm0, %v14757_v21, 0.0  ;;  %10525 = vmatmul.msk.bf16.vlgmr.msrb.gmra.mxu0 %vm993_vm0, %v5906_v12  ;;  %v6990_v47 = vsel %vm1701_vm15, %v5900_v27, 0 }
 0xf3d   : > { %10518 = vmatmul.msk.bf16.vlgmr.msra.gmra.mxu1 %vm993_vm0, %v6395_v1  ;;  %6961 = vmatpush.bf16.msrb.mxu0 %v6952_v54  ;;  %v5860_v39 = vmul.f32 %v11330_v11, %v14588_v32 }
 0xf3e   : > { %6828 = vmatpush.bf16.msra.mxu1 %v6819_v52  ;;  %5832 = vadd.xlane.f32.xlu0 %v5831_v23 }
 0xf3f   : > { %v11332_v25 = vpop.eup %11331  ;;  %v5908_v18 = vpack.c.bf16 %v5860_v39, %v5860_v39 }
 0xf40   : > { %v5855_v37 = vmul.f32 %v11332_v25, %v14610_v22  ;;  %v16735_v25 = vld [vmem:[#allocation50_spill] sm:$0xff] }
 0xf42   : > { %v5903_v60 = vpack.c.bf16 %v5855_v37, %v5855_v37 }
 0xf45   : > { %10527 = vmatmul.msk.bf16.vlgmr.msrb.gmra.mxu2 %vm993_vm0, %v5908_v18 }
 0xf46   : > { %6999 = vmatpush.bf16.msrb.mxu2 %v6990_v47 }
 0xf4d   : > { %10522 = vmatmul.msk.bf16.vlgmr.msrb.gmra.mxu1 %vm993_vm0, %v5903_v60 }
 0xf4e   : > { %6904 = vmatpush.bf16.msrb.mxu1 %v6895_v41 }
 0xf76   : > { %v14775_v32 = vpop.f32.mrf.mxu2 }
 0xf77   : > { %v5827_v22 = vpop.xlane.xlu0 %5826 }
 0xf78   : > { %v5815_v20 = vpop.xlane.xlu2 %5814  ;;  %v14777_v43 = vpop.f32.mrf.mxu1 }
 0xf79   : > { %11333 = vrcp.f32 %v5815_v20  ;;  %16730 = vst [vmem:[#allocation13_spill] sm:$0xff] %v14777_v43 }
 0xf7a   : > { %11335 = vrcp.f32 %v5827_v22  ;;  %v16741_v22 = vld [vmem:[#allocation10_spill] sm:$0xff] }
 0xf7e   : > { %v6471_v44 = vpop.f32.mrf.mxu2 }
 0xf7f   : > { %v11334_v61 = vpop.eup %11333 }
 0xf80   : > { %v5861_v6 = vmul.f32 %v11334_v61, %v14649_v62  ;;  %v6452_v34 = vpop.f32.mrf.mxu1  ;;  %v11336_v12 = vpop.eup %11335 }
 0xf81   : > { %v5865_v62 = vmul.f32 %v11336_v12, %v14647_v3  ;;  %v16736_v3 = vld [vmem:[#allocation70_spill] sm:$0xff]  ;;  %v16739_v34 = vld [vmem:[#allocation33_spill] sm:$0xff] }
 0xf82   : > { %v5909_v13 = vpack.c.bf16 %v5861_v6, %v5861_v6 }
 0xf83   : > { %v5913_v39 = vpack.c.bf16 %v5865_v62, %v5865_v62 }
 0xf84   : > { %10528 = vmatmul.msk.bf16.vlgmr.msra.gmra.mxu3 %vm993_vm0, %v5909_v13 }
 0xf85   : > { %7044 = vmatpush.bf16.xpose.msra.mxu3 %v16731_v30 }
 0xf86   : > { %v14782_v45 = vpop.f32.mrf.mxu2 }
 0xf87   : > { %v5824_v55 = vpop.xlane.xlu2 %5823 }
 0xf88   : > { %11337 = vrcp.f32 %v5824_v55  ;;  %v14784_v9 = vpop.f32.mrf.mxu1 }
 0xf89   : > { %16732 = vst [vmem:[#allocation15_spill] sm:$0xff] %v14784_v9  ;;  %v14786_v15 = vpop.f32.mrf.mxu0  ;;  %v16767_v9 = vld [vmem:[#allocation49_spill] sm:$0xff] }
 0xf8a   : > { %16733 = vst [vmem:[#allocation17_spill] sm:$0xff] %v14786_v15  ;;  %v16769_v15 = vld [vmem:[#allocation72_spill] sm:$0xff] }
 0xf8e   : > { %v11338_v26 = vpop.eup %11337  ;;  %v6547_v1 = vpop.f32.mrf.mxu2 }
 0xf8f   : > { %v5864_v48 = vmul.f32 %v11338_v26, %v14681_v33  ;;  %v14790_v11 = vpop.f32.mrf.mxu3  ;;  %v5818_v52 = vpop.xlane.xlu2 %5817  ;;  %v5883_v33 = vmul.f32 %v16676_v53, %v14645_v5 }
 0xf90   : > { %16734 = vst [vmem:[#allocation19_spill] sm:$0xff] %v14790_v11  ;;  %11339 = vrcp.f32 %v5818_v52  ;;  %v6528_v14 = vpop.f32.mrf.mxu1 }
 0xf91   : > { %v5912_v23 = vpack.c.bf16 %v5864_v48, %v5864_v48  ;;  %v5809_v54 = vpop.xlane.xlu1 %5808  ;;  %v6585_v27 = vpop.f32.mrf.mxu0  ;;  %v5899_v44 = vpack.c.bf16 %v5883_v33, %v5883_v33 }
 0xf92   : > { %11341 = vrcp.f32 %v5809_v54  ;;  %v16743_v54 = vld [vmem:[#allocation28_spill] sm:$0xff] }
 0xf93   : > { %10531 = vmatmul.msk.bf16.vlgmr.msra.gmra.mxu2 %vm993_vm0, %v5912_v23  ;;  %v6971_v53 = vsel %vm1701_vm15, %v5899_v44, 0  ;;  %v16746_v44 = vld [vmem:[#allocation45_spill] sm:$0xff] }
 0xf94   : > { %10532 = vmatmul.msk.bf16.vlgmr.msrb.gmra.mxu3 %vm993_vm0, %v5913_v39  ;;  %7083 = vmatpush.bf16.xpose.msra.mxu2 %v16735_v25 }
 0xf95   : > { %7096 = vmatpush.bf16.xpose.msrb.mxu3 %v16736_v3 }
 0xf96   : > { %v11340_v18 = vpop.eup %11339 }
 0xf97   : > { %v5862_v59 = vmul.f32 %v11340_v18, %v14695_v4  ;;  %v6642_v47 = vpop.f32.mrf.mxu3  ;;  %v14799_v17 = vpop.f32.mrf.mxu2  ;;  %v16740_v4 = vld [vmem:[#allocation36_spill] sm:$0xff] }
 0xf98   : > { %v11342_v37 = vpop.eup %11341  ;;  %16737 = vst [vmem:[#allocation30_spill] sm:$0xff] %v14799_v17  ;;  %v5830_v20 = vpop.xlane.xlu2 %5829  ;;  %v7005_v13 = vmul.f32 %v16741_v22, %v16740_v4 }
 0xf99   : > { %v5859_v60 = vmul.f32 %v11342_v37, %v14701_v51  ;;  %v5910_v41 = vpack.c.bf16 %v5862_v59, %v5862_v59  ;;  %v14802_v61 = vpop.f32.mrf.mxu0  ;;  %11343 = vrcp.f32 %v5830_v20 }
 0xf9a   : > { %16738 = vst [vmem:[#allocation9_spill] sm:$0xff] %v14802_v61  ;;  %v7021_v48 = vpack.c.bf16 %v7005_v13, %v7005_v13  ;;  %v16762_v61 = vld [vmem:[#allocation55_spill] sm:$0xff] }
 0xf9b   : > { %v5907_v6 = vpack.c.bf16 %v5859_v60, %v5859_v60  ;;  %10529 = vmatmul.msk.bf16.vlgmr.msra.gmra.mxu0 %vm993_vm0, %v5910_v41  ;;  %v7012_v11 = vmul.f32 %v16741_v22, %v16762_v61 }
 0xf9c   : > { %7057 = vmatpush.bf16.xpose.msra.mxu0 %v16739_v34 }
 0xf9d   : > { %10526 = vmatmul.msk.bf16.vlgmr.msra.gmra.mxu1 %vm993_vm0, %v5907_v6  ;;  %v16747_v6 = vld [vmem:[#allocation51_spill] sm:$0xff] }
 0xf9e   : > { %6980 = vmatpush.bf16.msra.mxu1 %v6971_v53  ;;  %v16748_v53 = vld [vmem:[#allocation38_spill] sm:$0xff] }
 0xf9f   : > { %v14810_v51 = vpop.f32.mrf.mxu3  ;;  %v6623_v55 = vpop.f32.mrf.mxu2 }
 0xfa0   : > { %v5821_v12 = vpop.xlane.xlu1 %5820  ;;  %v14812_v62 = vpop.f32.mrf.mxu1 }
 0xfa1   : > { %11345 = vrcp.f32 %v5821_v12  ;;  %v5836_v26 = vpop.xlane.xlu0 %5835  ;;  %16742 = vst [vmem:[#allocation60_spill] sm:$0xff] %v14812_v62  ;;  %v11344_v1 = vpop.eup %11343 }
 0xfa2   : > { %11347 = vrcp.f32 %v5836_v26  ;;  %v6661_v52 = vpop.f32.mrf.mxu0  ;;  %v5866_v23 = vmul.f32 %v11344_v1, %v14711_v31  ;;  %v16745_v31 = vld [vmem:[#allocation29_spill] sm:$0xff]  ;;  %v16749_v26 = vld [vmem:[#allocation64_spill] sm:$0xff] }
 0xfa3   : > { %v7006_v1 = vmul.f32 %v16741_v22, %v16749_v26  ;;  %v16751_v52 = vld [vmem:[#allocation59_spill] sm:$0xff] }
 0xfa4   : > { %7045 = vmatmul.bf16.vlgmr.msra.gmra.mxu3 %v7021_v48  ;;  %v5914_v59 = vpack.c.bf16 %v5866_v23, %v5866_v23  ;;  %v16750_v48 = vld [vmem:[#allocation47_spill] sm:$0xff]  ;;  %v7008_v23 = vmul.f32 %v16741_v22, %v16751_v52 }
 0xfa5   : > { %7148 = vmatpush.bf16.xpose.msra.mxu3 %v16743_v54 }
 0xfa7   : > { %v11346_v14 = vpop.eup %11345  ;;  %v6718_v39 = vpop.f32.mrf.mxu3 }
 0xfa8   : > { %v11348_v27 = vpop.eup %11347  ;;  %v5863_v33 = vmul.f32 %v11346_v14, %v14728_v10  ;;  %v14817_v18 = vpop.f32.mrf.mxu2  ;;  %v7009_v10 = vmul.f32 %v16741_v22, %v16746_v44 }
 0xfa9   : > { %16744 = vst [vmem:[#allocation50_spill] sm:$0xff] %v14817_v18  ;;  %v5868_v47 = vmul.f32 %v11348_v27, %v14730_v50  ;;  %v6604_v37 = vpop.f32.mrf.mxu1  ;;  %v16760_v18 = vld [vmem:[#allocation58_spill] sm:$0xff] }
 0xfaa   : > { %v5911_v60 = vpack.c.bf16 %v5863_v33, %v5863_v33  ;;  %v14820_v41 = vpop.f32.mrf.mxu0  ;;  %v7025_v55 = vpack.c.bf16 %v7009_v10, %v7009_v10  ;;  %v7022_v33 = vpack.c.bf16 %v7006_v1, %v7006_v1 }
 0xfab   : > { %v5916_v20 = vpack.c.bf16 %v5868_v47, %v5868_v47  ;;  %10533 = vmatmul.msk.bf16.vlgmr.msrb.gmra.mxu0 %vm993_vm0, %v5914_v59 }
 0xfac   : > { %7109 = vmatpush.bf16.xpose.msrb.mxu0 %v16745_v31 }
 0xfad   : > { %10530 = vmatmul.msk.bf16.vlgmr.msrb.gmra.mxu1 %vm993_vm0, %v5911_v60  ;;  %10535 = vmatmul.msk.bf16.vlgmr.msrb.gmra.mxu2 %vm993_vm0, %v5916_v20  ;;  %v7024_v20 = vpack.c.bf16 %v7008_v23, %v7008_v23 }
 0xfae   : > { %7070 = vmatpush.bf16.xpose.msrb.mxu1 %v16747_v6  ;;  %7135 = vmatpush.bf16.xpose.msrb.mxu2 %v16748_v53 }
 0xfb0   : > { %v6699_v50 = vpop.f32.mrf.mxu2 }
 0xfb1   : > { %v5833_v13 = vpop.xlane.xlu0 %5832  ;;  %v16756_v50 = vld [vmem:[#allocation31_spill] sm:$0xff] }
 0xfb2   : > { %11349 = vrcp.f32 %v5833_v13  ;;  %v6737_v12 = vpop.f32.mrf.mxu0  ;;  %v7437_v13 = vmul.f32 %v16741_v22, %v14141_v58 }
 0xfb3   : > { %v16759_v12 = vld [vmem:[#allocation57_spill] sm:$0xff] }
 0xfb4   : > { %7097 = vmatmul.bf16.vlgmr.msrb.gmra.mxu3 %v7025_v55  ;;  %v16757_v55 = vld [vmem:[#allocation39_spill] sm:$0xff]  ;;  %v7453_v23 = vpack.c.bf16 %v7437_v13, %v7437_v13 }
 0xfb5   : > { %7200 = vmatpush.bf16.xpose.msrb.mxu3 %v16750_v48 }
 0xfb7   : > { %v14835_v14 = vpop.f32.mrf.mxu3 }
 0xfb8   : > { %16752 = vst [vmem:[#allocation70_spill] sm:$0xff] %v14835_v14  ;;  %v11350_v39 = vpop.eup %11349  ;;  %v6773_v27 = vpop.f32.mrf.mxu2 }
 0xfb9   : > { %v5867_v59 = vmul.f32 %v11350_v39, %v14757_v21  ;;  %v14839_v47 = vadd.f32 %v6773_v27, %v14775_v32  ;;  %v7013_v21 = vmul.f32 %v16741_v22, %v16757_v55  ;;  %v16758_v32 = vld [vmem:[#allocation48_spill] sm:$0xff] }
 0xfba   : > { %v14841_v37 = vpop.f32.mrf.mxu1  ;;  %v14843_v60 = vpop.f32.mrf.mxu0 }
 0xfbb   : > { %16753 = vst [vmem:[#allocation33_spill] sm:$0xff] %v14839_v47  ;;  %v5915_v10 = vpack.c.bf16 %v5867_v59, %v5867_v59  ;;  %7058 = vmatmul.bf16.vlgmr.msra.gmra.mxu0 %v7022_v33  ;;  %v7029_v33 = vpack.c.bf16 %v7013_v21, %v7013_v21 }
 0xfbc   : > { %16754 = vst [vmem:[#allocation36_spill] sm:$0xff] %v14841_v37  ;;  %7161 = vmatpush.bf16.xpose.msra.mxu0 %v16756_v50  ;;  %v7489_v37 = vsel %vm1701_vm15, %v7453_v23, 0  ;;  %v16765_v23 = vld [vmem:[#allocation73_spill] sm:$0xff] }
 0xfbd   : > { %16755 = vst [vmem:[#allocation10_spill] sm:$0xff] %v14843_v60  ;;  %10534 = vmatmul.msk.bf16.vlgmr.msra.gmra.mxu1 %vm993_vm0, %v5915_v10  ;;  %7084 = vmatmul.bf16.vlgmr.msra.gmra.mxu2 %v7024_v20  ;;  %v7010_v10 = vmul.f32 %v16741_v22, %v16760_v18  ;;  %v16761_v20 = vld [vmem:[#allocation54_spill] sm:$0xff] }
 0xfbe   : > { %7122 = vmatpush.bf16.xpose.msra.mxu1 %v16758_v32  ;;  %7187 = vmatpush.bf16.xpose.msra.mxu2 %v16759_v12  ;;  %v7007_v62 = vmul.f32 %v16741_v22, %v16761_v20 }
 0xfbf   : > { %v6794_v1 = vpop.f32.mrf.mxu3 }
 0xfc0   : > { %v6775_v39 = vpop.f32.mrf.mxu2  ;;  %v7026_v1 = vpack.c.bf16 %v7010_v10, %v7010_v10  ;;  %v16768_v10 = vld [vmem:[#allocation16_spill] sm:$0xff] }
 0xfc1   : > { %v7023_v39 = vpack.c.bf16 %v7007_v62, %v7007_v62 }
 0xfc2   : > { %v6680_v27 = vpop.f32.mrf.mxu1  ;;  %v6813_v59 = vpop.f32.mrf.mxu0 }
 0xfc3   : > { %v7028_v27 = vpack.c.bf16 %v7012_v11, %v7012_v11  ;;  %v7438_v11 = vmul.f32 %v16741_v22, %v14164_v36 }
 0xfc4   : > { %7149 = vmatmul.bf16.vlgmr.msra.gmra.mxu3 %v7029_v33  ;;  %v16766_v33 = vld [vmem:[#allocation46_spill] sm:$0xff] }
 0xfc5   : > { %7498 = vmatpush.bf16.msra.mxu3 %v7489_v37  ;;  %v7441_v37 = vmul.f32 %v16741_v22, %v14160_v8  ;;  %v7017_v59 = vmul.f32 %v16741_v22, %v16766_v33 }
 0xfc7   : > { %v7033_v62 = vpack.c.bf16 %v7017_v59, %v7017_v59 }
 0xfc8   : > { %v6849_v17 = vpop.f32.mrf.mxu2 }
 0xfc9   : > { %v14861_v13 = vadd.f32 %v6849_v17, %v14782_v45  ;;  %v7457_v17 = vpack.c.bf16 %v7441_v37, %v7441_v37  ;;  %v7454_v37 = vpack.c.bf16 %v7438_v11, %v7438_v11 }
 0xfca   : > { %v14863_v21 = vpop.f32.mrf.mxu1 }
 0xfcb   : > { %16763 = vst [vmem:[#allocation28_spill] sm:$0xff] %v14861_v13  ;;  %7110 = vmatmul.bf16.vlgmr.msrb.gmra.mxu0 %v7026_v1  ;;  %v7565_v1 = vsel %vm1701_vm15, %v7457_v17, 0  ;;  %v7508_v17 = vsel %vm1701_vm15, %v7454_v37, 0 }
 0xfcc   : > { %16764 = vst [vmem:[#allocation29_spill] sm:$0xff] %v14863_v21  ;;  %7213 = vmatpush.bf16.xpose.msrb.mxu0 %v16765_v23 }
 0xfcd   : > { %7071 = vmatmul.bf16.vlgmr.msrb.gmra.mxu1 %v7023_v39  ;;  %7136 = vmatmul.bf16.vlgmr.msrb.gmra.mxu2 %v7028_v27  ;;  %v7014_v39 = vmul.f32 %v16741_v22, %v16769_v15  ;;  %v7440_v27 = vmul.f32 %v16741_v22, %v14283_v29  ;;  %v16772_v29 = vld [vmem:[#allocation12_spill] sm:$0xff] }
 0xfce   : > { %7174 = vmatpush.bf16.xpose.msrb.mxu1 %v16767_v9  ;;  %7239 = vmatpush.bf16.xpose.msrb.mxu2 %v16768_v10  ;;  %v7011_v9 = vmul.f32 %v16741_v22, %v16770_v57  ;;  %v7442_v57 = vmul.f32 %v16741_v22, %v14187_v28 }
 0xfcf   : > { %v7030_v59 = vpack.c.bf16 %v7014_v39, %v7014_v39  ;;  %v7456_v10 = vpack.c.bf16 %v7440_v27, %v7440_v27  ;;  %v7444_v39 = vmul.f32 %v16741_v22, %v16726_v56  ;;  %v16774_v27 = vld [vmem:[#allocation61_spill] sm:$0xff] }
 0xfd0   : > { %v6851_v45 = vpop.f32.mrf.mxu2  ;;  %v7027_v20 = vpack.c.bf16 %v7011_v9, %v7011_v9  ;;  %v7439_v9 = vmul.f32 %v16741_v22, %v16725_v19  ;;  %v7458_v37 = vpack.c.bf16 %v7442_v57, %v7442_v57  ;;  %v7443_v57 = vmul.f32 %v16741_v22, %v16729_v49 }
 0xfd1   : > { %v16771_v45 = vld [vmem:[#allocation63_spill] sm:$0xff] }
 0xfd2   : > { %v6756_v13 = vpop.f32.mrf.mxu1  ;;  %v7584_v61 = vsel %vm1701_vm15, %v7458_v37, 0 }
 0xfd3   : > { %v7016_v13 = vmul.f32 %v16741_v22, %v16771_v45  ;;  %v16773_v45 = vld [vmem:[#allocation37_spill] sm:$0xff] }
 0xfd4   : > { %7201 = vmatmul.bf16.vlgmr.msrb.gmra.mxu3 %v7033_v62  ;;  %v7018_v11 = vmul.f32 %v16741_v22, %v16773_v45 }
 0xfd5   : > { %7574 = vmatpush.bf16.msrb.mxu3 %v7565_v1  ;;  %v7032_v62 = vpack.c.bf16 %v7016_v13, %v7016_v13  ;;  %v7546_v1 = vsel %vm1701_vm15, %v7456_v10, 0  ;;  %v16775_v13 = vld [vmem:[#allocation14_spill] sm:$0xff] }
 0xfd6   : > { %v7020_v10 = vmul.f32 %v16741_v22, %v16775_v13 }
 0xfdb   : > { %7162 = vmatmul.bf16.vlgmr.msra.gmra.mxu0 %v7030_v59  ;;  %v7034_v59 = vpack.c.bf16 %v7018_v11, %v7018_v11  ;;  %v16776_v11 = vld [vmem:[#allocation65_spill] sm:$0xff] }
 0xfdc   : > { %7517 = vmatpush.bf16.msra.mxu0 %v7508_v17  ;;  %v7460_v17 = vpack.c.bf16 %v7444_v39, %v7444_v39  ;;  %v7459_v39 = vpack.c.bf16 %v7443_v57, %v7443_v57 }
 0xfdd   : > { %7123 = vmatmul.bf16.vlgmr.msra.gmra.mxu1 %v7027_v20  ;;  %7188 = vmatmul.bf16.vlgmr.msra.gmra.mxu2 %v7032_v62  ;;  %v7015_v20 = vmul.f32 %v16741_v22, %v16774_v27  ;;  %v7455_v62 = vpack.c.bf16 %v7439_v9, %v7439_v9  ;;  %v7019_v9 = vmul.f32 %v16741_v22, %v16776_v11 }
 0xfde   : > { %7226 = vmatpush.bf16.xpose.msra.mxu1 %v16772_v29  ;;  %7555 = vmatpush.bf16.msra.mxu2 %v7546_v1  ;;  %v7036_v29 = vpack.c.bf16 %v7020_v10, %v7020_v10  ;;  %v7622_v56 = vsel %vm1701_vm15, %v7460_v17, 0  ;;  %v7603_v10 = vsel %vm1701_vm15, %v7459_v39, 0 }
 0xfdf   : > { %v7031_v1 = vpack.c.bf16 %v7015_v20, %v7015_v20  ;;  %v7527_v19 = vsel %vm1701_vm15, %v7455_v62, 0  ;;  %v7035_v20 = vpack.c.bf16 %v7019_v9, %v7019_v9 }
 0xfeb   : > { %7214 = vmatmul.bf16.vlgmr.msrb.gmra.mxu0 %v7034_v59 }
 0xfec   : > { %7593 = vmatpush.bf16.msrb.mxu0 %v7584_v61 }
 0xfed   : > { %7175 = vmatmul.bf16.vlgmr.msrb.gmra.mxu1 %v7031_v1  ;;  %7240 = vmatmul.bf16.vlgmr.msrb.gmra.mxu2 %v7036_v29 }
 0xfee   : > { %7536 = vmatpush.bf16.msrb.mxu1 %v7527_v19  ;;  %7631 = vmatpush.bf16.msrb.mxu2 %v7622_v56 }
 0xffd   : > { %7227 = vmatmul.bf16.vlgmr.msra.gmra.mxu1 %v7035_v20 }
 0xffe   : > { %7612 = vmatpush.bf16.msra.mxu1 %v7603_v10 }
0x1007   : > { %v14906_v61 = vpop.f32.mrf.mxu3 }
0x1008   : > { %16777 = vst [vmem:[#allocation45_spill] sm:$0xff] %v14906_v61 }
0x100f   : > { %v6870_v29 = vpop.f32.mrf.mxu3 }
0x1016   : > { %v14908_v37 = vpop.f32.mrf.mxu2 }
0x1017   : > { %16778 = vst [vmem:[#allocation51_spill] sm:$0xff] %v14908_v37  ;;  %v14910_v59 = vpop.f32.mrf.mxu3 }
0x1018   : > { %16779 = vst [vmem:[#allocation38_spill] sm:$0xff] %v14910_v59  ;;  %v14912_v19 = vpop.f32.mrf.mxu0 }
0x1019   : > { %16780 = vst [vmem:[#allocation64_spill] sm:$0xff] %v14912_v19 }
0x101a   : > { %v14914_v56 = vpop.f32.mrf.mxu1 }
0x101b   : > { %16781 = vst [vmem:[#allocation47_spill] sm:$0xff] %v14914_v56 }
0x101e   : > { %v6927_v62 = vpop.f32.mrf.mxu2 }
0x101f   : > { %v6946_v17 = vpop.f32.mrf.mxu3 }
0x1020   : > { %v6889_v1 = vpop.f32.mrf.mxu0 }
0x1022   : > { %v6832_v57 = vpop.f32.mrf.mxu1 }
0x1027   : > { %v7046_v9 = vpop.f32.mrf.mxu3 }
0x1028   : > { %v14916_v20 = vmul.f32 0.35355338, %v7046_v9  ;;  %v14918_v39 = vpop.f32.mrf.mxu0 }
0x1029   : > { %16782 = vst [vmem:[#allocation31_spill] sm:$0xff] %v14918_v39 }
0x102a   : > { %v14920_v10 = vpop.f32.mrf.mxu1  ;;  %v7261_v29 = vsel %vm993_vm0, %v14916_v20, -inf }
0x102b   : > { %16783 = vst [vmem:[#allocation39_spill] sm:$0xff] %v14920_v10  ;;  %7262 = vmax.xlane.f32.xlu1 %v7261_v29 }
0x102f   : > { %v7048_v11 = vpop.f32.mrf.mxu3 }
0x1030   : > { %v14924_v49 = vpop.f32.mrf.mxu2  ;;  %v6965_v27 = vpop.f32.mrf.mxu0 }
0x1031   : > { %16784 = vst [vmem:[#allocation58_spill] sm:$0xff] %v14924_v49 }
0x1032   : > { %v6908_v13 = vpop.f32.mrf.mxu1 }
0x1037   : > { %v7098_v62 = vpop.f32.mrf.mxu3 }
0x1038   : > { %v7003_v17 = vpop.f32.mrf.mxu2  ;;  %v14926_v1 = vmul.f32 0.35355338, %v7098_v62  ;;  %v7059_v57 = vpop.f32.mrf.mxu0 }
0x1039   : > { %v14928_v9 = vmul.f32 0.35355338, %v7059_v57 }
0x103a   : > { %v14930_v59 = vpop.f32.mrf.mxu1  ;;  %v7273_v10 = vsel %vm993_vm0, %v14926_v1, -inf }
0x103b   : > { %16785 = vst [vmem:[#allocation73_spill] sm:$0xff] %v14930_v59  ;;  %7274 = vmax.xlane.f32.xlu1 %v7273_v10  ;;  %v7264_v11 = vsel %vm993_vm0, %v14928_v9, -inf }
0x103c   : > { %7265 = vmax.xlane.f32.xlu2 %v7264_v11 }
0x103f   : > { %v7100_v29 = vpop.f32.mrf.mxu3 }
0x1040   : > { %v7085_v27 = vpop.f32.mrf.mxu2  ;;  %v7061_v13 = vpop.f32.mrf.mxu0 }
0x1041   : > { %v14936_v49 = vmul.f32 0.35355338, %v7085_v27 }
0x1042   : > { %v6984_v62 = vpop.f32.mrf.mxu1 }
0x1043   : > { %v7270_v17 = vsel %vm993_vm0, %v14936_v49, -inf }
0x1044   : > { %7271 = vmax.xlane.f32.xlu0 %v7270_v17 }
0x1047   : > { %v7150_v57 = vpop.f32.mrf.mxu3 }
0x1048   : > { %v7087_v59 = vpop.f32.mrf.mxu2  ;;  %v7111_v39 = vpop.f32.mrf.mxu0  ;;  %v14948_v17 = vmul.f32 0.35355338, %v7150_v57 }
0x1049   : > { %v14940_v37 = vmul.f32 0.35355338, %v7111_v39 }
0x104a   : > { %v7072_v10 = vpop.f32.mrf.mxu1  ;;  %v7285_v19 = vsel %vm993_vm0, %v14948_v17, -inf }
0x104b   : > { %v14942_v56 = vmul.f32 0.35355338, %v7072_v10  ;;  %v7276_v11 = vsel %vm993_vm0, %v14940_v37, -inf }
0x104c   : > { %7277 = vmax.xlane.f32.xlu0 %v7276_v11 }
0x104d   : > { %v7267_v29 = vsel %vm993_vm0, %v14942_v56, -inf }
0x104e   : > { %7268 = vmax.xlane.f32.xlu2 %v7267_v29 }
0x104f   : > { %v7152_v27 = vpop.f32.mrf.mxu3 }
0x1050   : > { %v7137_v13 = vpop.f32.mrf.mxu2  ;;  %v7113_v62 = vpop.f32.mrf.mxu0 }
0x1051   : > { %v14950_v59 = vmul.f32 0.35355338, %v7137_v13 }
0x1052   : > { %v7074_v39 = vpop.f32.mrf.mxu1 }
0x1053   : > { %v7282_v10 = vsel %vm993_vm0, %v14950_v59, -inf }
0x1054   : > { %7283 = vmax.xlane.f32.xlu1 %v7282_v10 }
0x1056   : > { %7286 = vmax.xlane.f32.xlu2 %v7285_v19 }
0x1057   : > { %v7202_v11 = vpop.f32.mrf.mxu3 }
0x1058   : > { %v7139_v61 = vpop.f32.mrf.mxu2  ;;  %v7163_v21 = vpop.f32.mrf.mxu0  ;;  %v14964_v19 = vmul.f32 0.35355338, %v7202_v11 }
0x1059   : > { %v14956_v29 = vmul.f32 0.35355338, %v7163_v21 }
0x105a   : > { %v7124_v27 = vpop.f32.mrf.mxu1  ;;  %v7297_v47 = vsel %vm993_vm0, %v14964_v19, -inf }
0x105b   : > { %v14958_v62 = vmul.f32 0.35355338, %v7124_v27  ;;  %v7288_v57 = vsel %vm993_vm0, %v14956_v29, -inf }
0x105c   : > { %7289 = vmax.xlane.f32.xlu1 %v7288_v57 }
0x105d   : > { %v7279_v13 = vsel %vm993_vm0, %v14958_v62, -inf }
0x105e   : > { %7280 = vmax.xlane.f32.xlu0 %v7279_v13 }
0x105f   : > { %v7204_v39 = vpop.f32.mrf.mxu3 }
0x1060   : > { %v7189_v10 = vpop.f32.mrf.mxu2  ;;  %v7165_v43 = vpop.f32.mrf.mxu0 }
0x1061   : > { %v14966_v61 = vmul.f32 0.35355338, %v7189_v10 }
0x1062   : > { %v7126_v21 = vpop.f32.mrf.mxu1 }
0x1063   : > { %v7294_v27 = vsel %vm993_vm0, %v14966_v61, -inf }
0x1064   : > { %7295 = vmax.xlane.f32.xlu2 %v7294_v27 }
0x1066   : > { %7298 = vmax.xlane.f32.xlu0 %v7297_v47 }
0x1068   : > { %v7191_v57 = vpop.f32.mrf.mxu2  ;;  %v7215_v60 = vpop.f32.mrf.mxu0 }
0x1069   : > { %v14972_v63 = vmul.f32 0.35355338, %v7215_v60 }
0x106a   : > { %v7176_v13 = vpop.f32.mrf.mxu1 }
0x106b   : > { %v14974_v39 = vmul.f32 0.35355338, %v7176_v13  ;;  %v7300_v43 = vsel %vm993_vm0, %v14972_v63, -inf }
0x106d   : > { %v7291_v11 = vsel %vm993_vm0, %v14974_v39, -inf }
0x106e   : > { %7301 = vmax.xlane.f32.xlu0 %v7300_v43  ;;  %7292 = vmax.xlane.f32.xlu2 %v7291_v11 }
0x1070   : > { %v7241_v10 = vpop.f32.mrf.mxu2  ;;  %v7217_v21 = vpop.f32.mrf.mxu0 }
0x1071   : > { %v14985_v52 = vmul.f32 0.35355338, %v7241_v10 }
0x1072   : > { %v7178_v27 = vpop.f32.mrf.mxu1 }
0x1078   : > { %v7243_v32 = vpop.f32.mrf.mxu2 }
0x107a   : > { %v7228_v47 = vpop.f32.mrf.mxu1 }
0x1082   : > { %v7230_v57 = vpop.f32.mrf.mxu1 }
0x109e   : > { %v7263_v12 = vpop.xlane.xlu1 %7262 }
0x109f   : > { %v7309_v60 = vsub.f32 %v14916_v20, %v7263_v12  ;;  %v7306_v12 = vsel %vm993_vm0, %v14985_v52, -inf }
0x10a1   : > { %v7325_v14 = vmul.f32 1.442695, %v7309_v60 }
0x10a3   : > { %11351 = vpow2.f32 %v7325_v14 }
0x10a9   : > { %v14981_v13 = vpop.eup %11351 }
0x10aa   : > { %v7357_v24 = vsel %vm993_vm0, %v14981_v13, 0.0 }
0x10ab   : > { %7358 = vadd.xlane.f32.xlu1 %v7357_v24 }
0x10ae   : > { %v7275_v43 = vpop.xlane.xlu1 %7274 }
0x10af   : > { %v7313_v11 = vsub.f32 %v14926_v1, %v7275_v43  ;;  %v7266_v21 = vpop.xlane.xlu2 %7265  ;;  %v15000_v43 = vmul.f32 0.35355338, %v7228_v47 }
0x10b0   : > { %v7310_v32 = vsub.f32 %v14928_v9, %v7266_v21 }
0x10b1   : > { %v7333_v27 = vmul.f32 1.442695, %v7313_v11 }
0x10b2   : > { %v7327_v57 = vmul.f32 1.442695, %v7310_v32 }
0x10b3   : > { %11353 = vpow2.f32 %v7333_v27  ;;  %7307 = vmax.xlane.f32.xlu1 %v7306_v12 }
0x10b4   : > { %11355 = vpow2.f32 %v7327_v57 }
0x10b7   : > { %v7272_v14 = vpop.xlane.xlu0 %7271 }
0x10b8   : > { %v7312_v20 = vsub.f32 %v14936_v49, %v7272_v14  ;;  %v7303_v14 = vsel %vm993_vm0, %v15000_v43, -inf }
0x10b9   : > { %v14992_v24 = vpop.eup %11353 }
0x10ba   : > { %v14994_v10 = vpop.eup %11355  ;;  %v7331_v60 = vmul.f32 1.442695, %v7312_v20  ;;  %v7369_v1 = vsel %vm993_vm0, %v14992_v24, 0.0 }
0x10bb   : > { %7370 = vadd.xlane.f32.xlu1 %v7369_v1  ;;  %v7360_v9 = vsel %vm993_vm0, %v14994_v10, 0.0 }
0x10bc   : > { %11357 = vpow2.f32 %v7331_v60  ;;  %7361 = vadd.xlane.f32.xlu2 %v7360_v9 }
0x10bf   : > { %v7278_v11 = vpop.xlane.xlu0 %7277 }
0x10c0   : > { %v7314_v21 = vsub.f32 %v14940_v37, %v7278_v11 }
0x10c1   : > { %v7269_v49 = vpop.xlane.xlu2 %7268 }
0x10c2   : > { %v15003_v32 = vpop.eup %11357  ;;  %v7335_v27 = vmul.f32 1.442695, %v7314_v21  ;;  %v7311_v57 = vsub.f32 %v14942_v56, %v7269_v49 }
0x10c3   : > { %v7366_v12 = vsel %vm993_vm0, %v15003_v32, 0.0 }
0x10c4   : > { %11359 = vpow2.f32 %v7335_v27  ;;  %v7329_v20 = vmul.f32 1.442695, %v7311_v57  ;;  %7367 = vadd.xlane.f32.xlu0 %v7366_v12  ;;  %7304 = vmax.xlane.f32.xlu2 %v7303_v14 }
0x10c6   : > { %11361 = vpow2.f32 %v7329_v20 }
0x10c7   : > { %v7284_v47 = vpop.xlane.xlu1 %7283 }
0x10c8   : > { %v7316_v37 = vsub.f32 %v14950_v59, %v7284_v47 }
0x10c9   : > { %v7287_v60 = vpop.xlane.xlu2 %7286 }
0x10ca   : > { %v15011_v1 = vpop.eup %11359  ;;  %v7339_v9 = vmul.f32 1.442695, %v7316_v37  ;;  %v7317_v56 = vsub.f32 %v14948_v17, %v7287_v60 }
0x10cb   : > { %v7372_v11 = vsel %vm993_vm0, %v15011_v1, 0.0 }
0x10cc   : > { %v15016_v21 = vpop.eup %11361  ;;  %11363 = vpow2.f32 %v7339_v9  ;;  %v7341_v49 = vmul.f32 1.442695, %v7317_v56  ;;  %7373 = vadd.xlane.f32.xlu1 %v7372_v11 }
0x10cd   : > { %v7363_v27 = vsel %vm993_vm0, %v15016_v21, 0.0 }
0x10ce   : > { %11365 = vpow2.f32 %v7341_v49  ;;  %7364 = vadd.xlane.f32.xlu0 %v7363_v27 }
0x10cf   : > { %v7290_v59 = vpop.xlane.xlu1 %7289 }
0x10d0   : > { %v7318_v57 = vsub.f32 %v14956_v29, %v7290_v59 }
0x10d1   : > { %v7281_v12 = vpop.xlane.xlu0 %7280 }
0x10d2   : > { %v15021_v14 = vpop.eup %11363  ;;  %v7343_v17 = vmul.f32 1.442695, %v7318_v57  ;;  %v7315_v20 = vsub.f32 %v14958_v62, %v7281_v12 }
0x10d3   : > { %v7378_v47 = vsel %vm993_vm0, %v15021_v14, 0.0 }
0x10d4   : > { %v15026_v37 = vpop.eup %11365  ;;  %11367 = vpow2.f32 %v7343_v17  ;;  %v7337_v60 = vmul.f32 1.442695, %v7315_v20  ;;  %7379 = vadd.xlane.f32.xlu2 %v7378_v47 }
0x10d5   : > { %v7381_v9 = vsel %vm993_vm0, %v15026_v37, 0.0 }
0x10d6   : > { %11369 = vpow2.f32 %v7337_v60  ;;  %7382 = vadd.xlane.f32.xlu0 %v7381_v9 }
0x10d7   : > { %v7296_v29 = vpop.xlane.xlu2 %7295 }
0x10d8   : > { %v7320_v56 = vsub.f32 %v14966_v61, %v7296_v29 }
0x10d9   : > { %v7299_v11 = vpop.xlane.xlu0 %7298 }
0x10da   : > { %v15031_v49 = vpop.eup %11367  ;;  %v7347_v62 = vmul.f32 1.442695, %v7320_v56  ;;  %v7321_v27 = vsub.f32 %v14964_v19, %v7299_v11 }
0x10db   : > { %v7384_v59 = vsel %vm993_vm0, %v15031_v49, 0.0 }
0x10dc   : > { %v15036_v57 = vpop.eup %11369  ;;  %11371 = vpow2.f32 %v7347_v62  ;;  %v7349_v12 = vmul.f32 1.442695, %v7321_v27  ;;  %7385 = vadd.xlane.f32.xlu2 %v7384_v59 }
0x10dd   : > { %v7375_v17 = vsel %vm993_vm0, %v15036_v57, 0.0 }
0x10de   : > { %11373 = vpow2.f32 %v7349_v12  ;;  %7376 = vadd.xlane.f32.xlu1 %v7375_v17  ;;  %v7445_v17 = vmul.f32 %v16741_v22, %v14428_v2 }
0x10e1   : > { %v7302_v61 = vpop.xlane.xlu0 %7301  ;;  %v7293_v20 = vpop.xlane.xlu2 %7292 }
0x10e2   : > { %v15040_v47 = vpop.eup %11371  ;;  %v7322_v60 = vsub.f32 %v14972_v63, %v7302_v61  ;;  %v7319_v19 = vsub.f32 %v14974_v39, %v7293_v20 }
0x10e3   : > { %v7390_v9 = vsel %vm993_vm0, %v15040_v47, 0.0 }
0x10e4   : > { %v15046_v29 = vpop.eup %11373  ;;  %v7351_v56 = vmul.f32 1.442695, %v7322_v60  ;;  %v7345_v11 = vmul.f32 1.442695, %v7319_v19  ;;  %7391 = vadd.xlane.f32.xlu0 %v7390_v9  ;;  %v7461_v19 = vpack.c.bf16 %v7445_v17, %v7445_v17  ;;  %v7446_v17 = vmul.f32 %v16741_v22, %v14499_v0 }
0x10e5   : > { %v7393_v62 = vsel %vm993_vm0, %v15046_v29, 0.0 }
0x10e6   : > { %11375 = vpow2.f32 %v7351_v56  ;;  %7394 = vadd.xlane.f32.xlu1 %v7393_v62  ;;  %v7641_v62 = vsel %vm1701_vm15, %v7461_v19, 0 }
0x10e7   : > { %11377 = vpow2.f32 %v7345_v11 }
0x10ec   : > { %v15050_v27 = vpop.eup %11375 }
0x10ed   : > { %v15052_v59 = vpop.eup %11377  ;;  %v7396_v63 = vsel %vm993_vm0, %v15050_v27, 0.0 }
0x10ee   : > { %7397 = vadd.xlane.f32.xlu0 %v7396_v63  ;;  %v7387_v39 = vsel %vm993_vm0, %v15052_v59, 0.0 }
0x10ef   : > { %7388 = vadd.xlane.f32.xlu2 %v7387_v39 }
0x111e   : > { %v7359_v12 = vpop.xlane.xlu1 %7358 }
0x111f   : > { %11379 = vrcp.f32 %v7359_v12 }
0x1125   : > { %v11380_v61 = vpop.eup %11379 }
0x1126   : > { %v7421_v20 = vmul.f32 %v11380_v61, %v14981_v13  ;;  %v7308_v60 = vpop.xlane.xlu1 %7307 }
0x1127   : > { %v7324_v9 = vsub.f32 %v14985_v52, %v7308_v60  ;;  %v7449_v52 = vmul.f32 %v16741_v22, %v14468_v42 }
0x1128   : > { %v7469_v56 = vpack.c.bf16 %v7421_v20, %v7421_v20 }
0x1129   : > { %v7355_v11 = vmul.f32 1.442695, %v7324_v9  ;;  %v7465_v19 = vpack.c.bf16 %v7449_v52, %v7449_v52 }
0x112a   : > { %10536 = vmatmul.msk.bf16.vlgmr.msra.gmra.mxu3 %vm993_vm0, %v7469_v56 }
0x112b   : > { %11381 = vpow2.f32 %v7355_v11  ;;  %7650 = vmatpush.bf16.msra.mxu3 %v7641_v62  ;;  %v7462_v62 = vpack.c.bf16 %v7446_v17, %v7446_v17 }
0x112e   : > { %v7371_v63 = vpop.xlane.xlu1 %7370 }
0x112f   : > { %11383 = vrcp.f32 %v7371_v63  ;;  %v7362_v39 = vpop.xlane.xlu2 %7361 }
0x1130   : > { %11385 = vrcp.f32 %v7362_v39 }
0x1131   : > { %v15064_v12 = vpop.eup %11381 }
0x1132   : > { %v7402_v13 = vsel %vm993_vm0, %v15064_v12, 0.0 }
0x1133   : > { %7403 = vadd.xlane.f32.xlu1 %v7402_v13  ;;  %v7717_v13 = vsel %vm1701_vm15, %v7465_v19, 0 }
0x1135   : > { %v11384_v61 = vpop.eup %11383 }
0x1136   : > { %v11386_v20 = vpop.eup %11385  ;;  %v7425_v60 = vmul.f32 %v11384_v61, %v14992_v24  ;;  %v7660_v24 = vsel %vm1701_vm15, %v7462_v62, 0 }
0x1137   : > { %v7422_v9 = vmul.f32 %v11386_v20, %v14994_v10  ;;  %v7368_v56 = vpop.xlane.xlu0 %7367  ;;  %v7305_v11 = vpop.xlane.xlu2 %7304  ;;  %v7448_v10 = vmul.f32 %v16741_v22, %v14616_v38 }
0x1138   : > { %v7473_v63 = vpack.c.bf16 %v7425_v60, %v7425_v60  ;;  %11387 = vrcp.f32 %v7368_v56  ;;  %v7323_v39 = vsub.f32 %v15000_v43, %v7305_v11 }
0x1139   : > { %v7470_v2 = vpack.c.bf16 %v7422_v9, %v7422_v9  ;;  %v7464_v61 = vpack.c.bf16 %v7448_v10, %v7448_v10 }
0x113a   : > { %v7353_v42 = vmul.f32 1.442695, %v7323_v39  ;;  %10540 = vmatmul.msk.bf16.vlgmr.msrb.gmra.mxu3 %vm993_vm0, %v7473_v63 }
0x113b   : > { %7726 = vmatpush.bf16.msrb.mxu3 %v7717_v13  ;;  %10537 = vmatmul.msk.bf16.vlgmr.msra.gmra.mxu0 %vm993_vm0, %v7470_v2  ;;  %v7698_v2 = vsel %vm1701_vm15, %v7464_v61, 0  ;;  %v7452_v61 = vmul.f32 %v16741_v22, %v14634_v40 }
0x113c   : > { %11389 = vpow2.f32 %v7353_v42  ;;  %7669 = vmatpush.bf16.msra.mxu0 %v7660_v24  ;;  %v7450_v42 = vmul.f32 %v16741_v22, %v14542_v46 }
0x113e   : > { %v11388_v52 = vpop.eup %11387  ;;  %v7466_v63 = vpack.c.bf16 %v7450_v42, %v7450_v42 }
0x113f   : > { %v7424_v17 = vmul.f32 %v11388_v52, %v15003_v32  ;;  %v7374_v43 = vpop.xlane.xlu1 %7373  ;;  %v7447_v32 = vmul.f32 %v16741_v22, %v14625_v7 }
0x1140   : > { %11391 = vrcp.f32 %v7374_v43  ;;  %v7736_v43 = vsel %vm1701_vm15, %v7466_v63, 0 }
0x1141   : > { %v7472_v20 = vpack.c.bf16 %v7424_v17, %v7424_v17  ;;  %v7365_v60 = vpop.xlane.xlu0 %7364  ;;  %v7463_v52 = vpack.c.bf16 %v7447_v32, %v7447_v32 }
0x1142   : > { %v15082_v9 = vpop.eup %11389  ;;  %11393 = vrcp.f32 %v7365_v60 }
0x1143   : > { %10539 = vmatmul.msk.bf16.vlgmr.msra.gmra.mxu2 %vm993_vm0, %v7472_v20  ;;  %v7399_v19 = vsel %vm993_vm0, %v15082_v9, 0.0 }
0x1144   : > { %7707 = vmatpush.bf16.msra.mxu2 %v7698_v2  ;;  %7400 = vadd.xlane.f32.xlu2 %v7399_v19  ;;  %v7468_v2 = vpack.c.bf16 %v7452_v61, %v7452_v61 }
0x1146   : > { %v11392_v56 = vpop.eup %11391 }
0x1147   : > { %v7426_v11 = vmul.f32 %v11392_v56, %v15011_v1  ;;  %v7380_v62 = vpop.xlane.xlu2 %7379  ;;  %v7679_v1 = vsel %vm1701_vm15, %v7463_v52, 0 }
0x1148   : > { %v11394_v39 = vpop.eup %11393  ;;  %11395 = vrcp.f32 %v7380_v62  ;;  %v7774_v62 = vsel %vm1701_vm15, %v7468_v2, 0 }
0x1149   : > { %v7474_v13 = vpack.c.bf16 %v7426_v11, %v7426_v11  ;;  %v7423_v24 = vmul.f32 %v11394_v39, %v15016_v21  ;;  %v7383_v10 = vpop.xlane.xlu0 %7382 }
0x114a   : > { %11397 = vrcp.f32 %v7383_v10 }
0x114b   : > { %v7471_v17 = vpack.c.bf16 %v7423_v24, %v7423_v24  ;;  %10541 = vmatmul.msk.bf16.vlgmr.msrb.gmra.mxu0 %vm993_vm0, %v7474_v13 }
0x114c   : > { %7745 = vmatpush.bf16.msrb.mxu0 %v7736_v43 }
0x114d   : > { %10538 = vmatmul.msk.bf16.vlgmr.msrb.gmra.mxu1 %vm993_vm0, %v7471_v17 }
0x114e   : > { %v11396_v20 = vpop.eup %11395  ;;  %7688 = vmatpush.bf16.msrb.mxu1 %v7679_v1 }
0x114f   : > { %v7428_v21 = vmul.f32 %v11396_v20, %v15021_v14  ;;  %v7386_v60 = vpop.xlane.xlu2 %7385  ;;  %v7451_v14 = vmul.f32 %v16741_v22, %v14645_v5 }
0x1150   : > { %v11398_v19 = vpop.eup %11397  ;;  %11399 = vrcp.f32 %v7386_v60 }
0x1151   : > { %v7476_v42 = vpack.c.bf16 %v7428_v21, %v7428_v21  ;;  %v7429_v32 = vmul.f32 %v11398_v19, %v15026_v37  ;;  %v7377_v56 = vpop.xlane.xlu1 %7376  ;;  %v7467_v17 = vpack.c.bf16 %v7451_v14, %v7451_v14 }
0x1152   : > { %11401 = vrcp.f32 %v7377_v56 }
0x1153   : > { %v7477_v11 = vpack.c.bf16 %v7429_v32, %v7429_v32  ;;  %10543 = vmatmul.msk.bf16.vlgmr.msrb.gmra.mxu2 %vm993_vm0, %v7476_v42 }
0x1154   : > { %7783 = vmatpush.bf16.msrb.mxu2 %v7774_v62 }
0x1155   : > { %10544 = vmatmul.msk.bf16.vlgmr.msra.gmra.mxu3 %vm993_vm0, %v7477_v11 }
0x1156   : > { %v11400_v63 = vpop.eup %11399  ;;  %7844 = vmatpush.bf16.xpose.msra.mxu3 %v16731_v30  ;;  %v7755_v30 = vsel %vm1701_vm15, %v7467_v17, 0 }
0x1157   : > { %v7430_v39 = vmul.f32 %v11400_v63, %v15031_v49  ;;  %v7392_v13 = vpop.xlane.xlu0 %7391 }
0x1158   : > { %v11402_v37 = vpop.eup %11401  ;;  %11403 = vrcp.f32 %v7392_v13 }
0x1159   : > { %v7427_v24 = vmul.f32 %v11402_v37, %v15036_v57  ;;  %v7478_v10 = vpack.c.bf16 %v7430_v39, %v7430_v39  ;;  %v7395_v52 = vpop.xlane.xlu1 %7394 }
0x115a   : > { %11405 = vrcp.f32 %v7395_v52 }
0x115b   : > { %v7475_v43 = vpack.c.bf16 %v7427_v24, %v7427_v24  ;;  %10545 = vmatmul.msk.bf16.vlgmr.msra.gmra.mxu0 %vm993_vm0, %v7478_v10  ;;  %v6717_v10 = vadd.f32 %v14810_v51, %v14627_v16 }
0x115c   : > { %7857 = vmatpush.bf16.xpose.msra.mxu0 %v16739_v34 }
0x115d   : > { %10542 = vmatmul.msk.bf16.vlgmr.msra.gmra.mxu1 %vm993_vm0, %v7475_v43 }
0x115e   : > { %v11404_v22 = vpop.eup %11403  ;;  %7764 = vmatpush.bf16.msra.mxu1 %v7755_v30 }
0x115f   : > { %v7432_v49 = vmul.f32 %v11404_v22, %v15040_v47  ;;  %v6736_v22 = vadd.f32 %v14820_v41, %v14693_v35  ;;  %v16790_v41 = vld [vmem:[#allocation57_spill] sm:$0xff] }
0x1160   : > { %v11406_v61 = vpop.eup %11405 }
0x1161   : > { %v7480_v1 = vpack.c.bf16 %v7432_v49, %v7432_v49  ;;  %v7433_v57 = vmul.f32 %v11406_v61, %v15046_v29  ;;  %v7398_v20 = vpop.xlane.xlu0 %7397  ;;  %v16787_v61 = vld [vmem:[#allocation59_spill] sm:$0xff] }
0x1162   : > { %11407 = vrcp.f32 %v7398_v20  ;;  %v7389_v21 = vpop.xlane.xlu2 %7388 }
0x1163   : > { %v7481_v60 = vpack.c.bf16 %v7433_v57, %v7433_v57  ;;  %11409 = vrcp.f32 %v7389_v21  ;;  %10547 = vmatmul.msk.bf16.vlgmr.msra.gmra.mxu2 %vm993_vm0, %v7480_v1  ;;  %v16788_v1 = vld [vmem:[#allocation25_spill] sm:$0xff]  ;;  %v16789_v57 = vld [vmem:[#allocation70_spill] sm:$0xff] }
0x1164   : > { %7883 = vmatpush.bf16.xpose.msra.mxu2 %v16735_v25  ;;  %v16786_v25 = vld [vmem:[#allocation11_spill] sm:$0xff]  ;;  %v6793_v20 = vadd.f32 %v16789_v57, %v16788_v1 }
0x1165   : > { %10548 = vmatmul.msk.bf16.vlgmr.msrb.gmra.mxu3 %vm993_vm0, %v7481_v60  ;;  %v7805_v32 = vmul.f32 %v16786_v25, %v16740_v4  ;;  %v7809_v56 = vmul.f32 %v16786_v25, %v16746_v44  ;;  %v7810_v4 = vmul.f32 %v16786_v25, %v16760_v18  ;;  %v7814_v18 = vmul.f32 %v16786_v25, %v16769_v15 }
0x1166   : > { %7896 = vmatpush.bf16.xpose.msrb.mxu3 %v16736_v3  ;;  %v8242_v15 = vmul.f32 %v16786_v25, %v14187_v28  ;;  %v7818_v37 = vmul.f32 %v16786_v25, %v16773_v45 }
0x1167   : > { %v7821_v3 = vpack.c.bf16 %v7805_v32, %v7805_v32  ;;  %v7830_v14 = vpack.c.bf16 %v7814_v18, %v7814_v18  ;;  %v16792_v32 = vld [vmem:[#allocation26_spill] sm:$0xff] }
0x1168   : > { %v11408_v34 = vpop.eup %11407  ;;  %v8258_v24 = vpack.c.bf16 %v8242_v15, %v8242_v15  ;;  %v16801_v15 = vld [vmem:[#allocation27_spill] sm:$0xff] }
0x1169   : > { %v11410_v2 = vpop.eup %11409  ;;  %v7434_v47 = vmul.f32 %v11408_v34, %v15050_v27  ;;  %v7806_v27 = vmul.f32 %v16786_v25, %v16749_v26  ;;  %v7813_v26 = vmul.f32 %v16786_v25, %v16757_v55  ;;  %v8241_v55 = vmul.f32 %v16786_v25, %v14160_v8 }
0x116a   : > { %v7431_v19 = vmul.f32 %v11410_v2, %v15052_v59  ;;  %v7834_v8 = vpack.c.bf16 %v7818_v37, %v7818_v37  ;;  %v8384_v52 = vsel %vm1701_vm15, %v8258_v24, 0  ;;  %v16803_v24 = vld [vmem:[#allocation17_spill] sm:$0xff] }
0x116b   : > { %v7482_v29 = vpack.c.bf16 %v7434_v47, %v7434_v47  ;;  %v7822_v59 = vpack.c.bf16 %v7806_v27, %v7806_v27  ;;  %v7829_v11 = vpack.c.bf16 %v7813_v26, %v7813_v26  ;;  %v8257_v63 = vpack.c.bf16 %v8241_v55, %v8241_v55 }
0x116c   : > { %v7479_v42 = vpack.c.bf16 %v7431_v19, %v7431_v19  ;;  %v16791_v19 = vld [vmem:[#allocation48_spill] sm:$0xff] }
0x116d   : > { %10549 = vmatmul.msk.bf16.vlgmr.msrb.gmra.mxu0 %vm993_vm0, %v7482_v29 }
0x116e   : > { %10546 = vmatmul.msk.bf16.vlgmr.msrb.gmra.mxu1 %vm993_vm0, %v7479_v42  ;;  %7909 = vmatpush.bf16.xpose.msrb.mxu0 %v16745_v31  ;;  %v7825_v31 = vpack.c.bf16 %v7809_v56, %v7809_v56 }
0x116f   : > { %7870 = vmatpush.bf16.xpose.msrb.mxu1 %v16747_v6  ;;  %v7826_v6 = vpack.c.bf16 %v7810_v4, %v7810_v4  ;;  %v16796_v4 = vld [vmem:[#allocation29_spill] sm:$0xff] }
0x1175   : > { %7845 = vmatmul.bf16.vlgmr.msra.gmra.mxu3 %v7821_v3  ;;  %v16793_v3 = vld [vmem:[#allocation10_spill] sm:$0xff] }
0x1176   : > { %7948 = vmatpush.bf16.xpose.msra.mxu3 %v16743_v54  ;;  %v8237_v54 = vmul.f32 %v16786_v25, %v14141_v58  ;;  %v6812_v27 = vadd.f32 %v16793_v3, %v16792_v32  ;;  %v16811_v3 = vld [vmem:[#allocation12_spill] sm:$0xff] }
0x117d   : > { %7858 = vmatmul.bf16.vlgmr.msra.gmra.mxu0 %v7822_v59  ;;  %v16794_v59 = vld [vmem:[#allocation33_spill] sm:$0xff] }
0x117e   : > { %7961 = vmatpush.bf16.xpose.msra.mxu0 %v16756_v50  ;;  %v8253_v50 = vpack.c.bf16 %v8237_v54, %v8237_v54 }
0x1180   : > { %v8289_v44 = vsel %vm1701_vm15, %v8253_v50, 0 }
0x1185   : > { %7897 = vmatmul.bf16.vlgmr.msrb.gmra.mxu3 %v7825_v31 }
0x1186   : > { %8000 = vmatpush.bf16.xpose.msrb.mxu3 %v16750_v48  ;;  %v8238_v48 = vmul.f32 %v16786_v25, %v14164_v36  ;;  %v8365_v36 = vsel %vm1701_vm15, %v8257_v63, 0  ;;  %v16799_v63 = vld [vmem:[#allocation16_spill] sm:$0xff] }
0x1188   : > { %v8254_v62 = vpack.c.bf16 %v8238_v48, %v8238_v48  ;;  %v16798_v48 = vld [vmem:[#allocation54_spill] sm:$0xff] }
0x1189   : > { %v7807_v18 = vmul.f32 %v16786_v25, %v16798_v48  ;;  %v16816_v48 = vld [vmem:[#allocation9_spill] sm:$0xff] }
0x118a   : > { %v8308_v58 = vsel %vm1701_vm15, %v8254_v62, 0 }
0x118b   : > { %v7823_v55 = vpack.c.bf16 %v7807_v18, %v7807_v18  ;;  %v16817_v18 = vld [vmem:[#allocation31_spill] sm:$0xff] }
0x118d   : > { %7910 = vmatmul.bf16.vlgmr.msrb.gmra.mxu0 %v7826_v6 }
0x118e   : > { %8013 = vmatpush.bf16.xpose.msrb.mxu0 %v16765_v23  ;;  %v7817_v23 = vmul.f32 %v16786_v25, %v16766_v33 }
0x1190   : > { %v7833_v39 = vpack.c.bf16 %v7817_v23, %v7817_v23 }
0x1195   : > { %7949 = vmatmul.bf16.vlgmr.msra.gmra.mxu3 %v7829_v11  ;;  %v16797_v11 = vld [vmem:[#allocation55_spill] sm:$0xff] }
0x1196   : > { %8298 = vmatpush.bf16.msra.mxu3 %v8289_v44  ;;  %v7812_v44 = vmul.f32 %v16786_v25, %v16797_v11 }
0x119d   : > { %7962 = vmatmul.bf16.vlgmr.msra.gmra.mxu0 %v7830_v14  ;;  %v7828_v14 = vpack.c.bf16 %v7812_v44, %v7812_v44 }
0x119e   : > { %8317 = vmatpush.bf16.msra.mxu0 %v8308_v58 }
0x11a5   : > { %8001 = vmatmul.bf16.vlgmr.msrb.gmra.mxu3 %v7833_v39  ;;  %v16800_v39 = vld [vmem:[#allocation49_spill] sm:$0xff] }
0x11a6   : > { %8374 = vmatpush.bf16.msrb.mxu3 %v8365_v36  ;;  %v7404_v13 = vpop.xlane.xlu1 %7403 }
0x11a7   : > { %11411 = vrcp.f32 %v7404_v13  ;;  %v16802_v13 = vld [vmem:[#allocation45_spill] sm:$0xff] }
0x11a8   : > { %v6869_v37 = vadd.f32 %v16802_v13, %v16801_v15 }
0x11ad   : > { %v11412_v33 = vpop.eup %11411  ;;  %8014 = vmatmul.bf16.vlgmr.msrb.gmra.mxu0 %v7834_v8  ;;  %v7500_v17 = vpop.f32.mrf.mxu3  ;;  %v16804_v8 = vld [vmem:[#allocation64_spill] sm:$0xff] }
0x11ae   : > { %v7436_v43 = vmul.f32 %v11412_v33, %v15064_v12  ;;  %8393 = vmatpush.bf16.msrb.mxu0 %v8384_v52  ;;  %v15161_v28 = vadd.f32 %v7500_v17, %v6717_v10  ;;  %v7808_v12 = vmul.f32 %v16786_v25, %v16787_v61  ;;  %v6888_v10 = vadd.f32 %v16804_v8, %v16803_v24  ;;  %v16805_v33 = vld [vmem:[#allocation28_spill] sm:$0xff]  ;;  %v16822_v8 = vld [vmem:[#allocation14_spill] sm:$0xff] }
0x11b0   : > { %v7484_v30 = vpack.c.bf16 %v7436_v43, %v7436_v43  ;;  %v7824_v2 = vpack.c.bf16 %v7808_v12, %v7808_v12  ;;  %v16808_v12 = vld [vmem:[#allocation20_spill] sm:$0xff] }
0x11b1   : > { %v8240_v1 = vmul.f32 %v16786_v25, %v16808_v12 }
0x11b2   : > { %10551 = vmatmul.msk.bf16.vlgmr.msrb.gmra.mxu2 %vm993_vm0, %v7484_v30  ;;  %v16806_v30 = vld [vmem:[#allocation15_spill] sm:$0xff] }
0x11b3   : > { %7935 = vmatpush.bf16.xpose.msrb.mxu2 %v16748_v53 }
0x11b5   : > { %v7502_v45 = vpop.f32.mrf.mxu3 }
0x11b6   : > { %v16807_v45 = vld [vmem:[#allocation47_spill] sm:$0xff] }
0x11b7   : > { %v7401_v16 = vpop.xlane.xlu2 %7400 }
0x11b8   : > { %11413 = vrcp.f32 %v7401_v16  ;;  %v7519_v51 = vpop.f32.mrf.mxu0 }
0x11b9   : > { %v15167_v49 = vadd.f32 %v7519_v51, %v6736_v22  ;;  %v6831_v22 = vadd.f32 %v16807_v45, %v16806_v30 }
0x11bd   : > { %v7576_v21 = vpop.f32.mrf.mxu3 }
0x11be   : > { %v11414_v60 = vpop.eup %11413  ;;  %v15173_v34 = vadd.f32 %v7576_v21, %v6793_v20  ;;  %v16809_v20 = vld [vmem:[#allocation63_spill] sm:$0xff] }
0x11bf   : > { %v7435_v53 = vmul.f32 %v11414_v60, %v15082_v9  ;;  %v16795_v9 = vld [vmem:[#allocation13_spill] sm:$0xff]  ;;  %v7816_v21 = vmul.f32 %v16786_v25, %v16809_v20  ;;  %v16810_v60 = vld [vmem:[#allocation35_spill] sm:$0xff] }
0x11c0   : > { %v7521_v47 = vpop.f32.mrf.mxu0  ;;  %v6755_v6 = vadd.f32 %v16796_v4, %v16795_v9  ;;  %v16814_v4 = vld [vmem:[#allocation19_spill] sm:$0xff] }
0x11c1   : > { %v7483_v35 = vpack.c.bf16 %v7435_v53, %v7435_v53  ;;  %v7811_v53 = vmul.f32 %v16786_v25, %v16810_v60  ;;  %v8256_v47 = vpack.c.bf16 %v8240_v1, %v8240_v1 }
0x11c2   : > { %7884 = vmatmul.bf16.vlgmr.msra.gmra.mxu2 %v7824_v2 }
0x11c3   : > { %7987 = vmatpush.bf16.xpose.msra.mxu2 %v16790_v41  ;;  %10550 = vmatmul.msk.bf16.vlgmr.msra.gmra.mxu1 %vm993_vm0, %v7483_v35  ;;  %v7832_v35 = vpack.c.bf16 %v7816_v21, %v7816_v21  ;;  %v8346_v32 = vsel %vm1701_vm15, %v8256_v47, 0 }
0x11c4   : > { %7922 = vmatpush.bf16.xpose.msra.mxu1 %v16791_v19 }
0x11c5   : > { %v7578_v29 = vpop.f32.mrf.mxu3 }
0x11c6   : > { %v7557_v42 = vpop.f32.mrf.mxu2  ;;  %v7827_v29 = vpack.c.bf16 %v7811_v53, %v7811_v53 }
0x11c7   : > { %v15182_v56 = vadd.f32 %v7557_v42, %v16794_v59  ;;  %v16813_v59 = vld [vmem:[#allocation51_spill] sm:$0xff] }
0x11c8   : > { %v7595_v31 = vpop.f32.mrf.mxu0 }
0x11c9   : > { %v15186_v54 = vadd.f32 %v7595_v31, %v6812_v27  ;;  %v16812_v27 = vld [vmem:[#allocation30_spill] sm:$0xff] }
0x11ca   : > { %v7538_v26 = vpop.f32.mrf.mxu1  ;;  %v6926_v31 = vadd.f32 %v16813_v59, %v16812_v27 }
0x11cb   : > { %v15188_v50 = vadd.f32 %v7538_v26, %v6755_v6  ;;  %v16815_v6 = vld [vmem:[#allocation38_spill] sm:$0xff] }
0x11cc   : > { %v6945_v26 = vadd.f32 %v16815_v6, %v16814_v4 }
0x11ce   : > { %v7559_v62 = vpop.f32.mrf.mxu2 }
0x11cf   : > { %v6964_v62 = vadd.f32 %v16817_v18, %v16816_v48 }
0x11d0   : > { %v7597_v58 = vpop.f32.mrf.mxu0 }
0x11d1   : > { %v16818_v58 = vld [vmem:[#allocation60_spill] sm:$0xff] }
0x11d2   : > { %v7540_v23 = vpop.f32.mrf.mxu1  ;;  %7936 = vmatmul.bf16.vlgmr.msrb.gmra.mxu2 %v7828_v14 }
0x11d3   : > { %8039 = vmatpush.bf16.xpose.msrb.mxu2 %v16799_v63  ;;  %7871 = vmatmul.bf16.vlgmr.msrb.gmra.mxu1 %v7823_v55  ;;  %v16819_v55 = vld [vmem:[#allocation39_spill] sm:$0xff] }
0x11d4   : > { %7974 = vmatpush.bf16.xpose.msrb.mxu1 %v16800_v39  ;;  %v6907_v23 = vadd.f32 %v16819_v55, %v16818_v58  ;;  %v16820_v39 = vld [vmem:[#allocation22_spill] sm:$0xff] }
0x11d6   : > { %v7633_v36 = vpop.f32.mrf.mxu2 }
0x11d7   : > { %v15201_v52 = vadd.f32 %v7633_v36, %v16805_v33  ;;  %v8244_v36 = vmul.f32 %v16786_v25, %v16820_v39 }
0x11d8   : > { %v7652_v17 = vpop.f32.mrf.mxu3  ;;  %v7671_v43 = vpop.f32.mrf.mxu0 }
0x11d9   : > { %v15205_v16 = vadd.f32 %v7652_v17, %v6869_v37  ;;  %v15207_v51 = vadd.f32 %v7671_v43, %v6888_v10  ;;  %v16821_v37 = vld [vmem:[#allocation18_spill] sm:$0xff]  ;;  %v7820_v10 = vmul.f32 %v16786_v25, %v16822_v8  ;;  %v16823_v17 = vld [vmem:[#allocation61_spill] sm:$0xff]  ;;  %v8260_v45 = vpack.c.bf16 %v8244_v36, %v8244_v36 }
0x11da   : > { %v7614_v61 = vpop.f32.mrf.mxu1  ;;  %v8239_v24 = vmul.f32 %v16786_v25, %v16821_v37  ;;  %v7815_v43 = vmul.f32 %v16786_v25, %v16823_v17  ;;  %v16826_v8 = vld [vmem:[#allocation50_spill] sm:$0xff] }
0x11db   : > { %v15211_v57 = vadd.f32 %v7614_v61, %v6831_v22  ;;  %v7836_v61 = vpack.c.bf16 %v7820_v10, %v7820_v10  ;;  %v8422_v21 = vsel %vm1701_vm15, %v8260_v45, 0  ;;  %v16827_v10 = vld [vmem:[#allocation58_spill] sm:$0xff] }
0x11dc   : > { %v8255_v22 = vpack.c.bf16 %v8239_v24, %v8239_v24  ;;  %v7831_v1 = vpack.c.bf16 %v7815_v43, %v7815_v43  ;;  %v7002_v17 = vadd.f32 %v16827_v10, %v16826_v8 }
0x11de   : > { %v7635_v2 = vpop.f32.mrf.mxu2  ;;  %v8327_v53 = vsel %vm1701_vm15, %v8255_v22, 0  ;;  %v16828_v22 = vld [vmem:[#allocation36_spill] sm:$0xff] }
0x11e0   : > { %v7654_v41 = vpop.f32.mrf.mxu3  ;;  %v7673_v19 = vpop.f32.mrf.mxu0 }
0x11e2   : > { %v7616_v42 = vpop.f32.mrf.mxu1  ;;  %7988 = vmatmul.bf16.vlgmr.msra.gmra.mxu2 %v7832_v35 }
0x11e3   : > { %8355 = vmatpush.bf16.msra.mxu2 %v8346_v32  ;;  %7923 = vmatmul.bf16.vlgmr.msra.gmra.mxu1 %v7827_v29  ;;  %v16824_v29 = vld [vmem:[#allocation21_spill] sm:$0xff] }
0x11e4   : > { %8026 = vmatpush.bf16.xpose.msra.mxu1 %v16811_v3  ;;  %v8243_v42 = vmul.f32 %v16786_v25, %v16824_v29  ;;  %v16825_v32 = vld [vmem:[#allocation65_spill] sm:$0xff] }
0x11e5   : > { %v7819_v3 = vmul.f32 %v16786_v25, %v16825_v32 }
0x11e6   : > { %v7709_v9 = vpop.f32.mrf.mxu2  ;;  %v8259_v59 = vpack.c.bf16 %v8243_v42, %v8243_v42 }
0x11e7   : > { %v15223_v11 = vadd.f32 %v7709_v9, %v6926_v31  ;;  %v7835_v9 = vpack.c.bf16 %v7819_v3, %v7819_v3 }
0x11e8   : > { %v7728_v44 = vpop.f32.mrf.mxu3  ;;  %v8403_v6 = vsel %vm1701_vm15, %v8259_v59, 0 }
0x11e9   : > { %v15227_v14 = vadd.f32 %v7728_v44, %v6945_v26 }
0x11ea   : > { %v7747_v63 = vpop.f32.mrf.mxu0 }
0x11eb   : > { %v7690_v15 = vpop.f32.mrf.mxu1  ;;  %v15233_v13 = vadd.f32 %v7747_v63, %v6964_v62 }
0x11ec   : > { %v15239_v33 = vadd.f32 %v7690_v15, %v6907_v23 }
0x11ee   : > { %v7711_v30 = vpop.f32.mrf.mxu2 }
0x11f0   : > { %v7730_v12 = vpop.f32.mrf.mxu3 }
0x11f2   : > { %v7749_v20 = vpop.f32.mrf.mxu0  ;;  %8040 = vmatmul.bf16.vlgmr.msrb.gmra.mxu2 %v7836_v61  ;;  %v16829_v61 = vld [vmem:[#allocation73_spill] sm:$0xff] }
0x11f3   : > { %v7692_v60 = vpop.f32.mrf.mxu1  ;;  %8431 = vmatpush.bf16.msrb.mxu2 %v8422_v21  ;;  %7975 = vmatmul.bf16.vlgmr.msrb.gmra.mxu1 %v7831_v1  ;;  %v6983_v12 = vadd.f32 %v16829_v61, %v16828_v22 }
0x11f4   : > { %8336 = vmatpush.bf16.msrb.mxu1 %v8327_v53 }
0x11f8   : > { %v7846_v2 = vpop.f32.mrf.mxu3 }
0x11f9   : > { %v15245_v47 = vmul.f32 0.35355338, %v7846_v2 }
0x11fa   : > { %v7859_v35 = vpop.f32.mrf.mxu0 }
0x11fb   : > { %v15247_v41 = vmul.f32 0.35355338, %v7859_v35  ;;  %v8061_v19 = vsel %vm993_vm0, %v15245_v47, -inf }
0x11fc   : > { %8062 = vmax.xlane.f32.xlu0 %v8061_v19 }
0x11fd   : > { %v8064_v27 = vsel %vm993_vm0, %v15247_v41, -inf }
0x11fe   : > { %8065 = vmax.xlane.f32.xlu1 %v8064_v27 }
0x1200   : > { %v7848_v31 = vpop.f32.mrf.mxu3 }
0x1202   : > { %v7861_v4 = vpop.f32.mrf.mxu0 }
0x1203   : > { %8027 = vmatmul.bf16.vlgmr.msra.gmra.mxu1 %v7835_v9 }
0x1204   : > { %8412 = vmatpush.bf16.msra.mxu1 %v8403_v6 }
0x1208   : > { %v7898_v26 = vpop.f32.mrf.mxu3 }
0x1209   : > { %v15258_v44 = vmul.f32 0.35355338, %v7898_v26 }
0x120a   : > { %v7911_v48 = vpop.f32.mrf.mxu0 }
0x120b   : > { %v8073_v18 = vsel %vm993_vm0, %v15258_v44, -inf  ;;  %v15278_v35 = vmul.f32 0.35355338, %v7911_v48 }
0x120c   : > { %8074 = vmax.xlane.f32.xlu1 %v8073_v18 }
0x120d   : > { %v8076_v29 = vsel %vm993_vm0, %v15278_v35, -inf }
0x1210   : > { %v7900_v62 = vpop.f32.mrf.mxu3 }
0x1212   : > { %v7913_v58 = vpop.f32.mrf.mxu0 }
0x1218   : > { %v7950_v55 = vpop.f32.mrf.mxu3 }
0x121a   : > { %v7963_v23 = vpop.f32.mrf.mxu0 }
0x1220   : > { %v7952_v63 = vpop.f32.mrf.mxu3 }
0x1222   : > { %v7965_v39 = vpop.f32.mrf.mxu0 }
0x1228   : > { %v15262_v36 = vpop.f32.mrf.mxu3 }
0x122a   : > { %v15264_v15 = vpop.f32.mrf.mxu0 }
0x1230   : > { %v8004_v37 = vpop.f32.mrf.mxu3 }
0x1232   : > { %v8017_v24 = vpop.f32.mrf.mxu0 }
0x1235   : > { %v7785_v43 = vpop.f32.mrf.mxu2 }
0x1236   : > { %v15268_v30 = vadd.f32 %v7785_v43, %v7002_v17 }
0x123d   : > { %v7787_v45 = vpop.f32.mrf.mxu2 }
0x1240   : > { %v7766_v1 = vpop.f32.mrf.mxu1 }
0x1241   : > { %v15272_v20 = vadd.f32 %v7766_v1, %v6983_v12 }
0x1245   : > { %v7885_v21 = vpop.f32.mrf.mxu2 }
0x1246   : > { %v15274_v60 = vmul.f32 0.35355338, %v7885_v21 }
0x1248   : > { %v8070_v53 = vsel %vm993_vm0, %v15274_v60, -inf  ;;  %v7768_v2 = vpop.f32.mrf.mxu1 }
0x1249   : > { %8071 = vmax.xlane.f32.xlu2 %v8070_v53 }
0x124d   : > { %v7887_v19 = vpop.f32.mrf.mxu2 }
0x124e   : > { %v15309_v19 = vmul.f32 0.35355338, %v7963_v23 }
0x1250   : > { %v7872_v42 = vpop.f32.mrf.mxu1 }
0x1251   : > { %8077 = vmax.xlane.f32.xlu2 %v8076_v29  ;;  %v15282_v32 = vmul.f32 0.35355338, %v7872_v42 }
0x1253   : > { %v8067_v3 = vsel %vm993_vm0, %v15282_v32, -inf }
0x1254   : > { %8068 = vmax.xlane.f32.xlu0 %v8067_v3  ;;  %v8088_v3 = vsel %vm993_vm0, %v15309_v19, -inf }
0x1255   : > { %v7937_v27 = vpop.f32.mrf.mxu2 }
0x1256   : > { %v15286_v59 = vmul.f32 0.35355338, %v7937_v27 }
0x1258   : > { %v7874_v31 = vpop.f32.mrf.mxu1  ;;  %v8082_v9 = vsel %vm993_vm0, %v15286_v59, -inf }
0x125c   : > { %8083 = vmax.xlane.f32.xlu0 %v8082_v9 }
0x125d   : > { %v7939_v4 = vpop.f32.mrf.mxu2 }
0x1260   : > { %v7924_v6 = vpop.f32.mrf.mxu1 }
0x1261   : > { %v15290_v26 = vmul.f32 0.35355338, %v7924_v6 }
0x1263   : > { %v8079_v48 = vsel %vm993_vm0, %v15290_v26, -inf }
0x1264   : > { %8080 = vmax.xlane.f32.xlu2 %v8079_v48 }
0x1265   : > { %v7989_v18 = vpop.f32.mrf.mxu2 }
0x1268   : > { %v7926_v62 = vpop.f32.mrf.mxu1 }
0x126d   : > { %v7991_v58 = vpop.f32.mrf.mxu2 }
0x126f   : > { %v8063_v63 = vpop.xlane.xlu0 %8062 }
0x1270   : > { %v8109_v39 = vsub.f32 %v15245_v47, %v8063_v63  ;;  %v7976_v37 = vpop.f32.mrf.mxu1 }
0x1271   : > { %v8066_v24 = vpop.xlane.xlu1 %8065 }
0x1272   : > { %v8125_v8 = vmul.f32 1.442695, %v8109_v39  ;;  %v8110_v10 = vsub.f32 %v15247_v41, %v8066_v24  ;;  %v15306_v41 = vmul.f32 0.35355338, %v7950_v55 }
0x1274   : > { %11415 = vpow2.f32 %v8125_v8  ;;  %v8127_v17 = vmul.f32 1.442695, %v8110_v10  ;;  %v8085_v42 = vsel %vm993_vm0, %v15306_v41, -inf  ;;  %v15331_v10 = vmul.f32 0.35355338, %v7989_v18 }
0x1275   : > { %v15296_v43 = vpop.f32.mrf.mxu2  ;;  %v15342_v18 = vmul.f32 0.35355338, %v7976_v37 }
0x1276   : > { %11417 = vpow2.f32 %v8127_v17  ;;  %v8094_v17 = vsel %vm993_vm0, %v15331_v10, -inf }
0x1278   : > { %v7978_v45 = vpop.f32.mrf.mxu1 }
0x127a   : > { %v15298_v22 = vpop.eup %11415 }
0x127b   : > { %v8157_v61 = vsel %vm993_vm0, %v15298_v22, 0.0 }
0x127c   : > { %v15302_v12 = vpop.eup %11417  ;;  %8158 = vadd.xlane.f32.xlu1 %v8157_v61 }
0x127d   : > { %v8043_v47 = vpop.f32.mrf.mxu2  ;;  %v8160_v1 = vsel %vm993_vm0, %v15302_v12, 0.0 }
0x127e   : > { %8161 = vadd.xlane.f32.xlu0 %v8160_v1 }
0x127f   : > { %v8075_v21 = vpop.xlane.xlu1 %8074 }
0x1280   : > { %v8113_v53 = vsub.f32 %v15258_v44, %v8075_v21  ;;  %v8028_v2 = vpop.f32.mrf.mxu1  ;;  %v15320_v44 = vmul.f32 0.35355338, %v15262_v36 }
0x1282   : > { %v8133_v29 = vmul.f32 1.442695, %v8113_v53  ;;  %v8097_v23 = vsel %vm993_vm0, %v15320_v44, -inf }
0x1284   : > { %11419 = vpow2.f32 %v8133_v29  ;;  %8086 = vmax.xlane.f32.xlu1 %v8085_v42  ;;  %v15350_v42 = vmul.f32 0.35355338, %v15264_v15  ;;  %v15363_v15 = vmul.f32 0.35355338, %v15296_v43  ;;  %v8246_v43 = vmul.f32 %v16786_v25, %v14499_v0 }
0x1286   : > { %8089 = vmax.xlane.f32.xlu0 %v8088_v3  ;;  %v8100_v37 = vsel %vm993_vm0, %v15350_v42, -inf }
0x1288   : > { %v8030_v27 = vpop.f32.mrf.mxu1 }
0x128a   : > { %v15315_v31 = vpop.eup %11419 }
0x128b   : > { %v8169_v55 = vsel %vm993_vm0, %v15315_v31, 0.0 }
0x128e   : > { %8170 = vadd.xlane.f32.xlu0 %v8169_v55 }
0x1296   : > { %8098 = vmax.xlane.f32.xlu0 %v8097_v23  ;;  %v15365_v23 = vmul.f32 0.35355338, %v8028_v2 }
0x12bc   : > { %v8072_v9 = vpop.xlane.xlu2 %8071 }
0x12bd   : > { %v8112_v4 = vsub.f32 %v15274_v60, %v8072_v9  ;;  %v8106_v9 = vsel %vm993_vm0, %v15363_v15, -inf }
0x12bf   : > { %v8131_v6 = vmul.f32 1.442695, %v8112_v4  ;;  %v8103_v4 = vsel %vm993_vm0, %v15365_v23, -inf }
0x12c1   : > { %11421 = vpow2.f32 %v8131_v6 }
0x12c4   : > { %v8078_v48 = vpop.xlane.xlu2 %8077 }
0x12c5   : > { %v8114_v58 = vsub.f32 %v15278_v35, %v8078_v48 }
0x12c7   : > { %v15325_v62 = vpop.eup %11421  ;;  %v8069_v63 = vpop.xlane.xlu0 %8068  ;;  %v8135_v8 = vmul.f32 1.442695, %v8114_v58  ;;  %v16830_v58 = vld [vmem:[#allocation23_spill] sm:$0xff] }
0x12c8   : > { %v8111_v39 = vsub.f32 %v15282_v32, %v8069_v63  ;;  %v8166_v36 = vsel %vm993_vm0, %v15325_v62, 0.0  ;;  %v8245_v63 = vmul.f32 %v16786_v25, %v16830_v58 }
0x12c9   : > { %8167 = vadd.xlane.f32.xlu2 %v8166_v36 }
0x12ca   : > { %v8129_v24 = vmul.f32 1.442695, %v8111_v39 }
0x12cc   : > { %11423 = vpow2.f32 %v8129_v24  ;;  %v8261_v24 = vpack.c.bf16 %v8245_v63, %v8245_v63 }
0x12cd   : > { %11425 = vpow2.f32 %v8135_v8 }
0x12ce   : > { %v8441_v0 = vsel %vm1701_vm15, %v8261_v24, 0 }
0x12cf   : > { %v8084_v60 = vpop.xlane.xlu0 %8083 }
0x12d0   : > { %v8116_v35 = vsub.f32 %v15286_v59, %v8084_v60  ;;  %v8091_v59 = vsel %vm993_vm0, %v15342_v18, -inf }
0x12d1   : > { %8095 = vmax.xlane.f32.xlu2 %v8094_v17 }
0x12d2   : > { %v15335_v45 = vpop.eup %11423  ;;  %v8139_v47 = vmul.f32 1.442695, %v8116_v35 }
0x12d3   : > { %v8163_v32 = vsel %vm993_vm0, %v15335_v45, 0.0  ;;  %v15340_v61 = vpop.eup %11425 }
0x12d4   : > { %8164 = vadd.xlane.f32.xlu1 %v8163_v32  ;;  %v8172_v53 = vsel %vm993_vm0, %v15340_v61, 0.0  ;;  %11427 = vpow2.f32 %v8139_v47  ;;  %v8262_v47 = vpack.c.bf16 %v8246_v43, %v8246_v43 }
0x12d7   : > { %v8081_v1 = vpop.xlane.xlu2 %8080 }
0x12d8   : > { %v8115_v21 = vsub.f32 %v15290_v26, %v8081_v1 }
0x12d9   : > { %8173 = vadd.xlane.f32.xlu2 %v8172_v53 }
0x12da   : > { %v8137_v29 = vmul.f32 1.442695, %v8115_v21  ;;  %v15352_v3 = vpop.eup %11427 }
0x12db   : > { %v8178_v55 = vsel %vm993_vm0, %v15352_v3, 0.0 }
0x12dc   : > { %11429 = vpow2.f32 %v8137_v29  ;;  %8092 = vmax.xlane.f32.xlu1 %v8091_v59 }
0x12e1   : > { %8101 = vmax.xlane.f32.xlu2 %v8100_v37 }
0x12e2   : > { %v15356_v26 = vpop.eup %11429 }
0x12e3   : > { %v8175_v27 = vsel %vm993_vm0, %v15356_v26, 0.0 }
0x12e4   : > { %8176 = vadd.xlane.f32.xlu0 %v8175_v27  ;;  %8179 = vadd.xlane.f32.xlu1 %v8178_v55  ;;  %v16831_v27 = vld [vmem:[#allocation24_spill] sm:$0xff] }
0x12e5   : > { %v8249_v55 = vmul.f32 %v16786_v25, %v16831_v27 }
0x12ec   : > { %8107 = vmax.xlane.f32.xlu1 %v8106_v9  ;;  %8104 = vmax.xlane.f32.xlu0 %v8103_v4 }
0x12ef   : > { %v8159_v6 = vpop.xlane.xlu1 %8158 }
0x12f0   : > { %11431 = vrcp.f32 %v8159_v6 }
0x12f1   : > { %v8162_v48 = vpop.xlane.xlu0 %8161 }
0x12f2   : > { %11433 = vrcp.f32 %v8162_v48  ;;  %v8265_v48 = vpack.c.bf16 %v8249_v55, %v8249_v55 }
0x12f6   : > { %v11432_v2 = vpop.eup %11431 }
0x12f7   : > { %v8221_v39 = vmul.f32 %v11432_v2, %v15298_v22  ;;  %v8087_v36 = vpop.xlane.xlu1 %8086  ;;  %v8517_v2 = vsel %vm1701_vm15, %v8265_v48, 0 }
0x12f8   : > { %v11434_v8 = vpop.eup %11433  ;;  %v8117_v60 = vsub.f32 %v15306_v41, %v8087_v36  ;;  %v8460_v41 = vsel %vm1701_vm15, %v8262_v47, 0 }
0x12f9   : > { %v8269_v17 = vpack.c.bf16 %v8221_v39, %v8221_v39  ;;  %v8222_v35 = vmul.f32 %v11434_v8, %v15302_v12  ;;  %v8090_v32 = vpop.xlane.xlu0 %8089 }
0x12fa   : > { %v8141_v1 = vmul.f32 1.442695, %v8117_v60  ;;  %v8118_v21 = vsub.f32 %v15309_v19, %v8090_v32 }
0x12fb   : > { %v8270_v53 = vpack.c.bf16 %v8222_v35, %v8222_v35  ;;  %10552 = vmatmul.msk.bf16.vlgmr.msra.gmra.mxu3 %vm993_vm0, %v8269_v17 }
0x12fc   : > { %11435 = vpow2.f32 %v8141_v1  ;;  %v8143_v22 = vmul.f32 1.442695, %v8118_v21  ;;  %8450 = vmatpush.bf16.msra.mxu3 %v8441_v0 }
0x12fd   : > { %10553 = vmatmul.msk.bf16.vlgmr.msra.gmra.mxu0 %vm993_vm0, %v8270_v53 }
0x12fe   : > { %11437 = vpow2.f32 %v8143_v22  ;;  %8469 = vmatpush.bf16.msra.mxu0 %v8460_v41 }
0x1301   : > { %v8171_v12 = vpop.xlane.xlu0 %8170 }
0x1302   : > { %v15383_v29 = vpop.eup %11435  ;;  %11439 = vrcp.f32 %v8171_v12 }
0x1303   : > { %v8181_v19 = vsel %vm993_vm0, %v15383_v29, 0.0 }
0x1304   : > { %v15387_v59 = vpop.eup %11437  ;;  %8182 = vadd.xlane.f32.xlu2 %v8181_v19 }
0x1305   : > { %v8184_v37 = vsel %vm993_vm0, %v15387_v59, 0.0 }
0x1306   : > { %8185 = vadd.xlane.f32.xlu1 %v8184_v37  ;;  %v8250_v37 = vmul.f32 %v16786_v25, %v14542_v46 }
0x1308   : > { %v11440_v9 = vpop.eup %11439 }
0x1309   : > { %v8225_v4 = vmul.f32 %v11440_v9, %v15315_v31  ;;  %v8099_v6 = vpop.xlane.xlu0 %8098  ;;  %v8248_v31 = vmul.f32 %v16786_v25, %v14616_v38  ;;  %v8247_v38 = vmul.f32 %v16786_v25, %v14625_v7 }
0x130a   : > { %v8121_v58 = vsub.f32 %v15320_v44, %v8099_v6 }
0x130b   : > { %v8273_v63 = vpack.c.bf16 %v8225_v4, %v8225_v4  ;;  %v8264_v17 = vpack.c.bf16 %v8248_v31, %v8248_v31  ;;  %v8263_v41 = vpack.c.bf16 %v8247_v38, %v8247_v38 }
0x130c   : > { %v8149_v43 = vmul.f32 1.442695, %v8121_v58 }
0x130d   : > { %10556 = vmatmul.msk.bf16.vlgmr.msrb.gmra.mxu3 %vm993_vm0, %v8273_v63  ;;  %v8498_v21 = vsel %vm1701_vm15, %v8264_v17, 0  ;;  %v8479_v9 = vsel %vm1701_vm15, %v8263_v41, 0 }
0x130e   : > { %11441 = vpow2.f32 %v8149_v43  ;;  %8526 = vmatpush.bf16.msrb.mxu3 %v8517_v2 }
0x1314   : > { %v15397_v39 = vpop.eup %11441 }
0x1315   : > { %v8193_v36 = vsel %vm993_vm0, %v15397_v39, 0.0 }
0x1316   : > { %8194 = vadd.xlane.f32.xlu1 %v8193_v36  ;;  %v8252_v36 = vmul.f32 %v16786_v25, %v14634_v40 }
0x1318   : > { %v8268_v40 = vpack.c.bf16 %v8252_v36, %v8252_v36 }
0x133c   : > { %v8168_v24 = vpop.xlane.xlu2 %8167 }
0x133d   : > { %11443 = vrcp.f32 %v8168_v24 }
0x1343   : > { %v11444_v44 = vpop.eup %11443 }
0x1344   : > { %v8224_v8 = vmul.f32 %v11444_v44, %v15325_v62  ;;  %v8096_v60 = vpop.xlane.xlu2 %8095 }
0x1345   : > { %v8120_v35 = vsub.f32 %v15331_v10, %v8096_v60 }
0x1346   : > { %v8272_v32 = vpack.c.bf16 %v8224_v8, %v8224_v8 }
0x1347   : > { %v8147_v47 = vmul.f32 1.442695, %v8120_v35  ;;  %v8165_v1 = vpop.xlane.xlu1 %8164 }
0x1348   : > { %11445 = vrcp.f32 %v8165_v1  ;;  %10555 = vmatmul.msk.bf16.vlgmr.msra.gmra.mxu2 %vm993_vm0, %v8272_v32 }
0x1349   : > { %11447 = vpow2.f32 %v8147_v47  ;;  %8507 = vmatpush.bf16.msra.mxu2 %v8498_v21 }
0x134c   : > { %v8174_v53 = vpop.xlane.xlu2 %8173 }
0x134d   : > { %11449 = vrcp.f32 %v8174_v53 }
0x134e   : > { %v11446_v62 = vpop.eup %11445 }
0x134f   : > { %v15409_v0 = vpop.eup %11447  ;;  %v8223_v10 = vmul.f32 %v11446_v62, %v15335_v45  ;;  %v8093_v22 = vpop.xlane.xlu1 %8092 }
0x1350   : > { %v8119_v12 = vsub.f32 %v15342_v18, %v8093_v22  ;;  %v8190_v19 = vsel %vm993_vm0, %v15409_v0, 0.0  ;;  %v8266_v18 = vpack.c.bf16 %v8250_v37, %v8250_v37  ;;  %v10780_v37 = vld [vmem:[#allocation2 + $0x32c] sm:$0xf0] }
0x1351   : > { %v8271_v27 = vpack.c.bf16 %v8223_v10, %v8223_v10  ;;  %8191 = vadd.xlane.f32.xlu2 %v8190_v19  ;;  %v10598_v19 = vld [vmem:[#allocation2 + $0x2fc] sm:$0xf] }
0x1352   : > { %v8145_v7 = vmul.f32 1.442695, %v8119_v12  ;;  %v8536_v43 = vsel %vm1701_vm15, %v8266_v18, 0  ;;  %v10599_v18 = vor.u32 %v10780_v37, %v10598_v19 }
0x1353   : > { %v11450_v55 = vpop.eup %11449  ;;  %10554 = vmatmul.msk.bf16.vlgmr.msrb.gmra.mxu1 %vm993_vm0, %v8271_v27 }
0x1354   : > { %v8226_v45 = vmul.f32 %v11450_v55, %v15340_v61  ;;  %11451 = vpow2.f32 %v8145_v7  ;;  %8488 = vmatpush.bf16.msrb.mxu1 %v8479_v9  ;;  %v8102_v4 = vpop.xlane.xlu2 %8101 }
0x1355   : > { %v8122_v6 = vsub.f32 %v15350_v42, %v8102_v4  ;;  %v8251_v42 = vmul.f32 %v16786_v25, %v14645_v5 }
0x1356   : > { %v8274_v48 = vpack.c.bf16 %v8226_v45, %v8226_v45 }
0x1357   : > { %v8151_v58 = vmul.f32 1.442695, %v8122_v6  ;;  %v8177_v63 = vpop.xlane.xlu0 %8176  ;;  %v8180_v46 = vpop.xlane.xlu1 %8179  ;;  %v8267_v17 = vpack.c.bf16 %v8251_v42, %v8251_v42 }
0x1358   : > { %11453 = vrcp.f32 %v8177_v63  ;;  %10557 = vmatmul.msk.bf16.vlgmr.msrb.gmra.mxu0 %vm993_vm0, %v8274_v48  ;;  %v10594_v63 = vld [vmem:[#allocation2 + $0x294] sm:$0xf] }
0x1359   : > { %11455 = vpow2.f32 %v8151_v58  ;;  %8545 = vmatpush.bf16.msrb.mxu0 %v8536_v43 }
0x135a   : > { %v15423_v2 = vpop.eup %11451  ;;  %11457 = vrcp.f32 %v8180_v46  ;;  %v10779_v46 = vld [vmem:[#allocation2 + $0x2c4] sm:$0xf0] }
0x135b   : > { %v8187_v61 = vsel %vm993_vm0, %v15423_v2, 0.0  ;;  %v10595_v42 = vor.u32 %v10779_v46, %v10594_v63 }
0x135c   : > { %8188 = vadd.xlane.f32.xlu0 %v8187_v61 }
0x135e   : > { %v11454_v24 = vpop.eup %11453 }
0x135f   : > { %v15431_v31 = vpop.eup %11455  ;;  %v8227_v44 = vmul.f32 %v11454_v24, %v15356_v26  ;;  %v8108_v8 = vpop.xlane.xlu1 %8107  ;;  %v8555_v26 = vsel %vm1701_vm15, %v8267_v17, 0  ;;  %v10776_v17 = vld [vmem:[#allocation2 + $0x18c] sm:$0xf0] }
0x1360   : > { %v8105_v60 = vpop.xlane.xlu0 %8104  ;;  %v11458_v35 = vpop.eup %11457  ;;  %v8124_v32 = vsub.f32 %v15363_v15, %v8108_v8  ;;  %v8196_v5 = vsel %vm993_vm0, %v15431_v31, 0.0  ;;  %v8574_v15 = vsel %vm1701_vm15, %v8268_v40, 0  ;;  %v10777_v8 = vld [vmem:[#allocation2 + $0x1f4] sm:$0xf0]  ;;  %v10775_v40 = vld [vmem:[#allocation2 + $0x124] sm:$0xf0] }
0x1361   : > { %v8123_v47 = vsub.f32 %v15365_v23, %v8105_v60  ;;  %v8275_v1 = vpack.c.bf16 %v8227_v44, %v8227_v44  ;;  %v8228_v21 = vmul.f32 %v11458_v35, %v15352_v3  ;;  %8197 = vadd.xlane.f32.xlu2 %v8196_v5  ;;  %v10586_v44 = vld [vmem:[#allocation2 + $0x1c4] sm:$0xf]  ;;  %v10582_v60 = vld [vmem:[#allocation2 + $0x15c] sm:$0xf] }
0x1362   : > { %v8155_v25 = vmul.f32 1.442695, %v8124_v32 }
0x1363   : > { %v8153_v38 = vmul.f32 1.442695, %v8123_v47  ;;  %v8276_v53 = vpack.c.bf16 %v8228_v21, %v8228_v21  ;;  %10558 = vmatmul.msk.bf16.vlgmr.msra.gmra.mxu1 %vm993_vm0, %v8275_v1  ;;  %v10583_v47 = vor.u32 %v10776_v17, %v10582_v60  ;;  %v10578_v21 = vld [vmem:[#allocation2 + $0xf4] sm:$0xf] }
0x1364   : > { %11459 = vpow2.f32 %v8155_v25  ;;  %8564 = vmatpush.bf16.msra.mxu1 %v8555_v26  ;;  %v10774_v26 = vld [vmem:[#allocation2 + $0xbc] sm:$0xf0] }
0x1365   : > { %11461 = vpow2.f32 %v8153_v38  ;;  %10559 = vmatmul.msk.bf16.vlgmr.msrb.gmra.mxu2 %vm993_vm0, %v8276_v53  ;;  %v10579_v38 = vor.u32 %v10775_v40, %v10578_v21  ;;  %v10574_v53 = vld [vmem:[#allocation2 + $0x8c] sm:$0xf] }
0x1366   : > { %8583 = vmatpush.bf16.msrb.mxu2 %v8574_v15 }
0x136a   : > { %v15443_v23 = vpop.eup %11459 }
0x136b   : > { %v15445_v3 = vpop.eup %11461  ;;  %v8202_v62 = vsel %vm993_vm0, %v15443_v23, 0.0 }
0x136c   : > { %8203 = vadd.xlane.f32.xlu0 %v8202_v62  ;;  %v8199_v10 = vsel %vm993_vm0, %v15445_v3, 0.0  ;;  %v10575_v62 = vor.u32 %v10774_v26, %v10574_v53 }
0x136d   : > { %8200 = vadd.xlane.f32.xlu1 %v8199_v10  ;;  %v10570_v10 = vld [vmem:[#allocation2 + $0x24] sm:$0xf] }
0x1377   : > { %v8183_v22 = vpop.xlane.xlu2 %8182 }
0x1378   : > { %11463 = vrcp.f32 %v8183_v22  ;;  %v10773_v22 = vld [vmem:[#allocation2 + $0x54] sm:$0xf0] }
0x1379   : > { %v8186_v41 = vpop.xlane.xlu1 %8185 }
0x137a   : > { %11465 = vrcp.f32 %v8186_v41  ;;  %v8319_v12 = vpop.f32.mrf.mxu0  ;;  %v10571_v41 = vor.u32 %v10773_v22, %v10570_v10  ;;  %v16833_v10 = vld [vmem:[#allocation66_spill] sm:$0xff] }
0x137b   : > { %v8590_v9 = vadd.f32 %v8319_v12, %v15167_v49  ;;  %v10778_v49 = vld [vmem:[#allocation2 + $0x25c] sm:$0xf0] }
0x137e   : > { %v11464_v27 = vpop.eup %11463  ;;  %v8300_v7 = vpop.f32.mrf.mxu3 }
0x137f   : > { %v8229_v55 = vmul.f32 %v11464_v27, %v15383_v29  ;;  %v8589_v45 = vadd.f32 %v8300_v7, %v15161_v28  ;;  %v10590_v29 = vld [vmem:[#allocation2 + $0x22c] sm:$0xf] }
0x1380   : > { %v11466_v4 = vpop.eup %11465  ;;  %v10591_v28 = vor.u32 %v10778_v49, %v10590_v29 }
0x1381   : > { %v8277_v6 = vpack.c.bf16 %v8229_v55, %v8229_v55  ;;  %v8230_v48 = vmul.f32 %v11466_v4, %v15387_v59  ;;  %v8621_v58 = vpack.c.bf16 %v8590_v9, %v8589_v45  ;;  %v10587_v59 = vor.u32 %v10777_v8, %v10586_v44 }
0x1382   : > { %v8321_v43 = vpop.f32.mrf.mxu0 }
0x1383   : > { %v8278_v61 = vpack.c.bf16 %v8230_v48, %v8230_v48  ;;  %10560 = vmatmul.msk.bf16.vlgmr.msra.gmra.mxu3 %vm993_vm0, %v8277_v6 }
0x1384   : > { %8678 = vmatpush.bf16.msra.mxu3 %v10599_v18 }
0x1385   : > { %10561 = vmatmul.msk.bf16.vlgmr.msra.gmra.mxu0 %vm993_vm0, %v8278_v61 }
0x1386   : > { %v8302_v36 = vpop.f32.mrf.mxu3 }
0x1388   : > { %8679 = vmatpush.bf16.msra.mxu3 %v10595_v42 }
0x1389   : > { %v8195_v24 = vpop.xlane.xlu1 %8194 }
0x138a   : > { %11467 = vrcp.f32 %v8195_v24 }
0x138c   : > { %8680 = vmatpush.bf16.msra.mxu3 %v10591_v28 }
0x1390   : > { %v11468_v35 = vpop.eup %11467  ;;  %v8376_v32 = vpop.f32.mrf.mxu3  ;;  %8681 = vmatpush.bf16.msra.mxu3 %v10587_v59 }
0x1391   : > { %v8233_v5 = vmul.f32 %v11468_v35, %v15397_v39  ;;  %v8593_v1 = vadd.f32 %v8376_v32, %v15173_v34 }
0x1393   : > { %v8281_v25 = vpack.c.bf16 %v8233_v5, %v8233_v5 }
0x1394   : > { %8682 = vmatpush.bf16.msra.mxu3 %v10583_v47 }
0x1395   : > { %10564 = vmatmul.msk.bf16.vlgmr.msrb.gmra.mxu3 %vm993_vm0, %v8281_v25 }
0x1398   : > { %v8378_v15 = vpop.f32.mrf.mxu3  ;;  %8683 = vmatpush.bf16.msra.mxu3 %v10579_v38  ;;  %v15481_v38 = vld [vmem:[%s16285_s2 + $0xd] ss:$0 sm:$0xff] }
0x1399   : > { %v16832_v15 = vld [vmem:[#allocation40_spill] sm:$0xff] }
0x139c   : > { %8684 = vmatpush.bf16.msra.mxu3 %v10575_v62 }
0x13a0   : > { %8685 = vmatpush.bf16.msra.mxu3 %v10571_v41 }
0x13a5   : > { %8686 = vmatmul.bf16.vlgmr.msra.gmra.mxu3 %v8621_v58 }
0x13c4   : > { %v8192_v39 = vpop.xlane.xlu2 %8191 }
0x13c5   : > { %11469 = vrcp.f32 %v8192_v39 }
0x13cb   : > { %v11470_v34 = vpop.eup %11469  ;;  %v8357_v12 = vpop.f32.mrf.mxu2 }
0x13cc   : > { %v8232_v19 = vmul.f32 %v11470_v34, %v15409_v0  ;;  %v8592_v55 = vadd.f32 %v8357_v12, %v15182_v56 }
0x13ce   : > { %v8280_v37 = vpack.c.bf16 %v8232_v19, %v8232_v19 }
0x13cf   : > { %v8189_v27 = vpop.xlane.xlu0 %8188 }
0x13d0   : > { %10563 = vmatmul.msk.bf16.vlgmr.msra.gmra.mxu2 %vm993_vm0, %v8280_v37  ;;  %11471 = vrcp.f32 %v8189_v27  ;;  %v8338_v7 = vpop.f32.mrf.mxu1  ;;  %v16834_v27 = vld [vmem:[#allocation44_spill] sm:$0xff] }
0x13d1   : > { %v8591_v9 = vadd.f32 %v8338_v7, %v15188_v50 }
0x13d3   : > { %v8622_v45 = vpack.c.bf16 %v8592_v55, %v8591_v9  ;;  %v8359_v4 = vpop.f32.mrf.mxu2 }
0x13d4   : > { %v8198_v18 = vpop.xlane.xlu2 %8197 }
0x13d5   : > { %11473 = vrcp.f32 %v8198_v18  ;;  %v8395_v6 = vpop.f32.mrf.mxu0  ;;  %8691 = vmatmul.bf16.gmra.mxu3 %v8622_v45 }
0x13d6   : > { %v11472_v48 = vpop.eup %11471  ;;  %v8594_v58 = vadd.f32 %v8395_v6, %v15186_v54 }
0x13d7   : > { %v8231_v0 = vmul.f32 %v11472_v48, %v15423_v2 }
0x13d8   : > { %v8623_v63 = vpack.c.bf16 %v8594_v58, %v8593_v1  ;;  %v8340_v46 = vpop.f32.mrf.mxu1  ;;  %v16835_v58 = vld [vmem:[#allocation52_spill] sm:$0xff] }
0x13d9   : > { %v8279_v43 = vpack.c.bf16 %v8231_v0, %v8231_v0 }
0x13db   : > { %v11474_v61 = vpop.eup %11473  ;;  %10562 = vmatmul.msk.bf16.vlgmr.msrb.gmra.mxu1 %vm993_vm0, %v8279_v43  ;;  %v16836_v43 = vld [vmem:[#allocation34_spill] sm:$0xff] }
0x13dc   : > { %v8234_v56 = vmul.f32 %v11474_v61, %v15431_v31 }
0x13dd   : > { %v8397_v50 = vpop.f32.mrf.mxu0 }
0x13de   : > { %v8282_v42 = vpack.c.bf16 %v8234_v56, %v8234_v56 }
0x13df   : > { %v8204_v29 = vpop.xlane.xlu0 %8203 }
0x13e0   : > { %10565 = vmatmul.msk.bf16.vlgmr.msrb.gmra.mxu0 %vm993_vm0, %v8282_v42  ;;  %v8201_v49 = vpop.xlane.xlu1 %8200  ;;  %11475 = vrcp.f32 %v8204_v29  ;;  %v8414_v36 = vpop.f32.mrf.mxu1 }
0x13e1   : > { %11477 = vrcp.f32 %v8201_v49  ;;  %v8595_v31 = vadd.f32 %v8414_v36, %v15211_v57 }
0x13e5   : > { %8696 = vmatmul.bf16.gmra.mxu3 %v8623_v63 }
0x13e6   : > { %v11476_v54 = vpop.eup %11475 }
0x13e7   : > { %v11478_v2 = vpop.eup %11477  ;;  %v8236_v28 = vmul.f32 %v11476_v54, %v15443_v23  ;;  %v16837_v54 = vld [vmem:[#allocation43_spill] sm:$0xff] }
0x13e8   : > { %v8235_v24 = vmul.f32 %v11478_v2, %v15445_v3  ;;  %v8433_v44 = vpop.f32.mrf.mxu2  ;;  %v8416_v8 = vpop.f32.mrf.mxu1 }
0x13e9   : > { %v8284_v59 = vpack.c.bf16 %v8236_v28, %v8236_v28  ;;  %v8596_v60 = vadd.f32 %v8433_v44, %v15201_v52  ;;  %v16838_v8 = vld [vmem:[#allocation42_spill] sm:$0xff] }
0x13ea   : > { %v8283_v17 = vpack.c.bf16 %v8235_v24, %v8235_v24 }
0x13eb   : > { %v8624_v35 = vpack.c.bf16 %v8596_v60, %v8595_v31  ;;  %10567 = vmatmul.msk.bf16.vlgmr.msrb.gmra.mxu2 %vm993_vm0, %v8284_v59  ;;  %v16839_v31 = vld [vmem:[#allocation67_spill] sm:$0xff] }
0x13ec   : > { %10566 = vmatmul.msk.bf16.vlgmr.msra.gmra.mxu1 %vm993_vm0, %v8283_v17 }
0x13f0   : > { %v8435_v32 = vpop.f32.mrf.mxu2 }
0x13f1   : > { %v16840_v32 = vld [vmem:[#allocation32_spill] sm:$0xff] }
0x13f5   : > { %8701 = vmatmul.bf16.gmra.mxu3 %v8624_v35 }
0x1402   : > { %v8471_v47 = vpop.f32.mrf.mxu0 }
0x1403   : > { %v8598_v23 = vadd.f32 %v8471_v47, %v15207_v51 }
0x1406   : > { %v8452_v5 = vpop.f32.mrf.mxu3 }
0x1407   : > { %v8597_v3 = vadd.f32 %v8452_v5, %v15205_v16 }
0x1409   : > { %v8625_v1 = vpack.c.bf16 %v8598_v23, %v8597_v3 }
0x140a   : > { %v8473_v21 = vpop.f32.mrf.mxu0 }
0x140b   : > { %8706 = vmatmul.bf16.gmra.mxu3 %v8625_v1  ;;  %v16841_v1 = vld [vmem:[#allocation8_spill] sm:$0xff] }
0x140e   : > { %v8454_v57 = vpop.f32.mrf.mxu3 }
0x1418   : > { %v8528_v40 = vpop.f32.mrf.mxu3 }
0x1419   : > { %v8601_v52 = vadd.f32 %v8528_v40, %v15227_v14 }
0x1420   : > { %v8530_v25 = vpop.f32.mrf.mxu3 }
0x1428   : > { %v8687_v53 = vpop.f32.mrf.mxu3 }
0x1429   : > { %v8688_v26 = vadd.f32 %v15481_v38, %v8687_v53 }
0x142b   : > { %v8727_v51 = vadd.f32 %v8688_v26, %v16832_v15 }
0x142d   : > { %8743 = vadd.xlane.f32.xlu2 %v8727_v51 }
0x1430   : > { %v8689_v16 = vpop.f32.mrf.mxu3 }
0x1431   : > { %v8690_v62 = vadd.f32 %v15481_v38, %v8689_v16  ;;  %v16842_v16 = vld [vmem:[#allocation68_spill] sm:$0xff] }
0x1433   : > { %v15487_v22 = vadd.f32 %v8690_v62, %v16833_v10 }
0x1435   : > { %8745 = vadd.xlane.f32.xlu0 %v15487_v22 }
0x1453   : > { %v8509_v14 = vpop.f32.mrf.mxu2 }
0x1454   : > { %v8600_v34 = vadd.f32 %v8509_v14, %v15223_v11 }
0x1458   : > { %v8490_v41 = vpop.f32.mrf.mxu1  ;;  %v8692_v39 = vpop.f32.mrf.mxu3 }
0x1459   : > { %v8599_v12 = vadd.f32 %v8490_v41, %v15239_v33  ;;  %v8693_v19 = vadd.f32 %v15481_v38, %v8692_v39 }
0x145b   : > { %v8626_v37 = vpack.c.bf16 %v8600_v34, %v8599_v12  ;;  %v8729_v7 = vadd.f32 %v8693_v19, %v16834_v27  ;;  %v8511_v55 = vpop.f32.mrf.mxu2 }
0x145d   : > { %v8547_v9 = vpop.f32.mrf.mxu0  ;;  %8711 = vmatmul.bf16.gmra.mxu3 %v8626_v37  ;;  %8747 = vadd.xlane.f32.xlu1 %v8729_v7 }
0x145e   : > { %v8602_v45 = vadd.f32 %v8547_v9, %v15233_v13 }
0x1460   : > { %v8627_v4 = vpack.c.bf16 %v8602_v45, %v8601_v52  ;;  %v8492_v18 = vpop.f32.mrf.mxu1  ;;  %v8694_v6 = vpop.f32.mrf.mxu3 }
0x1461   : > { %v8695_v48 = vadd.f32 %v15481_v38, %v8694_v6 }
0x1463   : > { %v8730_v11 = vadd.f32 %v8695_v48, %v16835_v58 }
0x1465   : > { %v8549_v0 = vpop.f32.mrf.mxu0  ;;  %8749 = vadd.xlane.f32.xlu2 %v8730_v11 }
0x1468   : > { %v8697_v33 = vpop.f32.mrf.mxu3 }
0x1469   : > { %v8566_v63 = vpop.f32.mrf.mxu1  ;;  %v8698_v46 = vadd.f32 %v15481_v38, %v8697_v33 }
0x146a   : > { %v8603_v13 = vadd.f32 %v8566_v63, %v15272_v20 }
0x146b   : > { %v8731_v61 = vadd.f32 %v8698_v46, %v16836_v43  ;;  %v16844_v46 = vld [vmem:[#allocation71_spill] sm:$0xff] }
0x146d   : > { %8716 = vmatmul.bf16.gmra.mxu3 %v8627_v4  ;;  %8751 = vadd.xlane.f32.xlu0 %v8731_v61  ;;  %v16843_v4 = vld [vmem:[#allocation62_spill] sm:$0xff] }
0x146e   : > { %v8585_v56 = vpop.f32.mrf.mxu2 }
0x146f   : > { %v8604_v50 = vadd.f32 %v8585_v56, %v15268_v30 }
0x1470   : > { %v8699_v42 = vpop.f32.mrf.mxu3 }
0x1471   : > { %v8628_v29 = vpack.c.bf16 %v8604_v50, %v8603_v13  ;;  %v8568_v49 = vpop.f32.mrf.mxu1  ;;  %v8700_v36 = vadd.f32 %v15481_v38, %v8699_v42 }
0x1473   : > { %v8732_v2 = vadd.f32 %v8700_v36, %v16837_v54  ;;  %v16845_v36 = vld [vmem:[#allocation56_spill] sm:$0xff] }
0x1475   : > { %8753 = vadd.xlane.f32.xlu1 %v8732_v2 }
0x1476   : > { %v8587_v28 = vpop.f32.mrf.mxu2 }
0x1478   : > { %v8702_v24 = vpop.f32.mrf.mxu3 }
0x1479   : > { %v8703_v44 = vadd.f32 %v15481_v38, %v8702_v24 }
0x147b   : > { %v15505_v59 = vadd.f32 %v8703_v44, %v16838_v8 }
0x147d   : > { %8721 = vmatmul.bf16.gmra.mxu3 %v8628_v29  ;;  %8755 = vadd.xlane.f32.xlu2 %v15505_v59 }
0x1480   : > { %v8704_v20 = vpop.f32.mrf.mxu3 }
0x1481   : > { %v8705_v30 = vadd.f32 %v15481_v38, %v8704_v20 }
0x1483   : > { %v15510_v60 = vadd.f32 %v8705_v30, %v16839_v31  ;;  %v16846_v31 = vld [vmem:[#allocation69_spill] sm:$0xff] }
0x1485   : > { %8757 = vadd.xlane.f32.xlu0 %v15510_v60 }
0x148e   : > { %v8707_v17 = vpop.f32.mrf.mxu3 }
0x148f   : > { %v8708_v35 = vadd.f32 %v15481_v38, %v8707_v17 }
0x1491   : > { %v15515_v47 = vadd.f32 %v8708_v35, %v16840_v32 }
0x1493   : > { %8759 = vadd.xlane.f32.xlu0 %v15515_v47 }
0x1496   : > { %v8709_v40 = vpop.f32.mrf.mxu3 }
0x1497   : > { %v8710_v53 = vadd.f32 %v15481_v38, %v8709_v40 }
0x1499   : > { %v15529_v62 = vadd.f32 %v8710_v53, %v16842_v16  ;;  %v16848_v16 = vld [vmem:[#allocation41_spill] sm:$0xff] }
0x14a0   : > { %v8744_v5 = vpop.xlane.xlu2 %8743 }
0x14a1   : > { %v8775_v23 = vmul.f32 0.03125, %v8744_v5 }
0x14a3   : > { %v8791_v3 = vsub.f32 %v8727_v51, %v8775_v23 }
0x14a5   : > { %v15519_v21 = vmul.f32 %v16841_v1, %v8791_v3  ;;  %v16847_v3 = vld [vmem:[#allocation53_spill] sm:$0xff] }
0x14a7   : > { %v8823_v57 = vmul.f32 %v15519_v21, %v15519_v21 }
0x14a8   : > { %v8746_v52 = vpop.xlane.xlu0 %8745 }
0x14a9   : > { %v8776_v25 = vmul.f32 0.03125, %v8746_v52  ;;  %8839 = vadd.xlane.f32.xlu1 %v8823_v57 }
0x14ab   : > { %v8792_v26 = vsub.f32 %v15487_v22, %v8776_v25 }
0x14ad   : > { %v15526_v15 = vmul.f32 %v16841_v1, %v8792_v26 }
0x14af   : > { %v8824_v51 = vmul.f32 %v15526_v15, %v15526_v15 }
0x14b1   : > { %8841 = vadd.xlane.f32.xlu2 %v8824_v51  ;;  %8761 = vadd.xlane.f32.xlu1 %v15529_v62 }
0x14d0   : > { %v8748_v10 = vpop.xlane.xlu1 %8747 }
0x14d1   : > { %v8777_v14 = vmul.f32 0.03125, %v8748_v10 }
0x14d3   : > { %v8793_v41 = vsub.f32 %v8729_v7, %v8777_v14  ;;  %v10630_v14 = vld [vmem:[#allocation2 + $0x300] sm:$0xf] }
0x14d5   : > { %v15535_v39 = vmul.f32 %v16841_v1, %v8793_v41  ;;  %v10788_v41 = vld [vmem:[#allocation2 + $0x330] sm:$0xf0] }
0x14d7   : > { %v8825_v22 = vmul.f32 %v15535_v39, %v15535_v39 }
0x14d8   : > { %v8750_v34 = vpop.xlane.xlu2 %8749 }
0x14d9   : > { %v8778_v12 = vmul.f32 0.03125, %v8750_v34  ;;  %8843 = vadd.xlane.f32.xlu2 %v8825_v22  ;;  %v10631_v22 = vor.u32 %v10788_v41, %v10630_v14 }
0x14db   : > { %v8794_v19 = vsub.f32 %v8730_v11, %v8778_v12  ;;  %9186 = vmatpush.bf16.msra.mxu0 %v10631_v22 }
0x14dd   : > { %v15540_v37 = vmul.f32 %v16841_v1, %v8794_v19  ;;  %v10787_v19 = vld [vmem:[#allocation2 + $0x2c8] sm:$0xf0] }
0x14df   : > { %v8826_v27 = vmul.f32 %v15540_v37, %v15540_v37 }
0x14e0   : > { %v8712_v55 = vpop.f32.mrf.mxu3  ;;  %v8752_v9 = vpop.xlane.xlu0 %8751 }
0x14e1   : > { %v8713_v7 = vadd.f32 %v15481_v38, %v8712_v55  ;;  %v8779_v45 = vmul.f32 0.03125, %v8752_v9  ;;  %8845 = vadd.xlane.f32.xlu0 %v8826_v27  ;;  %v10622_v55 = vld [vmem:[#allocation2 + $0x230] sm:$0xf]  ;;  %v10786_v9 = vld [vmem:[#allocation2 + $0x260] sm:$0xf0] }
0x14e3   : > { %v15546_v18 = vadd.f32 %v8713_v7, %v16843_v4  ;;  %v8795_v6 = vsub.f32 %v8731_v61, %v8779_v45  ;;  %v10623_v7 = vor.u32 %v10786_v9, %v10622_v55  ;;  %v10618_v45 = vld [vmem:[#allocation2 + $0x1c8] sm:$0xf]  ;;  %v10785_v4 = vld [vmem:[#allocation2 + $0x1f8] sm:$0xf0] }
0x14e5   : > { %v15549_v48 = vmul.f32 %v16841_v1, %v8795_v6  ;;  %8763 = vadd.xlane.f32.xlu1 %v15546_v18 }
0x14e7   : > { %v8827_v58 = vmul.f32 %v15549_v48, %v15549_v48 }
0x14e8   : > { %v8714_v11 = vpop.f32.mrf.mxu3  ;;  %v8754_v0 = vpop.xlane.xlu1 %8753 }
0x14e9   : > { %v8715_v33 = vadd.f32 %v15481_v38, %v8714_v11  ;;  %v8780_v63 = vmul.f32 0.03125, %v8754_v0  ;;  %8847 = vadd.xlane.f32.xlu0 %v8827_v58 }
0x14eb   : > { %v15556_v43 = vadd.f32 %v8715_v33, %v16844_v46  ;;  %v8796_v56 = vsub.f32 %v8732_v2, %v8780_v63  ;;  %v10619_v33 = vor.u32 %v10785_v4, %v10618_v45 }
0x14ed   : > { %v15559_v61 = vmul.f32 %v16841_v1, %v8796_v56  ;;  %8765 = vadd.xlane.f32.xlu2 %v15556_v43 }
0x14ef   : > { %v8828_v13 = vmul.f32 %v15559_v61, %v15559_v61 }
0x14f0   : > { %v8717_v50 = vpop.f32.mrf.mxu3  ;;  %v8756_v42 = vpop.xlane.xlu2 %8755 }
0x14f1   : > { %v8718_v29 = vadd.f32 %v15481_v38, %v8717_v50  ;;  %v8781_v49 = vmul.f32 0.03125, %v8756_v42  ;;  %8849 = vadd.xlane.f32.xlu1 %v8828_v13  ;;  %v10614_v13 = vld [vmem:[#allocation2 + $0x160] sm:$0xf]  ;;  %v10784_v50 = vld [vmem:[#allocation2 + $0x190] sm:$0xf0] }
0x14f3   : > { %v15566_v54 = vadd.f32 %v8718_v29, %v16845_v36  ;;  %v8797_v28 = vsub.f32 %v15505_v59, %v8781_v49  ;;  %v10615_v36 = vor.u32 %v10784_v50, %v10614_v13 }
0x14f5   : > { %v15570_v2 = vmul.f32 %v16841_v1, %v8797_v28  ;;  %8767 = vadd.xlane.f32.xlu2 %v15566_v54 }
0x14f7   : > { %v8829_v24 = vmul.f32 %v15570_v2, %v15570_v2 }
0x14f8   : > { %v8719_v44 = vpop.f32.mrf.mxu3  ;;  %v8758_v8 = vpop.xlane.xlu0 %8757 }
0x14f9   : > { %v8720_v20 = vadd.f32 %v15481_v38, %v8719_v44  ;;  %v8782_v30 = vmul.f32 0.03125, %v8758_v8  ;;  %8851 = vadd.xlane.f32.xlu1 %v8829_v24  ;;  %v10610_v24 = vld [vmem:[#allocation2 + $0xf8] sm:$0xf]  ;;  %v10783_v44 = vld [vmem:[#allocation2 + $0x128] sm:$0xf0] }
0x14fb   : > { %v15577_v17 = vadd.f32 %v8720_v20, %v16846_v31  ;;  %v8798_v35 = vsub.f32 %v15510_v60, %v8782_v30  ;;  %v10606_v31 = vld [vmem:[#allocation2 + $0x90] sm:$0xf] }
0x14fd   : > { %v15581_v59 = vmul.f32 %v16841_v1, %v8798_v35  ;;  %8769 = vadd.xlane.f32.xlu0 %v15577_v17  ;;  %v10782_v35 = vld [vmem:[#allocation2 + $0xc0] sm:$0xf0] }
0x14ff   : > { %v8830_v32 = vmul.f32 %v15581_v59, %v15581_v59 }
0x1500   : > { %v8722_v5 = vpop.f32.mrf.mxu3 }
0x1501   : > { %v8723_v23 = vadd.f32 %v15481_v38, %v8722_v5  ;;  %8853 = vadd.xlane.f32.xlu2 %v8830_v32 }
0x1503   : > { %v15588_v57 = vadd.f32 %v8723_v23, %v16847_v3  ;;  %v10607_v3 = vor.u32 %v10782_v35, %v10606_v31 }
0x1505   : > { %8771 = vadd.xlane.f32.xlu0 %v15588_v57 }
0x1506   : > { %v8760_v40 = vpop.xlane.xlu0 %8759 }
0x1507   : > { %v8783_v52 = vmul.f32 0.03125, %v8760_v40  ;;  %v10602_v40 = vld [vmem:[#allocation2 + $0x28] sm:$0xf] }
0x1508   : > { %v8724_v60 = vpop.f32.mrf.mxu3 }
0x1509   : > { %v8799_v25 = vsub.f32 %v15515_v47, %v8783_v52  ;;  %v8725_v53 = vadd.f32 %v15481_v38, %v8724_v60  ;;  %v10626_v38 = vld [vmem:[#allocation2 + $0x298] sm:$0xf]  ;;  %v10781_v52 = vld [vmem:[#allocation2 + $0x58] sm:$0xf0] }
0x150a   : > { %v10627_v27 = vor.u32 %v10787_v19, %v10626_v38 }
0x150b   : > { %v15594_v26 = vmul.f32 %v16841_v1, %v8799_v25  ;;  %v15597_v51 = vadd.f32 %v8725_v53, %v16848_v16  ;;  %v10603_v16 = vor.u32 %v10781_v52, %v10602_v40 }
0x150c   : > { %9187 = vmatpush.bf16.msra.mxu0 %v10627_v27 }
0x150d   : > { %v8831_v10 = vmul.f32 %v15594_v26, %v15594_v26  ;;  %8773 = vadd.xlane.f32.xlu1 %v15597_v51 }
0x150f   : > { %8855 = vadd.xlane.f32.xlu2 %v8831_v10  ;;  %v15611_v10 = vld [vmem:[%s16285_s2 + $0xe] ss:$0 sm:$0xff] }
0x1510   : > { %9188 = vmatpush.bf16.msra.mxu0 %v10623_v7 }
0x1514   : > { %9189 = vmatpush.bf16.msra.mxu0 %v10619_v33 }
0x1518   : > { %9190 = vmatpush.bf16.msra.mxu0 %v10615_v36 }
0x151c   : > { %v8840_v34 = vpop.xlane.xlu1 %8839 }
0x151d   : > { %v8871_v47 = vmul.f32 0.03125, %v8840_v34  ;;  %v15617_v34 = vld [vmem:[%s16285_s2 + $0xf] ss:$0 sm:$0xff] }
0x151f   : > { %v8887_v12 = vadd.f32 1e-05, %v8871_v47 }
0x1521   : > { %11479 = vrsqrt.f32 %v8887_v12  ;;  %vm8909_vm0 = vweird.f32 %v8887_v12 }
0x1524   : > { %v8842_v6 = vpop.xlane.xlu2 %8841  ;;  %v8762_v58 = vpop.xlane.xlu1 %8761 }
0x1525   : > { %v8872_v11 = vmul.f32 0.03125, %v8842_v6  ;;  %v8784_v0 = vmul.f32 0.03125, %v8762_v58 }
0x1527   : > { %v11480_v63 = vpop.eup %11479  ;;  %v8888_v46 = vadd.f32 1e-05, %v8872_v11  ;;  %v8800_v56 = vsub.f32 %v15529_v62, %v8784_v0  ;;  %v10611_v62 = vor.u32 %v10783_v44, %v10610_v24 }
0x1528   : > { %v8904_v42 = vmul.f32 %v11480_v63, %v8887_v12  ;;  %vm8910_vm15 = vweird.f32 %v11480_v63 }
0x1529   : > { %11481 = vrsqrt.f32 %v8888_v46  ;;  %v15604_v29 = vmul.f32 %v16841_v1, %v8800_v56  ;;  %9191 = vmatpush.bf16.msra.mxu0 %v10611_v62  ;;  %vm8911_vm13 = vmor %vm8909_vm0, %vm8910_vm15  ;;  %vm8919_vm1 = vweird.f32 %v8888_v46 }
0x152a   : > { %v8905_v49 = vmul.f32 %v11480_v63, %v8904_v42 }
0x152b   : > { %v8832_v28 = vmul.f32 %v15604_v29, %v15604_v29 }
0x152c   : > { %v8906_v8 = vmul.f32 0.5, %v8905_v49 }
0x152d   : > { %8857 = vadd.xlane.f32.xlu0 %v8832_v28  ;;  %9192 = vmatpush.bf16.msra.mxu0 %v10607_v3 }
0x152e   : > { %v8907_v20 = vsub.f32 1.5, %v8906_v8 }
0x152f   : > { %v11482_v30 = vpop.eup %11481 }
0x1530   : > { %v8908_v32 = vmul.f32 %v11480_v63, %v8907_v20  ;;  %v8914_v5 = vmul.f32 %v11482_v30, %v8888_v46  ;;  %vm8920_vm14 = vweird.f32 %v11482_v30 }
0x1531   : > { %vm8921_vm2 = vmor %vm8919_vm1, %vm8920_vm14  ;;  %9193 = vmatpush.bf16.msra.mxu0 %v10603_v16 }
0x1532   : > { %v8915_v23 = vmul.f32 %v11482_v30, %v8914_v5  ;;  %v8912_v60 = vsel %vm8911_vm13, %v11480_v63, %v8908_v32 }
0x1533   : > { %v9063_v14 = vmul.f32 %v8912_v60, %v15519_v21 }
0x1534   : > { %v8916_v25 = vmul.f32 0.5, %v8915_v23 }
0x1535   : > { %v9080_v47 = vmul.f32 %v15611_v10, %v9063_v14 }
0x1536   : > { %v8917_v53 = vsub.f32 1.5, %v8916_v25 }
0x1537   : > { %v15623_v19 = vadd.f32 %v15617_v34, %v9080_v47 }
0x1538   : > { %v8918_v41 = vmul.f32 %v11482_v30, %v8917_v53 }
0x153a   : > { %v8922_v22 = vsel %vm8921_vm2, %v11482_v30, %v8918_v41 }
0x153b   : > { %v9064_v12 = vmul.f32 %v8922_v22, %v15526_v15 }
0x153d   : > { %v9081_v38 = vmul.f32 %v15611_v10, %v9064_v12 }
0x153f   : > { %v15626_v21 = vadd.f32 %v15617_v34, %v9081_v38 }
0x1541   : > { %v9129_v27 = vpack.c.bf16 %v15626_v21, %v15623_v19 }
0x1543   : > { %9194 = vmatmul.bf16.vlgmr.msra.gmra.mxu0 %v9129_v27 }
0x154c   : > { %v8844_v55 = vpop.xlane.xlu2 %8843 }
0x154d   : > { %v8873_v9 = vmul.f32 0.03125, %v8844_v55 }
0x154f   : > { %v8889_v7 = vadd.f32 1e-05, %v8873_v9 }
0x1551   : > { %11483 = vrsqrt.f32 %v8889_v7  ;;  %vm8929_vm4 = vweird.f32 %v8889_v7 }
0x1554   : > { %v8846_v45 = vpop.xlane.xlu0 %8845 }
0x1555   : > { %v8874_v4 = vmul.f32 0.03125, %v8846_v45 }
0x1557   : > { %v11484_v6 = vpop.eup %11483  ;;  %v8890_v15 = vadd.f32 1e-05, %v8874_v4 }
0x1558   : > { %v8924_v58 = vmul.f32 %v11484_v6, %v8889_v7  ;;  %v8764_v11 = vpop.xlane.xlu1 %8763  ;;  %vm8930_vm3 = vweird.f32 %v11484_v6 }
0x1559   : > { %11485 = vrsqrt.f32 %v8890_v15  ;;  %v8785_v0 = vmul.f32 0.03125, %v8764_v11  ;;  %vm8931_vm5 = vmor %vm8929_vm4, %vm8930_vm3  ;;  %vm8939_vm7 = vweird.f32 %v8890_v15 }
0x155a   : > { %v8925_v33 = vmul.f32 %v11484_v6, %v8924_v58 }
0x155b   : > { %v8801_v63 = vsub.f32 %v15546_v18, %v8785_v0 }
0x155c   : > { %v8926_v46 = vmul.f32 0.5, %v8925_v33  ;;  %v8848_v56 = vpop.xlane.xlu0 %8847 }
0x155d   : > { %v15632_v13 = vmul.f32 %v16841_v1, %v8801_v63  ;;  %v8875_v50 = vmul.f32 0.03125, %v8848_v56 }
0x155e   : > { %v8927_v42 = vsub.f32 1.5, %v8926_v46 }
0x155f   : > { %v11486_v49 = vpop.eup %11485  ;;  %v8891_v36 = vadd.f32 1e-05, %v8875_v50  ;;  %v8833_v28 = vmul.f32 %v15632_v13, %v15632_v13 }
0x1560   : > { %v8928_v24 = vmul.f32 %v11484_v6, %v8927_v42  ;;  %v8934_v44 = vmul.f32 %v11486_v49, %v8890_v15  ;;  %v8766_v8 = vpop.xlane.xlu2 %8765  ;;  %vm8940_vm6 = vweird.f32 %v11486_v49 }
0x1561   : > { %11487 = vrsqrt.f32 %v8891_v36  ;;  %v8786_v20 = vmul.f32 0.03125, %v8766_v8  ;;  %8859 = vadd.xlane.f32.xlu1 %v8833_v28  ;;  %vm8941_vm8 = vmor %vm8939_vm7, %vm8940_vm6  ;;  %vm8949_vm10 = vweird.f32 %v8891_v36 }
0x1562   : > { %v8935_v18 = vmul.f32 %v11486_v49, %v8934_v44  ;;  %v8932_v30 = vsel %vm8931_vm5, %v11484_v6, %v8928_v24 }
0x1563   : > { %v8802_v62 = vsub.f32 %v15556_v43, %v8786_v20  ;;  %v9065_v40 = vmul.f32 %v8932_v30, %v15535_v39 }
0x1564   : > { %v8936_v31 = vmul.f32 0.5, %v8935_v18  ;;  %v8850_v35 = vpop.xlane.xlu1 %8849 }
0x1565   : > { %v15638_v32 = vmul.f32 %v16841_v1, %v8802_v62  ;;  %v8876_v5 = vmul.f32 0.03125, %v8850_v35  ;;  %v9082_v39 = vmul.f32 %v15611_v10, %v9065_v40 }
0x1566   : > { %v8937_v23 = vsub.f32 1.5, %v8936_v31 }
0x1567   : > { %v11488_v3 = vpop.eup %11487  ;;  %v8892_v52 = vadd.f32 1e-05, %v8876_v5  ;;  %v8834_v60 = vmul.f32 %v15638_v32, %v15638_v32 }
0x1568   : > { %v8938_v25 = vmul.f32 %v11486_v49, %v8937_v23  ;;  %v8944_v53 = vmul.f32 %v11488_v3, %v8891_v36  ;;  %v8768_v43 = vpop.xlane.xlu2 %8767  ;;  %vm8950_vm9 = vweird.f32 %v11488_v3 }
0x1569   : > { %11489 = vrsqrt.f32 %v8892_v52  ;;  %v8787_v16 = vmul.f32 0.03125, %v8768_v43  ;;  %8861 = vadd.xlane.f32.xlu2 %v8834_v60  ;;  %vm8951_vm11 = vmor %vm8949_vm10, %vm8950_vm9  ;;  %vm8959_vm15 = vweird.f32 %v8892_v52 }
0x156a   : > { %v8942_v14 = vsel %vm8941_vm8, %v11486_v49, %v8938_v25  ;;  %v8945_v41 = vmul.f32 %v11488_v3, %v8944_v53 }
0x156b   : > { %v9066_v22 = vmul.f32 %v8942_v14, %v15540_v37  ;;  %v8803_v47 = vsub.f32 %v15566_v54, %v8787_v16  ;;  %v15653_v37 = vadd.f32 %v15617_v34, %v9082_v39 }
0x156c   : > { %v8946_v12 = vmul.f32 0.5, %v8945_v41  ;;  %v8852_v38 = vpop.xlane.xlu1 %8851 }
0x156d   : > { %v15647_v27 = vmul.f32 %v16841_v1, %v8803_v47  ;;  %v8877_v55 = vmul.f32 0.03125, %v8852_v38  ;;  %v9083_v9 = vmul.f32 %v15611_v10, %v9066_v22 }
0x156e   : > { %v8947_v7 = vsub.f32 1.5, %v8946_v12 }
0x156f   : > { %v11490_v45 = vpop.eup %11489  ;;  %v8893_v4 = vadd.f32 1e-05, %v8877_v55  ;;  %v8835_v6 = vmul.f32 %v15647_v27, %v15647_v27  ;;  %v15656_v54 = vadd.f32 %v15617_v34, %v9083_v9 }
0x1570   : > { %v8948_v15 = vmul.f32 %v11488_v3, %v8947_v7  ;;  %v8954_v58 = vmul.f32 %v11490_v45, %v8892_v52  ;;  %v8770_v11 = vpop.xlane.xlu0 %8769  ;;  %vm8960_vm12 = vweird.f32 %v11490_v45 }
0x1571   : > { %11491 = vrsqrt.f32 %v8893_v4  ;;  %v8788_v0 = vmul.f32 0.03125, %v8770_v11  ;;  %8863 = vadd.xlane.f32.xlu0 %v8835_v6  ;;  %v9130_v33 = vpack.c.bf16 %v15656_v54, %v15653_v37  ;;  %vm8961_vm0 = vmor %vm8959_vm15, %vm8960_vm12  ;;  %vm8969_vm14 = vweird.f32 %v8893_v4 }
0x1572   : > { %v8955_v63 = vmul.f32 %v11490_v45, %v8954_v58  ;;  %v8952_v56 = vsel %vm8951_vm11, %v11488_v3, %v8948_v15 }
0x1573   : > { %v8804_v46 = vsub.f32 %v15577_v17, %v8788_v0  ;;  %9199 = vmatmul.bf16.gmra.mxu0 %v9130_v33  ;;  %v9067_v8 = vmul.f32 %v8952_v56, %v15549_v48  ;;  %v10662_v56 = vld [vmem:[#allocation2 + $0x304] sm:$0xf] }
0x1574   : > { %v8956_v50 = vmul.f32 0.5, %v8955_v63  ;;  %v8854_v42 = vpop.xlane.xlu2 %8853 }
0x1575   : > { %v15662_v49 = vmul.f32 %v16841_v1, %v8804_v46  ;;  %v8878_v28 = vmul.f32 0.03125, %v8854_v42  ;;  %v9084_v48 = vmul.f32 %v15611_v10, %v9067_v8  ;;  %v10654_v8 = vld [vmem:[#allocation2 + $0x234] sm:$0xf] }
0x1576   : > { %v8957_v24 = vsub.f32 1.5, %v8956_v50  ;;  %v10796_v50 = vld [vmem:[#allocation2 + $0x334] sm:$0xf0] }
0x1577   : > { %v11492_v44 = vpop.eup %11491  ;;  %v8894_v20 = vadd.f32 1e-05, %v8878_v28  ;;  %v8836_v36 = vmul.f32 %v15662_v49, %v15662_v49  ;;  %v15677_v43 = vadd.f32 %v15617_v34, %v9084_v48  ;;  %v10663_v42 = vor.u32 %v10796_v50, %v10662_v56  ;;  %v10795_v28 = vld [vmem:[#allocation2 + $0x2cc] sm:$0xf0]  ;;  %v10646_v48 = vld [vmem:[#allocation2 + $0x164] sm:$0xf] }
0x1578   : > { %v8958_v18 = vmul.f32 %v11490_v45, %v8957_v24  ;;  %v8964_v17 = vmul.f32 %v11492_v44, %v8893_v4  ;;  %v8772_v62 = vpop.xlane.xlu0 %8771  ;;  %vm8970_vm13 = vweird.f32 %v11492_v44 }
0x1579   : > { %11493 = vrsqrt.f32 %v8894_v20  ;;  %v8789_v30 = vmul.f32 0.03125, %v8772_v62  ;;  %8865 = vadd.xlane.f32.xlu1 %v8836_v36  ;;  %vm8971_vm1 = vmor %vm8969_vm14, %vm8970_vm13  ;;  %vm8979_vm3 = vweird.f32 %v8894_v20  ;;  %9324 = vmatpush.bf16.msrb.mxu1 %v10663_v42  ;;  %v10793_v62 = vld [vmem:[#allocation2 + $0x1fc] sm:$0xf0]  ;;  %v15717_v42 = vld [vmem:[%s16285_s2 + $0x10] ss:$0 sm:$0xff] }
0x157a   : > { %v8962_v31 = vsel %vm8961_vm0, %v11490_v45, %v8958_v18  ;;  %v8965_v35 = vmul.f32 %v11492_v44, %v8964_v17  ;;  %v10650_v17 = vld [vmem:[#allocation2 + $0x1cc] sm:$0xf] }
0x157b   : > { %v9068_v5 = vmul.f32 %v8962_v31, %v15559_v61  ;;  %v8805_v23 = vsub.f32 %v15588_v57, %v8789_v30 }
0x157c   : > { %v8966_v3 = vmul.f32 0.5, %v8965_v35 }
0x157d   : > { %v15671_v40 = vmul.f32 %v16841_v1, %v8805_v23  ;;  %v9085_v52 = vmul.f32 %v15611_v10, %v9068_v5  ;;  %v10651_v5 = vor.u32 %v10793_v62, %v10650_v17 }
0x157e   : > { %v8967_v60 = vsub.f32 1.5, %v8966_v3  ;;  %v10792_v3 = vld [vmem:[#allocation2 + $0x194] sm:$0xf0] }
0x157f   : > { %v11494_v25 = vpop.eup %11493  ;;  %v8837_v53 = vmul.f32 %v15671_v40, %v15671_v40  ;;  %v15680_v61 = vadd.f32 %v15617_v34, %v9085_v52 }
0x1580   : > { %v8968_v57 = vmul.f32 %v11492_v44, %v8967_v60  ;;  %v8974_v16 = vmul.f32 %v11494_v25, %v8894_v20  ;;  %v8774_v14 = vpop.xlane.xlu1 %8773  ;;  %vm8980_vm2 = vweird.f32 %v11494_v25  ;;  %v10794_v20 = vld [vmem:[#allocation2 + $0x264] sm:$0xf0]  ;;  %v10647_v60 = vor.u32 %v10792_v3, %v10646_v48 }
0x1581   : > { %v8790_v41 = vmul.f32 0.03125, %v8774_v14  ;;  %8867 = vadd.xlane.f32.xlu2 %v8837_v53  ;;  %v9131_v22 = vpack.c.bf16 %v15680_v61, %v15677_v43  ;;  %vm8981_vm4 = vmor %vm8979_vm3, %vm8980_vm2  ;;  %v10655_v18 = vor.u32 %v10794_v20, %v10654_v8  ;;  %v10791_v53 = vld [vmem:[#allocation2 + $0x12c] sm:$0xf0] }
0x1582   : > { %v8975_v47 = vmul.f32 %v11494_v25, %v8974_v16  ;;  %v8972_v12 = vsel %vm8971_vm1, %v11492_v44, %v8968_v57  ;;  %v8856_v4 = vpop.xlane.xlu2 %8855 }
0x1583   : > { %v8806_v39 = vsub.f32 %v15597_v51, %v8790_v41  ;;  %9204 = vmatmul.bf16.gmra.mxu0 %v9131_v22  ;;  %v9069_v7 = vmul.f32 %v8972_v12, %v15570_v2  ;;  %v8879_v58 = vmul.f32 0.03125, %v8856_v4 }
0x1584   : > { %v8976_v38 = vmul.f32 0.5, %v8975_v47  ;;  %v10638_v47 = vld [vmem:[#allocation2 + $0x94] sm:$0xf] }
0x1585   : > { %v15686_v55 = vmul.f32 %v16841_v1, %v8806_v39  ;;  %v9086_v11 = vmul.f32 %v15611_v10, %v9069_v7  ;;  %v8895_v33 = vadd.f32 1e-05, %v8879_v58  ;;  %v10790_v39 = vld [vmem:[#allocation2 + $0xc4] sm:$0xf0]  ;;  %v10789_v7 = vld [vmem:[#allocation2 + $0x5c] sm:$0xf0] }
0x1586   : > { %v8977_v9 = vsub.f32 1.5, %v8976_v38  ;;  %v10639_v38 = vor.u32 %v10790_v39, %v10638_v47 }
0x1587   : > { %v8838_v45 = vmul.f32 %v15686_v55, %v15686_v55  ;;  %v15695_v63 = vadd.f32 %v15617_v34, %v9086_v11  ;;  %11495 = vrsqrt.f32 %v8895_v33  ;;  %vm8989_vm6 = vweird.f32 %v8895_v33 }
0x1588   : > { %v8978_v6 = vmul.f32 %v11494_v25, %v8977_v9  ;;  %v10634_v9 = vld [vmem:[#allocation2 + $0x2c] sm:$0xf] }
0x1589   : > { %8869 = vadd.xlane.f32.xlu0 %v8838_v45 }
0x158a   : > { %v8982_v15 = vsel %vm8981_vm4, %v11494_v25, %v8978_v6  ;;  %v10642_v25 = vld [vmem:[#allocation2 + $0xfc] sm:$0xf] }
0x158b   : > { %v9070_v51 = vmul.f32 %v8982_v15, %v15581_v59  ;;  %v10658_v59 = vld [vmem:[#allocation2 + $0x29c] sm:$0xf]  ;;  %v10643_v16 = vor.u32 %v10791_v53, %v10642_v25  ;;  %v10635_v15 = vor.u32 %v10789_v7, %v10634_v9 }
0x158c   : > { %v10659_v44 = vor.u32 %v10795_v28, %v10658_v59 }
0x158d   : > { %v9087_v0 = vmul.f32 %v15611_v10, %v9070_v51  ;;  %v11496_v24 = vpop.eup %11495 }
0x158e   : > { %v8984_v36 = vmul.f32 %v11496_v24, %v8895_v33  ;;  %9325 = vmatpush.bf16.msrb.mxu1 %v10659_v44  ;;  %vm8990_vm5 = vweird.f32 %v11496_v24 }
0x158f   : > { %v15698_v2 = vadd.f32 %v15617_v34, %v9087_v0  ;;  %vm8991_vm7 = vmor %vm8989_vm6, %vm8990_vm5 }
0x1590   : > { %v8985_v30 = vmul.f32 %v11496_v24, %v8984_v36 }
0x1591   : > { %v9132_v46 = vpack.c.bf16 %v15698_v2, %v15695_v63 }
0x1592   : > { %9326 = vmatpush.bf16.msrb.mxu1 %v10655_v18  ;;  %v8986_v52 = vmul.f32 0.5, %v8985_v30 }
0x1593   : > { %9209 = vmatmul.bf16.gmra.mxu0 %v9132_v46 }
0x1594   : > { %v8987_v57 = vsub.f32 1.5, %v8986_v52 }
0x1596   : > { %9327 = vmatpush.bf16.msrb.mxu1 %v10651_v5  ;;  %v8988_v41 = vmul.f32 %v11496_v24, %v8987_v57 }
0x1598   : > { %v8992_v45 = vsel %vm8991_vm7, %v11496_v24, %v8988_v41 }
0x1599   : > { %v9071_v51 = vmul.f32 %v8992_v45, %v15594_v26 }
0x159a   : > { %9328 = vmatpush.bf16.msrb.mxu1 %v10647_v60 }
0x159b   : > { %v9088_v33 = vmul.f32 %v15611_v10, %v9071_v51 }
0x159d   : > { %v15707_v56 = vadd.f32 %v15617_v34, %v9088_v33 }
0x159e   : > { %9329 = vmatpush.bf16.msrb.mxu1 %v10643_v16 }
0x15a0   : > { %v8858_v31 = vpop.xlane.xlu0 %8857 }
0x15a1   : > { %v8880_v35 = vmul.f32 0.03125, %v8858_v31 }
0x15a2   : > { %9330 = vmatpush.bf16.msrb.mxu1 %v10639_v38 }
0x15a3   : > { %v8896_v23 = vadd.f32 1e-05, %v8880_v35 }
0x15a5   : > { %11497 = vrsqrt.f32 %v8896_v23  ;;  %vm8999_vm9 = vweird.f32 %v8896_v23 }
0x15a6   : > { %9331 = vmatpush.bf16.msrb.mxu1 %v10635_v15 }
0x15ab   : > { %v11498_v14 = vpop.eup %11497 }
0x15ac   : > { %v8994_v22 = vmul.f32 %v11498_v14, %v8896_v23  ;;  %vm9000_vm8 = vweird.f32 %v11498_v14 }
0x15ad   : > { %vm9001_vm10 = vmor %vm8999_vm9, %vm9000_vm8 }
0x15ae   : > { %v8995_v12 = vmul.f32 %v11498_v14, %v8994_v22 }
0x15b0   : > { %v8996_v6 = vmul.f32 0.5, %v8995_v12 }
0x15b2   : > { %v8997_v4 = vsub.f32 1.5, %v8996_v6 }
0x15b4   : > { %v8998_v58 = vmul.f32 %v11498_v14, %v8997_v4 }
0x15b6   : > { %v9002_v11 = vsel %vm9001_vm10, %v11498_v14, %v8998_v58 }
0x15b7   : > { %v9072_v0 = vmul.f32 %v9002_v11, %v15604_v29 }
0x15b9   : > { %v9089_v46 = vmul.f32 %v15611_v10, %v9072_v0 }
0x15bb   : > { %v15710_v50 = vadd.f32 %v15617_v34, %v9089_v46 }
0x15bd   : > { %v9133_v26 = vpack.c.bf16 %v15710_v50, %v15707_v56 }
0x15bf   : > { %9214 = vmatmul.bf16.gmra.mxu0 %v9133_v26 }
0x15c0   : > { %v9195_v59 = vpop.f32.mrf.mxu0 }
0x15c1   : > { %v9196_v29 = vadd.f32 %v15717_v42, %v9195_v59 }
0x15c3   : > { %v9235_v44 = vmax.f32 %v9196_v29, 0.0 }
0x15c8   : > { %v9197_v28 = vpop.f32.mrf.mxu0 }
0x15c9   : > { %v9198_v24 = vadd.f32 %v15717_v42, %v9197_v28 }
0x15cb   : > { %v9236_v8 = vmax.f32 %v9198_v24, 0.0 }
0x15cd   : > { %v9267_v20 = vpack.c.bf16 %v9236_v8, %v9235_v44 }
0x15cf   : > { %9332 = vmatmul.bf16.vlgmr.msrb.gmra.mxu1 %v9267_v20 }
0x15d4   : > { %v8860_v36 = vpop.xlane.xlu1 %8859 }
0x15d5   : > { %v8881_v18 = vmul.f32 0.03125, %v8860_v36 }
0x15d7   : > { %v8897_v17 = vadd.f32 1e-05, %v8881_v18 }
0x15d9   : > { %11499 = vrsqrt.f32 %v8897_v17  ;;  %vm9009_vm12 = vweird.f32 %v8897_v17 }
0x15dc   : > { %v8862_v62 = vpop.xlane.xlu2 %8861 }
0x15dd   : > { %v8882_v30 = vmul.f32 0.03125, %v8862_v62 }
0x15df   : > { %v11500_v31 = vpop.eup %11499  ;;  %v8898_v35 = vadd.f32 1e-05, %v8882_v30 }
0x15e0   : > { %v9004_v5 = vmul.f32 %v11500_v31, %v8897_v17  ;;  %vm9010_vm11 = vweird.f32 %v11500_v31 }
0x15e1   : > { %11501 = vrsqrt.f32 %v8898_v35  ;;  %vm9011_vm15 = vmor %vm9009_vm12, %vm9010_vm11  ;;  %vm9019_vm13 = vweird.f32 %v8898_v35 }
0x15e2   : > { %v9005_v23 = vmul.f32 %v11500_v31, %v9004_v5 }
0x15e4   : > { %v9006_v48 = vmul.f32 0.5, %v9005_v23  ;;  %v8864_v3 = vpop.xlane.xlu0 %8863 }
0x15e5   : > { %v8883_v52 = vmul.f32 0.03125, %v8864_v3 }
0x15e6   : > { %v9007_v60 = vsub.f32 1.5, %v9006_v48 }
0x15e7   : > { %v11502_v25 = vpop.eup %11501  ;;  %v8899_v53 = vadd.f32 1e-05, %v8883_v52 }
0x15e8   : > { %v9008_v57 = vmul.f32 %v11500_v31, %v9007_v60  ;;  %v9014_v16 = vmul.f32 %v11502_v25, %v8898_v35  ;;  %vm9020_vm0 = vweird.f32 %v11502_v25 }
0x15e9   : > { %11503 = vrsqrt.f32 %v8899_v53  ;;  %vm9021_vm14 = vmor %vm9019_vm13, %vm9020_vm0  ;;  %vm9029_vm2 = vweird.f32 %v8899_v53 }
0x15ea   : > { %v9015_v14 = vmul.f32 %v11502_v25, %v9014_v16  ;;  %v9012_v41 = vsel %vm9011_vm15, %v11500_v31, %v9008_v57 }
0x15eb   : > { %v9073_v9 = vmul.f32 %v9012_v41, %v15632_v13 }
0x15ec   : > { %v9016_v22 = vmul.f32 0.5, %v9015_v14  ;;  %v8866_v47 = vpop.xlane.xlu1 %8865 }
0x15ed   : > { %v8884_v39 = vmul.f32 0.03125, %v8866_v47  ;;  %v9090_v11 = vmul.f32 %v15611_v10, %v9073_v9 }
0x15ee   : > { %v9017_v12 = vsub.f32 1.5, %v9016_v22 }
0x15ef   : > { %v11504_v38 = vpop.eup %11503  ;;  %v8900_v7 = vadd.f32 1e-05, %v8884_v39  ;;  %v15727_v24 = vadd.f32 %v15617_v34, %v9090_v11 }
0x15f0   : > { %v9018_v45 = vmul.f32 %v11502_v25, %v9017_v12  ;;  %v9024_v6 = vmul.f32 %v11504_v38, %v8899_v53  ;;  %v9200_v4 = vpop.f32.mrf.mxu0  ;;  %vm9030_vm1 = vweird.f32 %v11504_v38 }
0x15f1   : > { %11505 = vrsqrt.f32 %v8900_v7  ;;  %v9201_v29 = vadd.f32 %v15717_v42, %v9200_v4  ;;  %vm9031_vm3 = vmor %vm9029_vm2, %vm9030_vm1  ;;  %vm9039_vm5 = vweird.f32 %v8900_v7 }
0x15f2   : > { %v9022_v15 = vsel %vm9021_vm14, %v11502_v25, %v9018_v45  ;;  %v9025_v51 = vmul.f32 %v11504_v38, %v9024_v6 }
0x15f3   : > { %v9074_v58 = vmul.f32 %v9022_v15, %v15638_v32  ;;  %v9237_v62 = vmax.f32 %v9201_v29, 0.0 }
0x15f4   : > { %v9026_v0 = vmul.f32 0.5, %v9025_v51  ;;  %v8868_v33 = vpop.xlane.xlu2 %8867 }
0x15f5   : > { %v8885_v46 = vmul.f32 0.03125, %v8868_v33  ;;  %v9091_v26 = vmul.f32 %v15611_v10, %v9074_v58 }
0x15f6   : > { %v9027_v59 = vsub.f32 1.5, %v9026_v0 }
0x15f7   : > { %v11506_v13 = vpop.eup %11505  ;;  %v8901_v28 = vadd.f32 1e-05, %v8885_v46  ;;  %v15730_v44 = vadd.f32 %v15617_v34, %v9091_v26 }
0x15f8   : > { %v9028_v8 = vmul.f32 %v11504_v38, %v9027_v59  ;;  %v9034_v32 = vmul.f32 %v11506_v13, %v8900_v7  ;;  %v9202_v20 = vpop.f32.mrf.mxu0  ;;  %vm9040_vm4 = vweird.f32 %v11506_v13 }
0x15f9   : > { %11507 = vrsqrt.f32 %v8901_v28  ;;  %v9203_v36 = vadd.f32 %v15717_v42, %v9202_v20  ;;  %v9134_v18 = vpack.c.bf16 %v15730_v44, %v15727_v24  ;;  %vm9041_vm6 = vmor %vm9039_vm5, %vm9040_vm4  ;;  %vm9049_vm8 = vweird.f32 %v8901_v28 }
0x15fa   : > { %v9035_v17 = vmul.f32 %v11506_v13, %v9034_v32  ;;  %v9032_v31 = vsel %vm9031_vm3, %v11504_v38, %v9028_v8 }
0x15fb   : > { %v9238_v30 = vmax.f32 %v9203_v36, 0.0  ;;  %9219 = vmatmul.bf16.gmra.mxu0 %v9134_v18  ;;  %v9075_v60 = vmul.f32 %v9032_v31, %v15647_v27 }
0x15fc   : > { %v9036_v35 = vmul.f32 0.5, %v9035_v17  ;;  %v8870_v5 = vpop.xlane.xlu0 %8869 }
0x15fd   : > { %v9268_v23 = vpack.c.bf16 %v9238_v30, %v9237_v62  ;;  %v8886_v48 = vmul.f32 0.03125, %v8870_v5  ;;  %v9092_v47 = vmul.f32 %v15611_v10, %v9075_v60 }
0x15fe   : > { %v9037_v3 = vsub.f32 1.5, %v9036_v35 }
0x15ff   : > { %v11508_v52 = vpop.eup %11507  ;;  %v8902_v25 = vadd.f32 1e-05, %v8886_v48  ;;  %9337 = vmatmul.bf16.gmra.mxu1 %v9268_v23  ;;  %v15741_v45 = vadd.f32 %v15617_v34, %v9092_v47 }
0x1600   : > { %v9038_v57 = vmul.f32 %v11506_v13, %v9037_v3  ;;  %v9044_v53 = vmul.f32 %v11508_v52, %v8901_v28  ;;  %v9205_v16 = vpop.f32.mrf.mxu0  ;;  %vm9050_vm7 = vweird.f32 %v11508_v52 }
0x1601   : > { %11509 = vrsqrt.f32 %v8902_v25  ;;  %v9206_v27 = vadd.f32 %v15717_v42, %v9205_v16  ;;  %vm9051_vm9 = vmor %vm9049_vm8, %vm9050_vm7  ;;  %vm9059_vm11 = vweird.f32 %v8902_v25 }
0x1602   : > { %v9042_v14 = vsel %vm9041_vm6, %v11506_v13, %v9038_v57  ;;  %v9045_v41 = vmul.f32 %v11508_v52, %v9044_v53 }
0x1603   : > { %v9076_v22 = vmul.f32 %v9042_v14, %v15662_v49  ;;  %v9239_v11 = vmax.f32 %v9206_v27, 0.0 }
0x1604   : > { %v9046_v39 = vmul.f32 0.5, %v9045_v41 }
0x1605   : > { %v9093_v12 = vmul.f32 %v15611_v10, %v9076_v22 }
0x1606   : > { %v9047_v38 = vsub.f32 1.5, %v9046_v39 }
0x1607   : > { %v11510_v9 = vpop.eup %11509  ;;  %v15744_v7 = vadd.f32 %v15617_v34, %v9093_v12 }
0x1608   : > { %v9048_v6 = vmul.f32 %v11508_v52, %v9047_v38  ;;  %v9054_v4 = vmul.f32 %v11510_v9, %v8902_v25  ;;  %v9207_v15 = vpop.f32.mrf.mxu0  ;;  %vm9060_vm10 = vweird.f32 %v11510_v9  ;;  %v15768_v25 = vld [vmem:[%s16285_s2 + $0x11] ss:$0 sm:$0xff] }
0x1609   : > { %v9208_v49 = vadd.f32 %v15717_v42, %v9207_v15  ;;  %v9135_v51 = vpack.c.bf16 %v15744_v7, %v15741_v45  ;;  %vm9061_vm12 = vmor %vm9059_vm11, %vm9060_vm10 }
0x160a   : > { %v9055_v58 = vmul.f32 %v11510_v9, %v9054_v4  ;;  %v9052_v33 = vsel %vm9051_vm9, %v11508_v52, %v9048_v6 }
0x160b   : > { %v9240_v0 = vmax.f32 %v9208_v49, 0.0  ;;  %9224 = vmatmul.bf16.gmra.mxu0 %v9135_v51  ;;  %v9077_v13 = vmul.f32 %v9052_v33, %v15671_v40 }
0x160c   : > { %v9056_v46 = vmul.f32 0.5, %v9055_v58 }
0x160d   : > { %v9269_v26 = vpack.c.bf16 %v9240_v0, %v9239_v11  ;;  %v9094_v20 = vmul.f32 %v15611_v10, %v9077_v13 }
0x160e   : > { %v9057_v59 = vsub.f32 1.5, %v9056_v46 }
0x160f   : > { %9342 = vmatmul.bf16.gmra.mxu1 %v9269_v26  ;;  %v15755_v17 = vadd.f32 %v15617_v34, %v9094_v20 }
0x1610   : > { %v9058_v29 = vmul.f32 %v11510_v9, %v9057_v59  ;;  %v9210_v8 = vpop.f32.mrf.mxu0 }
0x1611   : > { %v9211_v18 = vadd.f32 %v15717_v42, %v9210_v8 }
0x1612   : > { %v9062_v32 = vsel %vm9061_vm12, %v11510_v9, %v9058_v29 }
0x1613   : > { %v9078_v28 = vmul.f32 %v9062_v32, %v15686_v55  ;;  %v9241_v35 = vmax.f32 %v9211_v18, 0.0 }
0x1615   : > { %v9095_v36 = vmul.f32 %v15611_v10, %v9078_v28 }
0x1617   : > { %v15758_v62 = vadd.f32 %v15617_v34, %v9095_v36 }
0x1618   : > { %v9212_v40 = vpop.f32.mrf.mxu0 }
0x1619   : > { %v9213_v30 = vadd.f32 %v15717_v42, %v9212_v40  ;;  %v9136_v31 = vpack.c.bf16 %v15758_v62, %v15755_v17 }
0x161b   : > { %v9242_v55 = vmax.f32 %v9213_v30, 0.0  ;;  %9229 = vmatmul.bf16.gmra.mxu0 %v9136_v31 }
0x161d   : > { %v9270_v5 = vpack.c.bf16 %v9242_v55, %v9241_v35 }
0x161f   : > { %9347 = vmatmul.bf16.gmra.mxu1 %v9270_v5 }
0x163c   : > { %v9215_v10 = vpop.f32.mrf.mxu0 }
0x163d   : > { %v9216_v23 = vadd.f32 %v15717_v42, %v9215_v10 }
0x163f   : > { %v9243_v52 = vmax.f32 %v9216_v23, 0.0 }
0x1644   : > { %v9217_v48 = vpop.f32.mrf.mxu0 }
0x1645   : > { %v9218_v3 = vadd.f32 %v15717_v42, %v9217_v48 }
0x1647   : > { %v9244_v34 = vmax.f32 %v9218_v3, 0.0 }
0x1649   : > { %v9271_v60 = vpack.c.bf16 %v9244_v34, %v9243_v52 }
0x164b   : > { %9352 = vmatmul.bf16.gmra.mxu1 %v9271_v60 }
0x164c   : > { %v9333_v57 = vpop.f32.mrf.mxu1 }
0x164d   : > { %v9334_v53 = vadd.f32 %v15768_v25, %v9333_v57 }
0x164f   : > { %v15772_v16 = vadd.f32 %v9334_v53, %v15623_v19 }
0x1651   : > { %9389 = vadd.xlane.f32.xlu1 %v15772_v16 }
0x1654   : > { %v9335_v14 = vpop.f32.mrf.mxu1 }
0x1655   : > { %v9336_v41 = vadd.f32 %v15768_v25, %v9335_v14 }
0x1657   : > { %v15777_v22 = vadd.f32 %v9336_v41, %v15626_v21 }
0x1659   : > { %9391 = vadd.xlane.f32.xlu2 %v15777_v22 }
0x1678   : > { %v9220_v47 = vpop.f32.mrf.mxu0 }
0x1679   : > { %v9221_v38 = vadd.f32 %v15717_v42, %v9220_v47 }
0x167b   : > { %v9245_v6 = vmax.f32 %v9221_v38, 0.0 }
0x167c   : > { %v9338_v39 = vpop.f32.mrf.mxu1 }
0x167d   : > { %v9339_v12 = vadd.f32 %v15768_v25, %v9338_v39 }
0x167f   : > { %v15783_v9 = vadd.f32 %v9339_v12, %v15653_v37 }
0x1680   : > { %v9222_v19 = vpop.f32.mrf.mxu0 }
0x1681   : > { %v9223_v27 = vadd.f32 %v15717_v42, %v9222_v19  ;;  %9393 = vadd.xlane.f32.xlu2 %v15783_v9 }
0x1683   : > { %v9246_v4 = vmax.f32 %v9223_v27, 0.0 }
0x1684   : > { %v9340_v21 = vpop.f32.mrf.mxu1 }
0x1685   : > { %v9272_v15 = vpack.c.bf16 %v9246_v4, %v9245_v6  ;;  %v9341_v49 = vadd.f32 %v15768_v25, %v9340_v21 }
0x1687   : > { %v15789_v51 = vadd.f32 %v9341_v49, %v15656_v54  ;;  %9357 = vmatmul.bf16.gmra.mxu1 %v9272_v15 }
0x1688   : > { %v9225_v58 = vpop.f32.mrf.mxu0 }
0x1689   : > { %9395 = vadd.xlane.f32.xlu1 %v15789_v51  ;;  %v9226_v0 = vadd.f32 %v15717_v42, %v9225_v58 }
0x168b   : > { %v9247_v59 = vmax.f32 %v9226_v0, 0.0 }
0x168c   : > { %v9343_v37 = vpop.f32.mrf.mxu1 }
0x168d   : > { %v9344_v11 = vadd.f32 %v15768_v25, %v9343_v37 }
0x168f   : > { %v15795_v33 = vadd.f32 %v9344_v11, %v15677_v43 }
0x1690   : > { %v9227_v46 = vpop.f32.mrf.mxu0 }
0x1691   : > { %v9228_v26 = vadd.f32 %v15717_v42, %v9227_v46  ;;  %9397 = vadd.xlane.f32.xlu0 %v15795_v33 }
0x1693   : > { %v9248_v54 = vmax.f32 %v9228_v26, 0.0 }
0x1694   : > { %v9345_v13 = vpop.f32.mrf.mxu1 }
0x1695   : > { %v9273_v29 = vpack.c.bf16 %v9248_v54, %v9247_v59  ;;  %v9346_v8 = vadd.f32 %v15768_v25, %v9345_v13 }
0x1697   : > { %v15801_v32 = vadd.f32 %v9346_v8, %v15680_v61  ;;  %9362 = vmatmul.bf16.gmra.mxu1 %v9273_v29 }
0x1698   : > { %v9230_v28 = vpop.f32.mrf.mxu0 }
0x1699   : > { %9399 = vadd.xlane.f32.xlu2 %v15801_v32  ;;  %v9231_v36 = vadd.f32 %v15717_v42, %v9230_v28 }
0x169b   : > { %v9249_v31 = vmax.f32 %v9231_v36, 0.0 }
0x169c   : > { %v9348_v43 = vpop.f32.mrf.mxu1 }
0x169d   : > { %v9349_v20 = vadd.f32 %v15768_v25, %v9348_v43 }
0x169f   : > { %v15807_v18 = vadd.f32 %v9349_v20, %v15695_v63 }
0x16a0   : > { %v9232_v40 = vpop.f32.mrf.mxu0 }
0x16a1   : > { %v9233_v30 = vadd.f32 %v15717_v42, %v9232_v40  ;;  %9401 = vadd.xlane.f32.xlu1 %v15807_v18 }
0x16a3   : > { %v9250_v61 = vmax.f32 %v9233_v30, 0.0 }
0x16a4   : > { %v9350_v55 = vpop.f32.mrf.mxu1 }
0x16a5   : > { %v9274_v35 = vpack.c.bf16 %v9250_v61, %v9249_v31 }
0x16a7   : > { %9367 = vmatmul.bf16.gmra.mxu1 %v9274_v35 }
0x16c4   : > { %v9390_v12 = vpop.xlane.xlu1 %9389 }
0x16c5   : > { %v9421_v19 = vmul.f32 0.03125, %v9390_v12 }
0x16c8   : > { %v9353_v5 = vpop.f32.mrf.mxu1 }
0x16c9   : > { %v9354_v10 = vadd.f32 %v15768_v25, %v9353_v5 }
0x16cb   : > { %v15813_v23 = vadd.f32 %v9354_v10, %v15707_v56 }
0x16cc   : > { %v9392_v39 = vpop.xlane.xlu2 %9391 }
0x16cd   : > { %9405 = vadd.xlane.f32.xlu0 %v15813_v23  ;;  %v9422_v38 = vmul.f32 0.03125, %v9392_v39 }
0x16cf   : > { %v9438_v4 = vsub.f32 %v15777_v22, %v9422_v38 }
0x16d0   : > { %v9355_v63 = vpop.f32.mrf.mxu1 }
0x16d1   : > { %v9356_v48 = vadd.f32 %v15768_v25, %v9355_v63  ;;  %v15854_v37 = vmul.f32 %v16841_v1, %v9438_v4 }
0x16d3   : > { %v15818_v42 = vadd.f32 %v9356_v48, %v15710_v50  ;;  %v9470_v54 = vmul.f32 %v15854_v37, %v15854_v37 }
0x16d5   : > { %9407 = vadd.xlane.f32.xlu1 %v15818_v42 }
0x16f4   : > { %v9394_v15 = vpop.xlane.xlu2 %9393 }
0x16f5   : > { %v9423_v11 = vmul.f32 0.03125, %v9394_v15 }
0x16fc   : > { %v9396_v58 = vpop.xlane.xlu1 %9395 }
0x16fd   : > { %v9424_v22 = vmul.f32 0.03125, %v9396_v58 }
0x16ff   : > { %v9440_v13 = vsub.f32 %v15789_v51, %v9424_v22 }
0x1704   : > { %v9358_v3 = vpop.f32.mrf.mxu1  ;;  %v9398_v49 = vpop.xlane.xlu0 %9397 }
0x1705   : > { %v9359_v52 = vadd.f32 %v15768_v25, %v9358_v3 }
0x1707   : > { %v15823_v34 = vadd.f32 %v9359_v52, %v15727_v24 }
0x1709   : > { %9409 = vadd.xlane.f32.xlu0 %v15823_v34 }
0x170c   : > { %v9360_v56 = vpop.f32.mrf.mxu1  ;;  %v9400_v29 = vpop.xlane.xlu2 %9399 }
0x170d   : > { %v9361_v60 = vadd.f32 %v15768_v25, %v9360_v56 }
0x170f   : > { %v15828_v57 = vadd.f32 %v9361_v60, %v15730_v44  ;;  %v9351_v44 = vadd.f32 %v15768_v25, %v9350_v55 }
0x1711   : > { %9411 = vadd.xlane.f32.xlu2 %v15828_v57  ;;  %v15844_v6 = vadd.f32 %v9351_v44, %v15698_v2  ;;  %v9425_v2 = vmul.f32 0.03125, %v9398_v49 }
0x1713   : > { %v9441_v26 = vsub.f32 %v15795_v33, %v9425_v2  ;;  %v15878_v33 = vmul.f32 %v16841_v1, %v9440_v13 }
0x1714   : > { %v9363_v50 = vpop.f32.mrf.mxu1  ;;  %v9402_v28 = vpop.xlane.xlu1 %9401 }
0x1715   : > { %v9364_v53 = vadd.f32 %v15768_v25, %v9363_v50  ;;  %v9427_v51 = vmul.f32 0.03125, %v9402_v28  ;;  %v9472_v30 = vmul.f32 %v15878_v33, %v15878_v33 }
0x1717   : > { %v15833_v14 = vadd.f32 %v9364_v53, %v15741_v45  ;;  %v9443_v40 = vsub.f32 %v15807_v18, %v9427_v51 }
0x1719   : > { %9413 = vadd.xlane.f32.xlu1 %v15833_v14  ;;  %v15892_v61 = vmul.f32 %v16841_v1, %v9443_v40 }
0x171b   : > { %v9475_v55 = vmul.f32 %v15892_v61, %v15892_v61 }
0x171c   : > { %v9365_v24 = vpop.f32.mrf.mxu1 }
0x171d   : > { %v9366_v41 = vadd.f32 %v15768_v25, %v9365_v24 }
0x171f   : > { %v15838_v47 = vadd.f32 %v9366_v41, %v15744_v7  ;;  %v9437_v7 = vsub.f32 %v15772_v16, %v9421_v19  ;;  %v9439_v16 = vsub.f32 %v15783_v9, %v9423_v11  ;;  %v9426_v9 = vmul.f32 0.03125, %v9400_v29 }
0x1721   : > { %9415 = vadd.xlane.f32.xlu0 %v15838_v47  ;;  %v15857_v0 = vmul.f32 %v16841_v1, %v9437_v7  ;;  %v9442_v43 = vsub.f32 %v15801_v32, %v9426_v9 }
0x1723   : > { %v9469_v8 = vmul.f32 %v15857_v0, %v15857_v0  ;;  %v15889_v31 = vmul.f32 %v16841_v1, %v9442_v43 }
0x1724   : > { %v9368_v27 = vpop.f32.mrf.mxu1 }
0x1725   : > { %v9369_v45 = vadd.f32 %v15768_v25, %v9368_v27  ;;  %v9474_v32 = vmul.f32 %v15889_v31, %v15889_v31 }
0x1727   : > { %v15848_v21 = vadd.f32 %v9369_v45, %v15755_v17 }
0x1729   : > { %9417 = vadd.xlane.f32.xlu2 %v15848_v21  ;;  %9403 = vadd.xlane.f32.xlu0 %v15844_v6 }
0x172c   : > { %v9370_v17 = vpop.f32.mrf.mxu1 }
0x172d   : > { %v9371_v46 = vadd.f32 %v15768_v25, %v9370_v17  ;;  %v15872_v25 = vmul.f32 %v16841_v1, %v9439_v16 }
0x172f   : > { %v15863_v59 = vadd.f32 %v9371_v46, %v15758_v62  ;;  %v15875_v62 = vmul.f32 %v16841_v1, %v9441_v26  ;;  %v9471_v20 = vmul.f32 %v15872_v25, %v15872_v25 }
0x1731   : > { %9487 = vadd.xlane.f32.xlu0 %v9470_v54  ;;  %9419 = vadd.xlane.f32.xlu1 %v15863_v59  ;;  %v9473_v36 = vmul.f32 %v15875_v62, %v15875_v62 }
0x1732   : > { %9485 = vadd.xlane.f32.xlu2 %v9469_v8 }
0x1739   : > { %9489 = vadd.xlane.f32.xlu0 %v9471_v20  ;;  %9493 = vadd.xlane.f32.xlu1 %v9473_v36 }
0x173a   : > { %9491 = vadd.xlane.f32.xlu2 %v9472_v30 }
0x1740   : > { %v9406_v35 = vpop.xlane.xlu0 %9405 }
0x1741   : > { %v9429_v18 = vmul.f32 0.03125, %v9406_v35  ;;  %9495 = vadd.xlane.f32.xlu0 %v9474_v32 }
0x1742   : > { %9497 = vadd.xlane.f32.xlu2 %v9475_v55 }
0x1743   : > { %v9445_v5 = vsub.f32 %v15813_v23, %v9429_v18 }
0x1745   : > { %v15900_v10 = vmul.f32 %v16841_v1, %v9445_v5 }
0x1747   : > { %v9477_v63 = vmul.f32 %v15900_v10, %v15900_v10 }
0x1748   : > { %v9408_v48 = vpop.xlane.xlu1 %9407 }
0x1749   : > { %v9430_v3 = vmul.f32 0.03125, %v9408_v48  ;;  %9501 = vadd.xlane.f32.xlu1 %v9477_v63 }
0x174b   : > { %v9446_v52 = vsub.f32 %v15818_v42, %v9430_v3 }
0x174d   : > { %v15906_v56 = vmul.f32 %v16841_v1, %v9446_v52 }
0x174f   : > { %v9478_v60 = vmul.f32 %v15906_v56, %v15906_v56 }
0x1751   : > { %9503 = vadd.xlane.f32.xlu2 %v9478_v60 }
0x177c   : > { %v9410_v50 = vpop.xlane.xlu0 %9409 }
0x177d   : > { %v9431_v23 = vmul.f32 0.03125, %v9410_v50 }
0x177f   : > { %v9447_v53 = vsub.f32 %v15823_v34, %v9431_v23 }
0x1781   : > { %v15912_v24 = vmul.f32 %v16841_v1, %v9447_v53 }
0x1783   : > { %v9479_v41 = vmul.f32 %v15912_v24, %v15912_v24 }
0x1784   : > { %v9412_v39 = vpop.xlane.xlu2 %9411 }
0x1785   : > { %v9432_v12 = vmul.f32 0.03125, %v9412_v39  ;;  %9505 = vadd.xlane.f32.xlu1 %v9479_v41 }
0x1787   : > { %v9448_v42 = vsub.f32 %v15828_v57, %v9432_v12 }
0x1789   : > { %v15918_v44 = vmul.f32 %v16841_v1, %v9448_v42 }
0x178b   : > { %v9480_v38 = vmul.f32 %v15918_v44, %v15918_v44 }
0x178c   : > { %v9414_v19 = vpop.xlane.xlu1 %9413 }
0x178d   : > { %v9433_v27 = vmul.f32 0.03125, %v9414_v19  ;;  %9507 = vadd.xlane.f32.xlu0 %v9480_v38 }
0x178f   : > { %v9449_v34 = vsub.f32 %v15833_v14, %v9433_v27 }
0x1791   : > { %v15924_v45 = vmul.f32 %v16841_v1, %v9449_v34  ;;  %v15968_v34 = vld [vmem:[%s16285_s2 + $0x12] ss:$0 sm:$0xff] }
0x1793   : > { %v9481_v4 = vmul.f32 %v15924_v45, %v15924_v45 }
0x1794   : > { %v9416_v7 = vpop.xlane.xlu0 %9415 }
0x1795   : > { %v9434_v15 = vmul.f32 0.03125, %v9416_v7  ;;  %9509 = vadd.xlane.f32.xlu2 %v9481_v4 }
0x1797   : > { %v9450_v57 = vsub.f32 %v15838_v47, %v9434_v15 }
0x1799   : > { %v15930_v49 = vmul.f32 %v16841_v1, %v9450_v57 }
0x179b   : > { %v9482_v58 = vmul.f32 %v15930_v49, %v15930_v49 }
0x179c   : > { %v9418_v11 = vpop.xlane.xlu2 %9417  ;;  %v9404_v2 = vpop.xlane.xlu0 %9403 }
0x179d   : > { %9511 = vadd.xlane.f32.xlu1 %v9482_v58  ;;  %v9435_v14 = vmul.f32 0.03125, %v9418_v11  ;;  %v9428_v22 = vmul.f32 0.03125, %v9404_v2 }
0x179f   : > { %v9451_v17 = vsub.f32 %v15848_v21, %v9435_v14  ;;  %v9444_v46 = vsub.f32 %v15844_v6, %v9428_v22  ;;  %v15980_v14 = vld [vmem:[%s16285_s2 + $0x13] ss:$0 sm:$0xff] }
0x17a1   : > { %v15937_v16 = vmul.f32 %v16841_v1, %v9451_v17  ;;  %v15940_v47 = vmul.f32 %v16841_v1, %v9444_v46 }
0x17a3   : > { %v9483_v26 = vmul.f32 %v15937_v16, %v15937_v16  ;;  %v9476_v54 = vmul.f32 %v15940_v47, %v15940_v47 }
0x17a4   : > { %v9420_v13 = vpop.xlane.xlu1 %9419  ;;  %v9488_v28 = vpop.xlane.xlu0 %9487 }
0x17a5   : > { %v9436_v29 = vmul.f32 0.03125, %v9420_v13  ;;  %9513 = vadd.xlane.f32.xlu0 %v9483_v26  ;;  %9499 = vadd.xlane.f32.xlu1 %v9476_v54  ;;  %v9518_v9 = vmul.f32 0.03125, %v9488_v28  ;;  %v9486_v43 = vpop.xlane.xlu2 %9485 }
0x17a6   : > { %v9517_v20 = vmul.f32 0.03125, %v9486_v43 }
0x17a7   : > { %v9452_v21 = vsub.f32 %v15863_v59, %v9436_v29  ;;  %v9534_v51 = vadd.f32 1e-05, %v9518_v9 }
0x17a8   : > { %v9533_v40 = vadd.f32 1e-05, %v9517_v20 }
0x17a9   : > { %v15948_v6 = vmul.f32 %v16841_v1, %v9452_v21  ;;  %11511 = vrsqrt.f32 %v9534_v51  ;;  %vm9565_vm0 = vweird.f32 %v9534_v51 }
0x17aa   : > { %11513 = vrsqrt.f32 %v9533_v40  ;;  %vm9555_vm1 = vweird.f32 %v9533_v40 }
0x17ab   : > { %v9484_v8 = vmul.f32 %v15948_v6, %v15948_v6 }
0x17ac   : > { %v9490_v32 = vpop.xlane.xlu0 %9489  ;;  %v9494_v63 = vpop.xlane.xlu1 %9493 }
0x17ad   : > { %9515 = vadd.xlane.f32.xlu2 %v9484_v8  ;;  %v9492_v59 = vpop.xlane.xlu2 %9491  ;;  %v9519_v55 = vmul.f32 0.03125, %v9490_v32  ;;  %v9521_v60 = vmul.f32 0.03125, %v9494_v63 }
0x17ae   : > { %v9520_v18 = vmul.f32 0.03125, %v9492_v59 }
0x17af   : > { %v11512_v36 = vpop.eup %11511  ;;  %v15952_v3 = vadd.f32 1e-05, %v9519_v55  ;;  %v15958_v53 = vadd.f32 1e-05, %v9521_v60 }
0x17b0   : > { %v9560_v30 = vmul.f32 %v11512_v36, %v9534_v51  ;;  %v11514_v1 = vpop.eup %11513  ;;  %v15954_v52 = vadd.f32 1e-05, %v9520_v18  ;;  %vm9566_vm15 = vweird.f32 %v11512_v36 }
0x17b1   : > { %v9550_v48 = vmul.f32 %v11514_v1, %v9533_v40  ;;  %11515 = vrsqrt.f32 %v15952_v3  ;;  %vm9567_vm13 = vmor %vm9565_vm0, %vm9566_vm15  ;;  %vm9556_vm14 = vweird.f32 %v11514_v1  ;;  %vm9575_vm5 = vweird.f32 %v15952_v3 }
0x17b2   : > { %v9561_v35 = vmul.f32 %v11512_v36, %v9560_v30  ;;  %11517 = vrsqrt.f32 %v15954_v52  ;;  %vm9557_vm2 = vmor %vm9555_vm1, %vm9556_vm14  ;;  %vm9585_vm7 = vweird.f32 %v15954_v52  ;;  %vm9595_vm10 = vweird.f32 %v15958_v53 }
0x17b3   : > { %v9551_v23 = vmul.f32 %v11514_v1, %v9550_v48  ;;  %11519 = vrsqrt.f32 %v15958_v53 }
0x17b4   : > { %v9562_v5 = vmul.f32 0.5, %v9561_v35  ;;  %v9496_v38 = vpop.xlane.xlu0 %9495 }
0x17b5   : > { %v9552_v39 = vmul.f32 0.5, %v9551_v23  ;;  %v9522_v15 = vmul.f32 0.03125, %v9496_v38  ;;  %v9498_v2 = vpop.xlane.xlu2 %9497 }
0x17b6   : > { %v9563_v50 = vsub.f32 1.5, %v9562_v5  ;;  %v9523_v51 = vmul.f32 0.03125, %v9498_v2 }
0x17b7   : > { %v15961_v12 = vpop.eup %11515  ;;  %v9553_v27 = vsub.f32 1.5, %v9552_v39  ;;  %v15984_v17 = vadd.f32 1e-05, %v9522_v15 }
0x17b8   : > { %v9564_v41 = vmul.f32 %v11512_v36, %v9563_v50  ;;  %v15963_v19 = vpop.eup %11517  ;;  %v9570_v7 = vmul.f32 %v15961_v12, %v15952_v3  ;;  %vm9576_vm3 = vweird.f32 %v15961_v12 }
0x17b9   : > { %v9580_v57 = vmul.f32 %v15963_v19, %v15954_v52  ;;  %v15975_v58 = vpop.eup %11519  ;;  %v9554_v11 = vmul.f32 %v11514_v1, %v9553_v27  ;;  %11521 = vrsqrt.f32 %v15984_v17  ;;  %vm9586_vm4 = vweird.f32 %v15963_v19  ;;  %vm9577_vm6 = vmor %vm9575_vm5, %vm9576_vm3 }
0x17ba   : > { %v9568_v42 = vsel %vm9567_vm13, %v11512_v36, %v9564_v41  ;;  %v9590_v26 = vmul.f32 %v15975_v58, %v15958_v53  ;;  %vm9587_vm8 = vmor %vm9585_vm7, %vm9586_vm4  ;;  %vm9596_vm9 = vweird.f32 %v15975_v58  ;;  %vm9605_vm15 = vweird.f32 %v15984_v17 }
0x17bb   : > { %v9710_v4 = vmul.f32 %v9568_v42, %v15854_v37  ;;  %v9571_v37 = vmul.f32 %v15961_v12, %v9570_v7  ;;  %v9581_v46 = vmul.f32 %v15963_v19, %v9580_v57  ;;  %v9558_v13 = vsel %vm9557_vm2, %v11514_v1, %v9554_v11  ;;  %vm9597_vm11 = vmor %vm9595_vm10, %vm9596_vm9 }
0x17bc   : > { %v9502_v54 = vpop.xlane.xlu1 %9501  ;;  %v9591_v28 = vmul.f32 %v15975_v58, %v9590_v26  ;;  %v9709_v9 = vmul.f32 %v9558_v13, %v15857_v0  ;;  %v15996_v1 = vadd.f32 1e-05, %v9523_v51 }
0x17bd   : > { %v9727_v22 = vmul.f32 %v15968_v34, %v9710_v4  ;;  %v9572_v21 = vmul.f32 0.5, %v9571_v37  ;;  %v9582_v8 = vmul.f32 0.5, %v9581_v46  ;;  %v9525_v32 = vmul.f32 0.03125, %v9502_v54 }
0x17be   : > { %v9592_v30 = vmul.f32 0.5, %v9591_v28  ;;  %v9726_v55 = vmul.f32 %v15968_v34, %v9709_v9  ;;  %11523 = vrsqrt.f32 %v15996_v1  ;;  %vm9615_vm14 = vweird.f32 %v15996_v1 }
0x17bf   : > { %v9744_v29 = vadd.f32 %v15980_v14, %v9727_v22  ;;  %v9573_v36 = vsub.f32 1.5, %v9572_v21  ;;  %v9583_v40 = vsub.f32 1.5, %v9582_v8  ;;  %v15993_v59 = vpop.eup %11521  ;;  %v16004_v23 = vadd.f32 1e-05, %v9525_v32 }
0x17c0   : > { %v9593_v60 = vsub.f32 1.5, %v9592_v30  ;;  %v9600_v50 = vmul.f32 %v15993_v59, %v15984_v17  ;;  %v9743_v41 = vadd.f32 %v15980_v14, %v9726_v55  ;;  %vm9606_vm12 = vweird.f32 %v15993_v59 }
0x17c1   : > { %v9765_v20 = vrot.slane %v9744_v29, 4  ;;  %v9574_v0 = vmul.f32 %v15961_v12, %v9573_v36  ;;  %v9584_v48 = vmul.f32 %v15963_v19, %v9583_v40  ;;  %11525 = vrsqrt.f32 %v16004_v23  ;;  %vm9607_vm0 = vmor %vm9605_vm15, %vm9606_vm12 }
0x17c2   : > { %v9594_v7 = vmul.f32 %v15975_v58, %v9593_v60  ;;  %v9601_v3 = vmul.f32 %v15993_v59, %v9600_v50  ;;  %v9759_v15 = vrot.slane %v9743_v41, 4  ;;  %vm9635_vm1 = vweird.f32 %v16004_v23 }
0x17c3   : > { %v9766_v5 = vadd.f32 %v9765_v20, %v9744_v29  ;;  %v9578_v38 = vsel %vm9577_vm6, %v15961_v12, %v9574_v0  ;;  %v9588_v4 = vsel %vm9587_vm8, %v15963_v19, %v9584_v48 }
0x17c4   : > { %v9504_v43 = vpop.xlane.xlu2 %9503  ;;  %v9711_v52 = vmul.f32 %v9578_v38, %v15872_v25  ;;  %v16023_v12 = vpop.eup %11523  ;;  %v9712_v57 = vmul.f32 %v9588_v4, %v15878_v33  ;;  %v9598_v11 = vsel %vm9597_vm11, %v15975_v58, %v9594_v7  ;;  %v9602_v2 = vmul.f32 0.5, %v9601_v3 }
0x17c5   : > { %v9526_v18 = vmul.f32 0.03125, %v9504_v43  ;;  %v9767_v42 = vrot.slane %v9766_v5, 2  ;;  %v9760_v37 = vadd.f32 %v9759_v15, %v9743_v41  ;;  %v9610_v53 = vmul.f32 %v16023_v12, %v15996_v1 }
0x17c6   : > { %v9728_v25 = vmul.f32 %v15968_v34, %v9711_v52  ;;  %v9729_v33 = vmul.f32 %v15968_v34, %v9712_v57  ;;  %v9713_v13 = vmul.f32 %v9598_v11, %v15875_v62  ;;  %v9603_v21 = vsub.f32 1.5, %v9602_v2 }
0x17c7   : > { %v16009_v39 = vadd.f32 1e-05, %v9526_v18  ;;  %v9768_v19 = vadd.f32 %v9767_v42, %v9766_v5  ;;  %v16028_v26 = vpop.eup %11525  ;;  %v9761_v28 = vrot.slane %v9760_v37, 2  ;;  %v9611_v43 = vmul.f32 %v16023_v12, %v9610_v53 }
0x17c8   : > { %v9630_v9 = vmul.f32 %v16028_v26, %v16004_v23  ;;  %v9745_v51 = vadd.f32 %v15980_v14, %v9728_v25  ;;  %v9746_v62 = vadd.f32 %v15980_v14, %v9729_v33  ;;  %v9730_v36 = vmul.f32 %v15968_v34, %v9713_v13 }
0x17c9   : > { %11527 = vrsqrt.f32 %v16009_v39  ;;  %v9769_v58 = vrot.slane %v9768_v19, 1  ;;  %v9604_v30 = vmul.f32 %v15993_v59, %v9603_v21  ;;  %v9612_v5 = vmul.f32 0.5, %v9611_v43 }
0x17ca   : > { %v9631_v55 = vmul.f32 %v16028_v26, %v9630_v9  ;;  %v9771_v18 = vrot.slane %v9745_v51, 4  ;;  %v9777_v48 = vrot.slane %v9746_v62, 4  ;;  %v9747_v60 = vadd.f32 %v15980_v14, %v9730_v36 }
0x17cb   : > { %v9770_v40 = vadd.f32 %v9769_v58, %v9768_v19  ;;  %v9608_v41 = vsel %vm9607_vm0, %v15993_v59, %v9604_v30  ;;  %v9613_v52 = vsub.f32 1.5, %v9612_v5  ;;  %vm9616_vm13 = vweird.f32 %v16023_v12 }
0x17cc   : > { %v9632_v17 = vmul.f32 0.5, %v9631_v55  ;;  %v9772_v15 = vadd.f32 %v9771_v18, %v9745_v51  ;;  %v9778_v11 = vadd.f32 %v9777_v48, %v9746_v62  ;;  %v9783_v2 = vrot.slane %v9747_v60, 4  ;;  %vm16079_vm3 = vmor %vm9615_vm14, %vm9616_vm13 }
0x17cd   : > { %v9856_v50 = vmul.f32 0.125, %v9770_v40  ;;  %v9614_v58 = vmul.f32 %v16023_v12, %v9613_v52  ;;  %vm9636_vm2 = vweird.f32 %v16028_v26  ;;  %vm9645_vm6 = vweird.f32 %v16009_v39 }
0x17ce   : > { %v9633_v53 = vsub.f32 1.5, %v9632_v17  ;;  %v9773_v13 = vrot.slane %v9772_v15, 2  ;;  %v9784_v9 = vadd.f32 %v9783_v2, %v9747_v60  ;;  %vm16096_vm5 = vmor %vm9635_vm1, %vm9636_vm2  ;;  %vm9937_vm13 = vcmask 1041409  }
0x17cf   : > { %v16033_v54 = vpop.eup %11527  ;;  %v9888_v59 = vpack.c.bf16 %v9856_v50, %v9856_v50  ;;  %v9618_v1 = vsel %vm16079_vm3, %v16023_v12, %v9614_v58 }
0x17d0   : > { %v9640_v20 = vmul.f32 %v16033_v54, %v16009_v39  ;;  %v9634_v40 = vmul.f32 %v16028_v26, %v9633_v53  ;;  %vm9646_vm4 = vweird.f32 %v16033_v54  ;;  %v9715_v39 = vmul.f32 %v9618_v1, %v15892_v61 }
0x17d1   : > { %vm16107_vm8 = vmor %vm9645_vm6, %vm9646_vm4 }
0x17d2   : > { %v9641_v0 = vmul.f32 %v16033_v54, %v9640_v20 }
0x17d4   : > { %v9642_v57 = vmul.f32 0.5, %v9641_v0  ;;  %v9785_v0 = vrot.slane %v9784_v9, 2 }
0x17d6   : > { %v9643_v21 = vsub.f32 1.5, %v9642_v57 }
0x17d8   : > { %v9644_v55 = vmul.f32 %v16033_v54, %v9643_v21 }
0x17f8   : > { %v9506_v35 = vpop.xlane.xlu1 %9505 }
0x17f9   : > { %v9527_v63 = vmul.f32 0.03125, %v9506_v35  ;;  %v9762_v35 = vadd.f32 %v9761_v28, %v9760_v37  ;;  %v9779_v28 = vrot.slane %v9778_v11, 2 }
0x17fb   : > { %v16014_v27 = vadd.f32 1e-05, %v9527_v63  ;;  %v9763_v7 = vrot.slane %v9762_v35, 1  ;;  %v9780_v5 = vadd.f32 %v9779_v28, %v9778_v11 }
0x17fd   : > { %11529 = vrsqrt.f32 %v16014_v27  ;;  %v9764_v25 = vadd.f32 %v9763_v7, %v9762_v35  ;;  %v9774_v35 = vadd.f32 %v9773_v13, %v9772_v15  ;;  %vm9655_vm10 = vweird.f32 %v16014_v27 }
0x17ff   : > { %v16077_v62 = vmul.f32 0.125, %v9764_v25  ;;  %v9775_v17 = vrot.slane %v9774_v35, 1 }
0x1800   : > { %v9508_v22 = vpop.xlane.xlu0 %9507 }
0x1801   : > { %v9528_v46 = vmul.f32 0.03125, %v9508_v22  ;;  %v9714_v22 = vmul.f32 %v9608_v41, %v15889_v31  ;;  %v16073_v31 = vunpack.c.l.b16 %v9888_v59  ;;  %v9776_v53 = vadd.f32 %v9775_v17, %v9774_v35 }
0x1803   : > { %v16037_v29 = vadd.f32 1e-05, %v9528_v46  ;;  %v16039_v8 = vpop.eup %11529  ;;  %v9731_v51 = vmul.f32 %v15968_v34, %v9714_v22 }
0x1804   : > { %v9650_v32 = vmul.f32 %v16039_v8, %v16014_v27  ;;  %vm9656_vm7 = vweird.f32 %v16039_v8 }
0x1805   : > { %11531 = vrsqrt.f32 %v16037_v29  ;;  %v9748_v48 = vadd.f32 %v15980_v14, %v9731_v51  ;;  %vm16121_vm11 = vmor %vm9655_vm10, %vm9656_vm7  ;;  %vm9665_vm12 = vweird.f32 %v16037_v29 }
0x1806   : > { %v9651_v42 = vmul.f32 %v16039_v8, %v9650_v32 }
0x1807   : > { %v9789_v52 = vrot.slane %v9748_v48, 4 }
0x1808   : > { %v9510_v4 = vpop.xlane.xlu2 %9509  ;;  %v9652_v46 = vmul.f32 0.5, %v9651_v42  ;;  %v9638_v42 = vsel %vm16096_vm5, %v16028_v26, %v9634_v40  ;;  %v9887_v26 = vpack.c.bf16 %v16077_v62, %v16077_v62 }
0x1809   : > { %v9529_v3 = vmul.f32 0.03125, %v9510_v4  ;;  %v9648_v4 = vsel %vm16107_vm8, %v16033_v54, %v9644_v55  ;;  %v9717_v61 = vmul.f32 %v9638_v42, %v15900_v10  ;;  %v9781_v10 = vrot.slane %v9780_v5, 1 }
0x180a   : > { %v9653_v43 = vsub.f32 1.5, %v9652_v46  ;;  %v9718_v2 = vmul.f32 %v9648_v4, %v15906_v56  ;;  %v9732_v46 = vmul.f32 %v15968_v34, %v9715_v39  ;;  %v9921_v40 = vunpack.c.l.b16 %v9887_v26 }
0x180b   : > { %v16057_v63 = vpop.eup %11531  ;;  %v16066_v37 = vadd.f32 1e-05, %v9529_v3  ;;  %v9786_v3 = vadd.f32 %v9785_v0, %v9784_v9  ;;  %v9734_v9 = vmul.f32 %v15968_v34, %v9717_v61  ;;  %v9782_v62 = vadd.f32 %v9781_v10, %v9780_v5 }
0x180c   : > { %v9660_v38 = vmul.f32 %v16057_v63, %v16037_v29  ;;  %v9654_v12 = vmul.f32 %v16039_v8, %v9653_v43  ;;  %vm9666_vm9 = vweird.f32 %v16057_v63  ;;  %v9735_v51 = vmul.f32 %v15968_v34, %v9718_v2  ;;  %v10694_v2 = vld [vmem:[#allocation2 + $0x308] sm:$0xf] }
0x180d   : > { %11533 = vrsqrt.f32 %v16066_v37  ;;  %vm16130_vm15 = vmor %vm9665_vm12, %vm9666_vm9  ;;  %vm9675_vm14 = vweird.f32 %v16066_v37  ;;  %v9787_v28 = vrot.slane %v9786_v3, 1 }
0x180e   : > { %v9661_v19 = vmul.f32 %v16057_v63, %v9660_v38  ;;  %v9658_v54 = vsel %vm16121_vm11, %v16039_v8, %v9654_v12  ;;  %v9752_v0 = vadd.f32 %v15980_v14, %v9735_v51 }
0x180f   : > { %v9788_v55 = vadd.f32 %v9787_v28, %v9786_v3 }
0x1810   : > { %v9662_v33 = vmul.f32 0.5, %v9661_v19  ;;  %v9512_v20 = vpop.xlane.xlu1 %9511  ;;  %v9813_v15 = vrot.slane %v9752_v0, 4 }
0x1811   : > { %v9530_v32 = vmul.f32 0.03125, %v9512_v20  ;;  %v16176_v17 = vmul.f32 0.125, %v9788_v55 }
0x1812   : > { %v9663_v30 = vsub.f32 1.5, %v9662_v33  ;;  %v9719_v33 = vmul.f32 %v9658_v54, %v15912_v24  ;;  %v9790_v24 = vadd.f32 %v9789_v52, %v9748_v48  ;;  %v9814_v28 = vadd.f32 %v9813_v15, %v9752_v0 }
0x1813   : > { %v11534_v18 = vpop.eup %11533  ;;  %v16090_v60 = vadd.f32 1e-05, %v9530_v32 }
0x1814   : > { %v9670_v41 = vmul.f32 %v11534_v18, %v16066_v37  ;;  %v9664_v23 = vmul.f32 %v16057_v63, %v9663_v30  ;;  %vm9676_vm0 = vweird.f32 %v11534_v18  ;;  %v9736_v37 = vmul.f32 %v15968_v34, %v9719_v33 }
0x1815   : > { %11535 = vrsqrt.f32 %v16090_v60  ;;  %vm9677_vm1 = vmor %vm9675_vm14, %vm9676_vm0  ;;  %v16156_v30 = vmul.f32 0.125, %v9776_v53  ;;  %v9791_v48 = vrot.slane %v9790_v24, 2  ;;  %vm9685_vm3 = vweird.f32 %v16090_v60 }
0x1816   : > { %v9671_v7 = vmul.f32 %v11534_v18, %v9670_v41  ;;  %v9668_v29 = vsel %vm16130_vm15, %v16057_v63, %v9664_v23  ;;  %v9753_v38 = vadd.f32 %v15980_v14, %v9736_v37  ;;  %v9815_v0 = vrot.slane %v9814_v28, 2 }
0x1817   : > { %v9720_v56 = vmul.f32 %v9668_v29, %v15918_v44  ;;  %v16152_v44 = vadd.f32 %v15980_v14, %v9732_v46  ;;  %v10804_v29 = vld [vmem:[#allocation2 + $0x338] sm:$0xf0]  ;;  %v16191_v53 = vadd.f32 %v9791_v48, %v9790_v24  ;;  %vm9939_vm0 = vcmask 1042434  }
0x1818   : > { %v9672_v57 = vmul.f32 0.5, %v9671_v7  ;;  %v9514_v19 = vpop.xlane.xlu0 %9513  ;;  %v9500_v11 = vpop.xlane.xlu1 %9499  ;;  %vm9941_vm14 = vcmask 1043459  }
0x1819   : > { %v9531_v22 = vmul.f32 0.03125, %v9514_v19  ;;  %v9524_v59 = vmul.f32 0.03125, %v9500_v11  ;;  %v9737_v32 = vmul.f32 %v15968_v34, %v9720_v56  ;;  %v9795_v42 = vrot.slane %v16152_v44, 4 }
0x181a   : > { %v9673_v25 = vsub.f32 1.5, %v9672_v57  ;;  %v9889_v57 = vpack.c.bf16 %v16156_v30, %v16156_v30 }
0x181b   : > { %v11536_v8 = vpop.eup %11535  ;;  %v16140_v13 = vadd.f32 1e-05, %v9531_v22  ;;  %v16142_v58 = vadd.f32 1e-05, %v9524_v59  ;;  %v9754_v4 = vadd.f32 %v15980_v14, %v9737_v32  ;;  %v10690_v22 = vld [vmem:[#allocation2 + $0x2a0] sm:$0xf] }
0x181c   : > { %v9674_v21 = vmul.f32 %v11534_v18, %v9673_v25  ;;  %v9680_v63 = vmul.f32 %v11536_v8, %v16090_v60  ;;  %vm9686_vm2 = vweird.f32 %v11536_v8  ;;  %v16185_v60 = vsel %vm9937_vm13, %v16073_v31, %v9921_v40 }
0x181d   : > { %11537 = vrsqrt.f32 %v16140_v13  ;;  %vm9687_vm4 = vmor %vm9685_vm3, %vm9686_vm2  ;;  %v9819_v59 = vrot.slane %v9753_v38, 4  ;;  %v9825_v10 = vrot.slane %v9754_v4, 4  ;;  %v10695_v25 = vor.u32 %v10804_v29, %v10694_v2 }
0x181e   : > { %v9678_v43 = vsel %vm9677_vm1, %v11534_v18, %v9674_v21  ;;  %v9681_v20 = vmul.f32 %v11536_v8, %v9680_v63  ;;  %11539 = vrsqrt.f32 %v16142_v58  ;;  %v9751_v18 = vadd.f32 %v15980_v14, %v9734_v9 }
0x181f   : > { %v9721_v36 = vmul.f32 %v9678_v43, %v15924_v45  ;;  %v16164_v45 = vmul.f32 0.125, %v9782_v62  ;;  %10008 = vmatpush.bf16.msra.mxu2 %v10695_v25  ;;  %v10686_v43 = vld [vmem:[#allocation2 + $0x238] sm:$0xf]  ;;  %v9820_v62 = vadd.f32 %v9819_v59, %v9753_v38  ;;  %v9826_v37 = vadd.f32 %v9825_v10, %v9754_v4 }
0x1820   : > { %v9682_v35 = vmul.f32 0.5, %v9681_v20  ;;  %v9516_v1 = vpop.xlane.xlu2 %9515  ;;  %v9807_v3 = vrot.slane %v9751_v18, 4  ;;  %v10802_v20 = vld [vmem:[#allocation2 + $0x268] sm:$0xf0]  ;;  %vm9695_vm7 = vweird.f32 %v16140_v13  ;;  %vm9625_vm9 = vweird.f32 %v16142_v58 }
0x1821   : > { %v9532_v5 = vmul.f32 0.03125, %v9516_v1  ;;  %v9738_v50 = vmul.f32 %v15968_v34, %v9721_v36  ;;  %v9796_v1 = vadd.f32 %v9795_v42, %v16152_v44  ;;  %v9890_v38 = vpack.c.bf16 %v16164_v45, %v16164_v45 }
0x1822   : > { %v9683_v12 = vsub.f32 1.5, %v9682_v35  ;;  %v9808_v33 = vadd.f32 %v9807_v3, %v9751_v18  ;;  %v9821_v44 = vrot.slane %v9820_v62, 2  ;;  %v9793_v4 = vrot.slane %v16191_v53, 1 }
0x1823   : > { %v16162_v41 = vpop.eup %11537  ;;  %v16168_v23 = vadd.f32 1e-05, %v9532_v5  ;;  %v9755_v61 = vadd.f32 %v15980_v14, %v9738_v50  ;;  %vm9943_vm1 = vcmask 1044484   ;;  %vm9945_vm2 = vcmask 1045509  }
0x1824   : > { %v16170_v39 = vpop.eup %11539  ;;  %v9684_v7 = vmul.f32 %v11536_v8, %v9683_v12  ;;  %v9690_v26 = vmul.f32 %v16162_v41, %v16140_v13  ;;  %vm9696_vm5 = vweird.f32 %v16162_v41  ;;  %v10687_v13 = vor.u32 %v10802_v20, %v10686_v43  ;;  %v10801_v12 = vld [vmem:[#allocation2 + $0x200] sm:$0xf0] }
0x1825   : > { %v9620_v52 = vmul.f32 %v16170_v39, %v16142_v58  ;;  %11541 = vrsqrt.f32 %v16168_v23  ;;  %v9831_v21 = vrot.slane %v9755_v61, 4  ;;  %vm9626_vm6 = vweird.f32 %v16170_v39  ;;  %vm9697_vm8 = vmor %vm9695_vm7, %vm9696_vm5  ;;  %v10682_v58 = vld [vmem:[#allocation2 + $0x1d0] sm:$0xf] }
0x1826   : > { %v9688_v54 = vsel %vm9687_vm4, %v11536_v8, %v9684_v7  ;;  %v9691_v27 = vmul.f32 %v16162_v41, %v9690_v26  ;;  %v10803_v8 = vld [vmem:[#allocation2 + $0x2d0] sm:$0xf0]  ;;  %vm9627_vm10 = vmor %vm9625_vm9, %vm9626_vm6  ;;  %v9809_v7 = vrot.slane %v9808_v33, 2  ;;  %v9827_v26 = vrot.slane %v9826_v37, 2 }
0x1827   : > { %v9722_v19 = vmul.f32 %v9688_v54, %v15930_v49  ;;  %v9621_v11 = vmul.f32 %v16170_v39, %v9620_v52  ;;  %v10691_v49 = vor.u32 %v10803_v8, %v10690_v22  ;;  %v9832_v55 = vadd.f32 %v9831_v21, %v9755_v61 }
0x1828   : > { %v9692_v46 = vmul.f32 0.5, %v9691_v27  ;;  %v10683_v52 = vor.u32 %v10801_v12, %v10682_v58  ;;  %v9797_v61 = vrot.slane %v9796_v1, 2  ;;  %v9816_v54 = vadd.f32 %v9815_v0, %v9814_v28  ;;  %v10670_v0 = vld [vmem:[#allocation2 + $0x98] sm:$0xf] }
0x1829   : > { %v9739_v31 = vmul.f32 %v15968_v34, %v9722_v19  ;;  %v9622_v56 = vmul.f32 0.5, %v9621_v11  ;;  %10009 = vmatpush.bf16.msra.mxu2 %v10691_v49  ;;  %v9833_v15 = vrot.slane %v9832_v55, 2  ;;  %v10800_v11 = vld [vmem:[#allocation2 + $0x198] sm:$0xf0]  ;;  %v9822_v2 = vadd.f32 %v9821_v44, %v9820_v62 }
0x182a   : > { %v9693_v63 = vsub.f32 1.5, %v9692_v46  ;;  %v9810_v59 = vadd.f32 %v9809_v7, %v9808_v33  ;;  %v9828_v10 = vadd.f32 %v9827_v26, %v9826_v37  ;;  %vm9705_vm12 = vweird.f32 %v16168_v23  ;;  %v10799_v33 = vld [vmem:[#allocation2 + $0x130] sm:$0xf0] }
0x182b   : > { %v9756_v9 = vadd.f32 %v15980_v14, %v9739_v31  ;;  %v9623_v51 = vsub.f32 1.5, %v9622_v56  ;;  %v16197_v24 = vpop.eup %11541  ;;  %v9834_v25 = vadd.f32 %v9833_v15, %v9832_v55  ;;  %v9923_v21 = vunpack.c.l.b16 %v9889_v57  ;;  %v10666_v15 = vld [vmem:[#allocation2 + $0x30] sm:$0xf] }
0x182c   : > { %v9694_v36 = vmul.f32 %v16162_v41, %v9693_v63  ;;  %v9700_v35 = vmul.f32 %v16197_v24, %v16168_v23  ;;  %vm9706_vm11 = vweird.f32 %v16197_v24  ;;  %v9817_v63 = vrot.slane %v9816_v54, 1 }
0x182d   : > { %v9837_v40 = vrot.slane %v9756_v9, 4  ;;  %v9624_v32 = vmul.f32 %v16170_v39, %v9623_v51  ;;  %10010 = vmatpush.bf16.msra.mxu2 %v10687_v13  ;;  %vm9707_vm15 = vmor %vm9705_vm12, %vm9706_vm11  ;;  %v9798_v51 = vadd.f32 %v9797_v61, %v9796_v1  ;;  %v9823_v43 = vrot.slane %v9822_v2, 1 }
0x182e   : > { %v9698_v18 = vsel %vm9697_vm8, %v16162_v41, %v9694_v36  ;;  %v9701_v41 = vmul.f32 %v16197_v24, %v9700_v35  ;;  %v9811_v62 = vrot.slane %v9810_v59, 1  ;;  %v9829_v37 = vrot.slane %v9828_v10, 1 }
0x182f   : > { %v9838_v5 = vadd.f32 %v9837_v40, %v9756_v9  ;;  %v9723_v48 = vmul.f32 %v9698_v18, %v15937_v16  ;;  %v9628_v50 = vsel %vm9627_vm10, %v16170_v39, %v9624_v32  ;;  %v10674_v9 = vld [vmem:[#allocation2 + $0x100] sm:$0xf]  ;;  %v9794_v32 = vadd.f32 %v9793_v4, %v16191_v53 }
0x1830   : > { %v9716_v42 = vmul.f32 %v9628_v50, %v15940_v47  ;;  %v9702_v39 = vmul.f32 0.5, %v9701_v41  ;;  %v10678_v47 = vld [vmem:[#allocation2 + $0x168] sm:$0xf]  ;;  %v9835_v30 = vrot.slane %v9834_v25, 1  ;;  %v10675_v35 = vor.u32 %v10799_v33, %v10674_v9 }
0x1831   : > { %v9740_v3 = vmul.f32 %v15968_v34, %v9723_v48  ;;  %v9839_v27 = vrot.slane %v9838_v5, 2  ;;  %10011 = vmatpush.bf16.msra.mxu2 %v10683_v52  ;;  %v10679_v56 = vor.u32 %v10800_v11, %v10678_v47  ;;  %v9818_v55 = vadd.f32 %v9817_v63, %v9816_v54 }
0x1832   : > { %v9733_v16 = vmul.f32 %v15968_v34, %v9716_v42  ;;  %v9703_v22 = vsub.f32 1.5, %v9702_v39  ;;  %v9799_v48 = vrot.slane %v9798_v51, 1  ;;  %v9812_v58 = vadd.f32 %v9811_v62, %v9810_v59 }
0x1833   : > { %v9757_v19 = vadd.f32 %v15980_v14, %v9740_v3  ;;  %v9840_v49 = vadd.f32 %v9839_v27, %v9838_v5  ;;  %v10798_v5 = vld [vmem:[#allocation2 + $0xc8] sm:$0xf0]  ;;  %v9830_v12 = vadd.f32 %v9829_v37, %v9828_v10  ;;  %v9860_v44 = vmul.f32 0.125, %v9794_v32 }
0x1834   : > { %v9750_v29 = vadd.f32 %v15980_v14, %v9733_v16  ;;  %v9704_v31 = vmul.f32 %v16197_v24, %v9703_v22  ;;  %v9836_v42 = vadd.f32 %v9835_v30, %v9834_v25  ;;  %v10671_v4 = vor.u32 %v10798_v5, %v10670_v0  ;;  %v10797_v16 = vld [vmem:[#allocation2 + $0x60] sm:$0xf0] }
0x1835   : > { %v9843_v46 = vrot.slane %v9757_v19, 4  ;;  %10012 = vmatpush.bf16.msra.mxu2 %v10679_v56  ;;  %v9841_v18 = vrot.slane %v9840_v49, 1  ;;  %v9891_v7 = vpack.c.bf16 %v16176_v17, %v16176_v17  ;;  %v9924_v39 = vunpack.c.l.b16 %v9890_v38 }
0x1836   : > { %v9801_v8 = vrot.slane %v9750_v29, 4  ;;  %v9708_v23 = vsel %vm9707_vm15, %v16197_v24, %v9704_v31  ;;  %v9824_v24 = vadd.f32 %v9823_v43, %v9822_v2  ;;  %v9800_v52 = vadd.f32 %v9799_v48, %v9798_v51 }
0x1837   : > { %v9844_v28 = vadd.f32 %v9843_v46, %v9757_v19  ;;  %v9724_v40 = vmul.f32 %v9708_v23, %v15948_v6  ;;  %v9842_v26 = vadd.f32 %v9841_v18, %v9840_v49  ;;  %v9863_v54 = vmul.f32 0.125, %v9812_v58 }
0x1838   : > { %v9802_v20 = vadd.f32 %v9801_v8, %v9750_v29  ;;  %v9865_v61 = vmul.f32 0.125, %v9824_v24  ;;  %v9866_v27 = vmul.f32 0.125, %v9830_v12  ;;  %v9867_v11 = vmul.f32 0.125, %v9836_v42 }
0x1839   : > { %v9845_v36 = vrot.slane %v9844_v28, 2  ;;  %v9741_v1 = vmul.f32 %v15968_v34, %v9724_v40  ;;  %10013 = vmatpush.bf16.msra.mxu2 %v10675_v35  ;;  %v9864_v34 = vmul.f32 0.125, %v9818_v55  ;;  %v10667_v2 = vor.u32 %v10797_v16, %v10666_v15 }
0x183a   : > { %v9803_v57 = vrot.slane %v9802_v20, 2  ;;  %v9940_v17 = vsel %vm9939_vm0, %v9923_v21, %v16185_v60  ;;  %v9892_v29 = vpack.c.bf16 %v9860_v44, %v9860_v44  ;;  %v9868_v59 = vmul.f32 0.125, %v9842_v26 }
0x183b   : > { %v9846_v13 = vadd.f32 %v9845_v36, %v9844_v28  ;;  %v9758_v53 = vadd.f32 %v15980_v14, %v9741_v1  ;;  %v9896_v22 = vpack.c.bf16 %v9864_v34, %v9864_v34  ;;  %v9861_v45 = vmul.f32 0.125, %v9800_v52 }
0x183c   : > { %v9804_v50 = vadd.f32 %v9803_v57, %v9802_v20  ;;  %v9897_v38 = vpack.c.bf16 %v9865_v61, %v9865_v61  ;;  %v9895_v25 = vpack.c.bf16 %v9863_v54, %v9863_v54  ;;  %v9898_v8 = vpack.c.bf16 %v9866_v27, %v9866_v27 }
0x183d   : > { %v9847_v6 = vrot.slane %v9846_v13, 1  ;;  %v9849_v3 = vrot.slane %v9758_v53, 4  ;;  %10014 = vmatpush.bf16.msra.mxu2 %v10671_v4  ;;  %v9925_v63 = vunpack.c.l.b16 %v9891_v7  ;;  %v9899_v49 = vpack.c.bf16 %v9867_v11, %v9867_v11 }
0x183e   : > { %v9805_v41 = vrot.slane %v9804_v50, 1  ;;  %v9942_v28 = vsel %vm9941_vm14, %v9924_v39, %v9940_v17  ;;  %v9926_v9 = vunpack.c.l.b16 %v9892_v29  ;;  %v9930_v60 = vunpack.c.l.b16 %v9896_v22 }
0x183f   : > { %v9848_v14 = vadd.f32 %v9847_v6, %v9846_v13  ;;  %v9850_v19 = vadd.f32 %v9849_v3, %v9758_v53  ;;  %v9900_v21 = vpack.c.bf16 %v9868_v59, %v9868_v59  ;;  %v9931_v51 = vunpack.c.l.b16 %v9897_v38 }
0x1840   : > { %v9806_v47 = vadd.f32 %v9805_v41, %v9804_v50  ;;  %v9893_v20 = vpack.c.bf16 %v9861_v45, %v9861_v45  ;;  %v9929_v23 = vunpack.c.l.b16 %v9895_v25  ;;  %v9932_v62 = vunpack.c.l.b16 %v9898_v8  ;;  %v10902_v41 = vld [vmem:[%s16285_s2 + $0x14] ss:$0 sm:$0xff] }
0x1841   : > { %v9851_v10 = vrot.slane %v9850_v19, 2  ;;  %v9869_v46 = vmul.f32 0.125, %v9848_v14  ;;  %10015 = vmatpush.bf16.msra.mxu2 %v10667_v2  ;;  %v9933_v40 = vunpack.c.l.b16 %v9899_v49  ;;  %v9934_v30 = vunpack.c.l.b16 %v9900_v21 }
0x1842   : > { %v9862_v56 = vmul.f32 0.125, %v9806_v47  ;;  %v9951_v32 = vsel %vm9937_vm13, %v9930_v60, %v9929_v23  ;;  %v9944_v35 = vsel %vm9943_vm1, %v9925_v63, %v9942_v28  ;;  %v9927_v55 = vunpack.c.l.b16 %v9893_v20 }
0x1843   : > { %v9852_v31 = vadd.f32 %v9851_v10, %v9850_v19  ;;  %v9901_v43 = vpack.c.bf16 %v9869_v46, %v9869_v46  ;;  %v9946_v13 = vsel %vm9945_vm2, %v9926_v9, %v9944_v35  ;;  %v9952_v1 = vsel %vm9939_vm0, %v9931_v51, %v9951_v32 }
0x1844   : > { %v9894_v36 = vpack.c.bf16 %v9862_v56, %v9862_v56  ;;  %vm9947_vm3 = vcmask 1046534   ;;  %v9953_v48 = vsel %vm9941_vm14, %v9932_v62, %v9952_v1  ;;  %vm9949_vm4 = vcmask 1047559  }
0x1845   : > { %v9853_v33 = vrot.slane %v9852_v31, 1  ;;  %v9935_v18 = vunpack.c.l.b16 %v9901_v43  ;;  %v9954_v24 = vsel %vm9943_vm1, %v9933_v40, %v9953_v48  ;;  %v9948_v12 = vsel %vm9947_vm3, %v9927_v55, %v9946_v13 }
0x1846   : > { %v9928_v5 = vunpack.c.l.b16 %v9894_v36  ;;  %v9955_v58 = vsel %vm9945_vm2, %v9934_v30, %v9954_v24 }
0x1847   : > { %v9854_v37 = vadd.f32 %v9853_v33, %v9852_v31  ;;  %v9956_v6 = vsel %vm9947_vm3, %v9935_v18, %v9955_v58 }
0x1848   : > { %v9950_v53 = vsel %vm9949_vm4, %v9928_v5, %v9948_v12 }
0x1849   : > { %v9870_v57 = vmul.f32 0.125, %v9854_v37 }
0x184b   : > { %v9902_v0 = vpack.c.bf16 %v9870_v57, %v9870_v57 }
0x184d   : > { %v9936_v50 = vunpack.c.l.b16 %v9902_v0 }
0x184f   : > { %v9957_v44 = vsel %vm9949_vm4, %v9936_v50, %v9956_v6 }
0x1850   : > { %v9958_v42 = vpack.c.b16 %v9957_v44, %v9950_v53 }
0x1852   : > { %10016 = vmatmul.bf16.vlgmr.msra.gmra.mxu2 %v9958_v42 }
0x18d5   : > { %v10017_v4 = vpop.f32.mrf.mxu2 }
0x18d6   : > { %v10018_v7 = vadd.f32 %v10902_v41, %v10017_v4 }
0x18d8   : > { %10022 = vst [vmem:[%s181_s28] sm:$0xff] %v10018_v7 }
0x18dd   : > { %v10019_v34 = vpop.f32.mrf.mxu2 }
0x18de   : > { %v10020_v26 = vadd.f32 %v10902_v41, %v10019_v34 }
0x18e0   : > { %10023 = vst [vmem:[%s181_s28 + $0x8] sm:$0xff] %v10020_v26 }
0x18e1   : > { %11601 = shalt.err (!%p11598_p8)
}
0x18e2   : > { %s11647_s20 = smov 128   ;;  %s11648_s24 = smov 8  }
0x18e3   : > { %10830 = dma.vmem_to_hbm [thread:$0]  (%p11707_p5), %s10038_s6, 256, %s10040_s7, %s10025_s8, %s11647_s20, %s11647_s20, %s11648_s24  }
0x18e4 PF: > { %p10842_p9 = scmp.ge.s32.totalorder %s11640_s15, 2  ;;  %s10054_s25 = sand.u32 1, %s11628_s12  }
0x18e5   : > { %s10055_s26 = scalar_lea.sflag [#allocation4], %s10054_s25 }
0x18e6   : > { %p10837_p10 = pnand %p10842_p9, %p11711_p6 }
0x18e8   : > { %p10838_p11 = pneg %p10837_p10 }
0x18ea   : > { %11623 = dma.done.wait (%p10838_p11), %s10055_s26, 256  }
0x18eb   : > { %11625 = vsyncadd (%p10838_p11), %s10055_s26, 4294967040  ;;  %p14_p12 = scmp.ge.s32.totalorder %s11694_s18, 6   ;;  %s16859_s12 = smov %s11632_s13 }
0x18ec   : > { %s16860_s13 = smov %s11636_s14  ;;  %s16861_s14 = smov %s11705_s21 }
0x18ed   : > { %s16862_s15 = smov %s11694_s18  ;;  %16 = sbr.rel (!%p14_p12) target bundleno = 4 (0x4), region = 72 }
0x18f2   :  { %10061 = vsyncpa [#allocation3], 1 }
0x18f3   :  { %10063 = vsyncpa [#allocation3 + $0x1], 1 }
0x18f4   :  { %10064 = vsyncpa [#allocation4], 1 }
0x18f5   :  { %10066 = vsyncpa [#allocation4 + $0x1], 1 }

</bundles_post_ra>
